<compile_context>
chip_gen: v5e
topology: v5e:2x2
jax: 0.10.0
libtpu: 0.0.40
codegen_flags: <defaults>
</compile_context>

<pallas_src>
import jax
import jax.numpy as jnp
from jax.experimental import pallas as pl
from jax.experimental.pallas import tpu as pltpu

# Problem sizes implied by the module: spw = 20, choose nmuscles = 4 (small synthetic)
SPW = 20
NMUSCLES = 4
IN_DIM = SPW * NMUSCLES      # 80
IN_PAD = 128                 # lane-dense padded input width
H1, H2, H3 = 1024, 512, 128
OUT = 1                      # real output width
OUT_PAD = 128                # lane-dense padded output width (unmasked stores)

BATCH = 256                  # rows per call
TILE_B = 256                 # rows per grid step -> grid=(1,) at this batch


def mlp_kernel(x_ref, w1_ref, b1_ref, w2_ref, b2_ref,
               w3_ref, b3_ref, w4_ref, b4_ref, o_ref):
    # One grid step = one TILE_B-row slab of the batch. Weights/biases use constant
    # index_maps, so their VMEM tiles persist across grid steps (single DMA total).
    # All matmuls run bf16 x bf16 on the MXU with f32 accumulation; bias-add / ReLU
    # on the VPU in f32; sigmoid on the EUP. No intermediate HBM round-trips.
    x = x_ref[...].astype(jnp.bfloat16)                                  # (TILE_B, 128)

    h1 = jnp.dot(x, w1_ref[...], preferred_element_type=jnp.float32) + b1_ref[...]
    h1 = jnp.maximum(h1, 0.0).astype(jnp.bfloat16)

    # l2_dropout: identity in eval mode
    h2 = jnp.dot(h1, w2_ref[...], preferred_element_type=jnp.float32) + b2_ref[...]
    h2 = jnp.maximum(h2, 0.0).astype(jnp.bfloat16)

    # l3_dropout: identity in eval mode
    h3 = jnp.dot(h2, w3_ref[...], preferred_element_type=jnp.float32) + b3_ref[...]
    h3 = jnp.maximum(h3, 0.0).astype(jnp.bfloat16)

    # Last layer padded to width 128 -> lane-dense (unmasked) output stores.
    logits = jnp.dot(h3, w4_ref[...], preferred_element_type=jnp.float32) + b4_ref[...]
    o_ref[...] = jax.nn.sigmoid(logits)                                  # f32 (TILE_B, 128)


def model4_forward(x_padded, params):
    """x_padded: f32 [B, IN_PAD] (80 real features + zero padding, padded once at
    data-prep time). params: bf16 weights ([in,out]; W1 rows padded to IN_PAD, W4
    cols padded to OUT_PAD) and f32 biases ([1,out]; b4 padded to OUT_PAD).
    Returns f32 [B, 1]."""
    w1, b1, w2, b2, w3, b3, w4, b4 = params
    B = x_padded.shape[0]

    # Pad batch to a TILE_B multiple (static no-op at BATCH=256).
    b_pad = (-B) % TILE_B
    if b_pad:
        x_padded = jnp.pad(x_padded, ((0, b_pad), (0, 0)))
    Bp = B + b_pad
    grid = (Bp // TILE_B,)

    def const_spec(a):
        # Full-array block with a constant index_map: DMA'd once, VMEM-resident
        # across all grid steps.
        return pl.BlockSpec(a.shape, lambda i: (0,) * a.ndim)

    out = pl.pallas_call(
        mlp_kernel,
        out_shape=jax.ShapeDtypeStruct((Bp, OUT_PAD), jnp.float32),
        grid=grid,
        in_specs=[pl.BlockSpec((TILE_B, IN_PAD), lambda i: (i, 0)),
                  const_spec(w1), const_spec(b1),
                  const_spec(w2), const_spec(b2),
                  const_spec(w3), const_spec(b3),
                  const_spec(w4), const_spec(b4)],
        out_specs=pl.BlockSpec((TILE_B, OUT_PAD), lambda i: (i, 0)),
        # Keep the batch axis sequential on one TC (weights DMA'd once). On v7x,
        # switch to ("parallel",) only once batch >= ~1-2K rows (many TILE_B tiles).
        compiler_params=pltpu.CompilerParams(dimension_semantics=("arbitrary",)),
    )(x_padded, w1, b1, w2, b2, w3, b3, w4, b4)

    # Drop batch padding and the padded output lanes (only column 0 is real).
    return out[:B, :OUT]


def init_linear(key, fan_in, fan_out, pad_in=None, pad_out=None):
    # Mimics torch.nn.Linear default init: U(-1/sqrt(fan_in), 1/sqrt(fan_in)).
    # Weight stored [in, out] in bf16 (optionally zero-padded on either dim);
    # bias stored [1, out] in f32 (optionally zero-padded on the out dim).
    kw, kb = jax.random.split(key)
    bound = 1.0 / jnp.sqrt(jnp.float32(fan_in))
    w = jax.random.uniform(kw, (fan_in, fan_out), jnp.float32, -bound, bound)
    b = jax.random.uniform(kb, (1, fan_out), jnp.float32, -bound, bound)
    if pad_in is not None and pad_in > fan_in:
        w = jnp.pad(w, ((0, pad_in - fan_in), (0, 0)))
    if pad_out is not None and pad_out > fan_out:
        w = jnp.pad(w, ((0, 0), (0, pad_out - fan_out)))
        b = jnp.pad(b, ((0, 0), (0, pad_out - fan_out)))
    return w.astype(jnp.bfloat16), b


def reference_forward(x_padded, params):
    # Pure-JAX reference using the *same* bf16 weights / f32 accumulation so the
    # comparison is apples-to-apples. Zero-padded columns of W4/b4 only affect the
    # discarded output lanes, so column 0 matches the unpadded model exactly.
    w1, b1, w2, b2, w3, b3, w4, b4 = params
    xb = x_padded.astype(jnp.bfloat16)
    h = jnp.maximum(jnp.dot(xb, w1, preferred_element_type=jnp.float32) + b1, 0.0)
    h = jnp.maximum(jnp.dot(h.astype(jnp.bfloat16), w2,
                            preferred_element_type=jnp.float32) + b2, 0.0)
    h = jnp.maximum(jnp.dot(h.astype(jnp.bfloat16), w3,
                            preferred_element_type=jnp.float32) + b3, 0.0)
    logits = jnp.dot(h.astype(jnp.bfloat16), w4,
                     preferred_element_type=jnp.float32) + b4
    return jax.nn.sigmoid(logits)[:, :OUT]


if __name__ == "__main__":
    key = jax.random.PRNGKey(0)
    kx, k1, k2, k3, k4 = jax.random.split(key, 5)

    # Data prep (done once, outside the kernel hot path): pad features 80 -> 128.
    x = jax.random.normal(kx, (BATCH, IN_DIM), jnp.float32)
    x_padded = jnp.pad(x, ((0, 0), (0, IN_PAD - IN_DIM)))

    w1, b1 = init_linear(k1, IN_DIM, H1, pad_in=IN_PAD)      # W1 rows padded 80->128
    w2, b2 = init_linear(k2, H1, H2)
    w3, b3 = init_linear(k3, H2, H3)
    w4, b4 = init_linear(k4, H3, OUT, pad_out=OUT_PAD)       # W4/b4 cols padded 1->128
    params = (w1, b1, w2, b2, w3, b3, w4, b4)

    y = model4_forward(x_padded, params)
    y = jax.block_until_ready(y)

    y_ref = reference_forward(x_padded, params)
    assert y.shape == (BATCH, OUT)
    assert jnp.allclose(y, y_ref, atol=1e-3, rtol=1e-3), "mismatch vs JAX reference"

    print("KERNEL_OK")
</pallas_src>

<mosaic_0001>
module attributes {stable_mosaic.version = 11 : i64} {
  func.func @mlp_kernel(%arg0: i32, %arg1: memref<256x128xf32, #tpu.memory_space<vmem>>, %arg2: memref<128x1024xbf16, #tpu.memory_space<vmem>>, %arg3: memref<1x1024xf32, #tpu.memory_space<vmem>>, %arg4: memref<1024x512xbf16, #tpu.memory_space<vmem>>, %arg5: memref<1x512xf32, #tpu.memory_space<vmem>>, %arg6: memref<512x128xbf16, #tpu.memory_space<vmem>>, %arg7: memref<1x128xf32, #tpu.memory_space<vmem>>, %arg8: memref<128x128xbf16, #tpu.memory_space<vmem>>, %arg9: memref<1x128xf32, #tpu.memory_space<vmem>>, %arg10: memref<256x128xf32, #tpu.memory_space<vmem>>) attributes {dimension_semantics = [#tpu.dimension_semantics<arbitrary>], iteration_bounds = array<i64: 1>, scalar_prefetch = 0 : i64, scratch_operands = 0 : i64, tpu.core_type = #tpu.core_type<tc>, window_params = [{transform_indices = @transform_0, window_bounds = array<i64: 256, 128>}, {pipeline_mode = #tpu.pipeline_mode<synchronous>, transform_indices = @transform_1, window_bounds = array<i64: 128, 1024>}, {pipeline_mode = #tpu.pipeline_mode<synchronous>, transform_indices = @transform_2, window_bounds = array<i64: 1, 1024>}, {pipeline_mode = #tpu.pipeline_mode<synchronous>, transform_indices = @transform_3, window_bounds = array<i64: 1024, 512>}, {pipeline_mode = #tpu.pipeline_mode<synchronous>, transform_indices = @transform_4, window_bounds = array<i64: 1, 512>}, {pipeline_mode = #tpu.pipeline_mode<synchronous>, transform_indices = @transform_5, window_bounds = array<i64: 512, 128>}, {pipeline_mode = #tpu.pipeline_mode<synchronous>, transform_indices = @transform_6, window_bounds = array<i64: 1, 128>}, {pipeline_mode = #tpu.pipeline_mode<synchronous>, transform_indices = @transform_7, window_bounds = array<i64: 128, 128>}, {pipeline_mode = #tpu.pipeline_mode<synchronous>, transform_indices = @transform_8, window_bounds = array<i64: 1, 128>}, {transform_indices = @transform_9, window_bounds = array<i64: 256, 128>}]} {
    %c0 = arith.constant 0 : index
    %c0_0 = arith.constant 0 : index
    %0 = vector.load %arg1[%c0, %c0_0] : memref<256x128xf32, #tpu.memory_space<vmem>>, vector<256x128xf32>
    %1 = arith.truncf %0 : vector<256x128xf32> to vector<256x128xbf16>
    %c0_1 = arith.constant 0 : index
    %c0_2 = arith.constant 0 : index
    %2 = vector.load %arg2[%c0_1, %c0_2] : memref<128x1024xbf16, #tpu.memory_space<vmem>>, vector<128x1024xbf16>
    %cst = arith.constant dense<0.000000e+00> : vector<256x1024xf32>
    %3 = tpu.matmul %1, %2, %cst {dimension_numbers = #tpu.dot_dimension_numbers<[1], [0], [0], [1], [0, 0, 1, 1], [], []>} : vector<256x128xbf16>, vector<128x1024xbf16>, vector<256x1024xf32> -> vector<256x1024xf32>
    %c0_3 = arith.constant 0 : index
    %c0_4 = arith.constant 0 : index
    %4 = vector.load %arg3[%c0_3, %c0_4] : memref<1x1024xf32, #tpu.memory_space<vmem>>, vector<1x1024xf32>
    %5 = vector.broadcast %4 : vector<1x1024xf32> to vector<256x1024xf32>
    %6 = arith.addf %3, %5 : vector<256x1024xf32>
    %cst_5 = arith.constant 0.000000e+00 : f32
    %7 = vector.broadcast %cst_5 : f32 to vector<256x1024xf32>
    %8 = arith.maximumf %6, %7 : vector<256x1024xf32>
    %9 = arith.truncf %8 : vector<256x1024xf32> to vector<256x1024xbf16>
    %c0_6 = arith.constant 0 : index
    %c0_7 = arith.constant 0 : index
    %10 = vector.load %arg4[%c0_6, %c0_7] : memref<1024x512xbf16, #tpu.memory_space<vmem>>, vector<1024x512xbf16>
    %cst_8 = arith.constant dense<0.000000e+00> : vector<256x512xf32>
    %11 = tpu.matmul %9, %10, %cst_8 {dimension_numbers = #tpu.dot_dimension_numbers<[1], [0], [0], [1], [0, 0, 1, 1], [], []>} : vector<256x1024xbf16>, vector<1024x512xbf16>, vector<256x512xf32> -> vector<256x512xf32>
    %c0_9 = arith.constant 0 : index
    %c0_10 = arith.constant 0 : index
    %12 = vector.load %arg5[%c0_9, %c0_10] : memref<1x512xf32, #tpu.memory_space<vmem>>, vector<1x512xf32>
    %13 = vector.broadcast %12 : vector<1x512xf32> to vector<256x512xf32>
    %14 = arith.addf %11, %13 : vector<256x512xf32>
    %cst_11 = arith.constant 0.000000e+00 : f32
    %15 = vector.broadcast %cst_11 : f32 to vector<256x512xf32>
    %16 = arith.maximumf %14, %15 : vector<256x512xf32>
    %17 = arith.truncf %16 : vector<256x512xf32> to vector<256x512xbf16>
    %c0_12 = arith.constant 0 : index
    %c0_13 = arith.constant 0 : index
    %18 = vector.load %arg6[%c0_12, %c0_13] : memref<512x128xbf16, #tpu.memory_space<vmem>>, vector<512x128xbf16>
    %cst_14 = arith.constant dense<0.000000e+00> : vector<256x128xf32>
    %19 = tpu.matmul %17, %18, %cst_14 {dimension_numbers = #tpu.dot_dimension_numbers<[1], [0], [0], [1], [0, 0, 1, 1], [], []>} : vector<256x512xbf16>, vector<512x128xbf16>, vector<256x128xf32> -> vector<256x128xf32>
    %c0_15 = arith.constant 0 : index
    %c0_16 = arith.constant 0 : index
    %20 = vector.load %arg7[%c0_15, %c0_16] : memref<1x128xf32, #tpu.memory_space<vmem>>, vector<1x128xf32>
    %21 = vector.broadcast %20 : vector<1x128xf32> to vector<256x128xf32>
    %22 = arith.addf %19, %21 : vector<256x128xf32>
    %cst_17 = arith.constant 0.000000e+00 : f32
    %23 = vector.broadcast %cst_17 : f32 to vector<256x128xf32>
    %24 = arith.maximumf %22, %23 : vector<256x128xf32>
    %25 = arith.truncf %24 : vector<256x128xf32> to vector<256x128xbf16>
    %c0_18 = arith.constant 0 : index
    %c0_19 = arith.constant 0 : index
    %26 = vector.load %arg8[%c0_18, %c0_19] : memref<128x128xbf16, #tpu.memory_space<vmem>>, vector<128x128xbf16>
    %cst_20 = arith.constant dense<0.000000e+00> : vector<256x128xf32>
    %27 = tpu.matmul %25, %26, %cst_20 {dimension_numbers = #tpu.dot_dimension_numbers<[1], [0], [0], [1], [0, 0, 1, 1], [], []>} : vector<256x128xbf16>, vector<128x128xbf16>, vector<256x128xf32> -> vector<256x128xf32>
    %c0_21 = arith.constant 0 : index
    %c0_22 = arith.constant 0 : index
    %28 = vector.load %arg9[%c0_21, %c0_22] : memref<1x128xf32, #tpu.memory_space<vmem>>, vector<1x128xf32>
    %29 = vector.broadcast %28 : vector<1x128xf32> to vector<256x128xf32>
    %30 = arith.addf %27, %29 : vector<256x128xf32>
    %31 = arith.negf %30 : vector<256x128xf32>
    %32 = math.exp %31 : vector<256x128xf32>
    %cst_23 = arith.constant 1.000000e+00 : f32
    %33 = vector.broadcast %cst_23 : f32 to vector<256x128xf32>
    %34 = arith.addf %33, %32 : vector<256x128xf32>
    %35 = arith.divf %33, %34 : vector<256x128xf32>
    %c0_24 = arith.constant 0 : index
    %c0_25 = arith.constant 0 : index
    %36 = vector.load %arg10[%c0_24, %c0_25] : memref<256x128xf32, #tpu.memory_space<vmem>>, vector<256x128xf32>
    tpu.vector_store %arg10[%c0_24, %c0_25], %35 {strides = array<i32>} : memref<256x128xf32, #tpu.memory_space<vmem>>, vector<256x128xf32>,
    return
  }
  func.func @transform_0(%arg0: i32) -> (i32, i32) {
    %c0_i32 = arith.constant 0 : i32
    %c0_i32_0 = arith.constant 0 : i32
    return %arg0, %c0_i32 : i32, i32
  }
  func.func @transform_1(%arg0: i32) -> (i32, i32) {
    %c0_i32 = arith.constant 0 : i32
    %c0_i32_0 = arith.constant 0 : i32
    %c0_i32_1 = arith.constant 0 : i32
    return %c0_i32, %c0_i32_0 : i32, i32
  }
  func.func @transform_2(%arg0: i32) -> (i32, i32) {
    %c0_i32 = arith.constant 0 : i32
    %c0_i32_0 = arith.constant 0 : i32
    %c0_i32_1 = arith.constant 0 : i32
    return %c0_i32, %c0_i32_0 : i32, i32
  }
  func.func @transform_3(%arg0: i32) -> (i32, i32) {
    %c0_i32 = arith.constant 0 : i32
    %c0_i32_0 = arith.constant 0 : i32
    %c0_i32_1 = arith.constant 0 : i32
    return %c0_i32, %c0_i32_0 : i32, i32
  }
  func.func @transform_4(%arg0: i32) -> (i32, i32) {
    %c0_i32 = arith.constant 0 : i32
    %c0_i32_0 = arith.constant 0 : i32
    %c0_i32_1 = arith.constant 0 : i32
    return %c0_i32, %c0_i32_0 : i32, i32
  }
  func.func @transform_5(%arg0: i32) -> (i32, i32) {
    %c0_i32 = arith.constant 0 : i32
    %c0_i32_0 = arith.constant 0 : i32
    %c0_i32_1 = arith.constant 0 : i32
    return %c0_i32, %c0_i32_0 : i32, i32
  }
  func.func @transform_6(%arg0: i32) -> (i32, i32) {
    %c0_i32 = arith.constant 0 : i32
    %c0_i32_0 = arith.constant 0 : i32
    %c0_i32_1 = arith.constant 0 : i32
    return %c0_i32, %c0_i32_0 : i32, i32
  }
  func.func @transform_7(%arg0: i32) -> (i32, i32) {
    %c0_i32 = arith.constant 0 : i32
    %c0_i32_0 = arith.constant 0 : i32
    %c0_i32_1 = arith.constant 0 : i32
    return %c0_i32, %c0_i32_0 : i32, i32
  }
  func.func @transform_8(%arg0: i32) -> (i32, i32) {
    %c0_i32 = arith.constant 0 : i32
    %c0_i32_0 = arith.constant 0 : i32
    %c0_i32_1 = arith.constant 0 : i32
    return %c0_i32, %c0_i32_0 : i32, i32
  }
  func.func @transform_9(%arg0: i32) -> (i32, i32) {
    %c0_i32 = arith.constant 0 : i32
    %c0_i32_0 = arith.constant 0 : i32
    return %arg0, %c0_i32 : i32, i32
  }
}

</mosaic_0001>

<bundles_post_ra>
// kernel: tpu_custom_call.1
= control target key start
LH: loop header
LB: loop body
LE: loop exit
PB: predicated region body
PF: predicated region fallthrough
CT: control target
= control target key end

     0   :  { %14 = vsyncpa [#allocation3], 0  ;;  %s12607_s0 = inlined_call_operand.hbm [shape: f32[256,128], index: 0, kind: input, shape index: {}]   ;;  %s12608_s1 = inlined_call_operand.hbm [shape: bf16[128,1024], index: 1, kind: input, shape index: {}]   ;;  %s12609_s2 = inlined_call_operand.hbm [shape: f32[1,1024], index: 2, kind: input, shape index: {}]   ;;  %s12610_s3 = inlined_call_operand.hbm [shape: bf16[1024,512], index: 3, kind: input, shape index: {}]   ;;  %s12611_s4 = inlined_call_operand.hbm [shape: f32[1,512], index: 4, kind: input, shape index: {}]   ;;  %s12612_s5 = inlined_call_operand.hbm [shape: bf16[512,128], index: 5, kind: input, shape index: {}]   ;;  %s12613_s6 = inlined_call_operand.vmem [shape: f32[1,128], index: 6, kind: input, shape index: {}]   ;;  %s12614_s7 = inlined_call_operand.hbm [shape: bf16[128,128], index: 7, kind: input, shape index: {}]   ;;  %s12615_s8 = inlined_call_operand.vmem [shape: f32[1,128], index: 8, kind: input, shape index: {}]   ;;  %s12616_s9 = inlined_call_operand.hbm [shape: f32[256,128], index: 9, kind: output, shape index: {}]  }
   0x1   :  { %15 = vsyncpa [#allocation6], 0 }
   0x2   :  { %16 = vsyncpa [#allocation9], 0 }
   0x3   :  { %17 = vsyncpa [#allocation12], 0  ;;  %s36_s11 = sshll.u32 %s12608_s1, 4  ;;  %s37_s11 = int_to_ptr.hbm [resolvable:$true] %s36_s11 }
   0x4   :  { %18 = vsyncpa [#allocation4], 0  ;;  %s9963_s12 = smov [#allocation5]   ;;  %s60_s16 = sshll.u32 %s12610_s3, 4  ;;  %s61_s16 = int_to_ptr.hbm [resolvable:$true] %s60_s16 }
   0x5   :  { %s38_s13 = sshll.u32 %s9963_s12, 4  ;;  %s9964_s17 = smov 512   ;;  %s39_s13 = int_to_ptr.vmem [resolvable:$true] %s38_s13 }
   0x6   :  { %s9965_s18 = smov 32   ;;  %s9966_s19 = smov [#allocation8]  }
   0x7   :  { %44 = dma.hbm_to_vmem [thread:$0]  %s37_s11, 8192, %s39_s13, [#allocation6], %s9964_s17, %s9964_s17, %s9965_s18  }
   0x8   :  { %s62_s20 = sshll.u32 %s9966_s19, 4  ;;  %s9967_s21 = smov 256   ;;  %s63_s20 = int_to_ptr.vmem [resolvable:$true] %s62_s20 }
   0x9   :  { %s9968_s22 = smov 16   ;;  %s84_s24 = sshll.u32 %s12612_s5, 4  ;;  %s85_s24 = int_to_ptr.hbm [resolvable:$true] %s84_s24 }
   0xa   :  { %68 = dma.hbm_to_vmem [thread:$0]  %s61_s16, 32768, %s63_s20, [#allocation9], %s9967_s21, %s9967_s21, %s9968_s22  }
   0xb   :  { %s9969_s25 = smov [#allocation11]   ;;  %s23_s28 = sshll.u32 %s12607_s0, 4  ;;  %s24_s28 = int_to_ptr.hbm [resolvable:$true] %s23_s28 }
   0xc   :  { %s86_s26 = sshll.u32 %s9969_s25, 4  ;;  %s9970_s29 = smov 64   ;;  %s87_s26 = int_to_ptr.vmem [resolvable:$true] %s86_s26 }
   0xd   :  { %s9971_s30 = smov 4   ;;  %s9972_s10 = smov [#allocation2]  }
   0xe   :  { %92 = dma.hbm_to_vmem [thread:$0]  %s85_s24, 4096, %s87_s26, [#allocation12], %s9970_s29, %s9970_s29, %s9971_s30  }
   0xf   :  { %s25_s11 = sshll.u32 %s9972_s10, 4  ;;  %s9973_s12 = smov 128   ;;  %s26_s11 = int_to_ptr.vmem [resolvable:$true] %s25_s11 }
  0x10   :  { %s9974_s5 = smov 8   ;;  %s50_s0 = sshll.u32 %s12609_s2, 4  ;;  %s51_s0 = int_to_ptr.hbm [resolvable:$true] %s50_s0 }
  0x11   :  { %31 = dma.hbm_to_vmem [thread:$0]  %s24_s28, 4096, %s26_s11, [#allocation3], %s9973_s12, %s9973_s12, %s9974_s5  }
  0x12   :  { %s9975_s15 = smov [#allocation7]   ;;  %s74_s19 = sshll.u32 %s12611_s4, 4  ;;  %s75_s19 = int_to_ptr.hbm [resolvable:$true] %s74_s19 }
  0x13   :  { %s52_s16 = sshll.u32 %s9975_s15, 4  ;;  %s9976_s20 = smov [#allocation10]   ;;  %s53_s16 = int_to_ptr.vmem [resolvable:$true] %s52_s16 }
  0x14   :  { %55 = dma.hbm_to_vmem [thread:$0]  %s51_s0, 128, %s53_s16, [#allocation6]  }
  0x15   :  { %s76_s21 = sshll.u32 %s9976_s20, 4  ;;  %s99_s23 = sshll.u32 %s12614_s7, 4  ;;  %s77_s21 = int_to_ptr.vmem [resolvable:$true] %s76_s21  ;;  %s100_s23 = int_to_ptr.hbm [resolvable:$true] %s99_s23 }
  0x16   :  { %79 = dma.hbm_to_vmem [thread:$0]  %s75_s19, 64, %s77_s21, [#allocation9]  }
  0x17   :  { %s9977_s2 = smov [#allocation13]  }
  0x18   :  { %s101_s24 = sshll.u32 %s9977_s2, 4  ;;  %s102_s24 = int_to_ptr.vmem [resolvable:$true] %s101_s24 }
  0x19   :  { %107 = dma.hbm_to_vmem [thread:$0]  %s100_s23, 1024, %s102_s24, [#allocation12], %s9970_s29, %s9970_s29, %s9971_s30  }
  0x1a   :  { %9953 = dma.done.wait [#allocation3], 4096  }
  0x1b   :  { %9954 = vsyncadd [#allocation3], 4294963200 }
  0x1c   :  { %9955 = dma.done.wait [#allocation6], 8320  }
  0x1d   :  { %9956 = vsyncadd [#allocation6], 4294958976 }
  0x1e   :  { %9957 = dma.done.wait [#allocation9], 32832  }
  0x1f   :  { %9958 = vsyncadd [#allocation9], 4294934464 }
  0x20   :  { %9959 = dma.done.wait [#allocation12], 5120  }
  0x21   :  { %9960 = vsyncadd [#allocation12], 4294962176  ;;  %v7979_v0 = vld [vmem:[#allocation5 + $0x1c0] sm:$0xf]  ;;  %v139_v24 = vld [vmem:[#allocation2 + $0x8] sm:$0xff]  ;;  %s7737_s11 = sshll.u32 %s12616_s9, 4  ;;  %s7738_s11 = int_to_ptr.hbm [resolvable:$true] %s7737_s11 }
  0x22   :  { %v9285_v1 = vld [vmem:[#allocation5 + $0x1dc] sm:$0xf0]  ;;  %v7987_v25 = vld [vmem:[#allocation5 + $0x1c8] sm:$0xf]  ;;  %v9282_v27 = vld [vmem:[#allocation5 + $0x1cc] sm:$0xf] }
  0x23   :  { %v7947_v2 = vld [vmem:[#allocation5 + $0x180] sm:$0xf]  ;;  %v7980_v3 = vor.u32 %v9285_v1, %v7979_v0  ;;  %v9286_v26 = vld [vmem:[#allocation5 + $0x1e4] sm:$0xf0]  ;;  %v7989_v28 = vld [vmem:[#allocation5 + $0x1e8] sm:$0xf0] }
  0x24   :  { %v9277_v4 = vld [vmem:[#allocation5 + $0x19c] sm:$0xf0]  ;;  %v147_v31 = vld [vmem:[#allocation2 + $0x48] sm:$0xff]  ;;  %v7988_v36 = vor.u32 %v9286_v26, %v7987_v25  ;;  %v7992_v37 = vor.u32 %v9282_v27, %v7989_v28  ;;  %v9281_v38 = vld [vmem:[#allocation5 + $0x1c4] sm:$0xf] }
  0x25   :  { %588 = vmatpush.bf16.msra.mxu0 %v7980_v3  ;;  %9585 = vmatpush.bf16.msra.mxu1 %v7980_v3  ;;  %v7948_v5 = vor.u32 %v9277_v4, %v7947_v2  ;;  %v7915_v6 = vld [vmem:[#allocation5 + $0x140] sm:$0xf]  ;;  %v155_v33 = vld [vmem:[#allocation2 + $0x88] sm:$0xff]  ;;  %v7981_v39 = vld [vmem:[#allocation5 + $0x1e0] sm:$0xf0] }
  0x26   :  { %9586 = vmatpush.bf16.msra.mxu2 %v7980_v3  ;;  %9587 = vmatpush.bf16.msra.mxu3 %v7980_v3  ;;  %v9269_v7 = vld [vmem:[#allocation5 + $0x15c] sm:$0xf0]  ;;  %v163_v35 = vld [vmem:[#allocation2 + $0xc8] sm:$0xff]  ;;  %v7984_v48 = vor.u32 %v9281_v38, %v7981_v39  ;;  %v9273_v49 = vld [vmem:[#allocation5 + $0x184] sm:$0xf] }
  0x27   :  { %v7916_v8 = vor.u32 %v9269_v7, %v7915_v6  ;;  %v7883_v9 = vld [vmem:[#allocation5 + $0x100] sm:$0xf]  ;;  %v7955_v40 = vld [vmem:[#allocation5 + $0x188] sm:$0xf]  ;;  %v9274_v44 = vld [vmem:[#allocation5 + $0x18c] sm:$0xf] }
  0x28   :  { %v9261_v10 = vld [vmem:[#allocation5 + $0x11c] sm:$0xf0]  ;;  %v9278_v43 = vld [vmem:[#allocation5 + $0x1a4] sm:$0xf0]  ;;  %v7957_v45 = vld [vmem:[#allocation5 + $0x1a8] sm:$0xf0] }
  0x29   :  { %589 = vmatpush.bf16.msra.mxu0 %v7948_v5  ;;  %9588 = vmatpush.bf16.msra.mxu1 %v7948_v5  ;;  %v7884_v11 = vor.u32 %v9261_v10, %v7883_v9  ;;  %v7851_v12 = vld [vmem:[#allocation5 + $0xc0] sm:$0xf]  ;;  %v7949_v50 = vld [vmem:[#allocation5 + $0x1a0] sm:$0xf0]  ;;  %v7956_v51 = vor.u32 %v9278_v43, %v7955_v40  ;;  %v7960_v52 = vor.u32 %v9274_v44, %v7957_v45  ;;  %v7923_v53 = vld [vmem:[#allocation5 + $0x148] sm:$0xf] }
  0x2a   :  { %9589 = vmatpush.bf16.msra.mxu2 %v7948_v5  ;;  %9590 = vmatpush.bf16.msra.mxu3 %v7948_v5  ;;  %v9253_v13 = vld [vmem:[#allocation5 + $0xdc] sm:$0xf0]  ;;  %v9270_v54 = vld [vmem:[#allocation5 + $0x164] sm:$0xf0]  ;;  %v9266_v55 = vld [vmem:[#allocation5 + $0x14c] sm:$0xf]  ;;  %v7952_v60 = vor.u32 %v9273_v49, %v7949_v50 }
  0x2b   :  { %v7852_v14 = vor.u32 %v9253_v13, %v7851_v12  ;;  %v7819_v15 = vld [vmem:[#allocation5 + $0x80] sm:$0xf]  ;;  %v7925_v56 = vld [vmem:[#allocation5 + $0x168] sm:$0xf0]  ;;  %v7995_v57 = vld [vmem:[#allocation5 + $0x1d0] sm:$0xf]  ;;  %v7924_v63 = vor.u32 %v9270_v54, %v7923_v53 }
  0x2c   :  { %v9245_v16 = vld [vmem:[#allocation5 + $0x9c] sm:$0xf0]  ;;  %v9287_v58 = vld [vmem:[#allocation5 + $0x1ec] sm:$0xf0]  ;;  %v9265_v61 = vld [vmem:[#allocation5 + $0x144] sm:$0xf]  ;;  %v7928_v0 = vor.u32 %v9266_v55, %v7925_v56 }
  0x2d   :  { %590 = vmatpush.bf16.msra.mxu0 %v7916_v8  ;;  %9591 = vmatpush.bf16.msra.mxu1 %v7916_v8  ;;  %v7820_v17 = vor.u32 %v9245_v16, %v7819_v15  ;;  %v7787_v18 = vld [vmem:[#allocation5 + $0x40] sm:$0xf]  ;;  %v7996_v59 = vor.u32 %v9287_v58, %v7995_v57  ;;  %v7917_v62 = vld [vmem:[#allocation5 + $0x160] sm:$0xf0]  ;;  %v7891_v1 = vld [vmem:[#allocation5 + $0x108] sm:$0xf] }
  0x2e   :  { %9592 = vmatpush.bf16.msra.mxu2 %v7916_v8  ;;  %9593 = vmatpush.bf16.msra.mxu3 %v7916_v8  ;;  %v9237_v19 = vld [vmem:[#allocation5 + $0x5c] sm:$0xf0]  ;;  %v7963_v2 = vld [vmem:[#allocation5 + $0x190] sm:$0xf]  ;;  %v9262_v4 = vld [vmem:[#allocation5 + $0x124] sm:$0xf0]  ;;  %v7920_v10 = vor.u32 %v9265_v61, %v7917_v62 }
  0x2f   :  { %v7788_v20 = vor.u32 %v9237_v19, %v7787_v18  ;;  %v7755_v21 = vld [vmem:[#allocation5] sm:$0xf]  ;;  %v9279_v3 = vld [vmem:[#allocation5 + $0x1ac] sm:$0xf0]  ;;  %v9258_v5 = vld [vmem:[#allocation5 + $0x10c] sm:$0xf]  ;;  %v7892_v15 = vor.u32 %v9262_v4, %v7891_v1 }
  0x30   :  { %v9229_v22 = vld [vmem:[#allocation5 + $0x1c] sm:$0xf0]  ;;  %v7893_v6 = vld [vmem:[#allocation5 + $0x128] sm:$0xf0]  ;;  %v7964_v7 = vor.u32 %v9279_v3, %v7963_v2  ;;  %v7931_v8 = vld [vmem:[#allocation5 + $0x150] sm:$0xf] }
  0x31   :  { %591 = vmatpush.bf16.msra.mxu0 %v7884_v11  ;;  %9594 = vmatpush.bf16.msra.mxu1 %v7884_v11  ;;  %v138_v23 = vld [vmem:[#allocation2] sm:$0xff]  ;;  %v7756_v29 = vor.u32 %v9229_v22, %v7755_v21  ;;  %v9271_v9 = vld [vmem:[#allocation5 + $0x16c] sm:$0xf0]  ;;  %v141_v12 = vld [vmem:[#allocation2 + $0x18] sm:$0xff]  ;;  %v7896_v16 = vor.u32 %v9258_v5, %v7893_v6 }
  0x32   :  { %9595 = vmatpush.bf16.msra.mxu2 %v7884_v11  ;;  %9596 = vmatpush.bf16.msra.mxu3 %v7884_v11  ;;  %v146_v30 = vld [vmem:[#allocation2 + $0x40] sm:$0xff]  ;;  %v10059_v41 = vpack.c.bf16 %v139_v24, %v138_v23  ;;  %v140_v11 = vld [vmem:[#allocation2 + $0x10] sm:$0xff]  ;;  %v7859_v19 = vld [vmem:[#allocation5 + $0xc8] sm:$0xf]  ;;  %v7932_v23 = vor.u32 %v9271_v9, %v7931_v8 }
  0x33   :  { %v154_v32 = vld [vmem:[#allocation2 + $0x80] sm:$0xff]  ;;  %v10061_v42 = vpack.c.bf16 %v147_v31, %v146_v30  ;;  %v148_v13 = vld [vmem:[#allocation2 + $0x50] sm:$0xff]  ;;  %v9250_v21 = vld [vmem:[#allocation5 + $0xcc] sm:$0xf] }
  0x34   :  { %v162_v34 = vld [vmem:[#allocation2 + $0xc0] sm:$0xff]  ;;  %v10063_v46 = vpack.c.bf16 %v155_v33, %v154_v32  ;;  %v7861_v22 = vld [vmem:[#allocation5 + $0xe8] sm:$0xf0]  ;;  %v156_v24 = vld [vmem:[#allocation2 + $0x90] sm:$0xff] }
  0x35   :  { %592 = vmatpush.bf16.msra.mxu0 %v7852_v14  ;;  %9597 = vmatpush.bf16.msra.mxu1 %v7852_v14  ;;  %v10065_v47 = vpack.c.bf16 %v163_v35, %v162_v34  ;;  %v7885_v18 = vld [vmem:[#allocation5 + $0x120] sm:$0xf0]  ;;  %v157_v25 = vld [vmem:[#allocation2 + $0x98] sm:$0xff]  ;;  %v164_v26 = vld [vmem:[#allocation2 + $0xd0] sm:$0xff]  ;;  %v7864_v32 = vor.u32 %v9250_v21, %v7861_v22 }
  0x36   :  { %9598 = vmatpush.bf16.msra.mxu2 %v7852_v14  ;;  %9599 = vmatpush.bf16.msra.mxu3 %v7852_v14  ;;  %v149_v14 = vld [vmem:[#allocation2 + $0x58] sm:$0xff]  ;;  %v7853_v30 = vld [vmem:[#allocation5 + $0xe0] sm:$0xf0]  ;;  %v7827_v33 = vld [vmem:[#allocation5 + $0x88] sm:$0xf]  ;;  %v10075_v43 = vpack.c.bf16 %v157_v25, %v156_v24 }
  0x37   :  { %v165_v27 = vld [vmem:[#allocation2 + $0xd8] sm:$0xff]  ;;  %v7899_v34 = vld [vmem:[#allocation5 + $0x110] sm:$0xf]  ;;  %v9246_v38 = vld [vmem:[#allocation5 + $0xa4] sm:$0xf0] }
  0x38   :  { %v9263_v35 = vld [vmem:[#allocation5 + $0x12c] sm:$0xf0]  ;;  %v9242_v39 = vld [vmem:[#allocation5 + $0x8c] sm:$0xf]  ;;  %v10077_v44 = vpack.c.bf16 %v165_v27, %v164_v26  ;;  %v7828_v49 = vor.u32 %v9246_v38, %v7827_v33  ;;  %v7795_v55 = vld [vmem:[#allocation5 + $0x48] sm:$0xf] }
  0x39   :  { %593 = vmatpush.bf16.msra.mxu0 %v7820_v17  ;;  %9600 = vmatpush.bf16.msra.mxu1 %v7820_v17  ;;  %v7829_v40 = vld [vmem:[#allocation5 + $0xa8] sm:$0xf0]  ;;  %v7867_v53 = vld [vmem:[#allocation5 + $0xd0] sm:$0xf]  ;;  %v9238_v56 = vld [vmem:[#allocation5 + $0x64] sm:$0xf0] }
  0x3a   :  { %9601 = vmatpush.bf16.msra.mxu2 %v7820_v17  ;;  %9602 = vmatpush.bf16.msra.mxu3 %v7820_v17  ;;  %v9257_v17 = vld [vmem:[#allocation5 + $0x104] sm:$0xf]  ;;  %v7832_v50 = vor.u32 %v9242_v39, %v7829_v40  ;;  %v9255_v54 = vld [vmem:[#allocation5 + $0xec] sm:$0xf0]  ;;  %v9234_v57 = vld [vmem:[#allocation5 + $0x4c] sm:$0xf]  ;;  %v7796_v62 = vor.u32 %v9238_v56, %v7795_v55 }
  0x3b   :  { %v7888_v28 = vor.u32 %v9257_v17, %v7885_v18  ;;  %v9233_v61 = vld [vmem:[#allocation5 + $0x44] sm:$0xf]  ;;  %v7835_v1 = vld [vmem:[#allocation5 + $0x90] sm:$0xf]  ;;  %v7763_v3 = vld [vmem:[#allocation5 + $0x8] sm:$0xf] }
  0x3c   :  { %v9247_v2 = vld [vmem:[#allocation5 + $0xac] sm:$0xf0]  ;;  %v9230_v4 = vld [vmem:[#allocation5 + $0x24] sm:$0xf0]  ;;  %v9226_v5 = vld [vmem:[#allocation5 + $0xc] sm:$0xf] }
  0x3d   :  { %594 = vmatpush.bf16.msra.mxu0 %v7788_v20  ;;  %9603 = vmatpush.bf16.msra.mxu1 %v7788_v20  ;;  %v7765_v6 = vld [vmem:[#allocation5 + $0x28] sm:$0xf0]  ;;  %v7836_v8 = vor.u32 %v9247_v2, %v7835_v1  ;;  %v7803_v9 = vld [vmem:[#allocation5 + $0x50] sm:$0xf]  ;;  %v150_v17 = vld [vmem:[#allocation2 + $0x60] sm:$0xff] }
  0x3e   :  { %9604 = vmatpush.bf16.msra.mxu2 %v7788_v20  ;;  %9605 = vmatpush.bf16.msra.mxu3 %v7788_v20  ;;  %v9254_v20 = vld [vmem:[#allocation5 + $0xe4] sm:$0xf0]  ;;  %v166_v21 = vld [vmem:[#allocation2 + $0xe0] sm:$0xff]  ;;  %v7771_v25 = vld [vmem:[#allocation5 + $0x10] sm:$0xf] }
  0x3f   :  { %v7860_v31 = vor.u32 %v9254_v20, %v7859_v19  ;;  %v151_v18 = vld [vmem:[#allocation2 + $0x68] sm:$0xff]  ;;  %v158_v19 = vld [vmem:[#allocation2 + $0xa0] sm:$0xff]  ;;  %v9231_v26 = vld [vmem:[#allocation5 + $0x2c] sm:$0xf0] }
  0x40   :  { %v159_v20 = vld [vmem:[#allocation2 + $0xa8] sm:$0xff]  ;;  %v9288_v33 = vld [vmem:[#allocation5 + $0x1f4] sm:$0xf0]  ;;  %v8005_v38 = vld [vmem:[#allocation5 + $0x1f8] sm:$0xf0] }
  0x41   :  { %595 = vmatpush.bf16.msra.mxu0 %v7756_v29  ;;  %9606 = vmatpush.bf16.msra.mxu1 %v7756_v29  ;;  %v167_v22 = vld [vmem:[#allocation2 + $0xe8] sm:$0xff]  ;;  %v9283_v39 = vld [vmem:[#allocation5 + $0x1d4] sm:$0xf]  ;;  %v169_v56 = vld [vmem:[#allocation2 + $0xf8] sm:$0xff] }
  0x42   :  { %9607 = vmatpush.bf16.msra.mxu2 %v7756_v29  ;;  %9608 = vmatpush.bf16.msra.mxu3 %v7756_v29  ;;  %v9249_v29 = vld [vmem:[#allocation5 + $0xc4] sm:$0xf]  ;;  %v7997_v40 = vld [vmem:[#allocation5 + $0x1f0] sm:$0xf0]  ;;  %v7973_v1 = vld [vmem:[#allocation5 + $0x1b8] sm:$0xf0] }
  0x43   :  { %v7856_v45 = vor.u32 %v9249_v29, %v7853_v30  ;;  %v10087_v29 = vpack.c.bf16 %v159_v20, %v158_v19  ;;  %v10089_v30 = vpack.c.bf16 %v167_v22, %v166_v21  ;;  %v168_v55 = vld [vmem:[#allocation2 + $0xf0] sm:$0xff]  ;;  %v7907_v20 = vld [vmem:[#allocation5 + $0x118] sm:$0xf]  ;;  %v9260_v22 = vld [vmem:[#allocation5 + $0x11c] sm:$0xf] }
  0x44   :  { %596 = vmatmul.bf16.vlgmr.msra.gmra.mxu0 %v10059_v41  ;;  %616 = vmatmul.bf16.vlgmr.msra.gmra.mxu1 %v10061_v42  ;;  %v9275_v2 = vld [vmem:[#allocation5 + $0x194] sm:$0xf]  ;;  %v9264_v21 = vld [vmem:[#allocation5 + $0x134] sm:$0xf0] }
  0x45   :  { %636 = vmatmul.bf16.vlgmr.msra.gmra.mxu2 %v10063_v46  ;;  %656 = vmatmul.bf16.vlgmr.msra.gmra.mxu3 %v10065_v47 }
  0x46   :  { %766 = vmatpush.bf16.msrb.mxu2 %v7988_v36  ;;  %855 = vmatpush.bf16.msrb.mxu3 %v7992_v37  ;;  %v10071_v36 = vpack.c.bf16 %v141_v12, %v140_v11  ;;  %v10073_v37 = vpack.c.bf16 %v149_v14, %v148_v13  ;;  %v9239_v11 = vld [vmem:[#allocation5 + $0x6c] sm:$0xf0]  ;;  %v7768_v12 = vor.u32 %v9226_v5, %v7765_v6  ;;  %v9225_v13 = vld [vmem:[#allocation5 + $0x4] sm:$0xf]  ;;  %v7939_v6 = vld [vmem:[#allocation5 + $0x158] sm:$0xf] }
  0x47   :  { %677 = vmatpush.bf16.msrb.mxu1 %v7984_v48  ;;  %944 = vmatpush.bf16.msrb.mxu0 %v7996_v59  ;;  %v7900_v48 = vor.u32 %v9263_v35, %v7899_v34  ;;  %v7868_v59 = vor.u32 %v9255_v54, %v7867_v53  ;;  %v7757_v14 = vld [vmem:[#allocation5 + $0x20] sm:$0xf0]  ;;  %v9284_v34 = vld [vmem:[#allocation5 + $0x1dc] sm:$0xf]  ;;  %v160_v53 = vld [vmem:[#allocation2 + $0xb0] sm:$0xff] }
  0x48   :  { %v7760_v24 = vor.u32 %v9225_v13, %v7757_v14  ;;  %v161_v54 = vld [vmem:[#allocation2 + $0xb8] sm:$0xff]  ;;  %v7933_v13 = vld [vmem:[#allocation5 + $0x170] sm:$0xf0] }
  0x4a   :  { %767 = vmatpush.bf16.msrb.mxu2 %v7956_v51  ;;  %856 = vmatpush.bf16.msrb.mxu3 %v7960_v52  ;;  %v9241_v51 = vld [vmem:[#allocation5 + $0x84] sm:$0xf] }
  0x4b   :  { %678 = vmatpush.bf16.msrb.mxu1 %v7952_v60  ;;  %945 = vmatpush.bf16.msrb.mxu0 %v7964_v7  ;;  %v7821_v52 = vld [vmem:[#allocation5 + $0xa0] sm:$0xf0]  ;;  %v7797_v60 = vld [vmem:[#allocation5 + $0x68] sm:$0xf0] }
  0x4c   :  { %v7824_v58 = vor.u32 %v9241_v51, %v7821_v52  ;;  %v152_v51 = vld [vmem:[#allocation2 + $0x70] sm:$0xff]  ;;  %v153_v52 = vld [vmem:[#allocation2 + $0x78] sm:$0xff] }
  0x4e   :  { %768 = vmatpush.bf16.msrb.mxu2 %v7924_v63  ;;  %857 = vmatpush.bf16.msrb.mxu3 %v7928_v0  ;;  %v7800_v63 = vor.u32 %v9234_v57, %v7797_v60  ;;  %v7789_v0 = vld [vmem:[#allocation5 + $0x60] sm:$0xf0]  ;;  %v10101_v60 = vpack.c.bf16 %v169_v56, %v168_v55 }
  0x4f   :  { %679 = vmatpush.bf16.msrb.mxu1 %v7920_v10  ;;  %946 = vmatpush.bf16.msrb.mxu0 %v7932_v23  ;;  %v7792_v7 = vor.u32 %v9233_v61, %v7789_v0  ;;  %v7764_v10 = vor.u32 %v9230_v4, %v7763_v3  ;;  %v7804_v23 = vor.u32 %v9239_v11, %v7803_v9  ;;  %v7971_v61 = vld [vmem:[#allocation5 + $0x198] sm:$0xf]  ;;  %v7965_v3 = vld [vmem:[#allocation5 + $0x1b0] sm:$0xf0] }
  0x50   :  { %v7968_v5 = vor.u32 %v9275_v2, %v7965_v3 }
  0x52   :  { %769 = vmatpush.bf16.msrb.mxu2 %v7892_v15  ;;  %858 = vmatpush.bf16.msrb.mxu3 %v7896_v16  ;;  %v142_v15 = vld [vmem:[#allocation2 + $0x20] sm:$0xff]  ;;  %v143_v16 = vld [vmem:[#allocation2 + $0x28] sm:$0xff] }
  0x53   :  { %680 = vmatpush.bf16.msrb.mxu1 %v7888_v28  ;;  %947 = vmatpush.bf16.msrb.mxu0 %v7900_v48  ;;  %v10083_v27 = vpack.c.bf16 %v143_v16, %v142_v15  ;;  %v10085_v28 = vpack.c.bf16 %v151_v18, %v150_v17  ;;  %v8000_v48 = vor.u32 %v9283_v39, %v7997_v40  ;;  %v10123_v15 = vld [vmem:[#allocation7] sm:$0xff] }
  0x54   :  { %601 = vmatmul.bf16.gmra.mxu0 %v10071_v36  ;;  %621 = vmatmul.bf16.gmra.mxu1 %v10073_v37  ;;  %v10126_v16 = vperm.slane %v10123_v15, 0 }
  0x55   :  { %641 = vmatmul.bf16.gmra.mxu2 %v10075_v43  ;;  %661 = vmatmul.bf16.gmra.mxu3 %v10077_v44 }
  0x56   :  { %770 = vmatpush.bf16.msrb.mxu2 %v7860_v31  ;;  %859 = vmatpush.bf16.msrb.mxu3 %v7864_v32  ;;  %v7772_v31 = vor.u32 %v9231_v26, %v7771_v25  ;;  %v8003_v32 = vld [vmem:[#allocation5 + $0x1d8] sm:$0xf]  ;;  %v7909_v25 = vld [vmem:[#allocation5 + $0x138] sm:$0xf0] }
  0x57   :  { %681 = vmatpush.bf16.msrb.mxu1 %v7856_v45  ;;  %948 = vmatpush.bf16.msrb.mxu0 %v7868_v59  ;;  %v8004_v35 = vor.u32 %v9288_v33, %v8003_v32  ;;  %v8008_v45 = vor.u32 %v9284_v34, %v8005_v38  ;;  %v10099_v59 = vpack.c.bf16 %v161_v54, %v160_v53 }
  0x58   :  { %v7912_v26 = vor.u32 %v9260_v22, %v7909_v25 }
  0x5a   :  { %771 = vmatpush.bf16.msrb.mxu2 %v7828_v49  ;;  %860 = vmatpush.bf16.msrb.mxu3 %v7832_v50  ;;  %v144_v49 = vld [vmem:[#allocation2 + $0x30] sm:$0xff]  ;;  %v145_v50 = vld [vmem:[#allocation2 + $0x38] sm:$0xff] }
  0x5b   :  { %682 = vmatpush.bf16.msrb.mxu1 %v7824_v58  ;;  %949 = vmatpush.bf16.msrb.mxu0 %v7836_v8  ;;  %v10095_v57 = vpack.c.bf16 %v145_v50, %v144_v49  ;;  %v10097_v58 = vpack.c.bf16 %v153_v52, %v152_v51  ;;  %v9268_v8 = vld [vmem:[#allocation5 + $0x15c] sm:$0xf]  ;;  %v7901_v49 = vld [vmem:[#allocation5 + $0x130] sm:$0xf0] }
  0x5e   :  { %772 = vmatpush.bf16.msrb.mxu2 %v7796_v62  ;;  %861 = vmatpush.bf16.msrb.mxu3 %v7800_v63  ;;  %v9280_v62 = vld [vmem:[#allocation5 + $0x1b4] sm:$0xf0]  ;;  %v9276_v63 = vld [vmem:[#allocation5 + $0x19c] sm:$0xf] }
  0x5f   :  { %683 = vmatpush.bf16.msrb.mxu1 %v7792_v7  ;;  %950 = vmatpush.bf16.msrb.mxu0 %v7804_v23  ;;  %v7972_v0 = vor.u32 %v9280_v62, %v7971_v61  ;;  %v7976_v4 = vor.u32 %v9276_v63, %v7973_v1  ;;  %v9272_v7 = vld [vmem:[#allocation5 + $0x174] sm:$0xf0] }
  0x60   :  { %v7940_v9 = vor.u32 %v9272_v7, %v7939_v6 }
  0x62   :  { %773 = vmatpush.bf16.msrb.mxu2 %v7764_v10  ;;  %862 = vmatpush.bf16.msrb.mxu3 %v7768_v12  ;;  %v7941_v10 = vld [vmem:[#allocation5 + $0x178] sm:$0xf0]  ;;  %v9267_v12 = vld [vmem:[#allocation5 + $0x154] sm:$0xf] }
  0x63   :  { %684 = vmatpush.bf16.msrb.mxu1 %v7760_v24  ;;  %951 = vmatpush.bf16.msrb.mxu0 %v7772_v31  ;;  %v7944_v11 = vor.u32 %v9268_v8, %v7941_v10  ;;  %v7936_v14 = vor.u32 %v9267_v12, %v7933_v13  ;;  %v7908_v24 = vor.u32 %v9264_v21, %v7907_v20 }
  0x64   :  { %606 = vmatmul.bf16.gmra.mxu0 %v10083_v27  ;;  %626 = vmatmul.bf16.gmra.mxu1 %v10085_v28 }
  0x65   :  { %646 = vmatmul.bf16.gmra.mxu2 %v10087_v29  ;;  %666 = vmatmul.bf16.gmra.mxu3 %v10089_v30 }
  0x66   :  { %1122 = vmatpush.bf16.msra.mxu2 %v8004_v35  ;;  %1211 = vmatpush.bf16.msra.mxu3 %v8008_v45 }
  0x67   :  { %1033 = vmatpush.bf16.msra.mxu1 %v8000_v48  ;;  %v9259_v48 = vld [vmem:[#allocation5 + $0x114] sm:$0xf] }
  0x68   :  { %v7904_v53 = vor.u32 %v9259_v48, %v7901_v49 }
  0x6a   :  { %1123 = vmatpush.bf16.msra.mxu2 %v7972_v0  ;;  %1212 = vmatpush.bf16.msra.mxu3 %v7976_v4 }
  0x6b   :  { %1034 = vmatpush.bf16.msra.mxu1 %v7968_v5 }
  0x6e   :  { %1124 = vmatpush.bf16.msra.mxu2 %v7940_v9  ;;  %1213 = vmatpush.bf16.msra.mxu3 %v7944_v11 }
  0x6f   :  { %1035 = vmatpush.bf16.msra.mxu1 %v7936_v14 }
  0x72   :  { %1125 = vmatpush.bf16.msra.mxu2 %v7908_v24  ;;  %1214 = vmatpush.bf16.msra.mxu3 %v7912_v26 }
  0x73   :  { %1036 = vmatpush.bf16.msra.mxu1 %v7904_v53 }
  0x74   :  { %611 = vmatmul.bf16.gmra.mxu0 %v10095_v57  ;;  %631 = vmatmul.bf16.gmra.mxu1 %v10097_v58 }
  0x75   :  { %651 = vmatmul.bf16.gmra.mxu2 %v10099_v59  ;;  %671 = vmatmul.bf16.gmra.mxu3 %v10101_v60 }
  0x84   :  { %685 = vmatmul.bf16.vlgmr.msrb.gmra.mxu1 %v10059_v41  ;;  %952 = vmatmul.bf16.vlgmr.msrb.gmra.mxu0 %v10059_v41 }
  0x85   :  { %774 = vmatmul.bf16.vlgmr.msrb.gmra.mxu2 %v10059_v41  ;;  %863 = vmatmul.bf16.vlgmr.msrb.gmra.mxu3 %v10059_v41 }
  0x94   :  { %690 = vmatmul.bf16.gmra.mxu1 %v10071_v36  ;;  %957 = vmatmul.bf16.gmra.mxu0 %v10071_v36 }
  0x95   :  { %779 = vmatmul.bf16.gmra.mxu2 %v10071_v36  ;;  %868 = vmatmul.bf16.gmra.mxu3 %v10071_v36 }
  0xa4   :  { %695 = vmatmul.bf16.gmra.mxu1 %v10083_v27  ;;  %962 = vmatmul.bf16.gmra.mxu0 %v10083_v27 }
  0xa5   :  { %784 = vmatmul.bf16.gmra.mxu2 %v10083_v27  ;;  %873 = vmatmul.bf16.gmra.mxu3 %v10083_v27 }
  0xb4   :  { %700 = vmatmul.bf16.gmra.mxu1 %v10095_v57  ;;  %967 = vmatmul.bf16.gmra.mxu0 %v10095_v57 }
  0xb5   :  { %789 = vmatmul.bf16.gmra.mxu2 %v10095_v57  ;;  %878 = vmatmul.bf16.gmra.mxu3 %v10095_v57 }
  0xc1   :  { %v597_v17 = vpop.f32.mrf.mxu0  ;;  %v617_v18 = vpop.f32.mrf.mxu1 }
  0xc2   :  { %v618_v19 = vadd.f32 %v617_v18, %v10126_v16  ;;  %v598_v23 = vadd.f32 %v597_v17, %v10126_v16 }
  0xc4   :  { %705 = vmatmul.bf16.gmra.mxu1 %v10061_v42  ;;  %972 = vmatmul.bf16.gmra.mxu0 %v10061_v42  ;;  %v1300_v39 = vmax.f32 %v598_v23, 0.0  ;;  %v1364_v50 = vmax.f32 %v618_v19, 0.0 }
  0xc5   :  { %794 = vmatmul.bf16.gmra.mxu2 %v10061_v42  ;;  %883 = vmatmul.bf16.gmra.mxu3 %v10061_v42 }
  0xc8   :  { %v637_v31 = vpop.f32.mrf.mxu2  ;;  %v657_v32 = vpop.f32.mrf.mxu3 }
  0xc9   :  { %v638_v33 = vadd.f32 %v637_v31, %v10126_v16  ;;  %v658_v34 = vadd.f32 %v657_v32, %v10126_v16  ;;  %v599_v35 = vpop.f32.mrf.mxu0  ;;  %v619_v38 = vpop.f32.mrf.mxu1 }
  0xca   :  { %v600_v40 = vadd.f32 %v599_v35, %v10126_v16  ;;  %v620_v45 = vadd.f32 %v619_v38, %v10126_v16 }
  0xcb   :  { %v1428_v3 = vmax.f32 %v638_v33, 0.0  ;;  %v1492_v4 = vmax.f32 %v658_v34, 0.0 }
  0xcc   :  { %v1308_v51 = vmax.f32 %v600_v40, 0.0  ;;  %v1372_v52 = vmax.f32 %v620_v45, 0.0 }
  0xce   :  { %v10138_v54 = vpack.c.bf16 %v1308_v51, %v1300_v39  ;;  %v10140_v55 = vpack.c.bf16 %v1372_v52, %v1364_v50  ;;  %v7875_v51 = vld [vmem:[#allocation5 + $0xd8] sm:$0xf] }
  0xcf   :  { %v9256_v52 = vld [vmem:[#allocation5 + $0xf4] sm:$0xf0] }
  0xd0   :  { %12781 = vst [vmem:[#allocation20_spill] sm:$0xff] %v10138_v54  ;;  %v639_v56 = vpop.f32.mrf.mxu2  ;;  %v659_v61 = vpop.f32.mrf.mxu3 }
  0xd1   :  { %12782 = vst [vmem:[#allocation21_spill] sm:$0xff] %v10140_v55  ;;  %v640_v62 = vadd.f32 %v639_v56, %v10126_v16  ;;  %v660_v63 = vadd.f32 %v659_v61, %v10126_v16  ;;  %v602_v0 = vpop.f32.mrf.mxu0  ;;  %v622_v1 = vpop.f32.mrf.mxu1  ;;  %v7876_v56 = vor.u32 %v9256_v52, %v7875_v51  ;;  %v9252_v61 = vld [vmem:[#allocation5 + $0xdc] sm:$0xf] }
  0xd2   :  { %v623_v2 = vadd.f32 %v622_v1, %v10126_v16  ;;  %v603_v9 = vadd.f32 %v602_v0, %v10126_v16 }
  0xd3   :  { %v1436_v5 = vmax.f32 %v640_v62, 0.0  ;;  %v1500_v6 = vmax.f32 %v660_v63, 0.0  ;;  %v7877_v62 = vld [vmem:[#allocation5 + $0xf8] sm:$0xf0]  ;;  %1126 = vmatpush.bf16.msra.mxu2 %v7876_v56 }
  0xd4   :  { %710 = vmatmul.bf16.gmra.mxu1 %v10073_v37  ;;  %977 = vmatmul.bf16.gmra.mxu0 %v10073_v37  ;;  %v1316_v18 = vmax.f32 %v603_v9, 0.0  ;;  %v1380_v21 = vmax.f32 %v623_v2, 0.0  ;;  %v7880_v63 = vor.u32 %v9252_v61, %v7877_v62 }
  0xd5   :  { %v10147_v7 = vpack.c.bf16 %v1436_v5, %v1428_v3  ;;  %v10149_v8 = vpack.c.bf16 %v1500_v6, %v1492_v4  ;;  %799 = vmatmul.bf16.gmra.mxu2 %v10073_v37  ;;  %888 = vmatmul.bf16.gmra.mxu3 %v10073_v37 }
  0xd6   :  { %1215 = vmatpush.bf16.msra.mxu3 %v7880_v63 }
  0xd7   :  { %12783 = vst [vmem:[#allocation22_spill] sm:$0xff] %v10147_v7 }
  0xd8   :  { %12784 = vst [vmem:[#allocation23_spill] sm:$0xff] %v10149_v8  ;;  %v642_v10 = vpop.f32.mrf.mxu2  ;;  %v662_v11 = vpop.f32.mrf.mxu3 }
  0xd9   :  { %v643_v12 = vadd.f32 %v642_v10, %v10126_v16  ;;  %v663_v13 = vadd.f32 %v662_v11, %v10126_v16  ;;  %v604_v14 = vpop.f32.mrf.mxu0  ;;  %v624_v17 = vpop.f32.mrf.mxu1  ;;  %v9251_v11 = vld [vmem:[#allocation5 + $0xd4] sm:$0xf] }
  0xda   :  { %v605_v19 = vadd.f32 %v604_v14, %v10126_v16  ;;  %v625_v20 = vadd.f32 %v624_v17, %v10126_v16 }
  0xdb   :  { %v1444_v39 = vmax.f32 %v643_v12, 0.0  ;;  %v1508_v40 = vmax.f32 %v663_v13, 0.0  ;;  %v7869_v12 = vld [vmem:[#allocation5 + $0xf0] sm:$0xf0] }
  0xdc   :  { %v1324_v22 = vmax.f32 %v605_v19, 0.0  ;;  %v1388_v23 = vmax.f32 %v625_v20, 0.0 }
  0xde   :  { %v10158_v24 = vpack.c.bf16 %v1324_v22, %v1316_v18  ;;  %v10160_v25 = vpack.c.bf16 %v1388_v23, %v1380_v21  ;;  %v7872_v18 = vor.u32 %v9251_v11, %v7869_v12 }
  0xe0   :  { %12785 = vst [vmem:[#allocation24_spill] sm:$0xff] %v10158_v24  ;;  %v644_v26 = vpop.f32.mrf.mxu2  ;;  %v664_v31 = vpop.f32.mrf.mxu3  ;;  %1037 = vmatpush.bf16.msra.mxu1 %v7872_v18 }
  0xe1   :  { %12786 = vst [vmem:[#allocation25_spill] sm:$0xff] %v10160_v25  ;;  %v645_v32 = vadd.f32 %v644_v26, %v10126_v16  ;;  %v665_v33 = vadd.f32 %v664_v31, %v10126_v16  ;;  %v607_v34 = vpop.f32.mrf.mxu0  ;;  %v627_v35 = vpop.f32.mrf.mxu1 }
  0xe2   :  { %v628_v38 = vadd.f32 %v627_v35, %v10126_v16  ;;  %v608_v53 = vadd.f32 %v607_v34, %v10126_v16 }
  0xe3   :  { %v1452_v45 = vmax.f32 %v645_v32, 0.0  ;;  %v1516_v48 = vmax.f32 %v665_v33, 0.0 }
  0xe4   :  { %715 = vmatmul.bf16.gmra.mxu1 %v10085_v28  ;;  %982 = vmatmul.bf16.gmra.mxu0 %v10085_v28  ;;  %v1332_v6 = vmax.f32 %v608_v53, 0.0  ;;  %v1396_v13 = vmax.f32 %v628_v38, 0.0 }
  0xe5   :  { %v10167_v49 = vpack.c.bf16 %v1452_v45, %v1444_v39  ;;  %v10169_v50 = vpack.c.bf16 %v1516_v48, %v1508_v40  ;;  %804 = vmatmul.bf16.gmra.mxu2 %v10085_v28  ;;  %893 = vmatmul.bf16.gmra.mxu3 %v10085_v28 }
  0xe7   :  { %12787 = vst [vmem:[#allocation26_spill] sm:$0xff] %v10167_v49 }
  0xe8   :  { %12788 = vst [vmem:[#allocation27_spill] sm:$0xff] %v10169_v50  ;;  %v647_v0 = vpop.f32.mrf.mxu2  ;;  %v667_v1 = vpop.f32.mrf.mxu3 }
  0xe9   :  { %v648_v2 = vadd.f32 %v647_v0, %v10126_v16  ;;  %v668_v3 = vadd.f32 %v667_v1, %v10126_v16  ;;  %v609_v4 = vpop.f32.mrf.mxu0  ;;  %v629_v5 = vpop.f32.mrf.mxu1 }
  0xea   :  { %v610_v9 = vadd.f32 %v609_v4, %v10126_v16  ;;  %v630_v10 = vadd.f32 %v629_v5, %v10126_v16 }
  0xeb   :  { %v1460_v34 = vmax.f32 %v648_v2, 0.0  ;;  %v1524_v35 = vmax.f32 %v668_v3, 0.0  ;;  %v8123_v2 = vld [vmem:[#allocation8 + $0xe0] sm:$0xf]  ;;  %v9319_v3 = vld [vmem:[#allocation8 + $0xec] sm:$0xf0] }
  0xec   :  { %v1340_v14 = vmax.f32 %v610_v9, 0.0  ;;  %v1404_v17 = vmax.f32 %v630_v10, 0.0  ;;  %v8124_v9 = vor.u32 %v9319_v3, %v8123_v2 }
  0xee   :  { %v10178_v19 = vpack.c.bf16 %v1340_v14, %v1332_v6  ;;  %v10180_v20 = vpack.c.bf16 %v1404_v17, %v1396_v13  ;;  %3230 = vmatpush.bf16.msra.mxu0 %v8124_v9  ;;  %v7837_v9 = vld [vmem:[#allocation5 + $0xb0] sm:$0xf0] }
  0xf0   :  { %12789 = vst [vmem:[#allocation28_spill] sm:$0xff] %v10178_v19  ;;  %v649_v21 = vpop.f32.mrf.mxu2  ;;  %v669_v22 = vpop.f32.mrf.mxu3 }
  0xf1   :  { %12790 = vst [vmem:[#allocation29_spill] sm:$0xff] %v10180_v20  ;;  %v650_v23 = vadd.f32 %v649_v21, %v10126_v16  ;;  %v670_v26 = vadd.f32 %v669_v22, %v10126_v16  ;;  %v612_v31 = vpop.f32.mrf.mxu0  ;;  %v632_v32 = vpop.f32.mrf.mxu1  ;;  %v10205_v22 = vperm.slane %v10123_v15, 4 }
  0xf2   :  { %v633_v33 = vadd.f32 %v632_v32, %v10126_v16  ;;  %v613_v48 = vadd.f32 %v612_v31, %v10126_v16 }
  0xf3   :  { %v1468_v38 = vmax.f32 %v650_v23, 0.0  ;;  %v1532_v39 = vmax.f32 %v670_v26, 0.0 }
  0xf4   :  { %720 = vmatmul.bf16.gmra.mxu1 %v10097_v58  ;;  %987 = vmatmul.bf16.gmra.mxu0 %v10097_v58  ;;  %v1348_v63 = vmax.f32 %v613_v48, 0.0  ;;  %v1412_v4 = vmax.f32 %v633_v33, 0.0  ;;  %v10208_v33 = vperm.slane %v10123_v15, 1 }
  0xf5   :  { %v10187_v40 = vpack.c.bf16 %v1468_v38, %v1460_v34  ;;  %v10189_v45 = vpack.c.bf16 %v1532_v39, %v1524_v35  ;;  %809 = vmatmul.bf16.gmra.mxu2 %v10097_v58  ;;  %898 = vmatmul.bf16.gmra.mxu3 %v10097_v58  ;;  %v9248_v38 = vld [vmem:[#allocation5 + $0xb4] sm:$0xf0]  ;;  %v9244_v39 = vld [vmem:[#allocation5 + $0x9c] sm:$0xf] }
  0xf7   :  { %12791 = vst [vmem:[#allocation30_spill] sm:$0xff] %v10187_v40 }
  0xf8   :  { %12792 = vst [vmem:[#allocation31_spill] sm:$0xff] %v10189_v45  ;;  %v652_v51 = vpop.f32.mrf.mxu2  ;;  %v672_v52 = vpop.f32.mrf.mxu3 }
  0xf9   :  { %v653_v53 = vadd.f32 %v652_v51, %v10126_v16  ;;  %v673_v56 = vadd.f32 %v672_v52, %v10126_v16  ;;  %v614_v61 = vpop.f32.mrf.mxu0  ;;  %v634_v62 = vpop.f32.mrf.mxu1  ;;  %v7845_v52 = vld [vmem:[#allocation5 + $0xb8] sm:$0xf0] }
  0xfa   :  { %v615_v0 = vadd.f32 %v614_v61, %v10126_v16  ;;  %v635_v1 = vadd.f32 %v634_v62, %v10126_v16 }
  0xfb   :  { %v1476_v23 = vmax.f32 %v653_v53, 0.0  ;;  %v1540_v26 = vmax.f32 %v673_v56, 0.0  ;;  %v7848_v53 = vor.u32 %v9244_v39, %v7845_v52 }
  0xfc   :  { %v1356_v5 = vmax.f32 %v615_v0, 0.0  ;;  %v1420_v6 = vmax.f32 %v635_v1, 0.0 }
  0xfd   :  { %1216 = vmatpush.bf16.msra.mxu3 %v7848_v53 }
  0xfe   :  { %v10198_v10 = vpack.c.bf16 %v1356_v5, %v1348_v63  ;;  %v10200_v11 = vpack.c.bf16 %v1420_v6, %v1412_v4  ;;  %v10223_v4 = vperm.slane %v10123_v15, 2  ;;  %v10226_v5 = vperm.slane %v10123_v15, 3  ;;  %v9243_v6 = vld [vmem:[#allocation5 + $0x94] sm:$0xf] }
 0x100   :  { %12793 = vst [vmem:[#allocation32_spill] sm:$0xff] %v10198_v10  ;;  %v654_v12 = vpop.f32.mrf.mxu2  ;;  %v674_v13 = vpop.f32.mrf.mxu3 }
 0x101   :  { %12794 = vst [vmem:[#allocation33_spill] sm:$0xff] %v10200_v11  ;;  %v655_v14 = vadd.f32 %v654_v12, %v10126_v16  ;;  %v675_v17 = vadd.f32 %v674_v13, %v10126_v16  ;;  %v686_v18 = vpop.f32.mrf.mxu1  ;;  %v953_v21 = vpop.f32.mrf.mxu0  ;;  %v7843_v16 = vld [vmem:[#allocation5 + $0x98] sm:$0xf] }
 0x102   :  { %v954_v48 = vadd.f32 %v953_v21, %v10205_v22  ;;  %v7844_v51 = vor.u32 %v9248_v38, %v7843_v16  ;;  %v687_v56 = vadd.f32 %v686_v18, %v10208_v33 }
 0x103   :  { %v1484_v31 = vmax.f32 %v655_v14, 0.0  ;;  %v1548_v32 = vmax.f32 %v675_v17, 0.0  ;;  %v7840_v17 = vor.u32 %v9243_v6, %v7837_v9 }
 0x104   :  { %725 = vmatmul.bf16.gmra.mxu1 %v10063_v46  ;;  %992 = vmatmul.bf16.gmra.mxu0 %v10063_v46  ;;  %v1304_v1 = vmax.f32 %v954_v48, 0.0  ;;  %v1301_v12 = vmax.f32 %v687_v56, 0.0 }
 0x105   :  { %v10212_v34 = vpack.c.bf16 %v1484_v31, %v1476_v23  ;;  %v10214_v35 = vpack.c.bf16 %v1548_v32, %v1540_v26  ;;  %814 = vmatmul.bf16.gmra.mxu2 %v10063_v46  ;;  %903 = vmatmul.bf16.gmra.mxu3 %v10063_v46 }
 0x106   :  { %1127 = vmatpush.bf16.msra.mxu2 %v7844_v51  ;;  %1038 = vmatpush.bf16.msra.mxu1 %v7840_v17 }
 0x107   :  { %12795 = vst [vmem:[#allocation34_spill] sm:$0xff] %v10212_v34 }
 0x108   :  { %12796 = vst [vmem:[#allocation35_spill] sm:$0xff] %v10214_v35  ;;  %v775_v61 = vpop.f32.mrf.mxu2  ;;  %v864_v62 = vpop.f32.mrf.mxu3 }
 0x109   :  { %v688_v63 = vpop.f32.mrf.mxu1  ;;  %v955_v0 = vpop.f32.mrf.mxu0  ;;  %v776_v23 = vadd.f32 %v775_v61, %v10223_v4  ;;  %v865_v26 = vadd.f32 %v864_v62, %v10226_v5 }
 0x10a   :  { %v689_v2 = vadd.f32 %v688_v63, %v10208_v33  ;;  %v956_v3 = vadd.f32 %v955_v0, %v10205_v22 }
 0x10b   :  { %v1302_v48 = vmax.f32 %v776_v23, 0.0  ;;  %v1303_v51 = vmax.f32 %v865_v26, 0.0 }
 0x10c   :  { %v1309_v13 = vmax.f32 %v689_v2, 0.0  ;;  %v1312_v14 = vmax.f32 %v956_v3, 0.0 }
 0x10e   :  { %v10228_v18 = vpack.c.bf16 %v1309_v13, %v1301_v12  ;;  %v10230_v21 = vpack.c.bf16 %v1312_v14, %v1304_v1  ;;  %v8107_v13 = vld [vmem:[#allocation8 + $0xc0] sm:$0xf]  ;;  %v9315_v14 = vld [vmem:[#allocation8 + $0xcc] sm:$0xf0] }
 0x110   :  { %12797 = vst [vmem:[#allocation36_spill] sm:$0xff] %v10228_v18  ;;  %v777_v31 = vpop.f32.mrf.mxu2  ;;  %v866_v32 = vpop.f32.mrf.mxu3 }
 0x111   :  { %12798 = vst [vmem:[#allocation37_spill] sm:$0xff] %v10230_v21  ;;  %v778_v15 = vadd.f32 %v777_v31, %v10223_v4  ;;  %v867_v16 = vadd.f32 %v866_v32, %v10226_v5  ;;  %v691_v38 = vpop.f32.mrf.mxu1  ;;  %v958_v39 = vpop.f32.mrf.mxu0  ;;  %v8108_v31 = vor.u32 %v9315_v14, %v8107_v13  ;;  %v9236_v13 = vld [vmem:[#allocation5 + $0x5c] sm:$0xf] }
 0x112   :  { %v959_v62 = vadd.f32 %v958_v39, %v10205_v22  ;;  %v692_v63 = vadd.f32 %v691_v38, %v10208_v33 }
 0x113   :  { %v1310_v52 = vmax.f32 %v778_v15, 0.0  ;;  %v1311_v53 = vmax.f32 %v867_v16, 0.0  ;;  %3231 = vmatpush.bf16.msra.mxu0 %v8108_v31 }
 0x114   :  { %730 = vmatmul.bf16.gmra.mxu1 %v10075_v43  ;;  %997 = vmatmul.bf16.gmra.mxu0 %v10075_v43  ;;  %v1320_v6 = vmax.f32 %v959_v62, 0.0  ;;  %v1317_v17 = vmax.f32 %v692_v63, 0.0 }
 0x115   :  { %v10238_v56 = vpack.c.bf16 %v1310_v52, %v1302_v48  ;;  %v10240_v61 = vpack.c.bf16 %v1311_v53, %v1303_v51  ;;  %819 = vmatmul.bf16.gmra.mxu2 %v10075_v43  ;;  %908 = vmatmul.bf16.gmra.mxu3 %v10075_v43 }
 0x117   :  { %12799 = vst [vmem:[#allocation38_spill] sm:$0xff] %v10238_v56 }
 0x118   :  { %12800 = vst [vmem:[#allocation39_spill] sm:$0xff] %v10240_v61  ;;  %v780_v0 = vpop.f32.mrf.mxu2  ;;  %v869_v1 = vpop.f32.mrf.mxu3 }
 0x119   :  { %v693_v2 = vpop.f32.mrf.mxu1  ;;  %v960_v3 = vpop.f32.mrf.mxu0  ;;  %v781_v16 = vadd.f32 %v780_v0, %v10223_v4  ;;  %v870_v38 = vadd.f32 %v869_v1, %v10226_v5  ;;  %v7811_v1 = vld [vmem:[#allocation5 + $0x58] sm:$0xf] }
 0x11a   :  { %v694_v9 = vadd.f32 %v693_v2, %v10208_v33  ;;  %v961_v12 = vadd.f32 %v960_v3, %v10205_v22 }
 0x11b   :  { %v1318_v63 = vmax.f32 %v781_v16, 0.0  ;;  %v1319_v2 = vmax.f32 %v870_v38, 0.0 }
 0x11c   :  { %v1325_v23 = vmax.f32 %v694_v9, 0.0  ;;  %v1328_v26 = vmax.f32 %v961_v12, 0.0  ;;  %v9240_v12 = vld [vmem:[#allocation5 + $0x74] sm:$0xf0] }
 0x11e   :  { %v10248_v32 = vpack.c.bf16 %v1325_v23, %v1317_v17  ;;  %v10250_v15 = vpack.c.bf16 %v1328_v26, %v1320_v6  ;;  %v7812_v17 = vor.u32 %v9240_v12, %v7811_v1  ;;  %v7813_v23 = vld [vmem:[#allocation5 + $0x78] sm:$0xf0] }
 0x11f   :  { %v7816_v26 = vor.u32 %v9236_v13, %v7813_v23 }
 0x120   :  { %12801 = vst [vmem:[#allocation40_spill] sm:$0xff] %v10248_v32  ;;  %v782_v39 = vpop.f32.mrf.mxu2  ;;  %v871_v48 = vpop.f32.mrf.mxu3  ;;  %1128 = vmatpush.bf16.msra.mxu2 %v7812_v17 }
 0x121   :  { %12802 = vst [vmem:[#allocation41_spill] sm:$0xff] %v10250_v15  ;;  %v783_v51 = vadd.f32 %v782_v39, %v10223_v4  ;;  %v872_v52 = vadd.f32 %v871_v48, %v10226_v5  ;;  %v696_v53 = vpop.f32.mrf.mxu1  ;;  %v963_v62 = vpop.f32.mrf.mxu0  ;;  %1217 = vmatpush.bf16.msra.mxu3 %v7816_v26 }
 0x122   :  { %v964_v14 = vadd.f32 %v963_v62, %v10205_v22  ;;  %v697_v31 = vadd.f32 %v696_v53, %v10208_v33 }
 0x123   :  { %v1326_v3 = vmax.f32 %v783_v51, 0.0  ;;  %v1327_v9 = vmax.f32 %v872_v52, 0.0 }
 0x124   :  { %735 = vmatmul.bf16.gmra.mxu1 %v10087_v29  ;;  %1002 = vmatmul.bf16.gmra.mxu0 %v10087_v29  ;;  %v1336_v51 = vmax.f32 %v964_v14, 0.0 }
 0x125   :  { %v10258_v6 = vpack.c.bf16 %v1326_v3, %v1318_v63  ;;  %v10260_v0 = vpack.c.bf16 %v1327_v9, %v1319_v2  ;;  %824 = vmatmul.bf16.gmra.mxu2 %v10087_v29  ;;  %913 = vmatmul.bf16.gmra.mxu3 %v10087_v29  ;;  %v9235_v2 = vld [vmem:[#allocation5 + $0x54] sm:$0xf]  ;;  %v1333_v9 = vmax.f32 %v697_v31, 0.0 }
 0x126   :  { %v7805_v3 = vld [vmem:[#allocation5 + $0x70] sm:$0xf0] }
 0x127   :  { %12803 = vst [vmem:[#allocation42_spill] sm:$0xff] %v10258_v6  ;;  %v7808_v12 = vor.u32 %v9235_v2, %v7805_v3 }
 0x128   :  { %12804 = vst [vmem:[#allocation43_spill] sm:$0xff] %v10260_v0  ;;  %v785_v16 = vpop.f32.mrf.mxu2  ;;  %v874_v38 = vpop.f32.mrf.mxu3 }
 0x129   :  { %v698_v39 = vpop.f32.mrf.mxu1  ;;  %v965_v48 = vpop.f32.mrf.mxu0  ;;  %1039 = vmatpush.bf16.msra.mxu1 %v7808_v12  ;;  %v786_v17 = vadd.f32 %v785_v16, %v10223_v4  ;;  %v875_v23 = vadd.f32 %v874_v38, %v10226_v5 }
 0x12a   :  { %v699_v52 = vadd.f32 %v698_v39, %v10208_v33  ;;  %v966_v63 = vadd.f32 %v965_v48, %v10205_v22 }
 0x12c   :  { %v1341_v62 = vmax.f32 %v699_v52, 0.0  ;;  %v1344_v1 = vmax.f32 %v966_v63, 0.0  ;;  %v1334_v52 = vmax.f32 %v786_v17, 0.0  ;;  %v1335_v63 = vmax.f32 %v875_v23, 0.0 }
 0x12e   :  { %v10268_v13 = vpack.c.bf16 %v1341_v62, %v1333_v9  ;;  %v10270_v53 = vpack.c.bf16 %v1344_v1, %v1336_v51 }
 0x130   :  { %12805 = vst [vmem:[#allocation44_spill] sm:$0xff] %v10268_v13  ;;  %v787_v14 = vpop.f32.mrf.mxu2  ;;  %v876_v26 = vpop.f32.mrf.mxu3 }
 0x131   :  { %12806 = vst [vmem:[#allocation45_spill] sm:$0xff] %v10270_v53  ;;  %v788_v39 = vadd.f32 %v787_v14, %v10223_v4  ;;  %v877_v48 = vadd.f32 %v876_v26, %v10226_v5  ;;  %v701_v0 = vpop.f32.mrf.mxu1  ;;  %v968_v31 = vpop.f32.mrf.mxu0 }
 0x132   :  { %v969_v38 = vadd.f32 %v968_v31, %v10205_v22  ;;  %v702_v9 = vadd.f32 %v701_v0, %v10208_v33 }
 0x133   :  { %v1342_v2 = vmax.f32 %v788_v39, 0.0  ;;  %v1343_v3 = vmax.f32 %v877_v48, 0.0  ;;  %v8091_v39 = vld [vmem:[#allocation8 + $0xa0] sm:$0xf]  ;;  %v9311_v48 = vld [vmem:[#allocation8 + $0xac] sm:$0xf0] }
 0x134   :  { %740 = vmatmul.bf16.gmra.mxu1 %v10099_v59  ;;  %1007 = vmatmul.bf16.gmra.mxu0 %v10099_v59  ;;  %v1352_v23 = vmax.f32 %v969_v38, 0.0 }
 0x135   :  { %v10278_v51 = vpack.c.bf16 %v1342_v2, %v1334_v52  ;;  %v10280_v16 = vpack.c.bf16 %v1343_v3, %v1335_v63  ;;  %829 = vmatmul.bf16.gmra.mxu2 %v10099_v59  ;;  %918 = vmatmul.bf16.gmra.mxu3 %v10099_v59  ;;  %v1349_v52 = vmax.f32 %v702_v9, 0.0  ;;  %v8092_v3 = vor.u32 %v9311_v48, %v8091_v39 }
 0x137   :  { %12807 = vst [vmem:[#allocation46_spill] sm:$0xff] %v10278_v51  ;;  %3232 = vmatpush.bf16.msra.mxu0 %v8092_v3 }
 0x138   :  { %12808 = vst [vmem:[#allocation47_spill] sm:$0xff] %v10280_v16  ;;  %v790_v62 = vpop.f32.mrf.mxu2  ;;  %v879_v1 = vpop.f32.mrf.mxu3 }
 0x139   :  { %v703_v12 = vpop.f32.mrf.mxu1  ;;  %v970_v17 = vpop.f32.mrf.mxu0  ;;  %v791_v0 = vadd.f32 %v790_v62, %v10223_v4  ;;  %v880_v51 = vadd.f32 %v879_v1, %v10226_v5  ;;  %v7779_v1 = vld [vmem:[#allocation5 + $0x18] sm:$0xf] }
 0x13a   :  { %v704_v14 = vadd.f32 %v703_v12, %v10208_v33  ;;  %v971_v26 = vadd.f32 %v970_v17, %v10205_v22 }
 0x13c   :  { %v1357_v63 = vmax.f32 %v704_v14, 0.0  ;;  %v1360_v2 = vmax.f32 %v971_v26, 0.0  ;;  %v1350_v14 = vmax.f32 %v791_v0, 0.0  ;;  %v1351_v26 = vmax.f32 %v880_v51, 0.0 }
 0x13e   :  { %v10288_v16 = vpack.c.bf16 %v1357_v63, %v1349_v52  ;;  %v10290_v31 = vpack.c.bf16 %v1360_v2, %v1352_v23  ;;  %v9228_v52 = vld [vmem:[#allocation5 + $0x1c] sm:$0xf] }
 0x13f   :  { %v7781_v2 = vld [vmem:[#allocation5 + $0x38] sm:$0xf0] }
 0x140   :  { %12809 = vst [vmem:[#allocation48_spill] sm:$0xff] %v10288_v16  ;;  %v792_v38 = vpop.f32.mrf.mxu2  ;;  %v881_v53 = vpop.f32.mrf.mxu3  ;;  %v7784_v3 = vor.u32 %v9228_v52, %v7781_v2 }
 0x141   :  { %12810 = vst [vmem:[#allocation49_spill] sm:$0xff] %v10290_v31  ;;  %v793_v12 = vadd.f32 %v792_v38, %v10223_v4  ;;  %v882_v17 = vadd.f32 %v881_v53, %v10226_v5  ;;  %v706_v13 = vpop.f32.mrf.mxu1  ;;  %v973_v9 = vpop.f32.mrf.mxu0  ;;  %v9232_v53 = vld [vmem:[#allocation5 + $0x34] sm:$0xf0] }
 0x142   :  { %v974_v63 = vadd.f32 %v973_v9, %v10205_v22  ;;  %v7780_v51 = vor.u32 %v9232_v53, %v7779_v1  ;;  %v707_v0 = vadd.f32 %v706_v13, %v10208_v33  ;;  %1218 = vmatpush.bf16.msra.mxu3 %v7784_v3  ;;  %v9307_v3 = vld [vmem:[#allocation8 + $0x8c] sm:$0xf0] }
 0x143   :  { %v1358_v39 = vmax.f32 %v793_v12, 0.0  ;;  %v1359_v48 = vmax.f32 %v882_v17, 0.0 }
 0x144   :  { %745 = vmatmul.bf16.gmra.mxu1 %v10065_v47  ;;  %1012 = vmatmul.bf16.gmra.mxu0 %v10065_v47  ;;  %v1365_v31 = vmax.f32 %v707_v0, 0.0 }
 0x145   :  { %v10298_v23 = vpack.c.bf16 %v1358_v39, %v1350_v14  ;;  %v10300_v62 = vpack.c.bf16 %v1359_v48, %v1351_v26  ;;  %834 = vmatmul.bf16.gmra.mxu2 %v10065_v47  ;;  %923 = vmatmul.bf16.gmra.mxu3 %v10065_v47  ;;  %v1368_v26 = vmax.f32 %v974_v63, 0.0  ;;  %v8075_v63 = vld [vmem:[#allocation8 + $0x80] sm:$0xf] }
 0x146   :  { %1129 = vmatpush.bf16.msra.mxu2 %v7780_v51 }
 0x147   :  { %12811 = vst [vmem:[#allocation50_spill] sm:$0xff] %v10298_v23  ;;  %v7773_v23 = vld [vmem:[#allocation5 + $0x30] sm:$0xf0] }
 0x148   :  { %12812 = vst [vmem:[#allocation51_spill] sm:$0xff] %v10300_v62  ;;  %v795_v38 = vpop.f32.mrf.mxu2  ;;  %v884_v12 = vpop.f32.mrf.mxu3  ;;  %v9227_v62 = vld [vmem:[#allocation5 + $0x14] sm:$0xf] }
 0x149   :  { %v708_v17 = vpop.f32.mrf.mxu1  ;;  %v975_v14 = vpop.f32.mrf.mxu0  ;;  %v7776_v53 = vor.u32 %v9227_v62, %v7773_v23  ;;  %v796_v52 = vadd.f32 %v795_v38, %v10223_v4  ;;  %v885_v13 = vadd.f32 %v884_v12, %v10226_v5 }
 0x14a   :  { %v709_v39 = vadd.f32 %v708_v17, %v10208_v33  ;;  %v976_v48 = vadd.f32 %v975_v14, %v10205_v22  ;;  %v8076_v14 = vor.u32 %v9307_v3, %v8075_v63 }
 0x14b   :  { %1040 = vmatpush.bf16.msra.mxu1 %v7776_v53  ;;  %v1366_v62 = vmax.f32 %v796_v52, 0.0  ;;  %v1367_v38 = vmax.f32 %v885_v13, 0.0  ;;  %v9299_v52 = vld [vmem:[#allocation8 + $0x4c] sm:$0xf0] }
 0x14c   :  { %v1373_v9 = vmax.f32 %v709_v39, 0.0  ;;  %v1376_v1 = vmax.f32 %v976_v48, 0.0  ;;  %3233 = vmatpush.bf16.msra.mxu0 %v8076_v14  ;;  %v8059_v48 = vld [vmem:[#allocation8 + $0x60] sm:$0xf] }
 0x14e   :  { %v10310_v2 = vpack.c.bf16 %v1373_v9, %v1365_v31  ;;  %v10312_v51 = vpack.c.bf16 %v1376_v1, %v1368_v26  ;;  %v9303_v26 = vld [vmem:[#allocation8 + $0x6c] sm:$0xf0] }
 0x14f   :  { %v8060_v9 = vor.u32 %v9303_v26, %v8059_v48  ;;  %v9295_v48 = vld [vmem:[#allocation8 + $0x2c] sm:$0xf0] }
 0x150   :  { %12813 = vst [vmem:[#allocation52_spill] sm:$0xff] %v10310_v2  ;;  %v797_v17 = vpop.f32.mrf.mxu2  ;;  %v886_v16 = vpop.f32.mrf.mxu3 }
 0x151   :  { %12814 = vst [vmem:[#allocation53_spill] sm:$0xff] %v10312_v51  ;;  %v798_v6 = vadd.f32 %v797_v17, %v10223_v4  ;;  %v887_v0 = vadd.f32 %v886_v16, %v10226_v5  ;;  %v711_v39 = vpop.f32.mrf.mxu1  ;;  %v978_v23 = vpop.f32.mrf.mxu0  ;;  %3234 = vmatpush.bf16.msra.mxu0 %v8060_v9 }
 0x152   :  { %v979_v16 = vadd.f32 %v978_v23, %v10205_v22  ;;  %v712_v13 = vadd.f32 %v711_v39, %v10208_v33 }
 0x153   :  { %v1374_v12 = vmax.f32 %v798_v6, 0.0  ;;  %v1375_v31 = vmax.f32 %v887_v0, 0.0  ;;  %v8043_v6 = vld [vmem:[#allocation8 + $0x40] sm:$0xf] }
 0x154   :  { %750 = vmatmul.bf16.gmra.mxu1 %v10077_v44  ;;  %1017 = vmatmul.bf16.gmra.mxu0 %v10077_v44  ;;  %v8044_v17 = vor.u32 %v9299_v52, %v8043_v6  ;;  %v1381_v26 = vmax.f32 %v712_v13, 0.0  ;;  %v8011_v52 = vld [vmem:[#allocation8] sm:$0xf] }
 0x155   :  { %v10318_v1 = vpack.c.bf16 %v1374_v12, %v1366_v62  ;;  %v10320_v53 = vpack.c.bf16 %v1375_v31, %v1367_v38  ;;  %839 = vmatmul.bf16.gmra.mxu2 %v10077_v44  ;;  %928 = vmatmul.bf16.gmra.mxu3 %v10077_v44  ;;  %v1384_v62 = vmax.f32 %v979_v16, 0.0  ;;  %v8027_v31 = vld [vmem:[#allocation8 + $0x20] sm:$0xf] }
 0x156   :  { %3235 = vmatpush.bf16.msra.mxu0 %v8044_v17 }
 0x157   :  { %12815 = vst [vmem:[#allocation54_spill] sm:$0xff] %v10318_v1 }
 0x158   :  { %12816 = vst [vmem:[#allocation55_spill] sm:$0xff] %v10320_v53  ;;  %v800_v63 = vpop.f32.mrf.mxu2  ;;  %v889_v3 = vpop.f32.mrf.mxu3  ;;  %v8028_v53 = vor.u32 %v9295_v48, %v8027_v31 }
 0x159   :  { %v713_v14 = vpop.f32.mrf.mxu1  ;;  %v980_v0 = vpop.f32.mrf.mxu0  ;;  %v801_v6 = vadd.f32 %v800_v63, %v10223_v4  ;;  %v890_v16 = vadd.f32 %v889_v3, %v10226_v5 }
 0x15a   :  { %v714_v38 = vadd.f32 %v713_v14, %v10208_v33  ;;  %v981_v12 = vadd.f32 %v980_v0, %v10205_v22  ;;  %3236 = vmatpush.bf16.msra.mxu0 %v8028_v53  ;;  %v9291_v14 = vld [vmem:[#allocation8 + $0xc] sm:$0xf0] }
 0x15b   :  { %v8012_v17 = vor.u32 %v9291_v14, %v8011_v52  ;;  %v1382_v31 = vmax.f32 %v801_v6, 0.0 }
 0x15c   :  { %v1389_v23 = vmax.f32 %v714_v38, 0.0  ;;  %v1392_v9 = vmax.f32 %v981_v12, 0.0 }
 0x15e   :  { %v10328_v1 = vpack.c.bf16 %v1389_v23, %v1381_v26  ;;  %v10330_v39 = vpack.c.bf16 %v1392_v9, %v1384_v62  ;;  %3237 = vmatpush.bf16.msra.mxu0 %v8012_v17  ;;  %v1383_v62 = vmax.f32 %v890_v16, 0.0  ;;  %v9383_v26 = vld [vmem:[#allocation8 + $0x2ec] sm:$0xf0]  ;;  %v8507_v23 = vld [vmem:[#allocation8 + $0x3e0] sm:$0xf] }
 0x160   :  { %12817 = vst [vmem:[#allocation56_spill] sm:$0xff] %v10328_v1  ;;  %v802_v51 = vpop.f32.mrf.mxu2  ;;  %v891_v0 = vpop.f32.mrf.mxu3 }
 0x161   :  { %12818 = vst [vmem:[#allocation57_spill] sm:$0xff] %v10330_v39  ;;  %v803_v2 = vadd.f32 %v802_v51, %v10223_v4  ;;  %v892_v13 = vadd.f32 %v891_v0, %v10226_v5  ;;  %v716_v38 = vpop.f32.mrf.mxu1  ;;  %v983_v12 = vpop.f32.mrf.mxu0  ;;  %v8379_v51 = vld [vmem:[#allocation8 + $0x2e0] sm:$0xf] }
 0x162   :  { %v984_v9 = vadd.f32 %v983_v12, %v10205_v22  ;;  %v8380_v6 = vor.u32 %v9383_v26, %v8379_v51  ;;  %v717_v52 = vadd.f32 %v716_v38, %v10208_v33 }
 0x163   :  { %v1390_v48 = vmax.f32 %v803_v2, 0.0  ;;  %v1391_v53 = vmax.f32 %v892_v13, 0.0  ;;  %v9415_v2 = vld [vmem:[#allocation8 + $0x3ec] sm:$0xf0] }
 0x164   :  { %755 = vmatmul.bf16.gmra.mxu1 %v10089_v30  ;;  %1022 = vmatmul.bf16.gmra.mxu0 %v10089_v30  ;;  %v8508_v16 = vor.u32 %v9415_v2, %v8507_v23 }
 0x165   :  { %v10338_v63 = vpack.c.bf16 %v1390_v48, %v1382_v31  ;;  %v10340_v3 = vpack.c.bf16 %v1391_v53, %v1383_v62  ;;  %844 = vmatmul.bf16.gmra.mxu2 %v10089_v30  ;;  %933 = vmatmul.bf16.gmra.mxu3 %v10089_v30  ;;  %v1400_v31 = vmax.f32 %v984_v9, 0.0  ;;  %v8251_v53 = vld [vmem:[#allocation8 + $0x1e0] sm:$0xf] }
 0x166   :  { %3408 = vmatpush.bf16.msrb.mxu2 %v8380_v6  ;;  %3497 = vmatpush.bf16.msrb.mxu3 %v8508_v16 }
 0x167   :  { %12819 = vst [vmem:[#allocation58_spill] sm:$0xff] %v10338_v63  ;;  %v1397_v63 = vmax.f32 %v717_v52, 0.0 }
 0x168   :  { %12820 = vst [vmem:[#allocation59_spill] sm:$0xff] %v10340_v3  ;;  %v805_v14 = vpop.f32.mrf.mxu2  ;;  %v894_v0 = vpop.f32.mrf.mxu3  ;;  %v9351_v3 = vld [vmem:[#allocation8 + $0x1ec] sm:$0xf0] }
 0x169   :  { %v718_v17 = vpop.f32.mrf.mxu1  ;;  %v985_v13 = vpop.f32.mrf.mxu0  ;;  %v8252_v26 = vor.u32 %v9351_v3, %v8251_v53  ;;  %v806_v6 = vadd.f32 %v805_v14, %v10223_v4  ;;  %v895_v2 = vadd.f32 %v894_v0, %v10226_v5 }
 0x16a   :  { %v719_v62 = vadd.f32 %v718_v17, %v10208_v33  ;;  %v986_v48 = vadd.f32 %v985_v13, %v10205_v22 }
 0x16b   :  { %3319 = vmatpush.bf16.msrb.mxu1 %v8252_v26 }
 0x16c   :  { %v1405_v12 = vmax.f32 %v719_v62, 0.0  ;;  %v1408_v51 = vmax.f32 %v986_v48, 0.0  ;;  %v1398_v62 = vmax.f32 %v806_v6, 0.0  ;;  %v1399_v48 = vmax.f32 %v895_v2, 0.0 }
 0x16e   :  { %v10348_v23 = vpack.c.bf16 %v1405_v12, %v1397_v63  ;;  %v10350_v38 = vpack.c.bf16 %v1408_v51, %v1400_v31 }
 0x170   :  { %12821 = vst [vmem:[#allocation60_spill] sm:$0xff] %v10348_v23  ;;  %v807_v9 = vpop.f32.mrf.mxu2  ;;  %v896_v16 = vpop.f32.mrf.mxu3 }
 0x171   :  { %12822 = vst [vmem:[#allocation61_spill] sm:$0xff] %v10350_v38  ;;  %v808_v17 = vadd.f32 %v807_v9, %v10223_v4  ;;  %v897_v13 = vadd.f32 %v896_v16, %v10226_v5  ;;  %v721_v39 = vpop.f32.mrf.mxu1  ;;  %v988_v52 = vpop.f32.mrf.mxu0 }
 0x172   :  { %v989_v0 = vadd.f32 %v988_v52, %v10205_v22  ;;  %v722_v53 = vadd.f32 %v721_v39, %v10208_v33 }
 0x173   :  { %v1406_v3 = vmax.f32 %v808_v17, 0.0  ;;  %v1407_v63 = vmax.f32 %v897_v13, 0.0 }
 0x174   :  { %760 = vmatmul.bf16.gmra.mxu1 %v10101_v60  ;;  %1027 = vmatmul.bf16.gmra.mxu0 %v10101_v60  ;;  %v1416_v2 = vmax.f32 %v989_v0, 0.0  ;;  %v1413_v17 = vmax.f32 %v722_v53, 0.0 }
 0x175   :  { %v10358_v31 = vpack.c.bf16 %v1406_v3, %v1398_v62  ;;  %v10360_v14 = vpack.c.bf16 %v1407_v63, %v1399_v48  ;;  %849 = vmatmul.bf16.gmra.mxu2 %v10101_v60  ;;  %938 = vmatmul.bf16.gmra.mxu3 %v10101_v60 }
 0x177   :  { %12823 = vst [vmem:[#allocation62_spill] sm:$0xff] %v10358_v31 }
 0x178   :  { %12824 = vst [vmem:[#allocation63_spill] sm:$0xff] %v10360_v14  ;;  %v810_v12 = vpop.f32.mrf.mxu2  ;;  %v899_v51 = vpop.f32.mrf.mxu3 }
 0x179   :  { %v723_v26 = vpop.f32.mrf.mxu1  ;;  %v990_v6 = vpop.f32.mrf.mxu0  ;;  %v811_v52 = vadd.f32 %v810_v12, %v10223_v4  ;;  %v900_v39 = vadd.f32 %v899_v51, %v10226_v5  ;;  %v8363_v51 = vld [vmem:[#allocation8 + $0x2c0] sm:$0xf] }
 0x17a   :  { %v724_v9 = vadd.f32 %v723_v26, %v10208_v33  ;;  %v991_v16 = vadd.f32 %v990_v6, %v10205_v22 }
 0x17b   :  { %v1414_v6 = vmax.f32 %v811_v52, 0.0  ;;  %v1415_v53 = vmax.f32 %v900_v39, 0.0 }
 0x17c   :  { %v1421_v13 = vmax.f32 %v724_v9, 0.0  ;;  %v1424_v62 = vmax.f32 %v991_v16, 0.0 }
 0x17e   :  { %v10368_v48 = vpack.c.bf16 %v1421_v13, %v1413_v17  ;;  %v10370_v3 = vpack.c.bf16 %v1424_v62, %v1416_v2  ;;  %v8491_v17 = vld [vmem:[#allocation8 + $0x3c0] sm:$0xf] }
 0x180   :  { %12825 = vst [vmem:[#allocation64_spill] sm:$0xff] %v10368_v48  ;;  %v812_v63 = vpop.f32.mrf.mxu2  ;;  %v901_v14 = vpop.f32.mrf.mxu3 }
 0x181   :  { %12826 = vst [vmem:[#allocation65_spill] sm:$0xff] %v10370_v3  ;;  %v813_v31 = vadd.f32 %v812_v63, %v10223_v4  ;;  %v902_v0 = vadd.f32 %v901_v14, %v10226_v5  ;;  %v726_v26 = vpop.f32.mrf.mxu1  ;;  %v993_v38 = vpop.f32.mrf.mxu0  ;;  %v9379_v14 = vld [vmem:[#allocation8 + $0x2cc] sm:$0xf0] }
 0x182   :  { %v994_v13 = vadd.f32 %v993_v38, %v10205_v22  ;;  %v8364_v62 = vor.u32 %v9379_v14, %v8363_v51  ;;  %v727_v39 = vadd.f32 %v726_v26, %v10208_v33 }
 0x183   :  { %v1422_v9 = vmax.f32 %v813_v31, 0.0  ;;  %v1423_v16 = vmax.f32 %v902_v0, 0.0  ;;  %v9411_v31 = vld [vmem:[#allocation8 + $0x3cc] sm:$0xf0] }
 0x184   :  { %1041 = vmatmul.bf16.vlgmr.msra.gmra.mxu1 %v10059_v41  ;;  %3238 = vmatmul.bf16.vlgmr.msra.gmra.mxu0 %v10138_v54  ;;  %v8492_v52 = vor.u32 %v9411_v31, %v8491_v17  ;;  %v8235_v54 = vld [vmem:[#allocation8 + $0x1c0] sm:$0xf] }
 0x185   :  { %v10378_v2 = vpack.c.bf16 %v1422_v9, %v1414_v6  ;;  %v10380_v12 = vpack.c.bf16 %v1423_v16, %v1415_v53  ;;  %1130 = vmatmul.bf16.vlgmr.msra.gmra.mxu2 %v10059_v41  ;;  %1219 = vmatmul.bf16.vlgmr.msra.gmra.mxu3 %v10059_v41  ;;  %v1432_v9 = vmax.f32 %v994_v13, 0.0 }
 0x186   :  { %3409 = vmatpush.bf16.msrb.mxu2 %v8364_v62  ;;  %3498 = vmatpush.bf16.msrb.mxu3 %v8492_v52 }
 0x187   :  { %12827 = vst [vmem:[#allocation66_spill] sm:$0xff] %v10378_v2  ;;  %v1429_v2 = vmax.f32 %v727_v39, 0.0 }
 0x188   :  { %12828 = vst [vmem:[#allocation67_spill] sm:$0xff] %v10380_v12  ;;  %v815_v63 = vpop.f32.mrf.mxu2  ;;  %v904_v0 = vpop.f32.mrf.mxu3  ;;  %v9347_v12 = vld [vmem:[#allocation8 + $0x1cc] sm:$0xf0] }
 0x189   :  { %v728_v6 = vpop.f32.mrf.mxu1  ;;  %v995_v53 = vpop.f32.mrf.mxu0  ;;  %v8236_v14 = vor.u32 %v9347_v12, %v8235_v54  ;;  %v816_v62 = vadd.f32 %v815_v63, %v10223_v4  ;;  %v905_v31 = vadd.f32 %v904_v0, %v10226_v5 }
 0x18a   :  { %v729_v16 = vadd.f32 %v728_v6, %v10208_v33  ;;  %v996_v41 = vadd.f32 %v995_v53, %v10205_v22 }
 0x18b   :  { %3320 = vmatpush.bf16.msrb.mxu1 %v8236_v14 }
 0x18c   :  { %v1437_v38 = vmax.f32 %v729_v16, 0.0  ;;  %v1440_v51 = vmax.f32 %v996_v41, 0.0  ;;  %v1430_v16 = vmax.f32 %v816_v62, 0.0  ;;  %v1431_v41 = vmax.f32 %v905_v31, 0.0 }
 0x18e   :  { %v10388_v17 = vpack.c.bf16 %v1437_v38, %v1429_v2  ;;  %v10390_v26 = vpack.c.bf16 %v1440_v51, %v1432_v9 }
 0x190   :  { %12829 = vst [vmem:[#allocation68_spill] sm:$0xff] %v10388_v17  ;;  %v817_v13 = vpop.f32.mrf.mxu2  ;;  %v906_v52 = vpop.f32.mrf.mxu3 }
 0x191   :  { %12830 = vst [vmem:[#allocation69_spill] sm:$0xff] %v10390_v26  ;;  %v818_v6 = vadd.f32 %v817_v13, %v10223_v4  ;;  %v907_v53 = vadd.f32 %v906_v52, %v10226_v5  ;;  %v731_v3 = vpop.f32.mrf.mxu1  ;;  %v998_v39 = vpop.f32.mrf.mxu0 }
 0x192   :  { %v999_v0 = vadd.f32 %v998_v39, %v10205_v22  ;;  %v732_v9 = vadd.f32 %v731_v3, %v10208_v33 }
 0x193   :  { %v1438_v54 = vmax.f32 %v818_v6, 0.0  ;;  %v1439_v2 = vmax.f32 %v907_v53, 0.0 }
 0x194   :  { %1046 = vmatmul.bf16.gmra.mxu1 %v10071_v36  ;;  %3243 = vmatmul.bf16.gmra.mxu0 %v10158_v24  ;;  %v1448_v31 = vmax.f32 %v999_v0, 0.0  ;;  %v1445_v6 = vmax.f32 %v732_v9, 0.0 }
 0x195   :  { %v10398_v12 = vpack.c.bf16 %v1438_v54, %v1430_v16  ;;  %v10400_v63 = vpack.c.bf16 %v1439_v2, %v1431_v41  ;;  %1135 = vmatmul.bf16.gmra.mxu2 %v10071_v36  ;;  %1224 = vmatmul.bf16.gmra.mxu3 %v10071_v36 }
 0x197   :  { %12831 = vst [vmem:[#allocation70_spill] sm:$0xff] %v10398_v12 }
 0x198   :  { %12832 = vst [vmem:[#allocation71_spill] sm:$0xff] %v10400_v63  ;;  %v820_v38 = vpop.f32.mrf.mxu2  ;;  %v909_v51 = vpop.f32.mrf.mxu3 }
 0x199   :  { %v733_v14 = vpop.f32.mrf.mxu1  ;;  %v1000_v62 = vpop.f32.mrf.mxu0  ;;  %v821_v36 = vadd.f32 %v820_v38, %v10223_v4  ;;  %v910_v3 = vadd.f32 %v909_v51, %v10226_v5  ;;  %v8347_v51 = vld [vmem:[#allocation8 + $0x2a0] sm:$0xf] }
 0x19a   :  { %v734_v13 = vadd.f32 %v733_v14, %v10208_v33  ;;  %v1001_v52 = vadd.f32 %v1000_v62, %v10205_v22 }
 0x19b   :  { %v1446_v62 = vmax.f32 %v821_v36, 0.0  ;;  %v1447_v9 = vmax.f32 %v910_v3, 0.0 }
 0x19c   :  { %v1453_v53 = vmax.f32 %v734_v13, 0.0  ;;  %v1456_v16 = vmax.f32 %v1001_v52, 0.0 }
 0x19e   :  { %v10408_v41 = vpack.c.bf16 %v1453_v53, %v1445_v6  ;;  %v10410_v54 = vpack.c.bf16 %v1456_v16, %v1448_v31  ;;  %v9375_v6 = vld [vmem:[#allocation8 + $0x2ac] sm:$0xf0]  ;;  %v8475_v53 = vld [vmem:[#allocation8 + $0x3a0] sm:$0xf] }
 0x19f   :  { %v8348_v36 = vor.u32 %v9375_v6, %v8347_v51 }
 0x1a0   :  { %12833 = vst [vmem:[#allocation72_spill] sm:$0xff] %v10410_v54  ;;  %v822_v39 = vpop.f32.mrf.mxu2  ;;  %v911_v2 = vpop.f32.mrf.mxu3 }
 0x1a1   :  { %v823_v24 = vadd.f32 %v822_v39, %v10223_v4  ;;  %v912_v0 = vadd.f32 %v911_v2, %v10226_v5  ;;  %v736_v14 = vpop.f32.mrf.mxu1  ;;  %v1003_v63 = vpop.f32.mrf.mxu0  ;;  %3410 = vmatpush.bf16.msrb.mxu2 %v8348_v36 }
 0x1a2   :  { %v1004_v16 = vadd.f32 %v1003_v63, %v10205_v22  ;;  %v737_v39 = vadd.f32 %v736_v14, %v10208_v33 }
 0x1a3   :  { %v1454_v13 = vmax.f32 %v823_v24, 0.0  ;;  %v1455_v52 = vmax.f32 %v912_v0, 0.0  ;;  %v9407_v24 = vld [vmem:[#allocation8 + $0x3ac] sm:$0xf0] }
 0x1a4   :  { %1051 = vmatmul.bf16.gmra.mxu1 %v10083_v27  ;;  %3248 = vmatmul.bf16.gmra.mxu0 %v10178_v19  ;;  %v8476_v3 = vor.u32 %v9407_v24, %v8475_v53  ;;  %v8219_v19 = vld [vmem:[#allocation8 + $0x1a0] sm:$0xf] }
 0x1a5   :  { %v10418_v31 = vpack.c.bf16 %v1454_v13, %v1446_v62  ;;  %v10420_v38 = vpack.c.bf16 %v1455_v52, %v1447_v9  ;;  %1140 = vmatmul.bf16.gmra.mxu2 %v10083_v27  ;;  %1229 = vmatmul.bf16.gmra.mxu3 %v10083_v27  ;;  %v1464_v13 = vmax.f32 %v1004_v16, 0.0 }
 0x1a6   :  { %3499 = vmatpush.bf16.msrb.mxu3 %v8476_v3 }
 0x1a7   :  { %12834 = vst [vmem:[#allocation73_spill] sm:$0xff] %v10418_v31  ;;  %v1461_v31 = vmax.f32 %v737_v39, 0.0 }
 0x1a8   :  { %12835 = vst [vmem:[#allocation74_spill] sm:$0xff] %v10420_v38  ;;  %v825_v2 = vpop.f32.mrf.mxu2  ;;  %v914_v0 = vpop.f32.mrf.mxu3  ;;  %v9343_v38 = vld [vmem:[#allocation8 + $0x1ac] sm:$0xf0] }
 0x1a9   :  { %v738_v62 = vpop.f32.mrf.mxu1  ;;  %v1005_v9 = vpop.f32.mrf.mxu0  ;;  %v8220_v6 = vor.u32 %v9343_v38, %v8219_v19  ;;  %v826_v36 = vadd.f32 %v825_v2, %v10223_v4  ;;  %v915_v24 = vadd.f32 %v914_v0, %v10226_v5 }
 0x1aa   :  { %v739_v52 = vadd.f32 %v738_v62, %v10208_v33  ;;  %v1006_v27 = vadd.f32 %v1005_v9, %v10205_v22 }
 0x1ab   :  { %3321 = vmatpush.bf16.msrb.mxu1 %v8220_v6 }
 0x1ac   :  { %v1469_v63 = vmax.f32 %v739_v52, 0.0  ;;  %v1472_v51 = vmax.f32 %v1006_v27, 0.0  ;;  %v1462_v52 = vmax.f32 %v826_v36, 0.0  ;;  %v1463_v27 = vmax.f32 %v915_v24, 0.0 }
 0x1ae   :  { %v10428_v53 = vpack.c.bf16 %v1469_v63, %v1461_v31  ;;  %v10430_v14 = vpack.c.bf16 %v1472_v51, %v1464_v13 }
 0x1b0   :  { %12836 = vst [vmem:[#allocation75_spill] sm:$0xff] %v10428_v53  ;;  %v827_v16 = vpop.f32.mrf.mxu2  ;;  %v916_v3 = vpop.f32.mrf.mxu3 }
 0x1b1   :  { %12837 = vst [vmem:[#allocation76_spill] sm:$0xff] %v10430_v14  ;;  %v828_v62 = vadd.f32 %v827_v16, %v10223_v4  ;;  %v917_v9 = vadd.f32 %v916_v3, %v10226_v5  ;;  %v741_v54 = vpop.f32.mrf.mxu1  ;;  %v1008_v39 = vpop.f32.mrf.mxu0 }
 0x1b2   :  { %v1009_v0 = vadd.f32 %v1008_v39, %v10205_v22  ;;  %v742_v13 = vadd.f32 %v741_v54, %v10208_v33 }
 0x1b3   :  { %v1470_v19 = vmax.f32 %v828_v62, 0.0  ;;  %v1471_v31 = vmax.f32 %v917_v9, 0.0 }
 0x1b4   :  { %1056 = vmatmul.bf16.gmra.mxu1 %v10095_v57  ;;  %3253 = vmatmul.bf16.gmra.mxu0 %v10198_v10  ;;  %v1480_v24 = vmax.f32 %v1009_v0, 0.0  ;;  %v1477_v62 = vmax.f32 %v742_v13, 0.0 }
 0x1b5   :  { %v10438_v38 = vpack.c.bf16 %v1470_v19, %v1462_v52  ;;  %v10440_v2 = vpack.c.bf16 %v1471_v31, %v1463_v27  ;;  %1145 = vmatmul.bf16.gmra.mxu2 %v10095_v57  ;;  %1234 = vmatmul.bf16.gmra.mxu3 %v10095_v57 }
 0x1b7   :  { %12838 = vst [vmem:[#allocation77_spill] sm:$0xff] %v10438_v38 }
 0x1b8   :  { %12839 = vst [vmem:[#allocation78_spill] sm:$0xff] %v10440_v2  ;;  %v830_v63 = vpop.f32.mrf.mxu2  ;;  %v919_v51 = vpop.f32.mrf.mxu3 }
 0x1b9   :  { %v743_v6 = vpop.f32.mrf.mxu1  ;;  %v1010_v36 = vpop.f32.mrf.mxu0  ;;  %v831_v57 = vadd.f32 %v830_v63, %v10223_v4  ;;  %v920_v54 = vadd.f32 %v919_v51, %v10226_v5  ;;  %v8331_v51 = vld [vmem:[#allocation8 + $0x280] sm:$0xf] }
 0x1ba   :  { %v744_v16 = vadd.f32 %v743_v6, %v10208_v33  ;;  %v1011_v3 = vadd.f32 %v1010_v36, %v10205_v22 }
 0x1bb   :  { %v1478_v36 = vmax.f32 %v831_v57, 0.0  ;;  %v1479_v13 = vmax.f32 %v920_v54, 0.0 }
 0x1bc   :  { %v1485_v9 = vmax.f32 %v744_v16, 0.0  ;;  %v1488_v52 = vmax.f32 %v1011_v3, 0.0 }
 0x1be   :  { %v10448_v27 = vpack.c.bf16 %v1485_v9, %v1477_v62  ;;  %v10450_v19 = vpack.c.bf16 %v1488_v52, %v1480_v24  ;;  %v9371_v62 = vld [vmem:[#allocation8 + $0x28c] sm:$0xf0]  ;;  %v8459_v9 = vld [vmem:[#allocation8 + $0x380] sm:$0xf] }
 0x1bf   :  { %v8332_v57 = vor.u32 %v9371_v62, %v8331_v51 }
 0x1c0   :  { %12840 = vst [vmem:[#allocation79_spill] sm:$0xff] %v10450_v19  ;;  %v832_v39 = vpop.f32.mrf.mxu2  ;;  %v921_v31 = vpop.f32.mrf.mxu3 }
 0x1c1   :  { %v833_v10 = vadd.f32 %v832_v39, %v10223_v4  ;;  %v922_v0 = vadd.f32 %v921_v31, %v10226_v5  ;;  %v746_v6 = vpop.f32.mrf.mxu1  ;;  %v1013_v2 = vpop.f32.mrf.mxu0  ;;  %3411 = vmatpush.bf16.msrb.mxu2 %v8332_v57 }
 0x1c2   :  { %v1014_v52 = vadd.f32 %v1013_v2, %v10205_v22  ;;  %v747_v39 = vadd.f32 %v746_v6, %v10208_v33 }
 0x1c3   :  { %v1486_v16 = vmax.f32 %v833_v10, 0.0  ;;  %v1487_v3 = vmax.f32 %v922_v0, 0.0  ;;  %v9403_v10 = vld [vmem:[#allocation8 + $0x38c] sm:$0xf0] }
 0x1c4   :  { %1061 = vmatmul.bf16.gmra.mxu1 %v10061_v42  ;;  %3258 = vmatmul.bf16.gmra.mxu0 %v10140_v55  ;;  %v8460_v54 = vor.u32 %v9403_v10, %v8459_v9  ;;  %v8203_v55 = vld [vmem:[#allocation8 + $0x180] sm:$0xf] }
 0x1c5   :  { %v10458_v24 = vpack.c.bf16 %v1486_v16, %v1478_v36  ;;  %v10460_v63 = vpack.c.bf16 %v1487_v3, %v1479_v13  ;;  %1150 = vmatmul.bf16.gmra.mxu2 %v10061_v42  ;;  %1239 = vmatmul.bf16.gmra.mxu3 %v10061_v42  ;;  %v1496_v16 = vmax.f32 %v1014_v52, 0.0 }
 0x1c6   :  { %3500 = vmatpush.bf16.msrb.mxu3 %v8460_v54 }
 0x1c7   :  { %12841 = vst [vmem:[#allocation80_spill] sm:$0xff] %v10458_v24  ;;  %v1493_v24 = vmax.f32 %v747_v39, 0.0 }
 0x1c8   :  { %12842 = vst [vmem:[#allocation81_spill] sm:$0xff] %v10460_v63  ;;  %v835_v31 = vpop.f32.mrf.mxu2  ;;  %v924_v0 = vpop.f32.mrf.mxu3  ;;  %v9339_v63 = vld [vmem:[#allocation8 + $0x18c] sm:$0xf0] }
 0x1c9   :  { %v748_v36 = vpop.f32.mrf.mxu1  ;;  %v1015_v13 = vpop.f32.mrf.mxu0  ;;  %v8204_v62 = vor.u32 %v9339_v63, %v8203_v55  ;;  %v836_v57 = vadd.f32 %v835_v31, %v10223_v4  ;;  %v925_v10 = vadd.f32 %v924_v0, %v10226_v5 }
 0x1ca   :  { %v749_v3 = vadd.f32 %v748_v36, %v10208_v33  ;;  %v1016_v42 = vadd.f32 %v1015_v13, %v10205_v22 }
 0x1cb   :  { %3322 = vmatpush.bf16.msrb.mxu1 %v8204_v62 }
 0x1cc   :  { %v1501_v2 = vmax.f32 %v749_v3, 0.0  ;;  %v1504_v51 = vmax.f32 %v1016_v42, 0.0  ;;  %v1494_v3 = vmax.f32 %v836_v57, 0.0  ;;  %v1495_v42 = vmax.f32 %v925_v10, 0.0 }
 0x1ce   :  { %v10468_v9 = vpack.c.bf16 %v1501_v2, %v1493_v24  ;;  %v10470_v6 = vpack.c.bf16 %v1504_v51, %v1496_v16 }
 0x1d0   :  { %12843 = vst [vmem:[#allocation82_spill] sm:$0xff] %v10468_v9  ;;  %v837_v52 = vpop.f32.mrf.mxu2  ;;  %v926_v54 = vpop.f32.mrf.mxu3 }
 0x1d1   :  { %12844 = vst [vmem:[#allocation83_spill] sm:$0xff] %v10470_v6  ;;  %v838_v36 = vadd.f32 %v837_v52, %v10223_v4  ;;  %v927_v13 = vadd.f32 %v926_v54, %v10226_v5  ;;  %v751_v19 = vpop.f32.mrf.mxu1  ;;  %v1018_v39 = vpop.f32.mrf.mxu0 }
 0x1d2   :  { %v1019_v0 = vadd.f32 %v1018_v39, %v10205_v22  ;;  %v752_v16 = vadd.f32 %v751_v19, %v10208_v33 }
 0x1d3   :  { %v1502_v55 = vmax.f32 %v838_v36, 0.0  ;;  %v1503_v24 = vmax.f32 %v927_v13, 0.0 }
 0x1d4   :  { %1066 = vmatmul.bf16.gmra.mxu1 %v10073_v37  ;;  %3263 = vmatmul.bf16.gmra.mxu0 %v10160_v25  ;;  %v1512_v10 = vmax.f32 %v1019_v0, 0.0  ;;  %v1509_v36 = vmax.f32 %v752_v16, 0.0 }
 0x1d5   :  { %v10478_v63 = vpack.c.bf16 %v1502_v55, %v1494_v3  ;;  %v10480_v31 = vpack.c.bf16 %v1503_v24, %v1495_v42  ;;  %1155 = vmatmul.bf16.gmra.mxu2 %v10073_v37  ;;  %1244 = vmatmul.bf16.gmra.mxu3 %v10073_v37 }
 0x1d7   :  { %12845 = vst [vmem:[#allocation84_spill] sm:$0xff] %v10478_v63 }
 0x1d8   :  { %12846 = vst [vmem:[#allocation85_spill] sm:$0xff] %v10480_v31  ;;  %v840_v2 = vpop.f32.mrf.mxu2  ;;  %v929_v51 = vpop.f32.mrf.mxu3 }
 0x1d9   :  { %v753_v62 = vpop.f32.mrf.mxu1  ;;  %v1020_v57 = vpop.f32.mrf.mxu0  ;;  %v841_v37 = vadd.f32 %v840_v2, %v10223_v4  ;;  %v930_v19 = vadd.f32 %v929_v51, %v10226_v5  ;;  %v8315_v51 = vld [vmem:[#allocation8 + $0x260] sm:$0xf] }
 0x1da   :  { %v754_v52 = vadd.f32 %v753_v62, %v10208_v33  ;;  %v1021_v54 = vadd.f32 %v1020_v57, %v10205_v22 }
 0x1db   :  { %v1510_v57 = vmax.f32 %v841_v37, 0.0  ;;  %v1511_v16 = vmax.f32 %v930_v19, 0.0  ;;  %v8443_v37 = vld [vmem:[#allocation8 + $0x360] sm:$0xf] }
 0x1dc   :  { %v1517_v13 = vmax.f32 %v754_v52, 0.0  ;;  %v1520_v3 = vmax.f32 %v1021_v54, 0.0 }
 0x1de   :  { %v10488_v42 = vpack.c.bf16 %v1517_v13, %v1509_v36  ;;  %v10490_v55 = vpack.c.bf16 %v1520_v3, %v1512_v10  ;;  %v9367_v36 = vld [vmem:[#allocation8 + $0x26c] sm:$0xf0] }
 0x1df   :  { %v8316_v3 = vor.u32 %v9367_v36, %v8315_v51 }
 0x1e0   :  { %12847 = vst [vmem:[#allocation86_spill] sm:$0xff] %v10488_v42  ;;  %v842_v39 = vpop.f32.mrf.mxu2  ;;  %v931_v24 = vpop.f32.mrf.mxu3 }
 0x1e1   :  { %12848 = vst [vmem:[#allocation87_spill] sm:$0xff] %v10490_v55  ;;  %v843_v25 = vadd.f32 %v842_v39, %v10223_v4  ;;  %v932_v0 = vadd.f32 %v931_v24, %v10226_v5  ;;  %v756_v62 = vpop.f32.mrf.mxu1  ;;  %v1023_v31 = vpop.f32.mrf.mxu0  ;;  %3412 = vmatpush.bf16.msrb.mxu2 %v8316_v3 }
 0x1e2   :  { %v1024_v13 = vadd.f32 %v1023_v31, %v10205_v22  ;;  %v757_v39 = vadd.f32 %v756_v62, %v10208_v33 }
 0x1e3   :  { %v1518_v52 = vmax.f32 %v843_v25, 0.0  ;;  %v1519_v54 = vmax.f32 %v932_v0, 0.0  ;;  %v9399_v25 = vld [vmem:[#allocation8 + $0x36c] sm:$0xf0] }
 0x1e4   :  { %1071 = vmatmul.bf16.gmra.mxu1 %v10085_v28  ;;  %3268 = vmatmul.bf16.gmra.mxu0 %v10180_v20  ;;  %v8444_v19 = vor.u32 %v9399_v25, %v8443_v37  ;;  %v8187_v20 = vld [vmem:[#allocation8 + $0x160] sm:$0xf]  ;;  %v1525_v31 = vmax.f32 %v757_v39, 0.0 }
 0x1e5   :  { %v10498_v10 = vpack.c.bf16 %v1518_v52, %v1510_v57  ;;  %v10500_v2 = vpack.c.bf16 %v1519_v54, %v1511_v16  ;;  %1160 = vmatmul.bf16.gmra.mxu2 %v10085_v28  ;;  %1249 = vmatmul.bf16.gmra.mxu3 %v10085_v28  ;;  %v1528_v52 = vmax.f32 %v1024_v13, 0.0 }
 0x1e6   :  { %3501 = vmatpush.bf16.msrb.mxu3 %v8444_v19 }
 0x1e7   :  { %12849 = vst [vmem:[#allocation88_spill] sm:$0xff] %v10498_v10 }
 0x1e8   :  { %12850 = vst [vmem:[#allocation89_spill] sm:$0xff] %v10500_v2  ;;  %v845_v24 = vpop.f32.mrf.mxu2  ;;  %v934_v0 = vpop.f32.mrf.mxu3  ;;  %v9335_v2 = vld [vmem:[#allocation8 + $0x16c] sm:$0xf0] }
 0x1e9   :  { %v758_v57 = vpop.f32.mrf.mxu1  ;;  %v1025_v16 = vpop.f32.mrf.mxu0  ;;  %v8188_v10 = vor.u32 %v9335_v2, %v8187_v20  ;;  %v846_v3 = vadd.f32 %v845_v24, %v10223_v4  ;;  %v935_v25 = vadd.f32 %v934_v0, %v10226_v5 }
 0x1ea   :  { %v759_v54 = vadd.f32 %v758_v57, %v10208_v33  ;;  %v1026_v28 = vadd.f32 %v1025_v16, %v10205_v22 }
 0x1eb   :  { %3323 = vmatpush.bf16.msrb.mxu1 %v8188_v10 }
 0x1ec   :  { %v1533_v51 = vmax.f32 %v759_v54, 0.0  ;;  %v1536_v36 = vmax.f32 %v1026_v28, 0.0  ;;  %v1526_v54 = vmax.f32 %v846_v3, 0.0  ;;  %v1527_v28 = vmax.f32 %v935_v25, 0.0 }
 0x1ee   :  { %v10508_v37 = vpack.c.bf16 %v1533_v51, %v1525_v31  ;;  %v10510_v62 = vpack.c.bf16 %v1536_v36, %v1528_v52 }
 0x1f0   :  { %12851 = vst [vmem:[#allocation90_spill] sm:$0xff] %v10508_v37  ;;  %v847_v13 = vpop.f32.mrf.mxu2  ;;  %v936_v19 = vpop.f32.mrf.mxu3 }
 0x1f1   :  { %12852 = vst [vmem:[#allocation91_spill] sm:$0xff] %v10510_v62  ;;  %v848_v57 = vadd.f32 %v847_v13, %v10223_v4  ;;  %v937_v16 = vadd.f32 %v936_v19, %v10226_v5  ;;  %v761_v55 = vpop.f32.mrf.mxu1  ;;  %v1028_v39 = vpop.f32.mrf.mxu0 }
 0x1f2   :  { %v1029_v0 = vadd.f32 %v1028_v39, %v10205_v22  ;;  %v762_v52 = vadd.f32 %v761_v55, %v10208_v33 }
 0x1f3   :  { %v1534_v20 = vmax.f32 %v848_v57, 0.0  ;;  %v1535_v2 = vmax.f32 %v937_v16, 0.0  ;;  %v8635_v57 = vld [vmem:[#allocation8 + $0x4e0] sm:$0xf]  ;;  %v9447_v16 = vld [vmem:[#allocation8 + $0x4ec] sm:$0xf0] }
 0x1f4   :  { %1076 = vmatmul.bf16.gmra.mxu1 %v10097_v58  ;;  %3273 = vmatmul.bf16.gmra.mxu0 %v10200_v11  ;;  %v1544_v25 = vmax.f32 %v1029_v0, 0.0 }
 0x1f5   :  { %v10518_v10 = vpack.c.bf16 %v1534_v20, %v1526_v54  ;;  %v10520_v24 = vpack.c.bf16 %v1535_v2, %v1527_v28  ;;  %1165 = vmatmul.bf16.gmra.mxu2 %v10097_v58  ;;  %1254 = vmatmul.bf16.gmra.mxu3 %v10097_v58  ;;  %v1541_v54 = vmax.f32 %v762_v52, 0.0  ;;  %v8636_v2 = vor.u32 %v9447_v16, %v8635_v57 }
 0x1f7   :  { %12853 = vst [vmem:[#allocation92_spill] sm:$0xff] %v10518_v10  ;;  %3586 = vmatpush.bf16.msrb.mxu0 %v8636_v2 }
 0x1f8   :  { %12854 = vst [vmem:[#allocation93_spill] sm:$0xff] %v10520_v24  ;;  %v850_v31 = vpop.f32.mrf.mxu2  ;;  %v939_v51 = vpop.f32.mrf.mxu3 }
 0x1f9   :  { %v763_v36 = vpop.f32.mrf.mxu1  ;;  %v1030_v3 = vpop.f32.mrf.mxu0  ;;  %v851_v55 = vadd.f32 %v850_v31, %v10223_v4  ;;  %v940_v11 = vadd.f32 %v939_v51, %v10226_v5 }
 0x1fa   :  { %v764_v13 = vadd.f32 %v763_v36, %v10208_v33  ;;  %v1031_v19 = vadd.f32 %v1030_v3, %v10205_v22 }
 0x1fb   :  { %v1542_v3 = vmax.f32 %v851_v55, 0.0 }
 0x1fc   :  { %v1549_v28 = vmax.f32 %v764_v13, 0.0  ;;  %v1552_v20 = vmax.f32 %v1031_v19, 0.0  ;;  %v1543_v13 = vmax.f32 %v940_v11, 0.0  ;;  %v8427_v11 = vld [vmem:[#allocation8 + $0x340] sm:$0xf] }
 0x1fe   :  { %v10528_v58 = vpack.c.bf16 %v1549_v28, %v1541_v54  ;;  %v10530_v39 = vpack.c.bf16 %v1552_v20, %v1544_v25  ;;  %v9755_v25 = vld [vmem:[#allocation7] sm:$0xff]  ;;  %v9395_v54 = vld [vmem:[#allocation8 + $0x34c] sm:$0xf0] }
 0x1ff   :  { %v10538_v16 = vperm.slane %v9755_v25, 5  ;;  %v8428_v28 = vor.u32 %v9395_v54, %v8427_v11 }
 0x200   :  { %12855 = vst [vmem:[#allocation94_spill] sm:$0xff] %v10528_v58  ;;  %v852_v0 = vpop.f32.mrf.mxu2  ;;  %v941_v24 = vpop.f32.mrf.mxu3 }
 0x201   :  { %12856 = vst [vmem:[#allocation95_spill] sm:$0xff] %v10530_v39  ;;  %v853_v33 = vadd.f32 %v852_v0, %v10223_v4  ;;  %v942_v22 = vadd.f32 %v941_v24, %v10226_v5  ;;  %v1042_v36 = vpop.f32.mrf.mxu1  ;;  %v10536_v52 = vpop.f32.mrf.mxu0  ;;  %v8299_v4 = vld [vmem:[#allocation8 + $0x240] sm:$0xf]  ;;  %v9363_v5 = vld [vmem:[#allocation8 + $0x24c] sm:$0xf0]  ;;  %3502 = vmatpush.bf16.msrb.mxu3 %v8428_v28 }
 0x202   :  { %v8300_v24 = vor.u32 %v9363_v5, %v8299_v4  ;;  %v1043_v20 = vadd.f32 %v1042_v36, %v10538_v16 }
 0x203   :  { %v1550_v19 = vmax.f32 %v853_v33, 0.0  ;;  %v1551_v57 = vmax.f32 %v942_v22, 0.0 }
 0x204   :  { %1081 = vmatmul.bf16.gmra.mxu1 %v10063_v46  ;;  %3278 = vmatmul.bf16.gmra.mxu0 %v10147_v7 }
 0x205   :  { %v10542_v31 = vpack.c.bf16 %v1550_v19, %v1542_v3  ;;  %v10544_v51 = vpack.c.bf16 %v1551_v57, %v1543_v13  ;;  %1170 = vmatmul.bf16.gmra.mxu2 %v10063_v46  ;;  %1259 = vmatmul.bf16.gmra.mxu3 %v10063_v46  ;;  %v10552_v3 = vperm.slane %v9755_v25, 6  ;;  %v10554_v46 = vperm.slane %v9755_v25, 7  ;;  %v8171_v13 = vld [vmem:[#allocation8 + $0x140] sm:$0xf]  ;;  %v9331_v19 = vld [vmem:[#allocation8 + $0x14c] sm:$0xf0] }
 0x206   :  { %3413 = vmatpush.bf16.msrb.mxu2 %v8300_v24  ;;  %v1305_v57 = vmax.f32 %v1043_v20, 0.0  ;;  %v8172_v5 = vor.u32 %v9331_v19, %v8171_v13 }
 0x207   :  { %12857 = vst [vmem:[#allocation96_spill] sm:$0xff] %v10542_v31 }
 0x208   :  { %12858 = vst [vmem:[#allocation97_spill] sm:$0xff] %v10544_v51  ;;  %v1131_v2 = vpop.f32.mrf.mxu2  ;;  %v1220_v55 = vpop.f32.mrf.mxu3  ;;  %3324 = vmatpush.bf16.msrb.mxu1 %v8172_v5 }
 0x209   :  { %v1044_v0 = vpop.f32.mrf.mxu1  ;;  %v10549_v33 = vpop.f32.mrf.mxu0  ;;  %v1132_v36 = vadd.f32 %v1131_v2, %v10552_v3  ;;  %v1221_v24 = vadd.f32 %v1220_v55, %v10554_v46 }
 0x20a   :  { %v1045_v22 = vadd.f32 %v1044_v0, %v10538_v16 }
 0x20b   :  { %v1306_v31 = vmax.f32 %v1132_v36, 0.0  ;;  %v1307_v20 = vmax.f32 %v1221_v24, 0.0  ;;  %v8619_v24 = vld [vmem:[#allocation8 + $0x4c0] sm:$0xf] }
 0x20c   :  { %v1313_v4 = vmax.f32 %v1045_v22, 0.0 }
 0x20e   :  { %v10556_v11 = vpack.c.bf16 %v1313_v4, %v1305_v57 }
 0x210   :  { %12859 = vst [vmem:[#allocation98_spill] sm:$0xff] %v10556_v11  ;;  %v1133_v54 = vpop.f32.mrf.mxu2  ;;  %v1222_v28 = vpop.f32.mrf.mxu3 }
 0x211   :  { %v1134_v0 = vadd.f32 %v1133_v54, %v10552_v3  ;;  %v1223_v7 = vadd.f32 %v1222_v28, %v10554_v46  ;;  %v1047_v25 = vpop.f32.mrf.mxu1  ;;  %v10562_v51 = vpop.f32.mrf.mxu0  ;;  %v9443_v54 = vld [vmem:[#allocation8 + $0x4cc] sm:$0xf0] }
 0x212   :  { %v1048_v19 = vadd.f32 %v1047_v25, %v10538_v16 }
 0x213   :  { %v1314_v22 = vmax.f32 %v1134_v0, 0.0  ;;  %v1315_v13 = vmax.f32 %v1223_v7, 0.0  ;;  %v8620_v0 = vor.u32 %v9443_v54, %v8619_v24  ;;  %v8283_v54 = vld [vmem:[#allocation8 + $0x220] sm:$0xf] }
 0x214   :  { %1086 = vmatmul.bf16.gmra.mxu1 %v10075_v43  ;;  %3283 = vmatmul.bf16.gmra.mxu0 %v10167_v49  ;;  %v1321_v28 = vmax.f32 %v1048_v19, 0.0 }
 0x215   :  { %v10566_v2 = vpack.c.bf16 %v1314_v22, %v1306_v31  ;;  %v10568_v55 = vpack.c.bf16 %v1315_v13, %v1307_v20  ;;  %1175 = vmatmul.bf16.gmra.mxu2 %v10075_v43  ;;  %1264 = vmatmul.bf16.gmra.mxu3 %v10075_v43 }
 0x216   :  { %3587 = vmatpush.bf16.msrb.mxu0 %v8620_v0 }
 0x217   :  { %12860 = vst [vmem:[#allocation99_spill] sm:$0xff] %v10566_v2 }
 0x218   :  { %12861 = vst [vmem:[#allocation100_spill] sm:$0xff] %v10568_v55  ;;  %v1136_v57 = vpop.f32.mrf.mxu2  ;;  %v1225_v4 = vpop.f32.mrf.mxu3 }
 0x219   :  { %v1049_v5 = vpop.f32.mrf.mxu1  ;;  %v10573_v36 = vpop.f32.mrf.mxu0  ;;  %v1137_v22 = vadd.f32 %v1136_v57, %v10552_v3  ;;  %v1226_v43 = vadd.f32 %v1225_v4, %v10554_v46 }
 0x21a   :  { %v1050_v7 = vadd.f32 %v1049_v5, %v10538_v16 }
 0x21b   :  { %v1322_v11 = vmax.f32 %v1137_v22, 0.0  ;;  %v1323_v19 = vmax.f32 %v1226_v43, 0.0  ;;  %v9391_v22 = vld [vmem:[#allocation8 + $0x32c] sm:$0xf0] }
 0x21c   :  { %v1329_v31 = vmax.f32 %v1050_v7, 0.0 }
 0x21e   :  { %v10576_v20 = vpack.c.bf16 %v1329_v31, %v1321_v28  ;;  %v9359_v28 = vld [vmem:[#allocation8 + $0x22c] sm:$0xf0]  ;;  %v8411_v31 = vld [vmem:[#allocation8 + $0x320] sm:$0xf] }
 0x21f   :  { %v8284_v0 = vor.u32 %v9359_v28, %v8283_v54  ;;  %v8412_v43 = vor.u32 %v9391_v22, %v8411_v31 }
 0x220   :  { %12862 = vst [vmem:[#allocation101_spill] sm:$0xff] %v10576_v20  ;;  %v1138_v25 = vpop.f32.mrf.mxu2  ;;  %v1227_v13 = vpop.f32.mrf.mxu3 }
 0x221   :  { %v1139_v49 = vadd.f32 %v1138_v25, %v10552_v3  ;;  %v1228_v55 = vadd.f32 %v1227_v13, %v10554_v46  ;;  %v1052_v2 = vpop.f32.mrf.mxu1  ;;  %v10582_v5 = vpop.f32.mrf.mxu0  ;;  %3414 = vmatpush.bf16.msrb.mxu2 %v8284_v0  ;;  %3503 = vmatpush.bf16.msrb.mxu3 %v8412_v43 }
 0x223   :  { %v1330_v7 = vmax.f32 %v1139_v49, 0.0  ;;  %v1331_v24 = vmax.f32 %v1228_v55, 0.0  ;;  %v1053_v49 = vadd.f32 %v1052_v2, %v10538_v16 }
 0x224   :  { %1091 = vmatmul.bf16.gmra.mxu1 %v10087_v29  ;;  %3288 = vmatmul.bf16.gmra.mxu0 %v10187_v40 }
 0x225   :  { %v10586_v57 = vpack.c.bf16 %v1330_v7, %v1322_v11  ;;  %v10588_v4 = vpack.c.bf16 %v1331_v24, %v1323_v19  ;;  %1180 = vmatmul.bf16.gmra.mxu2 %v10087_v29  ;;  %1269 = vmatmul.bf16.gmra.mxu3 %v10087_v29  ;;  %v8155_v7 = vld [vmem:[#allocation8 + $0x120] sm:$0xf]  ;;  %v9327_v24 = vld [vmem:[#allocation8 + $0x12c] sm:$0xf0]  ;;  %v1337_v29 = vmax.f32 %v1053_v49, 0.0 }
 0x227   :  { %12863 = vst [vmem:[#allocation102_spill] sm:$0xff] %v10586_v57 }
 0x228   :  { %12864 = vst [vmem:[#allocation103_spill] sm:$0xff] %v10588_v4  ;;  %v1141_v55 = vpop.f32.mrf.mxu2  ;;  %v1230_v25 = vpop.f32.mrf.mxu3  ;;  %v8156_v4 = vor.u32 %v9327_v24, %v8155_v7 }
 0x229   :  { %v1054_v13 = vpop.f32.mrf.mxu1  ;;  %v10593_v11 = vpop.f32.mrf.mxu0  ;;  %v1142_v54 = vadd.f32 %v1141_v55, %v10552_v3  ;;  %v1231_v2 = vadd.f32 %v1230_v25, %v10554_v46 }
 0x22a   :  { %v1055_v19 = vadd.f32 %v1054_v13, %v10538_v16  ;;  %3325 = vmatpush.bf16.msrb.mxu1 %v8156_v4 }
 0x22b   :  { %v1338_v20 = vmax.f32 %v1142_v54, 0.0  ;;  %v1339_v49 = vmax.f32 %v1231_v2, 0.0 }
 0x22c   :  { %v1345_v40 = vmax.f32 %v1055_v19, 0.0 }
 0x22e   :  { %v10596_v57 = vpack.c.bf16 %v1345_v40, %v1337_v29 }
 0x230   :  { %12865 = vst [vmem:[#allocation104_spill] sm:$0xff] %v10596_v57  ;;  %v1143_v28 = vpop.f32.mrf.mxu2  ;;  %v1232_v31 = vpop.f32.mrf.mxu3 }
 0x231   :  { %v1144_v0 = vadd.f32 %v1143_v28, %v10552_v3  ;;  %v1233_v22 = vadd.f32 %v1232_v31, %v10554_v46  ;;  %v1057_v43 = vpop.f32.mrf.mxu1  ;;  %v10602_v13 = vpop.f32.mrf.mxu0  ;;  %v8603_v28 = vld [vmem:[#allocation8 + $0x4a0] sm:$0xf]  ;;  %v9439_v31 = vld [vmem:[#allocation8 + $0x4ac] sm:$0xf0] }
 0x232   :  { %v1058_v55 = vadd.f32 %v1057_v43, %v10538_v16 }
 0x233   :  { %v1346_v19 = vmax.f32 %v1144_v0, 0.0  ;;  %v1347_v7 = vmax.f32 %v1233_v22, 0.0  ;;  %v8604_v22 = vor.u32 %v9439_v31, %v8603_v28  ;;  %v8267_v31 = vld [vmem:[#allocation8 + $0x200] sm:$0xf] }
 0x234   :  { %1096 = vmatmul.bf16.gmra.mxu1 %v10099_v59  ;;  %3293 = vmatmul.bf16.gmra.mxu0 %v10212_v34  ;;  %v1353_v0 = vmax.f32 %v1058_v55, 0.0 }
 0x235   :  { %v10606_v40 = vpack.c.bf16 %v1346_v19, %v1338_v20  ;;  %v10608_v4 = vpack.c.bf16 %v1347_v7, %v1339_v49  ;;  %1185 = vmatmul.bf16.gmra.mxu2 %v10099_v59  ;;  %1274 = vmatmul.bf16.gmra.mxu3 %v10099_v59 }
 0x236   :  { %3588 = vmatpush.bf16.msrb.mxu0 %v8604_v22 }
 0x237   :  { %12866 = vst [vmem:[#allocation105_spill] sm:$0xff] %v10606_v40 }
 0x238   :  { %12867 = vst [vmem:[#allocation106_spill] sm:$0xff] %v10608_v4  ;;  %v1146_v25 = vpop.f32.mrf.mxu2  ;;  %v1235_v24 = vpop.f32.mrf.mxu3 }
 0x239   :  { %v1059_v29 = vpop.f32.mrf.mxu1  ;;  %v10613_v54 = vpop.f32.mrf.mxu0  ;;  %v1147_v19 = vadd.f32 %v1146_v25, %v10552_v3  ;;  %v1236_v59 = vadd.f32 %v1235_v24, %v10554_v46 }
 0x23a   :  { %v1060_v2 = vadd.f32 %v1059_v29, %v10538_v16 }
 0x23b   :  { %v1354_v57 = vmax.f32 %v1147_v19, 0.0  ;;  %v1355_v55 = vmax.f32 %v1236_v59, 0.0  ;;  %v9387_v19 = vld [vmem:[#allocation8 + $0x30c] sm:$0xf0] }
 0x23c   :  { %v1361_v20 = vmax.f32 %v1060_v2, 0.0 }
 0x23e   :  { %v10616_v49 = vpack.c.bf16 %v1361_v20, %v1353_v0  ;;  %v9355_v0 = vld [vmem:[#allocation8 + $0x20c] sm:$0xf0]  ;;  %v8395_v20 = vld [vmem:[#allocation8 + $0x300] sm:$0xf] }
 0x23f   :  { %v8268_v22 = vor.u32 %v9355_v0, %v8267_v31  ;;  %v8396_v59 = vor.u32 %v9387_v19, %v8395_v20 }
 0x240   :  { %12868 = vst [vmem:[#allocation107_spill] sm:$0xff] %v10616_v49  ;;  %v1148_v43 = vpop.f32.mrf.mxu2  ;;  %v1237_v7 = vpop.f32.mrf.mxu3 }
 0x241   :  { %v1149_v34 = vadd.f32 %v1148_v43, %v10552_v3  ;;  %v1238_v4 = vadd.f32 %v1237_v7, %v10554_v46  ;;  %v1062_v40 = vpop.f32.mrf.mxu1  ;;  %v10622_v29 = vpop.f32.mrf.mxu0  ;;  %3415 = vmatpush.bf16.msrb.mxu2 %v8268_v22  ;;  %3504 = vmatpush.bf16.msrb.mxu3 %v8396_v59  ;;  %v9435_v22 = vld [vmem:[#allocation8 + $0x48c] sm:$0xf0] }
 0x243   :  { %v1362_v2 = vmax.f32 %v1149_v34, 0.0  ;;  %v1363_v28 = vmax.f32 %v1238_v4, 0.0  ;;  %v1063_v34 = vadd.f32 %v1062_v40, %v10538_v16  ;;  %v8587_v40 = vld [vmem:[#allocation8 + $0x480] sm:$0xf] }
 0x244   :  { %1101 = vmatmul.bf16.gmra.mxu1 %v10065_v47  ;;  %3298 = vmatmul.bf16.gmra.mxu0 %v10149_v8  ;;  %v8588_v49 = vor.u32 %v9435_v22, %v8587_v40 }
 0x245   :  { %v10626_v25 = vpack.c.bf16 %v1362_v2, %v1354_v57  ;;  %v10628_v24 = vpack.c.bf16 %v1363_v28, %v1355_v55  ;;  %1190 = vmatmul.bf16.gmra.mxu2 %v10065_v47  ;;  %1279 = vmatmul.bf16.gmra.mxu3 %v10065_v47  ;;  %v8139_v2 = vld [vmem:[#allocation8 + $0x100] sm:$0xf]  ;;  %v9323_v28 = vld [vmem:[#allocation8 + $0x10c] sm:$0xf0]  ;;  %v1369_v47 = vmax.f32 %v1063_v34, 0.0 }
 0x246   :  { %3589 = vmatpush.bf16.msrb.mxu0 %v8588_v49  ;;  %v9427_v49 = vld [vmem:[#allocation8 + $0x44c] sm:$0xf0] }
 0x247   :  { %12869 = vst [vmem:[#allocation108_spill] sm:$0xff] %v10626_v25 }
 0x248   :  { %12870 = vst [vmem:[#allocation109_spill] sm:$0xff] %v10628_v24  ;;  %v1151_v4 = vpop.f32.mrf.mxu2  ;;  %v1240_v43 = vpop.f32.mrf.mxu3  ;;  %v8140_v24 = vor.u32 %v9323_v28, %v8139_v2  ;;  %v9431_v28 = vld [vmem:[#allocation8 + $0x46c] sm:$0xf0] }
 0x249   :  { %v1064_v7 = vpop.f32.mrf.mxu1  ;;  %v10633_v57 = vpop.f32.mrf.mxu0  ;;  %v1152_v31 = vadd.f32 %v1151_v4, %v10552_v3  ;;  %v1241_v0 = vadd.f32 %v1240_v43, %v10554_v46 }
 0x24a   :  { %v1065_v55 = vadd.f32 %v1064_v7, %v10538_v16  ;;  %3326 = vmatpush.bf16.msrb.mxu1 %v8140_v24 }
 0x24b   :  { %v1371_v2 = vmax.f32 %v1241_v0, 0.0 }
 0x24c   :  { %v1377_v8 = vmax.f32 %v1065_v55, 0.0  ;;  %v1370_v55 = vmax.f32 %v1152_v31, 0.0 }
 0x24e   :  { %v10638_v20 = vpack.c.bf16 %v1377_v8, %v1369_v47  ;;  %v8571_v8 = vld [vmem:[#allocation8 + $0x460] sm:$0xf] }
 0x24f   :  { %v8572_v24 = vor.u32 %v9431_v28, %v8571_v8 }
 0x250   :  { %12871 = vst [vmem:[#allocation110_spill] sm:$0xff] %v10638_v20  ;;  %v1153_v19 = vpop.f32.mrf.mxu2  ;;  %v1242_v25 = vpop.f32.mrf.mxu3 }
 0x251   :  { %v1154_v59 = vadd.f32 %v1153_v19, %v10552_v3  ;;  %v1243_v7 = vadd.f32 %v1242_v25, %v10554_v46  ;;  %v1067_v39 = vpop.f32.mrf.mxu1  ;;  %v10642_v34 = vpop.f32.mrf.mxu0  ;;  %3590 = vmatpush.bf16.msrb.mxu0 %v8572_v24  ;;  %v8555_v25 = vld [vmem:[#allocation8 + $0x440] sm:$0xf] }
 0x252   :  { %v1068_v31 = vadd.f32 %v1067_v39, %v10538_v16  ;;  %v8556_v19 = vor.u32 %v9427_v49, %v8555_v25  ;;  %v9419_v25 = vld [vmem:[#allocation8 + $0x40c] sm:$0xf0] }
 0x253   :  { %v1378_v4 = vmax.f32 %v1154_v59, 0.0  ;;  %v1379_v43 = vmax.f32 %v1243_v7, 0.0 }
 0x254   :  { %1106 = vmatmul.bf16.gmra.mxu1 %v10077_v44  ;;  %3303 = vmatmul.bf16.gmra.mxu0 %v10169_v50  ;;  %v8523_v50 = vld [vmem:[#allocation8 + $0x400] sm:$0xf] }
 0x255   :  { %v10646_v47 = vpack.c.bf16 %v1378_v4, %v1370_v55  ;;  %v10648_v40 = vpack.c.bf16 %v1379_v43, %v1371_v2  ;;  %1195 = vmatmul.bf16.gmra.mxu2 %v10077_v44  ;;  %1284 = vmatmul.bf16.gmra.mxu3 %v10077_v44  ;;  %v8539_v2 = vld [vmem:[#allocation8 + $0x420] sm:$0xf]  ;;  %v9423_v4 = vld [vmem:[#allocation8 + $0x42c] sm:$0xf0]  ;;  %v1385_v43 = vmax.f32 %v1068_v31, 0.0 }
 0x256   :  { %3591 = vmatpush.bf16.msrb.mxu0 %v8556_v19  ;;  %v8540_v28 = vor.u32 %v9423_v4, %v8539_v2 }
 0x257   :  { %12872 = vst [vmem:[#allocation111_spill] sm:$0xff] %v10646_v47  ;;  %v8524_v47 = vor.u32 %v9419_v25, %v8523_v50  ;;  %v8891_v50 = vld [vmem:[#allocation8 + $0x6e0] sm:$0xf] }
 0x258   :  { %12873 = vst [vmem:[#allocation112_spill] sm:$0xff] %v10648_v40  ;;  %v1156_v0 = vpop.f32.mrf.mxu2  ;;  %v1245_v22 = vpop.f32.mrf.mxu3 }
 0x259   :  { %v1069_v59 = vpop.f32.mrf.mxu1  ;;  %v10653_v7 = vpop.f32.mrf.mxu0  ;;  %v1157_v24 = vadd.f32 %v1156_v0, %v10552_v3  ;;  %v1246_v39 = vadd.f32 %v1245_v22, %v10554_v46 }
 0x25a   :  { %v1070_v55 = vadd.f32 %v1069_v59, %v10538_v16  ;;  %3592 = vmatpush.bf16.msrb.mxu0 %v8540_v28  ;;  %v9543_v28 = vld [vmem:[#allocation8 + $0x7ec] sm:$0xf0] }
 0x25b   :  { %v1387_v2 = vmax.f32 %v1246_v39, 0.0 }
 0x25c   :  { %v1393_v8 = vmax.f32 %v1070_v55, 0.0  ;;  %v1386_v55 = vmax.f32 %v1157_v24, 0.0 }
 0x25e   :  { %v10656_v44 = vpack.c.bf16 %v1393_v8, %v1385_v43  ;;  %3593 = vmatpush.bf16.msrb.mxu0 %v8524_v47  ;;  %v9019_v8 = vld [vmem:[#allocation8 + $0x7e0] sm:$0xf] }
 0x25f   :  { %v9020_v24 = vor.u32 %v9543_v28, %v9019_v8 }
 0x260   :  { %12874 = vst [vmem:[#allocation113_spill] sm:$0xff] %v10656_v44  ;;  %v1158_v49 = vpop.f32.mrf.mxu2  ;;  %v1247_v40 = vpop.f32.mrf.mxu3 }
 0x261   :  { %v1159_v59 = vadd.f32 %v1158_v49, %v10552_v3  ;;  %v1248_v19 = vadd.f32 %v1247_v40, %v10554_v46  ;;  %v1072_v20 = vpop.f32.mrf.mxu1  ;;  %v10662_v31 = vpop.f32.mrf.mxu0  ;;  %v9511_v40 = vld [vmem:[#allocation8 + $0x6ec] sm:$0xf0]  ;;  %3853 = vmatpush.bf16.msra.mxu3 %v9020_v24 }
 0x262   :  { %v8892_v47 = vor.u32 %v9511_v40, %v8891_v50  ;;  %v1073_v39 = vadd.f32 %v1072_v20, %v10538_v16 }
 0x263   :  { %v1394_v4 = vmax.f32 %v1159_v59, 0.0  ;;  %v1395_v43 = vmax.f32 %v1248_v19, 0.0 }
 0x264   :  { %1111 = vmatmul.bf16.gmra.mxu1 %v10089_v30  ;;  %3308 = vmatmul.bf16.gmra.mxu0 %v10189_v45 }
 0x265   :  { %v10666_v0 = vpack.c.bf16 %v1394_v4, %v1386_v55  ;;  %v10668_v22 = vpack.c.bf16 %v1395_v43, %v1387_v2  ;;  %1200 = vmatmul.bf16.gmra.mxu2 %v10089_v30  ;;  %1289 = vmatmul.bf16.gmra.mxu3 %v10089_v30  ;;  %v8763_v2 = vld [vmem:[#allocation8 + $0x5e0] sm:$0xf]  ;;  %v9479_v4 = vld [vmem:[#allocation8 + $0x5ec] sm:$0xf0]  ;;  %v1401_v30 = vmax.f32 %v1073_v39, 0.0 }
 0x266   :  { %3764 = vmatpush.bf16.msra.mxu2 %v8892_v47  ;;  %v8764_v45 = vor.u32 %v9479_v4, %v8763_v2 }
 0x267   :  { %12875 = vst [vmem:[#allocation114_spill] sm:$0xff] %v10666_v0 }
 0x268   :  { %12876 = vst [vmem:[#allocation115_spill] sm:$0xff] %v10668_v22  ;;  %v1161_v25 = vpop.f32.mrf.mxu2  ;;  %v1250_v49 = vpop.f32.mrf.mxu3  ;;  %3675 = vmatpush.bf16.msra.mxu1 %v8764_v45 }
 0x269   :  { %v1074_v59 = vpop.f32.mrf.mxu1  ;;  %v10673_v19 = vpop.f32.mrf.mxu0  ;;  %v1162_v50 = vadd.f32 %v1161_v25, %v10552_v3  ;;  %v1251_v20 = vadd.f32 %v1250_v49, %v10554_v46 }
 0x26a   :  { %v1075_v55 = vadd.f32 %v1074_v59, %v10538_v16 }
 0x26b   :  { %v1402_v0 = vmax.f32 %v1162_v50, 0.0  ;;  %v1403_v39 = vmax.f32 %v1251_v20, 0.0 }
 0x26c   :  { %v1409_v43 = vmax.f32 %v1075_v55, 0.0 }
 0x26e   :  { %v10676_v22 = vpack.c.bf16 %v1409_v43, %v1401_v30 }
 0x270   :  { %12877 = vst [vmem:[#allocation116_spill] sm:$0xff] %v10676_v22  ;;  %v1163_v40 = vpop.f32.mrf.mxu2  ;;  %v1252_v8 = vpop.f32.mrf.mxu3 }
 0x271   :  { %v1164_v47 = vadd.f32 %v1163_v40, %v10552_v3  ;;  %v1253_v28 = vadd.f32 %v1252_v8, %v10554_v46  ;;  %v1077_v24 = vpop.f32.mrf.mxu1  ;;  %v10682_v59 = vpop.f32.mrf.mxu0 }
 0x272   :  { %v1078_v49 = vadd.f32 %v1077_v24, %v10538_v16 }
 0x273   :  { %v1410_v55 = vmax.f32 %v1164_v47, 0.0  ;;  %v1411_v2 = vmax.f32 %v1253_v28, 0.0 }
 0x274   :  { %1116 = vmatmul.bf16.gmra.mxu1 %v10101_v60  ;;  %3313 = vmatmul.bf16.gmra.mxu0 %v10214_v35  ;;  %v1417_v40 = vmax.f32 %v1078_v49, 0.0 }
 0x275   :  { %v10686_v45 = vpack.c.bf16 %v1410_v55, %v1402_v0  ;;  %v10688_v25 = vpack.c.bf16 %v1411_v2, %v1403_v39  ;;  %1205 = vmatmul.bf16.gmra.mxu2 %v10101_v60  ;;  %1294 = vmatmul.bf16.gmra.mxu3 %v10101_v60 }
 0x277   :  { %12878 = vst [vmem:[#allocation117_spill] sm:$0xff] %v10686_v45 }
 0x278   :  { %12879 = vst [vmem:[#allocation118_spill] sm:$0xff] %v10688_v25  ;;  %v1166_v4 = vpop.f32.mrf.mxu2  ;;  %v1255_v30 = vpop.f32.mrf.mxu3 }
 0x279   :  { %v1079_v43 = vpop.f32.mrf.mxu1  ;;  %v10693_v50 = vpop.f32.mrf.mxu0  ;;  %v1167_v0 = vadd.f32 %v1166_v4, %v10552_v3  ;;  %v1256_v28 = vadd.f32 %v1255_v30, %v10554_v46 }
 0x27a   :  { %v1080_v20 = vadd.f32 %v1079_v43, %v10538_v16 }
 0x27b   :  { %v1418_v25 = vmax.f32 %v1167_v0, 0.0  ;;  %v1419_v45 = vmax.f32 %v1256_v28, 0.0  ;;  %v9539_v0 = vld [vmem:[#allocation8 + $0x7cc] sm:$0xf0] }
 0x27c   :  { %v1425_v8 = vmax.f32 %v1080_v20, 0.0  ;;  %v8875_v20 = vld [vmem:[#allocation8 + $0x6c0] sm:$0xf] }
 0x27e   :  { %v10696_v47 = vpack.c.bf16 %v1425_v8, %v1417_v40  ;;  %v9507_v40 = vld [vmem:[#allocation8 + $0x6cc] sm:$0xf0]  ;;  %v9003_v8 = vld [vmem:[#allocation8 + $0x7c0] sm:$0xf] }
 0x27f   :  { %v9004_v28 = vor.u32 %v9539_v0, %v9003_v8 }
 0x280   :  { %12880 = vst [vmem:[#allocation119_spill] sm:$0xff] %v10696_v47  ;;  %v1168_v39 = vpop.f32.mrf.mxu2  ;;  %v1257_v55 = vpop.f32.mrf.mxu3 }
 0x281   :  { %v1169_v60 = vadd.f32 %v1168_v39, %v10552_v3  ;;  %v1258_v24 = vadd.f32 %v1257_v55, %v10554_v46  ;;  %v1082_v2 = vpop.f32.mrf.mxu1  ;;  %v10702_v35 = vpop.f32.mrf.mxu0  ;;  %v8876_v39 = vor.u32 %v9507_v40, %v8875_v20  ;;  %3854 = vmatpush.bf16.msra.mxu3 %v9004_v28 }
 0x282   :  { %v1083_v55 = vadd.f32 %v1082_v2, %v10538_v16 }
 0x283   :  { %v1426_v43 = vmax.f32 %v1169_v60, 0.0  ;;  %v1427_v49 = vmax.f32 %v1258_v24, 0.0  ;;  %3765 = vmatpush.bf16.msra.mxu2 %v8876_v39 }
 0x284   :  { %3327 = vmatmul.bf16.vlgmr.msrb.gmra.mxu1 %v10228_v18  ;;  %3594 = vmatmul.bf16.vlgmr.msrb.gmra.mxu0 %v10230_v21 }
 0x285   :  { %v10706_v4 = vpack.c.bf16 %v1426_v43, %v1418_v25  ;;  %v10708_v30 = vpack.c.bf16 %v1427_v49, %v1419_v45  ;;  %3416 = vmatmul.bf16.vlgmr.msrb.gmra.mxu2 %v10238_v56  ;;  %3505 = vmatmul.bf16.vlgmr.msrb.gmra.mxu3 %v10240_v61  ;;  %v8747_v43 = vld [vmem:[#allocation8 + $0x5c0] sm:$0xf]  ;;  %v9475_v49 = vld [vmem:[#allocation8 + $0x5cc] sm:$0xf0]  ;;  %v1433_v61 = vmax.f32 %v1083_v55, 0.0 }
 0x286   :  { %v8748_v18 = vor.u32 %v9475_v49, %v8747_v43 }
 0x287   :  { %12881 = vst [vmem:[#allocation120_spill] sm:$0xff] %v10706_v4 }
 0x288   :  { %12882 = vst [vmem:[#allocation121_spill] sm:$0xff] %v10708_v30  ;;  %v1171_v60 = vpop.f32.mrf.mxu2  ;;  %v1260_v24 = vpop.f32.mrf.mxu3  ;;  %3676 = vmatpush.bf16.msra.mxu1 %v8748_v18 }
 0x289   :  { %v1084_v21 = vpop.f32.mrf.mxu1  ;;  %v10713_v25 = vpop.f32.mrf.mxu0  ;;  %v1172_v20 = vadd.f32 %v1171_v60, %v10552_v3  ;;  %v1261_v2 = vadd.f32 %v1260_v24, %v10554_v46  ;;  %v12887_v60 = vld [vmem:[#allocation43_spill] sm:$0xff] }
 0x28a   :  { %v1085_v45 = vadd.f32 %v1084_v21, %v10538_v16 }
 0x28b   :  { %v1434_v4 = vmax.f32 %v1172_v20, 0.0  ;;  %v1435_v55 = vmax.f32 %v1261_v2, 0.0 }
 0x28c   :  { %v1441_v56 = vmax.f32 %v1085_v45, 0.0 }
 0x28e   :  { %v10716_v30 = vpack.c.bf16 %v1441_v56, %v1433_v61  ;;  %v12886_v61 = vld [vmem:[#allocation42_spill] sm:$0xff] }
 0x290   :  { %12883 = vst [vmem:[#allocation122_spill] sm:$0xff] %v10716_v30  ;;  %v1173_v40 = vpop.f32.mrf.mxu2  ;;  %v1262_v8 = vpop.f32.mrf.mxu3  ;;  %v8987_v30 = vld [vmem:[#allocation8 + $0x7a0] sm:$0xf] }
 0x291   :  { %v1174_v39 = vadd.f32 %v1173_v40, %v10552_v3  ;;  %v1263_v0 = vadd.f32 %v1262_v8, %v10554_v46  ;;  %v1087_v28 = vpop.f32.mrf.mxu1  ;;  %v10722_v21 = vpop.f32.mrf.mxu0 }
 0x292   :  { %v1088_v24 = vadd.f32 %v1087_v28, %v10538_v16 }
 0x293   :  { %v1442_v45 = vmax.f32 %v1174_v39, 0.0  ;;  %v1443_v43 = vmax.f32 %v1263_v0, 0.0 }
 0x294   :  { %3332 = vmatmul.bf16.gmra.mxu1 %v10248_v32  ;;  %3599 = vmatmul.bf16.gmra.mxu0 %v10250_v15  ;;  %v1449_v39 = vmax.f32 %v1088_v24, 0.0 }
 0x295   :  { %v10726_v18 = vpack.c.bf16 %v1442_v45, %v1434_v4  ;;  %v10728_v56 = vpack.c.bf16 %v1443_v43, %v1435_v55  ;;  %3421 = vmatmul.bf16.gmra.mxu2 %v12886_v61  ;;  %3510 = vmatmul.bf16.gmra.mxu3 %v12887_v60 }
 0x297   :  { %12884 = vst [vmem:[#allocation123_spill] sm:$0xff] %v10726_v18 }
 0x298   :  { %12885 = vst [vmem:[#allocation124_spill] sm:$0xff] %v10728_v56  ;;  %v1176_v49 = vpop.f32.mrf.mxu2  ;;  %v1265_v40 = vpop.f32.mrf.mxu3 }
 0x299   :  { %v1089_v20 = vpop.f32.mrf.mxu1  ;;  %v10733_v2 = vpop.f32.mrf.mxu0  ;;  %v1177_v4 = vadd.f32 %v1176_v49, %v10552_v3  ;;  %v1266_v55 = vadd.f32 %v1265_v40, %v10554_v46 }
 0x29a   :  { %v1090_v8 = vadd.f32 %v1089_v20, %v10538_v16 }
 0x29b   :  { %v1450_v56 = vmax.f32 %v1177_v4, 0.0  ;;  %v1451_v18 = vmax.f32 %v1266_v55, 0.0  ;;  %v9535_v4 = vld [vmem:[#allocation8 + $0x7ac] sm:$0xf0] }
 0x29c   :  { %v1457_v0 = vmax.f32 %v1090_v8, 0.0  ;;  %v12889_v8 = vld [vmem:[#allocation44_spill] sm:$0xff]  ;;  %v8988_v55 = vor.u32 %v9535_v4, %v8987_v30 }
 0x29e   :  { %v10736_v15 = vpack.c.bf16 %v1457_v0, %v1449_v39  ;;  %v12890_v39 = vld [vmem:[#allocation45_spill] sm:$0xff]  ;;  %v12893_v0 = vld [vmem:[#allocation46_spill] sm:$0xff]  ;;  %3855 = vmatpush.bf16.msra.mxu3 %v8988_v55 }
 0x2a0   :  { %12888 = vst [vmem:[#allocation125_spill] sm:$0xff] %v10736_v15  ;;  %v1178_v45 = vpop.f32.mrf.mxu2  ;;  %v1267_v43 = vpop.f32.mrf.mxu3  ;;  %v9503_v15 = vld [vmem:[#allocation8 + $0x6ac] sm:$0xf0] }
 0x2a1   :  { %v1179_v60 = vadd.f32 %v1178_v45, %v10552_v3  ;;  %v1268_v28 = vadd.f32 %v1267_v43, %v10554_v46  ;;  %v1092_v61 = vpop.f32.mrf.mxu1  ;;  %v10742_v32 = vpop.f32.mrf.mxu0  ;;  %v12894_v45 = vld [vmem:[#allocation47_spill] sm:$0xff] }
 0x2a2   :  { %v8859_v43 = vld [vmem:[#allocation8 + $0x6a0] sm:$0xf] }
 0x2a3   :  { %v1458_v20 = vmax.f32 %v1179_v60, 0.0  ;;  %v1459_v24 = vmax.f32 %v1268_v28, 0.0  ;;  %v8860_v47 = vor.u32 %v9503_v15, %v8859_v43  ;;  %v1093_v60 = vadd.f32 %v1092_v61, %v10538_v16 }
 0x2a4   :  { %3337 = vmatmul.bf16.gmra.mxu1 %v12889_v8  ;;  %3604 = vmatmul.bf16.gmra.mxu0 %v12890_v39 }
 0x2a5   :  { %v10746_v49 = vpack.c.bf16 %v1458_v20, %v1450_v56  ;;  %v10748_v40 = vpack.c.bf16 %v1459_v24, %v1451_v18  ;;  %3426 = vmatmul.bf16.gmra.mxu2 %v12893_v0  ;;  %3515 = vmatmul.bf16.gmra.mxu3 %v12894_v45  ;;  %v8731_v20 = vld [vmem:[#allocation8 + $0x5a0] sm:$0xf]  ;;  %v9471_v24 = vld [vmem:[#allocation8 + $0x5ac] sm:$0xf0]  ;;  %v1465_v45 = vmax.f32 %v1093_v60, 0.0 }
 0x2a6   :  { %3766 = vmatpush.bf16.msra.mxu2 %v8860_v47 }
 0x2a7   :  { %12891 = vst [vmem:[#allocation126_spill] sm:$0xff] %v10746_v49 }
 0x2a8   :  { %12892 = vst [vmem:[#allocation127_spill] sm:$0xff] %v10748_v40  ;;  %v1181_v28 = vpop.f32.mrf.mxu2  ;;  %v1270_v8 = vpop.f32.mrf.mxu3  ;;  %v8732_v40 = vor.u32 %v9471_v24, %v8731_v20  ;;  %v12901_v24 = vld [vmem:[#allocation51_spill] sm:$0xff] }
 0x2a9   :  { %v1094_v39 = vpop.f32.mrf.mxu1  ;;  %v10753_v56 = vpop.f32.mrf.mxu0  ;;  %v1182_v15 = vadd.f32 %v1181_v28, %v10552_v3  ;;  %v1271_v30 = vadd.f32 %v1270_v8, %v10554_v46  ;;  %v12900_v28 = vld [vmem:[#allocation50_spill] sm:$0xff] }
 0x2aa   :  { %v1095_v18 = vadd.f32 %v1094_v39, %v10538_v16  ;;  %3677 = vmatpush.bf16.msra.mxu1 %v8732_v40  ;;  %v12897_v40 = vld [vmem:[#allocation49_spill] sm:$0xff] }
 0x2ab   :  { %v1466_v22 = vmax.f32 %v1182_v15, 0.0  ;;  %v1467_v60 = vmax.f32 %v1271_v30, 0.0 }
 0x2ac   :  { %v1473_v0 = vmax.f32 %v1095_v18, 0.0 }
 0x2ae   :  { %v10756_v49 = vpack.c.bf16 %v1473_v0, %v1465_v45  ;;  %v12896_v0 = vld [vmem:[#allocation48_spill] sm:$0xff] }
 0x2b0   :  { %12895 = vst [vmem:[#allocation128_spill] sm:$0xff] %v10756_v49  ;;  %v1183_v61 = vpop.f32.mrf.mxu2  ;;  %v1272_v47 = vpop.f32.mrf.mxu3 }
 0x2b1   :  { %v1184_v43 = vadd.f32 %v1183_v61, %v10552_v3  ;;  %v1273_v4 = vadd.f32 %v1272_v47, %v10554_v46  ;;  %v1097_v55 = vpop.f32.mrf.mxu1  ;;  %v10762_v39 = vpop.f32.mrf.mxu0 }
 0x2b2   :  { %v1098_v61 = vadd.f32 %v1097_v55, %v10538_v16 }
 0x2b3   :  { %v1474_v18 = vmax.f32 %v1184_v43, 0.0  ;;  %v1475_v20 = vmax.f32 %v1273_v4, 0.0 }
 0x2b4   :  { %3342 = vmatmul.bf16.gmra.mxu1 %v12896_v0  ;;  %3609 = vmatmul.bf16.gmra.mxu0 %v12897_v40  ;;  %v1481_v4 = vmax.f32 %v1098_v61, 0.0 }
 0x2b5   :  { %v10766_v45 = vpack.c.bf16 %v1474_v18, %v1466_v22  ;;  %v10768_v8 = vpack.c.bf16 %v1475_v20, %v1467_v60  ;;  %3431 = vmatmul.bf16.gmra.mxu2 %v12900_v28  ;;  %3520 = vmatmul.bf16.gmra.mxu3 %v12901_v24 }
 0x2b7   :  { %12898 = vst [vmem:[#allocation129_spill] sm:$0xff] %v10766_v45 }
 0x2b8   :  { %12899 = vst [vmem:[#allocation130_spill] sm:$0xff] %v10768_v8  ;;  %v1186_v47 = vpop.f32.mrf.mxu2  ;;  %v1275_v49 = vpop.f32.mrf.mxu3 }
 0x2b9   :  { %v1099_v15 = vpop.f32.mrf.mxu1  ;;  %v10773_v30 = vpop.f32.mrf.mxu0  ;;  %v1187_v22 = vadd.f32 %v1186_v47, %v10552_v3  ;;  %v1276_v60 = vadd.f32 %v1275_v49, %v10554_v46 }
 0x2ba   :  { %12902 = vst [vmem:[#allocation131_spill] sm:$0xff] %v10773_v30  ;;  %v1100_v43 = vadd.f32 %v1099_v15, %v10538_v16  ;;  %v8971_v30 = vld [vmem:[#allocation8 + $0x780] sm:$0xf] }
 0x2bb   :  { %v1482_v45 = vmax.f32 %v1187_v22, 0.0  ;;  %v1483_v44 = vmax.f32 %v1276_v60, 0.0  ;;  %v9531_v22 = vld [vmem:[#allocation8 + $0x78c] sm:$0xf0] }
 0x2bc   :  { %v1489_v0 = vmax.f32 %v1100_v43, 0.0  ;;  %v12905_v43 = vld [vmem:[#allocation52_spill] sm:$0xff]  ;;  %v8972_v60 = vor.u32 %v9531_v22, %v8971_v30 }
 0x2be   :  { %v10776_v40 = vpack.c.bf16 %v1489_v0, %v1481_v4  ;;  %v12906_v0 = vld [vmem:[#allocation53_spill] sm:$0xff]  ;;  %v12909_v4 = vld [vmem:[#allocation54_spill] sm:$0xff]  ;;  %3856 = vmatpush.bf16.msra.mxu3 %v8972_v60 }
 0x2c0   :  { %12903 = vst [vmem:[#allocation132_spill] sm:$0xff] %v10776_v40  ;;  %v1188_v18 = vpop.f32.mrf.mxu2  ;;  %v1277_v20 = vpop.f32.mrf.mxu3  ;;  %v9499_v40 = vld [vmem:[#allocation8 + $0x68c] sm:$0xf0] }
 0x2c1   :  { %v1189_v24 = vadd.f32 %v1188_v18, %v10552_v3  ;;  %v1278_v55 = vadd.f32 %v1277_v20, %v10554_v46  ;;  %v1102_v28 = vpop.f32.mrf.mxu1  ;;  %v10782_v8 = vpop.f32.mrf.mxu0  ;;  %v12910_v18 = vld [vmem:[#allocation55_spill] sm:$0xff] }
 0x2c2   :  { %12904 = vst [vmem:[#allocation133_spill] sm:$0xff] %v10782_v8  ;;  %v8843_v20 = vld [vmem:[#allocation8 + $0x680] sm:$0xf] }
 0x2c3   :  { %v1490_v15 = vmax.f32 %v1189_v24, 0.0  ;;  %v1491_v61 = vmax.f32 %v1278_v55, 0.0  ;;  %v8844_v8 = vor.u32 %v9499_v40, %v8843_v20  ;;  %v1103_v24 = vadd.f32 %v1102_v28, %v10538_v16 }
 0x2c4   :  { %3347 = vmatmul.bf16.gmra.mxu1 %v12905_v43  ;;  %3614 = vmatmul.bf16.gmra.mxu0 %v12906_v0 }
 0x2c5   :  { %v10786_v47 = vpack.c.bf16 %v1490_v15, %v1482_v45  ;;  %v10788_v49 = vpack.c.bf16 %v1491_v61, %v1483_v44  ;;  %3436 = vmatmul.bf16.gmra.mxu2 %v12909_v4  ;;  %3525 = vmatmul.bf16.gmra.mxu3 %v12910_v18  ;;  %v8715_v15 = vld [vmem:[#allocation8 + $0x580] sm:$0xf]  ;;  %v9467_v61 = vld [vmem:[#allocation8 + $0x58c] sm:$0xf0]  ;;  %v1497_v18 = vmax.f32 %v1103_v24, 0.0 }
 0x2c6   :  { %3767 = vmatpush.bf16.msra.mxu2 %v8844_v8 }
 0x2c7   :  { %12907 = vst [vmem:[#allocation134_spill] sm:$0xff] %v10786_v47 }
 0x2c8   :  { %12908 = vst [vmem:[#allocation135_spill] sm:$0xff] %v10788_v49  ;;  %v1191_v55 = vpop.f32.mrf.mxu2  ;;  %v1280_v43 = vpop.f32.mrf.mxu3  ;;  %v8716_v49 = vor.u32 %v9467_v61, %v8715_v15 }
 0x2c9   :  { %v1104_v0 = vpop.f32.mrf.mxu1  ;;  %v10793_v45 = vpop.f32.mrf.mxu0  ;;  %v1192_v40 = vadd.f32 %v1191_v55, %v10552_v3  ;;  %v1281_v28 = vadd.f32 %v1280_v43, %v10554_v46  ;;  %v12917_v55 = vld [vmem:[#allocation59_spill] sm:$0xff] }
 0x2ca   :  { %12911 = vst [vmem:[#allocation136_spill] sm:$0xff] %v10793_v45  ;;  %v1105_v44 = vadd.f32 %v1104_v0, %v10538_v16  ;;  %3678 = vmatpush.bf16.msra.mxu1 %v8716_v49  ;;  %v12913_v49 = vld [vmem:[#allocation57_spill] sm:$0xff] }
 0x2cb   :  { %v1498_v45 = vmax.f32 %v1192_v40, 0.0  ;;  %v1499_v24 = vmax.f32 %v1281_v28, 0.0 }
 0x2cc   :  { %v1505_v4 = vmax.f32 %v1105_v44, 0.0 }
 0x2ce   :  { %v10796_v47 = vpack.c.bf16 %v1505_v4, %v1497_v18  ;;  %v12916_v18 = vld [vmem:[#allocation58_spill] sm:$0xff] }
 0x2d0   :  { %12912 = vst [vmem:[#allocation137_spill] sm:$0xff] %v10796_v47  ;;  %v1193_v30 = vpop.f32.mrf.mxu2  ;;  %v1282_v8 = vpop.f32.mrf.mxu3 }
 0x2d1   :  { %v1194_v20 = vadd.f32 %v1193_v30, %v10552_v3  ;;  %v1283_v22 = vadd.f32 %v1282_v8, %v10554_v46  ;;  %v1107_v60 = vpop.f32.mrf.mxu1  ;;  %v10802_v0 = vpop.f32.mrf.mxu0 }
 0x2d2   :  { %v1108_v61 = vadd.f32 %v1107_v60, %v10538_v16 }
 0x2d3   :  { %v1506_v44 = vmax.f32 %v1194_v20, 0.0  ;;  %v1507_v15 = vmax.f32 %v1283_v22, 0.0 }
 0x2d4   :  { %3352 = vmatmul.bf16.gmra.mxu1 %v10328_v1  ;;  %3619 = vmatmul.bf16.gmra.mxu0 %v12913_v49  ;;  %v1513_v22 = vmax.f32 %v1108_v61, 0.0 }
 0x2d5   :  { %v10806_v4 = vpack.c.bf16 %v1506_v44, %v1498_v45  ;;  %v10808_v43 = vpack.c.bf16 %v1507_v15, %v1499_v24  ;;  %3441 = vmatmul.bf16.gmra.mxu2 %v12916_v18  ;;  %3530 = vmatmul.bf16.gmra.mxu3 %v12917_v55 }
 0x2d7   :  { %12914 = vst [vmem:[#allocation138_spill] sm:$0xff] %v10806_v4 }
 0x2d8   :  { %12915 = vst [vmem:[#allocation139_spill] sm:$0xff] %v10808_v43  ;;  %v1196_v30 = vpop.f32.mrf.mxu2  ;;  %v1285_v8 = vpop.f32.mrf.mxu3 }
 0x2d9   :  { %v1109_v40 = vpop.f32.mrf.mxu1  ;;  %v10813_v28 = vpop.f32.mrf.mxu0  ;;  %v1197_v45 = vadd.f32 %v1196_v30, %v10552_v3  ;;  %v1286_v24 = vadd.f32 %v1285_v8, %v10554_v46 }
 0x2da   :  { %v1110_v20 = vadd.f32 %v1109_v40, %v10538_v16 }
 0x2db   :  { %v1514_v4 = vmax.f32 %v1197_v45, 0.0  ;;  %v1515_v47 = vmax.f32 %v1286_v24, 0.0  ;;  %v9527_v45 = vld [vmem:[#allocation8 + $0x76c] sm:$0xf0] }
 0x2dc   :  { %v1521_v1 = vmax.f32 %v1110_v20, 0.0  ;;  %v12923_v20 = vld [vmem:[#allocation62_spill] sm:$0xff] }
 0x2de   :  { %v10816_v49 = vpack.c.bf16 %v1521_v1, %v1513_v22  ;;  %v12920_v1 = vld [vmem:[#allocation61_spill] sm:$0xff]  ;;  %v12924_v22 = vld [vmem:[#allocation63_spill] sm:$0xff] }
 0x2e0   :  { %12918 = vst [vmem:[#allocation140_spill] sm:$0xff] %v10816_v49  ;;  %v1198_v44 = vpop.f32.mrf.mxu2  ;;  %v1287_v15 = vpop.f32.mrf.mxu3  ;;  %v8955_v49 = vld [vmem:[#allocation8 + $0x760] sm:$0xf] }
 0x2e1   :  { %v1199_v55 = vadd.f32 %v1198_v44, %v10552_v3  ;;  %v1288_v60 = vadd.f32 %v1287_v15, %v10554_v46  ;;  %v1112_v18 = vpop.f32.mrf.mxu1  ;;  %v10822_v43 = vpop.f32.mrf.mxu0  ;;  %v8827_v44 = vld [vmem:[#allocation8 + $0x660] sm:$0xf]  ;;  %v9495_v15 = vld [vmem:[#allocation8 + $0x66c] sm:$0xf0]  ;;  %v8956_v24 = vor.u32 %v9527_v45, %v8955_v49 }
 0x2e2   :  { %12919 = vst [vmem:[#allocation141_spill] sm:$0xff] %v10822_v43  ;;  %v8828_v43 = vor.u32 %v9495_v15, %v8827_v44 }
 0x2e3   :  { %v1522_v40 = vmax.f32 %v1199_v55, 0.0  ;;  %v1523_v61 = vmax.f32 %v1288_v60, 0.0  ;;  %v1113_v55 = vadd.f32 %v1112_v18, %v10538_v16  ;;  %3857 = vmatpush.bf16.msra.mxu3 %v8956_v24 }
 0x2e4   :  { %3357 = vmatmul.bf16.gmra.mxu1 %v10348_v23  ;;  %3624 = vmatmul.bf16.gmra.mxu0 %v12920_v1 }
 0x2e5   :  { %v10826_v30 = vpack.c.bf16 %v1522_v40, %v1514_v4  ;;  %v10828_v8 = vpack.c.bf16 %v1523_v61, %v1515_v47  ;;  %3446 = vmatmul.bf16.gmra.mxu2 %v12923_v20  ;;  %3535 = vmatmul.bf16.gmra.mxu3 %v12924_v22  ;;  %v8699_v40 = vld [vmem:[#allocation8 + $0x560] sm:$0xf]  ;;  %v9463_v61 = vld [vmem:[#allocation8 + $0x56c] sm:$0xf0]  ;;  %v1529_v22 = vmax.f32 %v1113_v55, 0.0 }
 0x2e6   :  { %3768 = vmatpush.bf16.msra.mxu2 %v8828_v43 }
 0x2e7   :  { %12921 = vst [vmem:[#allocation142_spill] sm:$0xff] %v10826_v30 }
 0x2e8   :  { %12922 = vst [vmem:[#allocation143_spill] sm:$0xff] %v10828_v8  ;;  %v1201_v60 = vpop.f32.mrf.mxu2  ;;  %v1290_v23 = vpop.f32.mrf.mxu3  ;;  %v8700_v8 = vor.u32 %v9463_v61, %v8699_v40 }
 0x2e9   :  { %v1114_v1 = vpop.f32.mrf.mxu1  ;;  %v10833_v4 = vpop.f32.mrf.mxu0  ;;  %v1202_v49 = vadd.f32 %v1201_v60, %v10552_v3  ;;  %v1291_v18 = vadd.f32 %v1290_v23, %v10554_v46  ;;  %v12931_v60 = vld [vmem:[#allocation67_spill] sm:$0xff] }
 0x2ea   :  { %12925 = vst [vmem:[#allocation144_spill] sm:$0xff] %v10833_v4  ;;  %v1115_v47 = vadd.f32 %v1114_v1, %v10538_v16  ;;  %3679 = vmatpush.bf16.msra.mxu1 %v8700_v8  ;;  %v12927_v8 = vld [vmem:[#allocation65_spill] sm:$0xff] }
 0x2eb   :  { %v1530_v4 = vmax.f32 %v1202_v49, 0.0  ;;  %v1531_v55 = vmax.f32 %v1291_v18, 0.0  ;;  %v1940_v49 = vld [vmem:[#allocation10] sm:$0xf] }
 0x2ec   :  { %v1537_v20 = vmax.f32 %v1115_v47, 0.0 }
 0x2ee   :  { %v10836_v30 = vpack.c.bf16 %v1537_v20, %v1529_v22  ;;  %v12930_v22 = vld [vmem:[#allocation66_spill] sm:$0xff] }
 0x2f0   :  { %12926 = vst [vmem:[#allocation145_spill] sm:$0xff] %v10836_v30  ;;  %v1203_v44 = vpop.f32.mrf.mxu2  ;;  %v1292_v43 = vpop.f32.mrf.mxu3 }
 0x2f1   :  { %v1204_v15 = vadd.f32 %v1203_v44, %v10552_v3  ;;  %v1293_v45 = vadd.f32 %v1292_v43, %v10554_v46  ;;  %v1117_v24 = vpop.f32.mrf.mxu1  ;;  %v10842_v1 = vpop.f32.mrf.mxu0 }
 0x2f2   :  { %v1118_v61 = vadd.f32 %v1117_v24, %v10538_v16 }
 0x2f3   :  { %v1538_v47 = vmax.f32 %v1204_v15, 0.0  ;;  %v1539_v40 = vmax.f32 %v1293_v45, 0.0 }
 0x2f4   :  { %3362 = vmatmul.bf16.gmra.mxu1 %v10368_v48  ;;  %3629 = vmatmul.bf16.gmra.mxu0 %v12927_v8  ;;  %v9317_v48 = vld [vmem:[#allocation8 + $0xe4] sm:$0xf]  ;;  %v8125_v8 = vld [vmem:[#allocation8 + $0xf0] sm:$0xf0] }
 0x2f5   :  { %v10846_v20 = vpack.c.bf16 %v1538_v47, %v1530_v4  ;;  %v10848_v23 = vpack.c.bf16 %v1539_v40, %v1531_v55  ;;  %3451 = vmatmul.bf16.gmra.mxu2 %v12930_v22  ;;  %3540 = vmatmul.bf16.gmra.mxu3 %v12931_v60  ;;  %v10856_v4 = vperm.slane %v1940_v49, 0  ;;  %v1545_v55 = vmax.f32 %v1118_v61, 0.0 }
 0x2f6   :  { %v8128_v40 = vor.u32 %v9317_v48, %v8125_v8 }
 0x2f7   :  { %12928 = vst [vmem:[#allocation146_spill] sm:$0xff] %v10846_v20 }
 0x2f8   :  { %12929 = vst [vmem:[#allocation147_spill] sm:$0xff] %v10848_v23  ;;  %v1206_v44 = vpop.f32.mrf.mxu2  ;;  %v1295_v43 = vpop.f32.mrf.mxu3  ;;  %3942 = vmatpush.bf16.msra.mxu0 %v8128_v40  ;;  %v3240_v23 = vadd.f32 %v10536_v52, %v10856_v4  ;;  %v3242_v40 = vadd.f32 %v10549_v33, %v10856_v4 }
 0x2f9   :  { %v1119_v18 = vpop.f32.mrf.mxu1  ;;  %v10853_v15 = vpop.f32.mrf.mxu0  ;;  %v1207_v24 = vadd.f32 %v1206_v44, %v10552_v3  ;;  %v1296_v60 = vadd.f32 %v1295_v43, %v10554_v46  ;;  %v9523_v43 = vld [vmem:[#allocation8 + $0x74c] sm:$0xf0] }
 0x2fa   :  { %v1120_v45 = vadd.f32 %v1119_v18, %v10538_v16 }
 0x2fb   :  { %v1546_v48 = vmax.f32 %v1207_v24, 0.0  ;;  %v1547_v8 = vmax.f32 %v1296_v60, 0.0 }
 0x2fc   :  { %v1553_v47 = vmax.f32 %v1120_v45, 0.0 }
 0x2fe   :  { %v10858_v22 = vpack.c.bf16 %v1553_v47, %v1545_v55 }
 0x300   :  { %v1208_v20 = vpop.f32.mrf.mxu2  ;;  %v1297_v30 = vpop.f32.mrf.mxu3 }
 0x301   :  { %v1209_v16 = vadd.f32 %v1208_v20, %v10552_v3  ;;  %v1298_v49 = vadd.f32 %v1297_v30, %v10554_v46  ;;  %v3328_v18 = vpop.f32.mrf.mxu1  ;;  %v3595_v61 = vpop.f32.mrf.mxu0  ;;  %v12934_v3 = vld [vmem:[#allocation71_spill] sm:$0xff]  ;;  %v9491_v30 = vld [vmem:[#allocation8 + $0x64c] sm:$0xf0] }
 0x302   :  { %v3329_v45 = vadd.f32 %v3328_v18, %v3240_v23  ;;  %v8811_v46 = vld [vmem:[#allocation8 + $0x640] sm:$0xf] }
 0x303   :  { %v1554_v55 = vmax.f32 %v1209_v16, 0.0  ;;  %v1555_v47 = vmax.f32 %v1298_v49, 0.0  ;;  %v8939_v20 = vld [vmem:[#allocation8 + $0x740] sm:$0xf]  ;;  %v8812_v23 = vor.u32 %v9491_v30, %v8811_v46  ;;  %v3245_v46 = vadd.f32 %v10562_v51, %v10856_v4 }
 0x304   :  { %3367 = vmatmul.bf16.gmra.mxu1 %v10388_v17  ;;  %3634 = vmatmul.bf16.gmra.mxu0 %v10390_v26  ;;  %v8940_v60 = vor.u32 %v9523_v43, %v8939_v20 }
 0x305   :  { %v10868_v44 = vpack.c.bf16 %v1554_v55, %v1546_v48  ;;  %v10870_v52 = vpack.c.bf16 %v1555_v47, %v1547_v8  ;;  %3456 = vmatmul.bf16.gmra.mxu2 %v10398_v12  ;;  %3545 = vmatmul.bf16.gmra.mxu3 %v12934_v3  ;;  %v8683_v47 = vld [vmem:[#allocation8 + $0x540] sm:$0xf]  ;;  %v9459_v3 = vld [vmem:[#allocation8 + $0x54c] sm:$0xf0] }
 0x306   :  { %3769 = vmatpush.bf16.msra.mxu2 %v8812_v23  ;;  %3858 = vmatpush.bf16.msra.mxu3 %v8940_v60  ;;  %v8684_v12 = vor.u32 %v9459_v3, %v8683_v47  ;;  %v12935_v60 = vld [vmem:[#allocation72_spill] sm:$0xff]  ;;  %v12937_v3 = vld [vmem:[#allocation74_spill] sm:$0xff] }
 0x307   :  { %12932 = vst [vmem:[#allocation148_spill] sm:$0xff] %v10868_v44 }
 0x308   :  { %12933 = vst [vmem:[#allocation149_spill] sm:$0xff] %v10870_v52  ;;  %v3417_v24 = vpop.f32.mrf.mxu2  ;;  %v3506_v16 = vpop.f32.mrf.mxu3  ;;  %3680 = vmatpush.bf16.msra.mxu1 %v8684_v12  ;;  %v3247_v12 = vadd.f32 %v10573_v36, %v10856_v4 }
 0x309   :  { %v3418_v49 = vadd.f32 %v3417_v24, %v3329_v45  ;;  %v3330_v18 = vpop.f32.mrf.mxu1  ;;  %v3597_v48 = vpop.f32.mrf.mxu0 }
 0x30a   :  { %v3331_v8 = vadd.f32 %v3330_v18, %v3242_v40  ;;  %v12936_v40 = vld [vmem:[#allocation73_spill] sm:$0xff] }
 0x30b   :  { %v3507_v55 = vadd.f32 %v3506_v16, %v3418_v49 }
 0x30d   :  { %v10876_v26 = vadd.f32 %v3595_v61, %v3507_v55 }
 0x310   :  { %v3419_v30 = vpop.f32.mrf.mxu2  ;;  %v3508_v33 = vpop.f32.mrf.mxu3 }
 0x311   :  { %v3420_v20 = vadd.f32 %v3419_v30, %v3331_v8  ;;  %v3333_v43 = vpop.f32.mrf.mxu1  ;;  %v3600_v23 = vpop.f32.mrf.mxu0  ;;  %v8109_v30 = vld [vmem:[#allocation8 + $0xd0] sm:$0xf0] }
 0x312   :  { %v3334_v45 = vadd.f32 %v3333_v43, %v3245_v46  ;;  %v9313_v46 = vld [vmem:[#allocation8 + $0xc4] sm:$0xf] }
 0x313   :  { %v3509_v24 = vadd.f32 %v3508_v33, %v3420_v20  ;;  %v8112_v33 = vor.u32 %v9313_v46, %v8109_v30 }
 0x314   :  { %3372 = vmatmul.bf16.gmra.mxu1 %v10408_v41  ;;  %3639 = vmatmul.bf16.gmra.mxu0 %v12935_v60 }
 0x315   :  { %3461 = vmatmul.bf16.gmra.mxu2 %v12936_v40  ;;  %3550 = vmatmul.bf16.gmra.mxu3 %v12937_v3  ;;  %v10884_v61 = vadd.f32 %v3597_v48, %v3509_v24  ;;  %v3250_v48 = vadd.f32 %v10582_v5, %v10856_v4 }
 0x316   :  { %3943 = vmatpush.bf16.msra.mxu0 %v8112_v33 }
 0x318   :  { %v3422_v51 = vpop.f32.mrf.mxu2  ;;  %v3511_v16 = vpop.f32.mrf.mxu3 }
 0x319   :  { %v3423_v49 = vadd.f32 %v3422_v51, %v3334_v45  ;;  %v3335_v18 = vpop.f32.mrf.mxu1  ;;  %v3602_v8 = vpop.f32.mrf.mxu0  ;;  %v9487_v51 = vld [vmem:[#allocation8 + $0x62c] sm:$0xf0] }
 0x31a   :  { %v3336_v55 = vadd.f32 %v3335_v18, %v3247_v12  ;;  %v12938_v12 = vld [vmem:[#allocation78_spill] sm:$0xff]  ;;  %v9519_v18 = vld [vmem:[#allocation8 + $0x72c] sm:$0xf0] }
 0x31b   :  { %v3512_v47 = vadd.f32 %v3511_v16, %v3423_v49  ;;  %v8923_v16 = vld [vmem:[#allocation8 + $0x720] sm:$0xf] }
 0x31d   :  { %v10888_v20 = vadd.f32 %v3600_v23, %v3512_v47  ;;  %v8795_v23 = vld [vmem:[#allocation8 + $0x620] sm:$0xf]  ;;  %v3252_v47 = vadd.f32 %v10593_v11, %v10856_v4 }
 0x31e   :  { %v8796_v5 = vor.u32 %v9487_v51, %v8795_v23 }
 0x320   :  { %v3424_v43 = vpop.f32.mrf.mxu2  ;;  %v3513_v24 = vpop.f32.mrf.mxu3  ;;  %3770 = vmatpush.bf16.msra.mxu2 %v8796_v5 }
 0x321   :  { %v3425_v3 = vadd.f32 %v3424_v43, %v3336_v55  ;;  %v3338_v36 = vpop.f32.mrf.mxu1  ;;  %v3605_v40 = vpop.f32.mrf.mxu0  ;;  %v8924_v55 = vor.u32 %v9519_v18, %v8923_v16 }
 0x322   :  { %v3339_v60 = vadd.f32 %v3338_v36, %v3250_v48  ;;  %v8667_v36 = vld [vmem:[#allocation8 + $0x520] sm:$0xf] }
 0x323   :  { %v3514_v45 = vadd.f32 %v3513_v24, %v3425_v3  ;;  %3859 = vmatpush.bf16.msra.mxu3 %v8924_v55  ;;  %v12939_v55 = vld [vmem:[#allocation79_spill] sm:$0xff] }
 0x324   :  { %3377 = vmatmul.bf16.gmra.mxu1 %v10428_v53  ;;  %3644 = vmatmul.bf16.gmra.mxu0 %v10430_v14 }
 0x325   :  { %3466 = vmatmul.bf16.gmra.mxu2 %v10438_v38  ;;  %3555 = vmatmul.bf16.gmra.mxu3 %v12938_v12  ;;  %v10896_v49 = vadd.f32 %v3602_v8, %v3514_v45  ;;  %v9455_v12 = vld [vmem:[#allocation8 + $0x52c] sm:$0xf0]  ;;  %v3255_v45 = vadd.f32 %v10602_v13, %v10856_v4 }
 0x326   :  { %v8668_v38 = vor.u32 %v9455_v12, %v8667_v36  ;;  %v12941_v12 = vld [vmem:[#allocation81_spill] sm:$0xff]  ;;  %v9309_v36 = vld [vmem:[#allocation8 + $0xa4] sm:$0xf] }
 0x328   :  { %v3427_v3 = vpop.f32.mrf.mxu2  ;;  %v3516_v46 = vpop.f32.mrf.mxu3  ;;  %3681 = vmatpush.bf16.msra.mxu1 %v8668_v38  ;;  %v3257_v38 = vadd.f32 %v10613_v54, %v10856_v4 }
 0x329   :  { %v3428_v30 = vadd.f32 %v3427_v3, %v3339_v60  ;;  %v3340_v33 = vpop.f32.mrf.mxu1  ;;  %v3607_v48 = vpop.f32.mrf.mxu0 }
 0x32a   :  { %v3341_v43 = vadd.f32 %v3340_v33, %v3252_v47  ;;  %v12940_v47 = vld [vmem:[#allocation80_spill] sm:$0xff] }
 0x32b   :  { %v3517_v24 = vadd.f32 %v3516_v46, %v3428_v30 }
 0x32d   :  { %v10900_v8 = vadd.f32 %v3605_v40, %v3517_v24 }
 0x330   :  { %v3429_v23 = vpop.f32.mrf.mxu2  ;;  %v3518_v11 = vpop.f32.mrf.mxu3 }
 0x331   :  { %v3430_v51 = vadd.f32 %v3429_v23, %v3341_v43  ;;  %v3343_v16 = vpop.f32.mrf.mxu1  ;;  %v3610_v5 = vpop.f32.mrf.mxu0 }
 0x332   :  { %v3344_v60 = vadd.f32 %v3343_v16, %v3255_v45  ;;  %v8093_v45 = vld [vmem:[#allocation8 + $0xb0] sm:$0xf0] }
 0x333   :  { %v3519_v18 = vadd.f32 %v3518_v11, %v3430_v51  ;;  %v8096_v23 = vor.u32 %v9309_v36, %v8093_v45 }
 0x334   :  { %3382 = vmatmul.bf16.gmra.mxu1 %v10448_v27  ;;  %3649 = vmatmul.bf16.gmra.mxu0 %v12939_v55 }
 0x335   :  { %3471 = vmatmul.bf16.gmra.mxu2 %v12940_v47  ;;  %3560 = vmatmul.bf16.gmra.mxu3 %v12941_v12  ;;  %v10908_v40 = vadd.f32 %v3607_v48, %v3519_v18  ;;  %v3260_v48 = vadd.f32 %v10622_v29, %v10856_v4 }
 0x336   :  { %3944 = vmatpush.bf16.msra.mxu0 %v8096_v23 }
 0x338   :  { %v3432_v13 = vpop.f32.mrf.mxu2  ;;  %v3521_v3 = vpop.f32.mrf.mxu3 }
 0x339   :  { %v3433_v46 = vadd.f32 %v3432_v13, %v3344_v60  ;;  %v3345_v30 = vpop.f32.mrf.mxu1  ;;  %v3612_v33 = vpop.f32.mrf.mxu0  ;;  %v9483_v13 = vld [vmem:[#allocation8 + $0x60c] sm:$0xf0] }
 0x33a   :  { %v3346_v43 = vadd.f32 %v3345_v30, %v3257_v38  ;;  %v12942_v38 = vld [vmem:[#allocation85_spill] sm:$0xff] }
 0x33b   :  { %v3522_v24 = vadd.f32 %v3521_v3, %v3433_v46  ;;  %v8907_v3 = vld [vmem:[#allocation8 + $0x700] sm:$0xf]  ;;  %v9515_v30 = vld [vmem:[#allocation8 + $0x70c] sm:$0xf0] }
 0x33d   :  { %v10912_v11 = vadd.f32 %v3610_v5, %v3522_v24  ;;  %v8779_v5 = vld [vmem:[#allocation8 + $0x600] sm:$0xf]  ;;  %v3262_v24 = vadd.f32 %v10633_v57, %v10856_v4  ;;  %v3265_v57 = vadd.f32 %v10642_v34, %v10856_v4 }
 0x33e   :  { %v8780_v29 = vor.u32 %v9483_v13, %v8779_v5  ;;  %v8077_v5 = vld [vmem:[#allocation8 + $0x90] sm:$0xf0] }
 0x340   :  { %v3434_v51 = vpop.f32.mrf.mxu2  ;;  %v3523_v16 = vpop.f32.mrf.mxu3  ;;  %3771 = vmatpush.bf16.msra.mxu2 %v8780_v29 }
 0x341   :  { %v3435_v18 = vadd.f32 %v3434_v51, %v3346_v43  ;;  %v3348_v54 = vpop.f32.mrf.mxu1  ;;  %v3615_v12 = vpop.f32.mrf.mxu0  ;;  %v8908_v43 = vor.u32 %v9515_v30, %v8907_v3 }
 0x342   :  { %v3349_v47 = vadd.f32 %v3348_v54, %v3260_v48  ;;  %v8651_v54 = vld [vmem:[#allocation8 + $0x500] sm:$0xf] }
 0x343   :  { %v3524_v60 = vadd.f32 %v3523_v16, %v3435_v18  ;;  %3860 = vmatpush.bf16.msra.mxu3 %v8908_v43 }
 0x344   :  { %3387 = vmatmul.bf16.gmra.mxu1 %v10468_v9  ;;  %3654 = vmatmul.bf16.gmra.mxu0 %v10470_v6 }
 0x345   :  { %3476 = vmatmul.bf16.gmra.mxu2 %v10478_v63  ;;  %3565 = vmatmul.bf16.gmra.mxu3 %v12942_v38  ;;  %v10920_v46 = vadd.f32 %v3612_v33, %v3524_v60  ;;  %v9451_v38 = vld [vmem:[#allocation8 + $0x50c] sm:$0xf0]  ;;  %v9305_v60 = vld [vmem:[#allocation8 + $0x84] sm:$0xf] }
 0x346   :  { %v8652_v63 = vor.u32 %v9451_v38, %v8651_v54  ;;  %v8080_v29 = vor.u32 %v9305_v60, %v8077_v5  ;;  %v12944_v38 = vld [vmem:[#allocation88_spill] sm:$0xff]  ;;  %v3267_v54 = vadd.f32 %v10653_v7, %v10856_v4  ;;  %v3270_v7 = vadd.f32 %v10662_v31, %v10856_v4 }
 0x347   :  { %v9413_v31 = vld [vmem:[#allocation8 + $0x3e4] sm:$0xf] }
 0x348   :  { %v3437_v36 = vpop.f32.mrf.mxu2  ;;  %v3526_v45 = vpop.f32.mrf.mxu3  ;;  %3682 = vmatpush.bf16.msra.mxu1 %v8652_v63  ;;  %3945 = vmatpush.bf16.msra.mxu0 %v8080_v29 }
 0x349   :  { %v3438_v23 = vadd.f32 %v3437_v36, %v3349_v47  ;;  %v3350_v48 = vpop.f32.mrf.mxu1  ;;  %v3617_v51 = vpop.f32.mrf.mxu0 }
 0x34a   :  { %v3351_v16 = vadd.f32 %v3350_v48, %v3262_v24  ;;  %v12945_v48 = vld [vmem:[#allocation89_spill] sm:$0xff] }
 0x34b   :  { %v3527_v18 = vadd.f32 %v3526_v45, %v3438_v23  ;;  %v9301_v45 = vld [vmem:[#allocation8 + $0x64] sm:$0xf]  ;;  %v8061_v23 = vld [vmem:[#allocation8 + $0x70] sm:$0xf0] }
 0x34c   :  { %v8064_v63 = vor.u32 %v9301_v45, %v8061_v23  ;;  %v9293_v45 = vld [vmem:[#allocation8 + $0x24] sm:$0xf]  ;;  %v8029_v23 = vld [vmem:[#allocation8 + $0x30] sm:$0xf0] }
 0x34d   :  { %v10924_v33 = vadd.f32 %v3615_v12, %v3527_v18  ;;  %v12943_v12 = vld [vmem:[#allocation87_spill] sm:$0xff]  ;;  %v8045_v18 = vld [vmem:[#allocation8 + $0x50] sm:$0xf0] }
 0x34e   :  { %3946 = vmatpush.bf16.msra.mxu0 %v8064_v63  ;;  %v8013_v63 = vld [vmem:[#allocation8 + $0x10] sm:$0xf0] }
 0x350   :  { %v3439_v13 = vpop.f32.mrf.mxu2  ;;  %v3528_v3 = vpop.f32.mrf.mxu3 }
 0x351   :  { %v3440_v47 = vadd.f32 %v3439_v13, %v3351_v16  ;;  %v3353_v30 = vpop.f32.mrf.mxu1  ;;  %v3620_v36 = vpop.f32.mrf.mxu0  ;;  %v9297_v16 = vld [vmem:[#allocation8 + $0x44] sm:$0xf] }
 0x352   :  { %v3354_v43 = vadd.f32 %v3353_v30, %v3265_v57  ;;  %v8048_v57 = vor.u32 %v9297_v16, %v8045_v18 }
 0x353   :  { %v3529_v24 = vadd.f32 %v3528_v3, %v3440_v47 }
 0x354   :  { %3392 = vmatmul.bf16.gmra.mxu1 %v10488_v42  ;;  %3659 = vmatmul.bf16.gmra.mxu0 %v12943_v12 }
 0x355   :  { %3481 = vmatmul.bf16.gmra.mxu2 %v12944_v38  ;;  %3570 = vmatmul.bf16.gmra.mxu3 %v12945_v48  ;;  %v10932_v34 = vadd.f32 %v3617_v51, %v3529_v24  ;;  %v8032_v48 = vor.u32 %v9293_v45, %v8029_v23  ;;  %v9289_v24 = vld [vmem:[#allocation8 + $0x4] sm:$0xf] }
 0x356   :  { %3947 = vmatpush.bf16.msra.mxu0 %v8048_v57  ;;  %v8016_v16 = vor.u32 %v9289_v24, %v8013_v63  ;;  %v8381_v57 = vld [vmem:[#allocation8 + $0x2f0] sm:$0xf0] }
 0x358   :  { %v3442_v60 = vpop.f32.mrf.mxu2  ;;  %v3531_v5 = vpop.f32.mrf.mxu3 }
 0x359   :  { %v3443_v13 = vadd.f32 %v3442_v60, %v3354_v43  ;;  %v3355_v3 = vpop.f32.mrf.mxu1  ;;  %v3622_v29 = vpop.f32.mrf.mxu0 }
 0x35a   :  { %v3356_v47 = vadd.f32 %v3355_v3, %v3267_v54  ;;  %3948 = vmatpush.bf16.msra.mxu0 %v8032_v48  ;;  %v9381_v48 = vld [vmem:[#allocation8 + $0x2e4] sm:$0xf] }
 0x35b   :  { %v3532_v30 = vadd.f32 %v3531_v5, %v3443_v13  ;;  %v8384_v3 = vor.u32 %v9381_v48, %v8381_v57 }
 0x35d   :  { %v10936_v51 = vadd.f32 %v3620_v36, %v3532_v30  ;;  %v12946_v36 = vld [vmem:[#allocation93_spill] sm:$0xff]  ;;  %v3272_v30 = vadd.f32 %v10673_v19, %v10856_v4  ;;  %4120 = vmatpush.bf16.msrb.mxu2 %v8384_v3 }
 0x35e   :  { %3949 = vmatpush.bf16.msra.mxu0 %v8016_v16 }
 0x360   :  { %v3444_v38 = vpop.f32.mrf.mxu2  ;;  %v3533_v12 = vpop.f32.mrf.mxu3 }
 0x361   :  { %v3445_v43 = vadd.f32 %v3444_v38, %v3356_v47  ;;  %v3358_v18 = vpop.f32.mrf.mxu1  ;;  %v3625_v60 = vpop.f32.mrf.mxu0  ;;  %v8509_v38 = vld [vmem:[#allocation8 + $0x3f0] sm:$0xf0] }
 0x362   :  { %v3359_v54 = vadd.f32 %v3358_v18, %v3270_v7  ;;  %v8512_v47 = vor.u32 %v9413_v31, %v8509_v38  ;;  %v8253_v18 = vld [vmem:[#allocation8 + $0x1f0] sm:$0xf0] }
 0x363   :  { %v3534_v5 = vadd.f32 %v3533_v12, %v3445_v43  ;;  %v9349_v43 = vld [vmem:[#allocation8 + $0x1e4] sm:$0xf] }
 0x364   :  { %3397 = vmatmul.bf16.gmra.mxu1 %v10508_v37  ;;  %3664 = vmatmul.bf16.gmra.mxu0 %v10510_v62  ;;  %v8189_v37 = vld [vmem:[#allocation8 + $0x170] sm:$0xf0] }
 0x365   :  { %3486 = vmatmul.bf16.gmra.mxu2 %v10518_v10  ;;  %3575 = vmatmul.bf16.gmra.mxu3 %v12946_v36  ;;  %v10944_v13 = vadd.f32 %v3622_v29, %v3534_v5  ;;  %v8256_v36 = vor.u32 %v9349_v43, %v8253_v18  ;;  %v3275_v5 = vadd.f32 %v10682_v59, %v10856_v4  ;;  %v8205_v10 = vld [vmem:[#allocation8 + $0x190] sm:$0xf0] }
 0x366   :  { %4209 = vmatpush.bf16.msrb.mxu3 %v8512_v47  ;;  %v12947_v47 = vld [vmem:[#allocation95_spill] sm:$0xff]  ;;  %v3277_v59 = vadd.f32 %v10693_v50, %v10856_v4  ;;  %v12950_v50 = vld [vmem:[#allocation98_spill] sm:$0xff] }
 0x367   :  { %4031 = vmatpush.bf16.msrb.mxu1 %v8256_v36 }
 0x368   :  { %v3447_v12 = vpop.f32.mrf.mxu2  ;;  %v3536_v45 = vpop.f32.mrf.mxu3 }
 0x369   :  { %v3448_v23 = vadd.f32 %v3447_v12, %v3359_v54  ;;  %v3360_v24 = vpop.f32.mrf.mxu1  ;;  %v3627_v63 = vpop.f32.mrf.mxu0  ;;  %v12949_v12 = vld [vmem:[#allocation97_spill] sm:$0xff] }
 0x36a   :  { %v3361_v7 = vadd.f32 %v3360_v24, %v3272_v30  ;;  %v12948_v30 = vld [vmem:[#allocation96_spill] sm:$0xff] }
 0x36b   :  { %v3537_v16 = vadd.f32 %v3536_v45, %v3448_v23 }
 0x36d   :  { %v10948_v29 = vadd.f32 %v3625_v60, %v3537_v16 }
 0x370   :  { %v3449_v48 = vpop.f32.mrf.mxu2  ;;  %v3538_v19 = vpop.f32.mrf.mxu3 }
 0x371   :  { %v3450_v57 = vadd.f32 %v3449_v48, %v3361_v7  ;;  %v3363_v31 = vpop.f32.mrf.mxu1  ;;  %v3630_v3 = vpop.f32.mrf.mxu0 }
 0x372   :  { %v3364_v54 = vadd.f32 %v3363_v31, %v3275_v5  ;;  %v3280_v5 = vadd.f32 %v10702_v35, %v10856_v4 }
 0x373   :  { %v3539_v38 = vadd.f32 %v3538_v19, %v3450_v57 }
 0x374   :  { %3402 = vmatmul.bf16.gmra.mxu1 %v10528_v58  ;;  %3669 = vmatmul.bf16.gmra.mxu0 %v12947_v47  ;;  %v12969_v58 = vld [vmem:[#allocation21_spill] sm:$0xff] }
 0x375   :  { %3491 = vmatmul.bf16.gmra.mxu2 %v12948_v30  ;;  %3580 = vmatmul.bf16.gmra.mxu3 %v12949_v12  ;;  %v10956_v60 = vadd.f32 %v3627_v63, %v3539_v38  ;;  %v12951_v30 = vld [vmem:[#allocation20_spill] sm:$0xff] }
 0x378   :  { %v3452_v36 = vpop.f32.mrf.mxu2  ;;  %v3541_v45 = vpop.f32.mrf.mxu3 }
 0x379   :  { %v3453_v23 = vadd.f32 %v3452_v36, %v3364_v54  ;;  %v3365_v24 = vpop.f32.mrf.mxu1  ;;  %v3632_v7 = vpop.f32.mrf.mxu0  ;;  %v12952_v54 = vld [vmem:[#allocation99_spill] sm:$0xff]  ;;  %v8365_v36 = vld [vmem:[#allocation8 + $0x2d0] sm:$0xf0] }
 0x37a   :  { %v3366_v16 = vadd.f32 %v3365_v24, %v3277_v59  ;;  %v12953_v59 = vld [vmem:[#allocation100_spill] sm:$0xff]  ;;  %v8493_v24 = vld [vmem:[#allocation8 + $0x3d0] sm:$0xf0] }
 0x37b   :  { %v3542_v43 = vadd.f32 %v3541_v45, %v3453_v23  ;;  %v9409_v45 = vld [vmem:[#allocation8 + $0x3c4] sm:$0xf] }
 0x37d   :  { %v10960_v18 = vadd.f32 %v3630_v3, %v3542_v43  ;;  %v9377_v3 = vld [vmem:[#allocation8 + $0x2c4] sm:$0xf]  ;;  %v3282_v43 = vadd.f32 %v10713_v25, %v10856_v4 }
 0x37e   :  { %v8368_v35 = vor.u32 %v9377_v3, %v8365_v36 }
 0x380   :  { %v3454_v48 = vpop.f32.mrf.mxu2  ;;  %v3543_v19 = vpop.f32.mrf.mxu3  ;;  %4121 = vmatpush.bf16.msrb.mxu2 %v8368_v35 }
 0x381   :  { %v3455_v57 = vadd.f32 %v3454_v48, %v3366_v16  ;;  %v3368_v63 = vpop.f32.mrf.mxu1  ;;  %v3635_v31 = vpop.f32.mrf.mxu0  ;;  %v8496_v16 = vor.u32 %v9409_v45, %v8493_v24 }
 0x382   :  { %v3369_v38 = vadd.f32 %v3368_v63, %v3280_v5 }
 0x383   :  { %v3544_v12 = vadd.f32 %v3543_v19, %v3455_v57  ;;  %4210 = vmatpush.bf16.msrb.mxu3 %v8496_v16  ;;  %v12955_v16 = vld [vmem:[#allocation24_spill] sm:$0xff] }
 0x384   :  { %3683 = vmatmul.bf16.vlgmr.msra.gmra.mxu1 %v12950_v50  ;;  %3950 = vmatmul.bf16.vlgmr.msra.gmra.mxu0 %v12951_v30  ;;  %v9345_v30 = vld [vmem:[#allocation8 + $0x1c4] sm:$0xf]  ;;  %v8237_v50 = vld [vmem:[#allocation8 + $0x1d0] sm:$0xf0] }
 0x385   :  { %3772 = vmatmul.bf16.vlgmr.msra.gmra.mxu2 %v12952_v54  ;;  %3861 = vmatmul.bf16.vlgmr.msra.gmra.mxu3 %v12953_v59  ;;  %v10968_v23 = vadd.f32 %v3632_v7, %v3544_v12  ;;  %v8240_v47 = vor.u32 %v9345_v30, %v8237_v50  ;;  %v3285_v7 = vadd.f32 %v10722_v21, %v10856_v4  ;;  %v12957_v30 = vld [vmem:[#allocation103_spill] sm:$0xff] }
 0x386   :  { %v3287_v21 = vadd.f32 %v10733_v2, %v10856_v4  ;;  %v12958_v2 = vld [vmem:[#allocation104_spill] sm:$0xff] }
 0x387   :  { %4032 = vmatpush.bf16.msrb.mxu1 %v8240_v47 }
 0x388   :  { %v3457_v5 = vpop.f32.mrf.mxu2  ;;  %v3546_v48 = vpop.f32.mrf.mxu3 }
 0x389   :  { %v3458_v19 = vadd.f32 %v3457_v5, %v3369_v38  ;;  %v3370_v57 = vpop.f32.mrf.mxu1  ;;  %v3637_v63 = vpop.f32.mrf.mxu0  ;;  %v12954_v5 = vld [vmem:[#allocation101_spill] sm:$0xff] }
 0x38a   :  { %v3371_v54 = vadd.f32 %v3370_v57, %v3282_v43  ;;  %v12956_v43 = vld [vmem:[#allocation102_spill] sm:$0xff] }
 0x38b   :  { %v3547_v59 = vadd.f32 %v3546_v48, %v3458_v19 }
 0x38d   :  { %v10972_v12 = vadd.f32 %v3635_v31, %v3547_v59 }
 0x390   :  { %v3459_v3 = vpop.f32.mrf.mxu2  ;;  %v3548_v25 = vpop.f32.mrf.mxu3 }
 0x391   :  { %v3460_v36 = vadd.f32 %v3459_v3, %v3371_v54  ;;  %v3373_v45 = vpop.f32.mrf.mxu1  ;;  %v3640_v35 = vpop.f32.mrf.mxu0  ;;  %v3290_v3 = vadd.f32 %v10742_v32, %v10856_v4 }
 0x392   :  { %v3374_v38 = vadd.f32 %v3373_v45, %v3285_v7 }
 0x393   :  { %v3549_v24 = vadd.f32 %v3548_v25, %v3460_v36 }
 0x394   :  { %3688 = vmatmul.bf16.gmra.mxu1 %v12954_v5  ;;  %3955 = vmatmul.bf16.gmra.mxu0 %v12955_v16  ;;  %v12959_v16 = vld [vmem:[#allocation28_spill] sm:$0xff] }
 0x395   :  { %3777 = vmatmul.bf16.gmra.mxu2 %v12956_v43  ;;  %3866 = vmatmul.bf16.gmra.mxu3 %v12957_v30  ;;  %v10980_v31 = vadd.f32 %v3637_v63, %v3549_v24 }
 0x398   :  { %v3462_v47 = vpop.f32.mrf.mxu2  ;;  %v3551_v50 = vpop.f32.mrf.mxu3 }
 0x399   :  { %v3463_v54 = vadd.f32 %v3462_v47, %v3374_v38  ;;  %v3375_v59 = vpop.f32.mrf.mxu1  ;;  %v3642_v48 = vpop.f32.mrf.mxu0  ;;  %v12960_v38 = vld [vmem:[#allocation105_spill] sm:$0xff]  ;;  %v8349_v47 = vld [vmem:[#allocation8 + $0x2b0] sm:$0xf0] }
 0x39a   :  { %v3376_v19 = vadd.f32 %v3375_v59, %v3287_v21  ;;  %v12961_v21 = vld [vmem:[#allocation106_spill] sm:$0xff] }
 0x39b   :  { %v3552_v57 = vadd.f32 %v3551_v50, %v3463_v54  ;;  %v9405_v50 = vld [vmem:[#allocation8 + $0x3a4] sm:$0xf]  ;;  %v8477_v59 = vld [vmem:[#allocation8 + $0x3b0] sm:$0xf0] }
 0x39d   :  { %v10984_v7 = vadd.f32 %v3640_v35, %v3552_v57  ;;  %v9373_v35 = vld [vmem:[#allocation8 + $0x2a4] sm:$0xf]  ;;  %v3292_v57 = vadd.f32 %v10753_v56, %v10856_v4 }
 0x39e   :  { %v8352_v32 = vor.u32 %v9373_v35, %v8349_v47 }
 0x3a0   :  { %v3464_v25 = vpop.f32.mrf.mxu2  ;;  %v3553_v36 = vpop.f32.mrf.mxu3  ;;  %4122 = vmatpush.bf16.msrb.mxu2 %v8352_v32 }
 0x3a1   :  { %v3465_v45 = vadd.f32 %v3464_v25, %v3376_v19  ;;  %v3378_v63 = vpop.f32.mrf.mxu1  ;;  %v3645_v24 = vpop.f32.mrf.mxu0  ;;  %v8480_v19 = vor.u32 %v9405_v50, %v8477_v59 }
 0x3a2   :  { %v3379_v30 = vadd.f32 %v3378_v63, %v3290_v3 }
 0x3a3   :  { %v3554_v43 = vadd.f32 %v3553_v36, %v3465_v45  ;;  %4211 = vmatpush.bf16.msrb.mxu3 %v8480_v19  ;;  %v12963_v19 = vld [vmem:[#allocation32_spill] sm:$0xff] }
 0x3a4   :  { %3693 = vmatmul.bf16.gmra.mxu1 %v12958_v2  ;;  %3960 = vmatmul.bf16.gmra.mxu0 %v12959_v16  ;;  %v9341_v16 = vld [vmem:[#allocation8 + $0x1a4] sm:$0xf]  ;;  %v8221_v2 = vld [vmem:[#allocation8 + $0x1b0] sm:$0xf0] }
 0x3a5   :  { %3782 = vmatmul.bf16.gmra.mxu2 %v12960_v38  ;;  %3871 = vmatmul.bf16.gmra.mxu3 %v12961_v21  ;;  %v10992_v54 = vadd.f32 %v3642_v48, %v3554_v43  ;;  %v8224_v5 = vor.u32 %v9341_v16, %v8221_v2  ;;  %v3295_v48 = vadd.f32 %v10762_v39, %v10856_v4  ;;  %v12965_v16 = vld [vmem:[#allocation109_spill] sm:$0xff] }
 0x3a7   :  { %4033 = vmatpush.bf16.msrb.mxu1 %v8224_v5  ;;  %v12966_v5 = vld [vmem:[#allocation131_spill] sm:$0xff] }
 0x3a8   :  { %v3467_v3 = vpop.f32.mrf.mxu2  ;;  %v3556_v25 = vpop.f32.mrf.mxu3  ;;  %v3297_v39 = vadd.f32 %v12966_v5, %v10856_v4  ;;  %v12968_v5 = vld [vmem:[#allocation110_spill] sm:$0xff] }
 0x3a9   :  { %v3468_v36 = vadd.f32 %v3467_v3, %v3379_v30  ;;  %v3380_v45 = vpop.f32.mrf.mxu1  ;;  %v3647_v63 = vpop.f32.mrf.mxu0  ;;  %v12962_v3 = vld [vmem:[#allocation107_spill] sm:$0xff] }
 0x3aa   :  { %v3381_v38 = vadd.f32 %v3380_v45, %v3292_v57  ;;  %v12964_v57 = vld [vmem:[#allocation108_spill] sm:$0xff] }
 0x3ab   :  { %v3557_v21 = vadd.f32 %v3556_v25, %v3468_v36 }
 0x3ad   :  { %v10996_v43 = vadd.f32 %v3645_v24, %v3557_v21 }
 0x3b0   :  { %v3469_v35 = vpop.f32.mrf.mxu2  ;;  %v3558_v56 = vpop.f32.mrf.mxu3 }
 0x3b1   :  { %v3470_v47 = vadd.f32 %v3469_v35, %v3381_v38  ;;  %v3383_v50 = vpop.f32.mrf.mxu1  ;;  %v3650_v32 = vpop.f32.mrf.mxu0 }
 0x3b2   :  { %v3384_v30 = vadd.f32 %v3383_v50, %v3295_v48 }
 0x3b3   :  { %v3559_v59 = vadd.f32 %v3558_v56, %v3470_v47  ;;  %v12967_v56 = vld [vmem:[#allocation133_spill] sm:$0xff] }
 0x3b4   :  { %3698 = vmatmul.bf16.gmra.mxu1 %v12962_v3  ;;  %3965 = vmatmul.bf16.gmra.mxu0 %v12963_v19  ;;  %v3300_v47 = vadd.f32 %v12967_v56, %v10856_v4  ;;  %v12972_v56 = vld [vmem:[#allocation136_spill] sm:$0xff] }
 0x3b5   :  { %3787 = vmatmul.bf16.gmra.mxu2 %v12964_v57  ;;  %3876 = vmatmul.bf16.gmra.mxu3 %v12965_v16  ;;  %v11004_v24 = vadd.f32 %v3647_v63, %v3559_v59 }
 0x3b8   :  { %v3472_v2 = vpop.f32.mrf.mxu2  ;;  %v3561_v21 = vpop.f32.mrf.mxu3 }
 0x3b9   :  { %v3473_v38 = vadd.f32 %v3472_v2, %v3384_v30  ;;  %v3385_v25 = vpop.f32.mrf.mxu1  ;;  %v3652_v36 = vpop.f32.mrf.mxu0  ;;  %v12970_v30 = vld [vmem:[#allocation111_spill] sm:$0xff]  ;;  %v8333_v2 = vld [vmem:[#allocation8 + $0x290] sm:$0xf0] }
 0x3ba   :  { %v3386_v45 = vadd.f32 %v3385_v25, %v3297_v39  ;;  %v12971_v39 = vld [vmem:[#allocation112_spill] sm:$0xff] }
 0x3bb   :  { %v3562_v48 = vadd.f32 %v3561_v21, %v3473_v38  ;;  %v9401_v21 = vld [vmem:[#allocation8 + $0x384] sm:$0xf] }
 0x3bd   :  { %v11008_v35 = vadd.f32 %v3650_v32, %v3562_v48  ;;  %v9369_v32 = vld [vmem:[#allocation8 + $0x284] sm:$0xf]  ;;  %v8461_v48 = vld [vmem:[#allocation8 + $0x390] sm:$0xf0] }
 0x3be   :  { %v8336_v25 = vor.u32 %v9369_v32, %v8333_v2 }
 0x3c0   :  { %v3474_v50 = vpop.f32.mrf.mxu2  ;;  %v3563_v57 = vpop.f32.mrf.mxu3  ;;  %4123 = vmatpush.bf16.msrb.mxu2 %v8336_v25 }
 0x3c1   :  { %v3475_v16 = vadd.f32 %v3474_v50, %v3386_v45  ;;  %v3388_v63 = vpop.f32.mrf.mxu1  ;;  %v3655_v59 = vpop.f32.mrf.mxu0  ;;  %v8464_v45 = vor.u32 %v9401_v21, %v8461_v48 }
 0x3c2   :  { %v3389_v19 = vadd.f32 %v3388_v63, %v3300_v47  ;;  %v3302_v47 = vadd.f32 %v12972_v56, %v10856_v4 }
 0x3c3   :  { %v3564_v3 = vadd.f32 %v3563_v57, %v3475_v16  ;;  %4212 = vmatpush.bf16.msrb.mxu3 %v8464_v45  ;;  %v12974_v45 = vld [vmem:[#allocation25_spill] sm:$0xff] }
 0x3c4   :  { %3703 = vmatmul.bf16.gmra.mxu1 %v12968_v5  ;;  %3970 = vmatmul.bf16.gmra.mxu0 %v12969_v58  ;;  %v9337_v5 = vld [vmem:[#allocation8 + $0x184] sm:$0xf] }
 0x3c5   :  { %3792 = vmatmul.bf16.gmra.mxu2 %v12970_v30  ;;  %3881 = vmatmul.bf16.gmra.mxu3 %v12971_v39  ;;  %v11016_v38 = vadd.f32 %v3652_v36, %v3564_v3  ;;  %v8208_v62 = vor.u32 %v9337_v5, %v8205_v10  ;;  %v3305_v36 = vadd.f32 %v10802_v0, %v10856_v4  ;;  %v12976_v10 = vld [vmem:[#allocation115_spill] sm:$0xff] }
 0x3c7   :  { %4034 = vmatpush.bf16.msrb.mxu1 %v8208_v62  ;;  %v3307_v62 = vadd.f32 %v10813_v28, %v10856_v4  ;;  %v12978_v28 = vld [vmem:[#allocation116_spill] sm:$0xff] }
 0x3c8   :  { %v3477_v57 = vpop.f32.mrf.mxu2  ;;  %v3566_v16 = vpop.f32.mrf.mxu3 }
 0x3c9   :  { %v3478_v50 = vadd.f32 %v3477_v57, %v3389_v19  ;;  %v3390_v63 = vpop.f32.mrf.mxu1  ;;  %v3657_v58 = vpop.f32.mrf.mxu0  ;;  %v12973_v57 = vld [vmem:[#allocation113_spill] sm:$0xff] }
 0x3ca   :  { %v3391_v30 = vadd.f32 %v3390_v63, %v3302_v47  ;;  %v12975_v47 = vld [vmem:[#allocation114_spill] sm:$0xff] }
 0x3cb   :  { %v3567_v39 = vadd.f32 %v3566_v16, %v3478_v50 }
 0x3cd   :  { %v11020_v3 = vadd.f32 %v3655_v59, %v3567_v39 }
 0x3d0   :  { %v3479_v32 = vpop.f32.mrf.mxu2  ;;  %v3568_v2 = vpop.f32.mrf.mxu3 }
 0x3d1   :  { %v3480_v21 = vadd.f32 %v3479_v32, %v3391_v30  ;;  %v3393_v48 = vpop.f32.mrf.mxu1  ;;  %v3660_v25 = vpop.f32.mrf.mxu0  ;;  %v12977_v32 = vld [vmem:[#allocation141_spill] sm:$0xff] }
 0x3d2   :  { %v3394_v19 = vadd.f32 %v3393_v48, %v3305_v36 }
 0x3d3   :  { %v3569_v56 = vadd.f32 %v3568_v2, %v3480_v21  ;;  %v3310_v2 = vadd.f32 %v12977_v32, %v10856_v4  ;;  %v12982_v32 = vld [vmem:[#allocation144_spill] sm:$0xff] }
 0x3d4   :  { %3708 = vmatmul.bf16.gmra.mxu1 %v12973_v57  ;;  %3975 = vmatmul.bf16.gmra.mxu0 %v12974_v45  ;;  %v12979_v57 = vld [vmem:[#allocation29_spill] sm:$0xff] }
 0x3d5   :  { %3797 = vmatmul.bf16.gmra.mxu2 %v12975_v47  ;;  %3886 = vmatmul.bf16.gmra.mxu3 %v12976_v10  ;;  %v11028_v59 = vadd.f32 %v3657_v58, %v3569_v56 }
 0x3d8   :  { %v3482_v0 = vpop.f32.mrf.mxu2  ;;  %v3571_v5 = vpop.f32.mrf.mxu3 }
 0x3d9   :  { %v3483_v30 = vadd.f32 %v3482_v0, %v3394_v19  ;;  %v3395_v39 = vpop.f32.mrf.mxu1  ;;  %v3662_v16 = vpop.f32.mrf.mxu0  ;;  %v12980_v19 = vld [vmem:[#allocation117_spill] sm:$0xff]  ;;  %v8317_v0 = vld [vmem:[#allocation8 + $0x270] sm:$0xf0] }
 0x3da   :  { %v3396_v50 = vadd.f32 %v3395_v39, %v3307_v62  ;;  %v12981_v62 = vld [vmem:[#allocation118_spill] sm:$0xff] }
 0x3db   :  { %v3572_v63 = vadd.f32 %v3571_v5, %v3483_v30  ;;  %v9397_v5 = vld [vmem:[#allocation8 + $0x364] sm:$0xf] }
 0x3dd   :  { %v11032_v36 = vadd.f32 %v3660_v25, %v3572_v63  ;;  %v9365_v25 = vld [vmem:[#allocation8 + $0x264] sm:$0xf]  ;;  %v8445_v63 = vld [vmem:[#allocation8 + $0x370] sm:$0xf0] }
 0x3de   :  { %v8320_v39 = vor.u32 %v9365_v25, %v8317_v0 }
 0x3e0   :  { %v3484_v21 = vpop.f32.mrf.mxu2  ;;  %v3573_v48 = vpop.f32.mrf.mxu3  ;;  %4124 = vmatpush.bf16.msrb.mxu2 %v8320_v39 }
 0x3e1   :  { %v3485_v10 = vadd.f32 %v3484_v21, %v3396_v50  ;;  %v3398_v58 = vpop.f32.mrf.mxu1  ;;  %v3665_v56 = vpop.f32.mrf.mxu0  ;;  %v8448_v50 = vor.u32 %v9397_v5, %v8445_v63 }
 0x3e2   :  { %v3399_v47 = vadd.f32 %v3398_v58, %v3310_v2  ;;  %v3312_v2 = vadd.f32 %v12982_v32, %v10856_v4 }
 0x3e3   :  { %v3574_v45 = vadd.f32 %v3573_v48, %v3485_v10  ;;  %4213 = vmatpush.bf16.msrb.mxu3 %v8448_v50  ;;  %v12984_v50 = vld [vmem:[#allocation33_spill] sm:$0xff] }
 0x3e4   :  { %3713 = vmatmul.bf16.gmra.mxu1 %v12978_v28  ;;  %3980 = vmatmul.bf16.gmra.mxu0 %v12979_v57  ;;  %v9333_v28 = vld [vmem:[#allocation8 + $0x164] sm:$0xf] }
 0x3e5   :  { %3802 = vmatmul.bf16.gmra.mxu2 %v12980_v19  ;;  %3891 = vmatmul.bf16.gmra.mxu3 %v12981_v62  ;;  %v11040_v30 = vadd.f32 %v3662_v16, %v3574_v45  ;;  %v8192_v45 = vor.u32 %v9333_v28, %v8189_v37  ;;  %v3315_v16 = vadd.f32 %v10842_v1, %v10856_v4 }
 0x3e6   :  { %v3317_v1 = vadd.f32 %v10853_v15, %v10856_v4 }
 0x3e7   :  { %4035 = vmatpush.bf16.msrb.mxu1 %v8192_v45 }
 0x3e8   :  { %v3487_v10 = vpop.f32.mrf.mxu2  ;;  %v3576_v21 = vpop.f32.mrf.mxu3 }
 0x3e9   :  { %v3488_v48 = vadd.f32 %v3487_v10, %v3399_v47  ;;  %v3400_v58 = vpop.f32.mrf.mxu1  ;;  %v3667_v57 = vpop.f32.mrf.mxu0  ;;  %v12983_v10 = vld [vmem:[#allocation119_spill] sm:$0xff] }
 0x3ea   :  { %v3401_v19 = vadd.f32 %v3400_v58, %v3312_v2  ;;  %v12985_v2 = vld [vmem:[#allocation120_spill] sm:$0xff] }
 0x3eb   :  { %v3577_v62 = vadd.f32 %v3576_v21, %v3488_v48 }
 0x3ed   :  { %v11044_v42 = vadd.f32 %v3665_v56, %v3577_v62  ;;  %v12986_v56 = vld [vmem:[#allocation121_spill] sm:$0xff] }
 0x3f0   :  { %v3489_v25 = vpop.f32.mrf.mxu2  ;;  %v3578_v0 = vpop.f32.mrf.mxu3 }
 0x3f1   :  { %v3490_v5 = vadd.f32 %v3489_v25, %v3401_v19  ;;  %v3403_v63 = vpop.f32.mrf.mxu1  ;;  %v3670_v39 = vpop.f32.mrf.mxu0  ;;  %v8637_v25 = vld [vmem:[#allocation8 + $0x4f0] sm:$0xf0] }
 0x3f2   :  { %v3404_v47 = vadd.f32 %v3403_v63, %v3315_v16  ;;  %v9445_v16 = vld [vmem:[#allocation8 + $0x4e4] sm:$0xf] }
 0x3f3   :  { %v3579_v32 = vadd.f32 %v3578_v0, %v3490_v5  ;;  %v8640_v5 = vor.u32 %v9445_v16, %v8637_v25  ;;  %v8429_v16 = vld [vmem:[#allocation8 + $0x350] sm:$0xf0] }
 0x3f4   :  { %3718 = vmatmul.bf16.gmra.mxu1 %v12983_v10  ;;  %3985 = vmatmul.bf16.gmra.mxu0 %v12984_v50 }
 0x3f5   :  { %3807 = vmatmul.bf16.gmra.mxu2 %v12985_v2  ;;  %3896 = vmatmul.bf16.gmra.mxu3 %v12986_v56  ;;  %v11052_v37 = vadd.f32 %v3667_v57, %v3579_v32 }
 0x3f6   :  { %4298 = vmatpush.bf16.msrb.mxu0 %v8640_v5 }
 0x3f8   :  { %v3492_v28 = vpop.f32.mrf.mxu2  ;;  %v3581_v62 = vpop.f32.mrf.mxu3 }
 0x3f9   :  { %v3493_v19 = vadd.f32 %v3492_v28, %v3404_v47  ;;  %v3405_v21 = vpop.f32.mrf.mxu1  ;;  %v3672_v48 = vpop.f32.mrf.mxu0  ;;  %v12987_v47 = vld [vmem:[#allocation122_spill] sm:$0xff] }
 0x3fa   :  { %v3406_v58 = vadd.f32 %v3405_v21, %v3317_v1  ;;  %v12988_v28 = vld [vmem:[#allocation22_spill] sm:$0xff]  ;;  %v12989_v1 = vld [vmem:[#allocation123_spill] sm:$0xff]  ;;  %v9393_v21 = vld [vmem:[#allocation8 + $0x344] sm:$0xf] }
 0x3fb   :  { %v3582_v45 = vadd.f32 %v3581_v62, %v3493_v19  ;;  %v12990_v62 = vld [vmem:[#allocation124_spill] sm:$0xff]  ;;  %v8301_v19 = vld [vmem:[#allocation8 + $0x250] sm:$0xf0]  ;;  %v8432_v25 = vor.u32 %v9393_v21, %v8429_v16 }
 0x3fc   :  { %v12992_v16 = vld [vmem:[#allocation26_spill] sm:$0xff] }
 0x3fd   :  { %v11056_v0 = vadd.f32 %v3670_v39, %v3582_v45  ;;  %v9361_v39 = vld [vmem:[#allocation8 + $0x244] sm:$0xf]  ;;  %4214 = vmatpush.bf16.msrb.mxu3 %v8432_v25 }
 0x400   :  { %v3494_v63 = vpop.f32.mrf.mxu2  ;;  %v3583_v2 = vpop.f32.mrf.mxu3 }
 0x401   :  { %v3495_v57 = vadd.f32 %v3494_v63, %v3406_v58  ;;  %v3684_v32 = vpop.f32.mrf.mxu1  ;;  %v11058_v56 = vpop.f32.mrf.mxu0  ;;  %v8304_v58 = vor.u32 %v9361_v39, %v8301_v19 }
 0x402   :  { %v3685_v15 = vadd.f32 %v3684_v32, %v10876_v26 }
 0x403   :  { %v3584_v4 = vadd.f32 %v3583_v2, %v3495_v57  ;;  %4125 = vmatpush.bf16.msrb.mxu2 %v8304_v58  ;;  %v12991_v58 = vld [vmem:[#allocation125_spill] sm:$0xff] }
 0x404   :  { %3723 = vmatmul.bf16.gmra.mxu1 %v12987_v47  ;;  %3990 = vmatmul.bf16.gmra.mxu0 %v12988_v28  ;;  %v8173_v28 = vld [vmem:[#allocation8 + $0x150] sm:$0xf0] }
 0x405   :  { %3812 = vmatmul.bf16.gmra.mxu2 %v12989_v1  ;;  %3901 = vmatmul.bf16.gmra.mxu3 %v12990_v62  ;;  %v11065_v45 = vadd.f32 %v3672_v48, %v3584_v4  ;;  %v9329_v62 = vld [vmem:[#allocation8 + $0x144] sm:$0xf] }
 0x406   :  { %v8176_v47 = vor.u32 %v9329_v62, %v8173_v28 }
 0x408   :  { %v3773_v5 = vpop.f32.mrf.mxu2  ;;  %v3862_v63 = vpop.f32.mrf.mxu3  ;;  %4036 = vmatpush.bf16.msrb.mxu1 %v8176_v47 }
 0x409   :  { %v3774_v26 = vadd.f32 %v3773_v5, %v3685_v15  ;;  %v3686_v2 = vpop.f32.mrf.mxu1  ;;  %v11067_v57 = vpop.f32.mrf.mxu0  ;;  %v12993_v5 = vld [vmem:[#allocation126_spill] sm:$0xff] }
 0x40a   :  { %v3687_v32 = vadd.f32 %v3686_v2, %v10884_v61 }
 0x40b   :  { %v3863_v1 = vadd.f32 %v3862_v63, %v3774_v26  ;;  %v12994_v63 = vld [vmem:[#allocation127_spill] sm:$0xff] }
 0x40d   :  { %v6078_v25 = vmax.f32 %v3863_v1, 0.0 }
 0x410   :  { %v3775_v50 = vpop.f32.mrf.mxu2  ;;  %v3864_v48 = vpop.f32.mrf.mxu3 }
 0x411   :  { %v3776_v4 = vadd.f32 %v3775_v50, %v3687_v32  ;;  %v3689_v39 = vpop.f32.mrf.mxu1  ;;  %v11070_v19 = vpop.f32.mrf.mxu0 }
 0x412   :  { %v3690_v21 = vadd.f32 %v3689_v39, %v10888_v20 }
 0x413   :  { %v3865_v15 = vadd.f32 %v3864_v48, %v3776_v4  ;;  %v9441_v48 = vld [vmem:[#allocation8 + $0x4c4] sm:$0xf]  ;;  %v8621_v4 = vld [vmem:[#allocation8 + $0x4d0] sm:$0xf0] }
 0x414   :  { %3728 = vmatmul.bf16.gmra.mxu1 %v12991_v58  ;;  %3995 = vmatmul.bf16.gmra.mxu0 %v12992_v16  ;;  %v8624_v39 = vor.u32 %v9441_v48, %v8621_v4  ;;  %v8285_v48 = vld [vmem:[#allocation8 + $0x230] sm:$0xf0] }
 0x415   :  { %v6082_v61 = vmax.f32 %v3865_v15, 0.0  ;;  %3817 = vmatmul.bf16.gmra.mxu2 %v12993_v5  ;;  %3906 = vmatmul.bf16.gmra.mxu3 %v12994_v63 }
 0x416   :  { %4299 = vmatpush.bf16.msrb.mxu0 %v8624_v39  ;;  %v8413_v39 = vld [vmem:[#allocation8 + $0x330] sm:$0xf0] }
 0x417   :  { %v11077_v28 = vpack.c.bf16 %v6082_v61, %v6078_v25 }
 0x418   :  { %v3778_v47 = vpop.f32.mrf.mxu2  ;;  %v3867_v50 = vpop.f32.mrf.mxu3 }
 0x419   :  { %12995 = vst [vmem:[#allocation79_spill] sm:$0xff] %v11077_v28  ;;  %v3779_v62 = vadd.f32 %v3778_v47, %v3690_v21  ;;  %v3691_v26 = vpop.f32.mrf.mxu1  ;;  %v11079_v2 = vpop.f32.mrf.mxu0  ;;  %v12996_v21 = vld [vmem:[#allocation128_spill] sm:$0xff]  ;;  %v12997_v47 = vld [vmem:[#allocation30_spill] sm:$0xff] }
 0x41a   :  { %v3692_v20 = vadd.f32 %v3691_v26, %v10896_v49  ;;  %v9357_v26 = vld [vmem:[#allocation8 + $0x224] sm:$0xf] }
 0x41b   :  { %v3868_v32 = vadd.f32 %v3867_v50, %v3779_v62  ;;  %v12998_v50 = vld [vmem:[#allocation129_spill] sm:$0xff]  ;;  %v12999_v62 = vld [vmem:[#allocation130_spill] sm:$0xff]  ;;  %v8288_v4 = vor.u32 %v9357_v26, %v8285_v48 }
 0x41d   :  { %v6086_v28 = vmax.f32 %v3868_v32, 0.0  ;;  %4126 = vmatpush.bf16.msrb.mxu2 %v8288_v4 }
 0x420   :  { %v3780_v1 = vpop.f32.mrf.mxu2  ;;  %v3869_v15 = vpop.f32.mrf.mxu3 }
 0x421   :  { %v3781_v5 = vadd.f32 %v3780_v1, %v3692_v20  ;;  %v3694_v16 = vpop.f32.mrf.mxu1  ;;  %v11082_v63 = vpop.f32.mrf.mxu0  ;;  %v9389_v20 = vld [vmem:[#allocation8 + $0x324] sm:$0xf] }
 0x422   :  { %v3695_v25 = vadd.f32 %v3694_v16, %v10900_v8  ;;  %v8416_v1 = vor.u32 %v9389_v20, %v8413_v39  ;;  %v13001_v39 = vld [vmem:[#allocation132_spill] sm:$0xff] }
 0x423   :  { %v3870_v61 = vadd.f32 %v3869_v15, %v3781_v5 }
 0x424   :  { %3733 = vmatmul.bf16.gmra.mxu1 %v12996_v21  ;;  %4000 = vmatmul.bf16.gmra.mxu0 %v12997_v47 }
 0x425   :  { %v6090_v49 = vmax.f32 %v3870_v61, 0.0  ;;  %3822 = vmatmul.bf16.gmra.mxu2 %v12998_v50  ;;  %3911 = vmatmul.bf16.gmra.mxu3 %v12999_v62  ;;  %v9325_v62 = vld [vmem:[#allocation8 + $0x124] sm:$0xf]  ;;  %v8157_v50 = vld [vmem:[#allocation8 + $0x130] sm:$0xf0] }
 0x426   :  { %4215 = vmatpush.bf16.msrb.mxu3 %v8416_v1  ;;  %v8160_v21 = vor.u32 %v9325_v62, %v8157_v50 }
 0x427   :  { %v11089_v58 = vpack.c.bf16 %v6090_v49, %v6086_v28 }
 0x428   :  { %v3783_v8 = vpop.f32.mrf.mxu2  ;;  %v3872_v16 = vpop.f32.mrf.mxu3  ;;  %4037 = vmatpush.bf16.msrb.mxu1 %v8160_v21 }
 0x429   :  { %13000 = vst [vmem:[#allocation131_spill] sm:$0xff] %v11089_v58  ;;  %v3784_v5 = vadd.f32 %v3783_v8, %v3695_v25  ;;  %v3696_v15 = vpop.f32.mrf.mxu1  ;;  %v11091_v47 = vpop.f32.mrf.mxu0  ;;  %v13002_v8 = vld [vmem:[#allocation34_spill] sm:$0xff] }
 0x42a   :  { %v3697_v32 = vadd.f32 %v3696_v15, %v10908_v40 }
 0x42b   :  { %v3873_v61 = vadd.f32 %v3872_v16, %v3784_v5  ;;  %v13003_v16 = vld [vmem:[#allocation134_spill] sm:$0xff]  ;;  %v13004_v5 = vld [vmem:[#allocation135_spill] sm:$0xff] }
 0x42d   :  { %v6094_v1 = vmax.f32 %v3873_v61, 0.0 }
 0x430   :  { %v3785_v26 = vpop.f32.mrf.mxu2  ;;  %v3874_v48 = vpop.f32.mrf.mxu3 }
 0x431   :  { %v3786_v20 = vadd.f32 %v3785_v26, %v3697_v32  ;;  %v3699_v28 = vpop.f32.mrf.mxu1  ;;  %v11094_v49 = vpop.f32.mrf.mxu0 }
 0x432   :  { %v3700_v4 = vadd.f32 %v3699_v28, %v10912_v11  ;;  %v8605_v28 = vld [vmem:[#allocation8 + $0x4b0] sm:$0xf0] }
 0x433   :  { %v3875_v25 = vadd.f32 %v3874_v48, %v3786_v20  ;;  %v9437_v20 = vld [vmem:[#allocation8 + $0x4a4] sm:$0xf] }
 0x434   :  { %3738 = vmatmul.bf16.gmra.mxu1 %v13001_v39  ;;  %4005 = vmatmul.bf16.gmra.mxu0 %v13002_v8  ;;  %v8608_v58 = vor.u32 %v9437_v20, %v8605_v28  ;;  %v8269_v20 = vld [vmem:[#allocation8 + $0x210] sm:$0xf0] }
 0x435   :  { %v6098_v40 = vmax.f32 %v3875_v25, 0.0  ;;  %3827 = vmatmul.bf16.gmra.mxu2 %v13003_v16  ;;  %3916 = vmatmul.bf16.gmra.mxu3 %v13004_v5  ;;  %v8397_v28 = vld [vmem:[#allocation8 + $0x310] sm:$0xf0] }
 0x436   :  { %4300 = vmatpush.bf16.msrb.mxu0 %v8608_v58 }
 0x437   :  { %v11101_v50 = vpack.c.bf16 %v6098_v40, %v6094_v1 }
 0x438   :  { %v3788_v21 = vpop.f32.mrf.mxu2  ;;  %v3877_v62 = vpop.f32.mrf.mxu3 }
 0x439   :  { %13005 = vst [vmem:[#allocation133_spill] sm:$0xff] %v11101_v50  ;;  %v3789_v15 = vadd.f32 %v3788_v21, %v3700_v4  ;;  %v3701_v32 = vpop.f32.mrf.mxu1  ;;  %v11103_v26 = vpop.f32.mrf.mxu0  ;;  %v13006_v4 = vld [vmem:[#allocation137_spill] sm:$0xff]  ;;  %v13007_v21 = vld [vmem:[#allocation23_spill] sm:$0xff] }
 0x43a   :  { %v3702_v11 = vadd.f32 %v3701_v32, %v10920_v46  ;;  %v9353_v32 = vld [vmem:[#allocation8 + $0x204] sm:$0xf] }
 0x43b   :  { %v3878_v48 = vadd.f32 %v3877_v62, %v3789_v15  ;;  %v13008_v62 = vld [vmem:[#allocation138_spill] sm:$0xff]  ;;  %v13009_v15 = vld [vmem:[#allocation139_spill] sm:$0xff]  ;;  %v8272_v58 = vor.u32 %v9353_v32, %v8269_v20  ;;  %v9433_v32 = vld [vmem:[#allocation8 + $0x484] sm:$0xf] }
 0x43c   :  { %v8589_v20 = vld [vmem:[#allocation8 + $0x490] sm:$0xf0] }
 0x43d   :  { %v6102_v50 = vmax.f32 %v3878_v48, 0.0  ;;  %4127 = vmatpush.bf16.msrb.mxu2 %v8272_v58 }
 0x440   :  { %v3790_v61 = vpop.f32.mrf.mxu2  ;;  %v3879_v25 = vpop.f32.mrf.mxu3 }
 0x441   :  { %v3791_v16 = vadd.f32 %v3790_v61, %v3702_v11  ;;  %v3704_v8 = vpop.f32.mrf.mxu1  ;;  %v11106_v5 = vpop.f32.mrf.mxu0  ;;  %v9385_v11 = vld [vmem:[#allocation8 + $0x304] sm:$0xf] }
 0x442   :  { %v3705_v1 = vadd.f32 %v3704_v8, %v10924_v33  ;;  %v8400_v61 = vor.u32 %v9385_v11, %v8397_v28 }
 0x443   :  { %v3880_v40 = vadd.f32 %v3879_v25, %v3791_v16 }
 0x444   :  { %3743 = vmatmul.bf16.gmra.mxu1 %v13006_v4  ;;  %4010 = vmatmul.bf16.gmra.mxu0 %v13007_v21 }
 0x445   :  { %v6106_v46 = vmax.f32 %v3880_v40, 0.0  ;;  %3832 = vmatmul.bf16.gmra.mxu2 %v13008_v62  ;;  %3921 = vmatmul.bf16.gmra.mxu3 %v13009_v15  ;;  %v9321_v15 = vld [vmem:[#allocation8 + $0x104] sm:$0xf]  ;;  %v8141_v62 = vld [vmem:[#allocation8 + $0x110] sm:$0xf0] }
 0x446   :  { %4216 = vmatpush.bf16.msrb.mxu3 %v8400_v61  ;;  %v8144_v4 = vor.u32 %v9321_v15, %v8141_v62 }
 0x447   :  { %v11113_v39 = vpack.c.bf16 %v6106_v46, %v6102_v50  ;;  %v8592_v50 = vor.u32 %v9433_v32, %v8589_v20 }
 0x448   :  { %v3793_v33 = vpop.f32.mrf.mxu2  ;;  %v3882_v8 = vpop.f32.mrf.mxu3  ;;  %4038 = vmatpush.bf16.msrb.mxu1 %v8144_v4  ;;  %v13014_v4 = vld [vmem:[#allocation143_spill] sm:$0xff] }
 0x449   :  { %13010 = vst [vmem:[#allocation136_spill] sm:$0xff] %v11113_v39  ;;  %v3794_v16 = vadd.f32 %v3793_v33, %v3705_v1  ;;  %v3706_v25 = vpop.f32.mrf.mxu1  ;;  %v11115_v21 = vpop.f32.mrf.mxu0  ;;  %4301 = vmatpush.bf16.msrb.mxu0 %v8592_v50  ;;  %v9429_v33 = vld [vmem:[#allocation8 + $0x464] sm:$0xf]  ;;  %v13013_v39 = vld [vmem:[#allocation142_spill] sm:$0xff] }
 0x44a   :  { %v3707_v48 = vadd.f32 %v3706_v25, %v10932_v34  ;;  %v8573_v34 = vld [vmem:[#allocation8 + $0x470] sm:$0xf0] }
 0x44b   :  { %v3883_v40 = vadd.f32 %v3882_v8, %v3794_v16  ;;  %v13011_v8 = vld [vmem:[#allocation140_spill] sm:$0xff]  ;;  %v13012_v16 = vld [vmem:[#allocation27_spill] sm:$0xff]  ;;  %v8576_v62 = vor.u32 %v9429_v33, %v8573_v34  ;;  %v8541_v34 = vld [vmem:[#allocation8 + $0x430] sm:$0xf0] }
 0x44d   :  { %v6110_v15 = vmax.f32 %v3883_v40, 0.0  ;;  %4302 = vmatpush.bf16.msrb.mxu0 %v8576_v62  ;;  %v9417_v62 = vld [vmem:[#allocation8 + $0x404] sm:$0xf] }
 0x450   :  { %v3795_v10 = vpop.f32.mrf.mxu2  ;;  %v3884_v11 = vpop.f32.mrf.mxu3 }
 0x451   :  { %v3796_v46 = vadd.f32 %v3795_v10, %v3707_v48  ;;  %v3709_v28 = vpop.f32.mrf.mxu1  ;;  %v11118_v58 = vpop.f32.mrf.mxu0  ;;  %v9425_v10 = vld [vmem:[#allocation8 + $0x444] sm:$0xf]  ;;  %v8557_v48 = vld [vmem:[#allocation8 + $0x450] sm:$0xf0] }
 0x452   :  { %v3710_v1 = vadd.f32 %v3709_v28, %v10936_v51 }
 0x453   :  { %v3885_v61 = vadd.f32 %v3884_v11, %v3796_v46  ;;  %v8560_v11 = vor.u32 %v9425_v10, %v8557_v48 }
 0x454   :  { %3748 = vmatmul.bf16.gmra.mxu1 %v13011_v8  ;;  %4015 = vmatmul.bf16.gmra.mxu0 %v13012_v16 }
 0x455   :  { %v6114_v25 = vmax.f32 %v3885_v61, 0.0  ;;  %3837 = vmatmul.bf16.gmra.mxu2 %v13013_v39  ;;  %3926 = vmatmul.bf16.gmra.mxu3 %v13014_v4  ;;  %v9421_v61 = vld [vmem:[#allocation8 + $0x424] sm:$0xf]  ;;  %v8525_v4 = vld [vmem:[#allocation8 + $0x410] sm:$0xf0] }
 0x456   :  { %4303 = vmatpush.bf16.msrb.mxu0 %v8560_v11  ;;  %v8544_v39 = vor.u32 %v9421_v61, %v8541_v34  ;;  %v9021_v61 = vld [vmem:[#allocation8 + $0x7f0] sm:$0xf0] }
 0x457   :  { %v11125_v32 = vpack.c.bf16 %v6114_v25, %v6110_v15  ;;  %v8528_v25 = vor.u32 %v9417_v62, %v8525_v4  ;;  %v8893_v4 = vld [vmem:[#allocation8 + $0x6f0] sm:$0xf0] }
 0x458   :  { %v3798_v51 = vpop.f32.mrf.mxu2  ;;  %v3887_v20 = vpop.f32.mrf.mxu3 }
 0x459   :  { %13015 = vst [vmem:[#allocation141_spill] sm:$0xff] %v11125_v32  ;;  %v3799_v50 = vadd.f32 %v3798_v51, %v3710_v1  ;;  %v3711_v46 = vpop.f32.mrf.mxu1  ;;  %v11127_v28 = vpop.f32.mrf.mxu0  ;;  %v13017_v51 = vld [vmem:[#allocation31_spill] sm:$0xff] }
 0x45a   :  { %v3712_v33 = vadd.f32 %v3711_v46, %v10944_v13  ;;  %4304 = vmatpush.bf16.msrb.mxu0 %v8544_v39  ;;  %v13016_v13 = vld [vmem:[#allocation145_spill] sm:$0xff]  ;;  %v13018_v39 = vld [vmem:[#allocation146_spill] sm:$0xff]  ;;  %v9509_v46 = vld [vmem:[#allocation8 + $0x6e4] sm:$0xf] }
 0x45b   :  { %v3888_v40 = vadd.f32 %v3887_v20, %v3799_v50  ;;  %v13019_v50 = vld [vmem:[#allocation147_spill] sm:$0xff] }
 0x45d   :  { %v6118_v20 = vmax.f32 %v3888_v40, 0.0 }
 0x45e   :  { %4305 = vmatpush.bf16.msrb.mxu0 %v8528_v25 }
 0x460   :  { %v3800_v16 = vpop.f32.mrf.mxu2  ;;  %v3889_v15 = vpop.f32.mrf.mxu3 }
 0x461   :  { %v3801_v32 = vadd.f32 %v3800_v16, %v3712_v33  ;;  %v3714_v8 = vpop.f32.mrf.mxu1  ;;  %v11130_v10 = vpop.f32.mrf.mxu0  ;;  %v8896_v16 = vor.u32 %v9509_v46, %v8893_v4  ;;  %v9541_v33 = vld [vmem:[#allocation8 + $0x7e4] sm:$0xf] }
 0x462   :  { %v3715_v1 = vadd.f32 %v3714_v8, %v10948_v29  ;;  %v9024_v34 = vor.u32 %v9541_v33, %v9021_v61  ;;  %v13021_v61 = vld [vmem:[#allocation35_spill] sm:$0xff] }
 0x463   :  { %v3890_v48 = vadd.f32 %v3889_v15, %v3801_v32  ;;  %4476 = vmatpush.bf16.msra.mxu2 %v8896_v16 }
 0x464   :  { %3753 = vmatmul.bf16.gmra.mxu1 %v13016_v13  ;;  %4020 = vmatmul.bf16.gmra.mxu0 %v13017_v51 }
 0x465   :  { %v6122_v11 = vmax.f32 %v3890_v48, 0.0  ;;  %3842 = vmatmul.bf16.gmra.mxu2 %v13018_v39  ;;  %3931 = vmatmul.bf16.gmra.mxu3 %v13019_v50  ;;  %v9477_v50 = vld [vmem:[#allocation8 + $0x5e4] sm:$0xf]  ;;  %v8765_v39 = vld [vmem:[#allocation8 + $0x5f0] sm:$0xf0] }
 0x466   :  { %4565 = vmatpush.bf16.msra.mxu3 %v9024_v34  ;;  %v8768_v51 = vor.u32 %v9477_v50, %v8765_v39 }
 0x467   :  { %v11137_v62 = vpack.c.bf16 %v6122_v11, %v6118_v20 }
 0x468   :  { %v3803_v29 = vpop.f32.mrf.mxu2  ;;  %v3892_v8 = vpop.f32.mrf.mxu3  ;;  %4387 = vmatpush.bf16.msra.mxu1 %v8768_v51 }
 0x469   :  { %13020 = vst [vmem:[#allocation144_spill] sm:$0xff] %v11137_v62  ;;  %v3804_v32 = vadd.f32 %v3803_v29, %v3715_v1  ;;  %v3716_v15 = vpop.f32.mrf.mxu1  ;;  %v11139_v25 = vpop.f32.mrf.mxu0  ;;  %v13026_v62 = vld [vmem:[#allocation39_spill] sm:$0xff] }
 0x46a   :  { %v3717_v40 = vadd.f32 %v3716_v15, %v10956_v60 }
 0x46b   :  { %v3893_v48 = vadd.f32 %v3892_v8, %v3804_v32 }
 0x46d   :  { %v6126_v34 = vmax.f32 %v3893_v48, 0.0 }
 0x470   :  { %v3805_v46 = vpop.f32.mrf.mxu2  ;;  %v3894_v4 = vpop.f32.mrf.mxu3 }
 0x471   :  { %v3806_v33 = vadd.f32 %v3805_v46, %v3717_v40  ;;  %v3719_v20 = vpop.f32.mrf.mxu1  ;;  %v11142_v11 = vpop.f32.mrf.mxu0 }
 0x472   :  { %v3720_v16 = vadd.f32 %v3719_v20, %v10960_v18 }
 0x473   :  { %v3895_v1 = vadd.f32 %v3894_v4, %v3806_v33 }
 0x474   :  { %3758 = vmatmul.bf16.gmra.mxu1 %v10858_v22  ;;  %4025 = vmatmul.bf16.gmra.mxu0 %v13021_v61 }
 0x475   :  { %v6130_v60 = vmax.f32 %v3895_v1, 0.0  ;;  %3847 = vmatmul.bf16.gmra.mxu2 %v10868_v44  ;;  %3936 = vmatmul.bf16.gmra.mxu3 %v10870_v52 }
 0x477   :  { %v11149_v39 = vpack.c.bf16 %v6130_v60, %v6126_v34  ;;  %v13023_v34 = vld [vmem:[#allocation36_spill] sm:$0xff]  ;;  %v13024_v60 = vld [vmem:[#allocation37_spill] sm:$0xff] }
 0x478   :  { %v3808_v51 = vpop.f32.mrf.mxu2  ;;  %v3897_v50 = vpop.f32.mrf.mxu3 }
 0x479   :  { %13022 = vst [vmem:[#allocation145_spill] sm:$0xff] %v11149_v39  ;;  %v3809_v29 = vadd.f32 %v3808_v51, %v3720_v16  ;;  %v3721_v8 = vpop.f32.mrf.mxu1  ;;  %v11151_v32 = vpop.f32.mrf.mxu0  ;;  %v13025_v39 = vld [vmem:[#allocation38_spill] sm:$0xff] }
 0x47a   :  { %v3722_v18 = vadd.f32 %v3721_v8, %v10968_v23  ;;  %v9505_v23 = vld [vmem:[#allocation8 + $0x6c4] sm:$0xf] }
 0x47b   :  { %v3898_v15 = vadd.f32 %v3897_v50, %v3809_v29  ;;  %v8877_v50 = vld [vmem:[#allocation8 + $0x6d0] sm:$0xf0]  ;;  %v9537_v8 = vld [vmem:[#allocation8 + $0x7c4] sm:$0xf] }
 0x47c   :  { %v8880_v29 = vor.u32 %v9505_v23, %v8877_v50 }
 0x47d   :  { %v6134_v16 = vmax.f32 %v3898_v15, 0.0 }
 0x47e   :  { %4477 = vmatpush.bf16.msra.mxu2 %v8880_v29 }
 0x480   :  { %v3810_v40 = vpop.f32.mrf.mxu2  ;;  %v3899_v46 = vpop.f32.mrf.mxu3 }
 0x481   :  { %v3811_v4 = vadd.f32 %v3810_v40, %v3722_v18  ;;  %v3724_v48 = vpop.f32.mrf.mxu1  ;;  %v11154_v33 = vpop.f32.mrf.mxu0  ;;  %v9005_v18 = vld [vmem:[#allocation8 + $0x7d0] sm:$0xf0] }
 0x482   :  { %v3725_v20 = vadd.f32 %v3724_v48, %v10972_v12  ;;  %v9008_v40 = vor.u32 %v9537_v8, %v9005_v18  ;;  %v13028_v18 = vld [vmem:[#allocation40_spill] sm:$0xff] }
 0x483   :  { %v3900_v1 = vadd.f32 %v3899_v46, %v3811_v4 }
 0x484   :  { %4039 = vmatmul.bf16.vlgmr.msrb.gmra.mxu1 %v13023_v34  ;;  %4306 = vmatmul.bf16.vlgmr.msrb.gmra.mxu0 %v13024_v60 }
 0x485   :  { %v6138_v51 = vmax.f32 %v3900_v1, 0.0  ;;  %4128 = vmatmul.bf16.vlgmr.msrb.gmra.mxu2 %v13025_v39  ;;  %4217 = vmatmul.bf16.vlgmr.msrb.gmra.mxu3 %v13026_v62  ;;  %v9473_v62 = vld [vmem:[#allocation8 + $0x5c4] sm:$0xf]  ;;  %v8749_v39 = vld [vmem:[#allocation8 + $0x5d0] sm:$0xf0] }
 0x486   :  { %4566 = vmatpush.bf16.msra.mxu3 %v9008_v40  ;;  %v8752_v34 = vor.u32 %v9473_v62, %v8749_v39 }
 0x487   :  { %v11161_v52 = vpack.c.bf16 %v6138_v51, %v6134_v16 }
 0x488   :  { %v3813_v12 = vpop.f32.mrf.mxu2  ;;  %v3902_v46 = vpop.f32.mrf.mxu3  ;;  %4388 = vmatpush.bf16.msra.mxu1 %v8752_v34 }
 0x489   :  { %13027 = vst [vmem:[#allocation35_spill] sm:$0xff] %v11161_v52  ;;  %v3814_v4 = vadd.f32 %v3813_v12, %v3725_v20  ;;  %v3726_v48 = vpop.f32.mrf.mxu1  ;;  %v11163_v60 = vpop.f32.mrf.mxu0  ;;  %v13029_v12 = vld [vmem:[#allocation41_spill] sm:$0xff] }
 0x48a   :  { %v3727_v15 = vadd.f32 %v3726_v48, %v10980_v31 }
 0x48b   :  { %v3903_v1 = vadd.f32 %v3902_v46, %v3814_v4  ;;  %v13030_v46 = vld [vmem:[#allocation42_spill] sm:$0xff]  ;;  %v13031_v4 = vld [vmem:[#allocation43_spill] sm:$0xff] }
 0x48d   :  { %v6142_v40 = vmax.f32 %v3903_v1, 0.0 }
 0x490   :  { %v3815_v23 = vpop.f32.mrf.mxu2  ;;  %v3904_v50 = vpop.f32.mrf.mxu3 }
 0x491   :  { %v3816_v8 = vadd.f32 %v3815_v23, %v3727_v15  ;;  %v3729_v16 = vpop.f32.mrf.mxu1  ;;  %v11166_v51 = vpop.f32.mrf.mxu0 }
 0x492   :  { %v3730_v29 = vadd.f32 %v3729_v16, %v10984_v7 }
 0x493   :  { %v3905_v20 = vadd.f32 %v3904_v50, %v3816_v8 }
 0x494   :  { %4044 = vmatmul.bf16.gmra.mxu1 %v13028_v18  ;;  %4311 = vmatmul.bf16.gmra.mxu0 %v13029_v12  ;;  %v13036_v12 = vld [vmem:[#allocation47_spill] sm:$0xff] }
 0x495   :  { %v6146_v31 = vmax.f32 %v3905_v20, 0.0  ;;  %4133 = vmatmul.bf16.gmra.mxu2 %v13030_v46  ;;  %4222 = vmatmul.bf16.gmra.mxu3 %v13031_v4 }
 0x497   :  { %v11173_v62 = vpack.c.bf16 %v6146_v31, %v6142_v40  ;;  %v13033_v40 = vld [vmem:[#allocation44_spill] sm:$0xff]  ;;  %v13034_v31 = vld [vmem:[#allocation45_spill] sm:$0xff] }
 0x498   :  { %v3818_v39 = vpop.f32.mrf.mxu2  ;;  %v3907_v34 = vpop.f32.mrf.mxu3 }
 0x499   :  { %13032 = vst [vmem:[#allocation150_spill] sm:$0xff] %v11173_v62  ;;  %v3819_v48 = vadd.f32 %v3818_v39, %v3730_v29  ;;  %v3731_v15 = vpop.f32.mrf.mxu1  ;;  %v11175_v23 = vpop.f32.mrf.mxu0  ;;  %v13035_v62 = vld [vmem:[#allocation46_spill] sm:$0xff] }
 0x49a   :  { %v3732_v7 = vadd.f32 %v3731_v15, %v10992_v54  ;;  %v9501_v54 = vld [vmem:[#allocation8 + $0x6a4] sm:$0xf] }
 0x49b   :  { %v3908_v50 = vadd.f32 %v3907_v34, %v3819_v48  ;;  %v8861_v34 = vld [vmem:[#allocation8 + $0x6b0] sm:$0xf0]  ;;  %v9533_v15 = vld [vmem:[#allocation8 + $0x7a4] sm:$0xf] }
 0x49c   :  { %v8864_v48 = vor.u32 %v9501_v54, %v8861_v34 }
 0x49d   :  { %v6150_v29 = vmax.f32 %v3908_v50, 0.0 }
 0x49e   :  { %4478 = vmatpush.bf16.msra.mxu2 %v8864_v48 }
 0x4a0   :  { %v3820_v8 = vpop.f32.mrf.mxu2  ;;  %v3909_v16 = vpop.f32.mrf.mxu3 }
 0x4a1   :  { %v3821_v52 = vadd.f32 %v3820_v8, %v3732_v7  ;;  %v3734_v1 = vpop.f32.mrf.mxu1  ;;  %v11178_v20 = vpop.f32.mrf.mxu0  ;;  %v8989_v7 = vld [vmem:[#allocation8 + $0x7b0] sm:$0xf0] }
 0x4a2   :  { %v3735_v46 = vadd.f32 %v3734_v1, %v10996_v43  ;;  %v8992_v8 = vor.u32 %v9533_v15, %v8989_v7  ;;  %v13038_v7 = vld [vmem:[#allocation48_spill] sm:$0xff] }
 0x4a3   :  { %v3910_v4 = vadd.f32 %v3909_v16, %v3821_v52 }
 0x4a4   :  { %4049 = vmatmul.bf16.gmra.mxu1 %v13033_v40  ;;  %4316 = vmatmul.bf16.gmra.mxu0 %v13034_v31 }
 0x4a5   :  { %v6154_v39 = vmax.f32 %v3910_v4, 0.0  ;;  %4138 = vmatmul.bf16.gmra.mxu2 %v13035_v62  ;;  %4227 = vmatmul.bf16.gmra.mxu3 %v13036_v12  ;;  %v9469_v12 = vld [vmem:[#allocation8 + $0x5a4] sm:$0xf]  ;;  %v8733_v62 = vld [vmem:[#allocation8 + $0x5b0] sm:$0xf0] }
 0x4a6   :  { %4567 = vmatpush.bf16.msra.mxu3 %v8992_v8  ;;  %v8736_v40 = vor.u32 %v9469_v12, %v8733_v62 }
 0x4a7   :  { %v11185_v18 = vpack.c.bf16 %v6154_v39, %v6150_v29 }
 0x4a8   :  { %v3823_v43 = vpop.f32.mrf.mxu2  ;;  %v3912_v52 = vpop.f32.mrf.mxu3  ;;  %4389 = vmatpush.bf16.msra.mxu1 %v8736_v40 }
 0x4a9   :  { %13037 = vst [vmem:[#allocation151_spill] sm:$0xff] %v11185_v18  ;;  %v3824_v16 = vadd.f32 %v3823_v43, %v3735_v46  ;;  %v3736_v1 = vpop.f32.mrf.mxu1  ;;  %v11187_v31 = vpop.f32.mrf.mxu0  ;;  %v13039_v43 = vld [vmem:[#allocation49_spill] sm:$0xff] }
 0x4aa   :  { %v3737_v4 = vadd.f32 %v3736_v1, %v11004_v24 }
 0x4ab   :  { %v3913_v50 = vadd.f32 %v3912_v52, %v3824_v16  ;;  %v13040_v52 = vld [vmem:[#allocation50_spill] sm:$0xff]  ;;  %v13041_v16 = vld [vmem:[#allocation51_spill] sm:$0xff] }
 0x4ad   :  { %v6158_v8 = vmax.f32 %v3913_v50, 0.0 }
 0x4b0   :  { %v3825_v54 = vpop.f32.mrf.mxu2  ;;  %v3914_v34 = vpop.f32.mrf.mxu3 }
 0x4b1   :  { %v3826_v15 = vadd.f32 %v3825_v54, %v3737_v4  ;;  %v3739_v29 = vpop.f32.mrf.mxu1  ;;  %v11190_v39 = vpop.f32.mrf.mxu0 }
 0x4b2   :  { %v3740_v48 = vadd.f32 %v3739_v29, %v11008_v35 }
 0x4b3   :  { %v3915_v46 = vadd.f32 %v3914_v34, %v3826_v15 }
 0x4b4   :  { %4054 = vmatmul.bf16.gmra.mxu1 %v13038_v7  ;;  %4321 = vmatmul.bf16.gmra.mxu0 %v13039_v43  ;;  %v13046_v43 = vld [vmem:[#allocation55_spill] sm:$0xff] }
 0x4b5   :  { %v6162_v24 = vmax.f32 %v3915_v46, 0.0  ;;  %4143 = vmatmul.bf16.gmra.mxu2 %v13040_v52  ;;  %4232 = vmatmul.bf16.gmra.mxu3 %v13041_v16 }
 0x4b7   :  { %v11197_v12 = vpack.c.bf16 %v6162_v24, %v6158_v8  ;;  %v13043_v8 = vld [vmem:[#allocation52_spill] sm:$0xff]  ;;  %v13044_v24 = vld [vmem:[#allocation53_spill] sm:$0xff] }
 0x4b8   :  { %v3828_v62 = vpop.f32.mrf.mxu2  ;;  %v3917_v40 = vpop.f32.mrf.mxu3 }
 0x4b9   :  { %13042 = vst [vmem:[#allocation152_spill] sm:$0xff] %v11197_v12  ;;  %v3829_v1 = vadd.f32 %v3828_v62, %v3740_v48  ;;  %v3741_v4 = vpop.f32.mrf.mxu1  ;;  %v11199_v54 = vpop.f32.mrf.mxu0  ;;  %v13045_v12 = vld [vmem:[#allocation54_spill] sm:$0xff] }
 0x4ba   :  { %v3742_v35 = vadd.f32 %v3741_v4, %v11016_v38  ;;  %v9497_v38 = vld [vmem:[#allocation8 + $0x684] sm:$0xf] }
 0x4bb   :  { %v3918_v34 = vadd.f32 %v3917_v40, %v3829_v1  ;;  %v8845_v40 = vld [vmem:[#allocation8 + $0x690] sm:$0xf0]  ;;  %v9529_v4 = vld [vmem:[#allocation8 + $0x784] sm:$0xf] }
 0x4bc   :  { %v8848_v1 = vor.u32 %v9497_v38, %v8845_v40 }
 0x4bd   :  { %v6166_v48 = vmax.f32 %v3918_v34, 0.0 }
 0x4be   :  { %4479 = vmatpush.bf16.msra.mxu2 %v8848_v1 }
 0x4c0   :  { %v3830_v15 = vpop.f32.mrf.mxu2  ;;  %v3919_v29 = vpop.f32.mrf.mxu3 }
 0x4c1   :  { %v3831_v18 = vadd.f32 %v3830_v15, %v3742_v35  ;;  %v3744_v50 = vpop.f32.mrf.mxu1  ;;  %v11202_v46 = vpop.f32.mrf.mxu0  ;;  %v8973_v35 = vld [vmem:[#allocation8 + $0x790] sm:$0xf0] }
 0x4c2   :  { %v3745_v52 = vadd.f32 %v3744_v50, %v11020_v3  ;;  %v8976_v15 = vor.u32 %v9529_v4, %v8973_v35  ;;  %v13048_v35 = vld [vmem:[#allocation56_spill] sm:$0xff] }
 0x4c3   :  { %v3920_v16 = vadd.f32 %v3919_v29, %v3831_v18 }
 0x4c4   :  { %4059 = vmatmul.bf16.gmra.mxu1 %v13043_v8  ;;  %4326 = vmatmul.bf16.gmra.mxu0 %v13044_v24 }
 0x4c5   :  { %v6170_v62 = vmax.f32 %v3920_v16, 0.0  ;;  %4148 = vmatmul.bf16.gmra.mxu2 %v13045_v12  ;;  %4237 = vmatmul.bf16.gmra.mxu3 %v13046_v43  ;;  %v9465_v43 = vld [vmem:[#allocation8 + $0x584] sm:$0xf]  ;;  %v8717_v12 = vld [vmem:[#allocation8 + $0x590] sm:$0xf0] }
 0x4c6   :  { %4568 = vmatpush.bf16.msra.mxu3 %v8976_v15  ;;  %v8720_v8 = vor.u32 %v9465_v43, %v8717_v12 }
 0x4c7   :  { %v11209_v7 = vpack.c.bf16 %v6170_v62, %v6166_v48 }
 0x4c8   :  { %v3833_v3 = vpop.f32.mrf.mxu2  ;;  %v3922_v18 = vpop.f32.mrf.mxu3  ;;  %4390 = vmatpush.bf16.msra.mxu1 %v8720_v8 }
 0x4c9   :  { %13047 = vst [vmem:[#allocation153_spill] sm:$0xff] %v11209_v7  ;;  %v3834_v29 = vadd.f32 %v3833_v3, %v3745_v52  ;;  %v3746_v50 = vpop.f32.mrf.mxu1  ;;  %v11211_v24 = vpop.f32.mrf.mxu0  ;;  %v13049_v3 = vld [vmem:[#allocation57_spill] sm:$0xff] }
 0x4ca   :  { %v3747_v16 = vadd.f32 %v3746_v50, %v11028_v59 }
 0x4cb   :  { %v3923_v34 = vadd.f32 %v3922_v18, %v3834_v29  ;;  %v13050_v18 = vld [vmem:[#allocation58_spill] sm:$0xff]  ;;  %v13051_v29 = vld [vmem:[#allocation59_spill] sm:$0xff] }
 0x4cd   :  { %v6174_v15 = vmax.f32 %v3923_v34, 0.0 }
 0x4d0   :  { %v3835_v38 = vpop.f32.mrf.mxu2  ;;  %v3924_v40 = vpop.f32.mrf.mxu3 }
 0x4d1   :  { %v3836_v4 = vadd.f32 %v3835_v38, %v3747_v16  ;;  %v3749_v48 = vpop.f32.mrf.mxu1  ;;  %v11214_v62 = vpop.f32.mrf.mxu0 }
 0x4d2   :  { %v3750_v1 = vadd.f32 %v3749_v48, %v11032_v36 }
 0x4d3   :  { %v3925_v52 = vadd.f32 %v3924_v40, %v3836_v4 }
 0x4d4   :  { %4064 = vmatmul.bf16.gmra.mxu1 %v13048_v35  ;;  %4331 = vmatmul.bf16.gmra.mxu0 %v13049_v3  ;;  %v13056_v3 = vld [vmem:[#allocation63_spill] sm:$0xff] }
 0x4d5   :  { %v6178_v59 = vmax.f32 %v3925_v52, 0.0  ;;  %4153 = vmatmul.bf16.gmra.mxu2 %v13050_v18  ;;  %4242 = vmatmul.bf16.gmra.mxu3 %v13051_v29 }
 0x4d7   :  { %v11221_v43 = vpack.c.bf16 %v6178_v59, %v6174_v15  ;;  %v13053_v15 = vld [vmem:[#allocation60_spill] sm:$0xff]  ;;  %v13054_v59 = vld [vmem:[#allocation61_spill] sm:$0xff] }
 0x4d8   :  { %v3838_v12 = vpop.f32.mrf.mxu2  ;;  %v3927_v8 = vpop.f32.mrf.mxu3 }
 0x4d9   :  { %13052 = vst [vmem:[#allocation154_spill] sm:$0xff] %v11221_v43  ;;  %v3839_v50 = vadd.f32 %v3838_v12, %v3750_v1  ;;  %v3751_v16 = vpop.f32.mrf.mxu1  ;;  %v11223_v38 = vpop.f32.mrf.mxu0  ;;  %v13055_v43 = vld [vmem:[#allocation62_spill] sm:$0xff] }
 0x4da   :  { %v3752_v36 = vadd.f32 %v3751_v16, %v11040_v30  ;;  %v9493_v30 = vld [vmem:[#allocation8 + $0x664] sm:$0xf] }
 0x4db   :  { %v3928_v40 = vadd.f32 %v3927_v8, %v3839_v50  ;;  %v8829_v8 = vld [vmem:[#allocation8 + $0x670] sm:$0xf0]  ;;  %v9525_v16 = vld [vmem:[#allocation8 + $0x764] sm:$0xf] }
 0x4dc   :  { %v8832_v50 = vor.u32 %v9493_v30, %v8829_v8 }
 0x4dd   :  { %v6182_v1 = vmax.f32 %v3928_v40, 0.0 }
 0x4de   :  { %4480 = vmatpush.bf16.msra.mxu2 %v8832_v50 }
 0x4e0   :  { %v3840_v4 = vpop.f32.mrf.mxu2  ;;  %v3929_v48 = vpop.f32.mrf.mxu3 }
 0x4e1   :  { %v3841_v7 = vadd.f32 %v3840_v4, %v3752_v36  ;;  %v3754_v34 = vpop.f32.mrf.mxu1  ;;  %v11226_v52 = vpop.f32.mrf.mxu0  ;;  %v8957_v36 = vld [vmem:[#allocation8 + $0x770] sm:$0xf0] }
 0x4e2   :  { %v3755_v18 = vadd.f32 %v3754_v34, %v11044_v42  ;;  %v8960_v4 = vor.u32 %v9525_v16, %v8957_v36  ;;  %v13058_v36 = vld [vmem:[#allocation64_spill] sm:$0xff] }
 0x4e3   :  { %v3930_v29 = vadd.f32 %v3929_v48, %v3841_v7 }
 0x4e4   :  { %4069 = vmatmul.bf16.gmra.mxu1 %v13053_v15  ;;  %4336 = vmatmul.bf16.gmra.mxu0 %v13054_v59 }
 0x4e5   :  { %v6186_v12 = vmax.f32 %v3930_v29, 0.0  ;;  %4158 = vmatmul.bf16.gmra.mxu2 %v13055_v43  ;;  %4247 = vmatmul.bf16.gmra.mxu3 %v13056_v3  ;;  %v9461_v3 = vld [vmem:[#allocation8 + $0x564] sm:$0xf]  ;;  %v8701_v43 = vld [vmem:[#allocation8 + $0x570] sm:$0xf0] }
 0x4e6   :  { %4569 = vmatpush.bf16.msra.mxu3 %v8960_v4  ;;  %v8704_v15 = vor.u32 %v9461_v3, %v8701_v43 }
 0x4e7   :  { %v11233_v35 = vpack.c.bf16 %v6186_v12, %v6182_v1 }
 0x4e8   :  { %v3843_v42 = vpop.f32.mrf.mxu2  ;;  %v3932_v7 = vpop.f32.mrf.mxu3  ;;  %4391 = vmatpush.bf16.msra.mxu1 %v8704_v15 }
 0x4e9   :  { %13057 = vst [vmem:[#allocation155_spill] sm:$0xff] %v11233_v35  ;;  %v3844_v48 = vadd.f32 %v3843_v42, %v3755_v18  ;;  %v3756_v34 = vpop.f32.mrf.mxu1  ;;  %v11235_v59 = vpop.f32.mrf.mxu0  ;;  %v13059_v42 = vld [vmem:[#allocation65_spill] sm:$0xff]  ;;  %v9756_v35 = vld [vmem:[#allocation10] sm:$0xf] }
 0x4ea   :  { %v3757_v29 = vadd.f32 %v3756_v34, %v11052_v37 }
 0x4eb   :  { %v3933_v40 = vadd.f32 %v3932_v7, %v3844_v48  ;;  %v13060_v7 = vld [vmem:[#allocation66_spill] sm:$0xff]  ;;  %v13061_v48 = vld [vmem:[#allocation67_spill] sm:$0xff] }
 0x4ed   :  { %v6190_v4 = vmax.f32 %v3933_v40, 0.0  ;;  %v11250_v40 = vperm.slane %v9756_v35, 1  ;;  %v13064_v35 = vld [vmem:[#allocation70_spill] sm:$0xff] }
 0x4f0   :  { %v3845_v30 = vpop.f32.mrf.mxu2  ;;  %v3934_v8 = vpop.f32.mrf.mxu3 }
 0x4f1   :  { %v3846_v16 = vadd.f32 %v3845_v30, %v3757_v29  ;;  %v3759_v1 = vpop.f32.mrf.mxu1  ;;  %v11238_v12 = vpop.f32.mrf.mxu0 }
 0x4f2   :  { %v3760_v50 = vadd.f32 %v3759_v1, %v11056_v0  ;;  %v9320_v1 = vld [vmem:[#allocation8 + $0xf4] sm:$0xf0] }
 0x4f3   :  { %v3935_v18 = vadd.f32 %v3934_v8, %v3846_v16  ;;  %v8131_v16 = vld [vmem:[#allocation8 + $0xe8] sm:$0xf] }
 0x4f4   :  { %4074 = vmatmul.bf16.gmra.mxu1 %v13058_v36  ;;  %4341 = vmatmul.bf16.gmra.mxu0 %v13059_v42  ;;  %v8941_v36 = vld [vmem:[#allocation8 + $0x750] sm:$0xf0] }
 0x4f5   :  { %v6194_v37 = vmax.f32 %v3935_v18, 0.0  ;;  %4163 = vmatmul.bf16.gmra.mxu2 %v13060_v7  ;;  %4252 = vmatmul.bf16.gmra.mxu3 %v13061_v48  ;;  %v8132_v18 = vor.u32 %v9320_v1, %v8131_v16  ;;  %v9489_v16 = vld [vmem:[#allocation8 + $0x644] sm:$0xf]  ;;  %v8813_v1 = vld [vmem:[#allocation8 + $0x650] sm:$0xf0] }
 0x4f7   :  { %v11245_v3 = vpack.c.bf16 %v6194_v37, %v6190_v4  ;;  %4654 = vmatpush.bf16.msra.mxu0 %v8132_v18  ;;  %v3952_v4 = vadd.f32 %v11058_v56, %v11250_v40  ;;  %v8816_v56 = vor.u32 %v9489_v16, %v8813_v1  ;;  %v9521_v18 = vld [vmem:[#allocation8 + $0x744] sm:$0xf] }
 0x4f8   :  { %v3848_v43 = vpop.f32.mrf.mxu2  ;;  %v3937_v15 = vpop.f32.mrf.mxu3 }
 0x4f9   :  { %13062 = vst [vmem:[#allocation156_spill] sm:$0xff] %v11245_v3  ;;  %v3849_v34 = vadd.f32 %v3848_v43, %v3760_v50  ;;  %v3761_v29 = vpop.f32.mrf.mxu1  ;;  %v11247_v30 = vpop.f32.mrf.mxu0  ;;  %4481 = vmatpush.bf16.msra.mxu2 %v8816_v56 }
 0x4fa   :  { %v3762_v0 = vadd.f32 %v3761_v29, %v11065_v45  ;;  %v13063_v45 = vld [vmem:[#allocation69_spill] sm:$0xff]  ;;  %v13065_v29 = vld [vmem:[#allocation71_spill] sm:$0xff] }
 0x4fb   :  { %v3938_v8 = vadd.f32 %v3937_v15, %v3849_v34 }
 0x4fd   :  { %v6198_v15 = vmax.f32 %v3938_v8, 0.0 }
 0x500   :  { %v3850_v37 = vpop.f32.mrf.mxu2  ;;  %v3939_v3 = vpop.f32.mrf.mxu3 }
 0x501   :  { %v3851_v48 = vadd.f32 %v3850_v37, %v3762_v0  ;;  %v4040_v50 = vpop.f32.mrf.mxu1  ;;  %v4307_v43 = vpop.f32.mrf.mxu0  ;;  %v8944_v0 = vor.u32 %v9521_v18, %v8941_v36  ;;  %v3957_v36 = vadd.f32 %v11070_v19, %v11250_v40  ;;  %v3959_v19 = vadd.f32 %v11079_v2, %v11250_v40 }
 0x502   :  { %v4041_v7 = vadd.f32 %v4040_v50, %v3952_v4 }
 0x503   :  { %v3940_v42 = vadd.f32 %v3939_v3, %v3851_v48  ;;  %v3954_v48 = vadd.f32 %v11067_v57, %v11250_v40  ;;  %4570 = vmatpush.bf16.msra.mxu3 %v8944_v0  ;;  %v13067_v0 = vld [vmem:[#allocation72_spill] sm:$0xff] }
 0x504   :  { %4079 = vmatmul.bf16.gmra.mxu1 %v10388_v17  ;;  %4346 = vmatmul.bf16.gmra.mxu0 %v13063_v45  ;;  %v9457_v45 = vld [vmem:[#allocation8 + $0x544] sm:$0xf]  ;;  %v8685_v17 = vld [vmem:[#allocation8 + $0x550] sm:$0xf0] }
 0x505   :  { %v6202_v34 = vmax.f32 %v3940_v42, 0.0  ;;  %4168 = vmatmul.bf16.gmra.mxu2 %v13064_v35  ;;  %4257 = vmatmul.bf16.gmra.mxu3 %v13065_v29  ;;  %v8688_v16 = vor.u32 %v9457_v45, %v8685_v17  ;;  %v13069_v17 = vld [vmem:[#allocation74_spill] sm:$0xff] }
 0x507   :  { %v11258_v37 = vpack.c.bf16 %v6202_v34, %v6198_v15  ;;  %4392 = vmatpush.bf16.msra.mxu1 %v8688_v16 }
 0x508   :  { %v4129_v3 = vpop.f32.mrf.mxu2  ;;  %v4218_v4 = vpop.f32.mrf.mxu3 }
 0x509   :  { %13066 = vst [vmem:[#allocation157_spill] sm:$0xff] %v11258_v37  ;;  %v4130_v8 = vadd.f32 %v4129_v3, %v4041_v7  ;;  %v4042_v42 = vpop.f32.mrf.mxu1  ;;  %v4309_v50 = vpop.f32.mrf.mxu0 }
 0x50a   :  { %v4043_v35 = vadd.f32 %v4042_v42, %v3954_v48  ;;  %v13068_v48 = vld [vmem:[#allocation73_spill] sm:$0xff] }
 0x50b   :  { %v4219_v29 = vadd.f32 %v4218_v4, %v4130_v8 }
 0x50d   :  { %v11262_v1 = vadd.f32 %v4307_v43, %v4219_v29 }
 0x510   :  { %v4131_v15 = vpop.f32.mrf.mxu2  ;;  %v4220_v57 = vpop.f32.mrf.mxu3 }
 0x511   :  { %v4132_v34 = vadd.f32 %v4131_v15, %v4043_v35  ;;  %v4045_v18 = vpop.f32.mrf.mxu1  ;;  %v4312_v56 = vpop.f32.mrf.mxu0  ;;  %v9316_v15 = vld [vmem:[#allocation8 + $0xd4] sm:$0xf0] }
 0x512   :  { %v4046_v7 = vadd.f32 %v4045_v18, %v3957_v36  ;;  %v8115_v36 = vld [vmem:[#allocation8 + $0xc8] sm:$0xf] }
 0x513   :  { %v4221_v3 = vadd.f32 %v4220_v57, %v4132_v34  ;;  %v8116_v57 = vor.u32 %v9316_v15, %v8115_v36  ;;  %v3964_v36 = vadd.f32 %v11091_v47, %v11250_v40 }
 0x514   :  { %4084 = vmatmul.bf16.gmra.mxu1 %v10408_v41  ;;  %4351 = vmatmul.bf16.gmra.mxu0 %v13067_v0 }
 0x515   :  { %4173 = vmatmul.bf16.gmra.mxu2 %v13068_v48  ;;  %4262 = vmatmul.bf16.gmra.mxu3 %v13069_v17  ;;  %v11270_v43 = vadd.f32 %v4309_v50, %v4221_v3  ;;  %v3962_v50 = vadd.f32 %v11082_v63, %v11250_v40 }
 0x516   :  { %4655 = vmatpush.bf16.msra.mxu0 %v8116_v57 }
 0x518   :  { %v4134_v45 = vpop.f32.mrf.mxu2  ;;  %v4223_v29 = vpop.f32.mrf.mxu3 }
 0x519   :  { %v4135_v35 = vadd.f32 %v4134_v45, %v4046_v7  ;;  %v4047_v4 = vpop.f32.mrf.mxu1  ;;  %v4314_v8 = vpop.f32.mrf.mxu0  ;;  %v13071_v45 = vld [vmem:[#allocation78_spill] sm:$0xff] }
 0x51a   :  { %v4048_v42 = vadd.f32 %v4047_v4, %v3959_v19  ;;  %v13070_v19 = vld [vmem:[#allocation77_spill] sm:$0xff] }
 0x51b   :  { %v4224_v16 = vadd.f32 %v4223_v29, %v4135_v35  ;;  %v8797_v29 = vld [vmem:[#allocation8 + $0x630] sm:$0xf0]  ;;  %v9517_v35 = vld [vmem:[#allocation8 + $0x724] sm:$0xf] }
 0x51d   :  { %v11274_v34 = vadd.f32 %v4312_v56, %v4224_v16  ;;  %v9485_v56 = vld [vmem:[#allocation8 + $0x624] sm:$0xf]  ;;  %v8925_v16 = vld [vmem:[#allocation8 + $0x730] sm:$0xf0] }
 0x51e   :  { %v8800_v63 = vor.u32 %v9485_v56, %v8797_v29 }
 0x520   :  { %v4136_v18 = vpop.f32.mrf.mxu2  ;;  %v4225_v3 = vpop.f32.mrf.mxu3  ;;  %4482 = vmatpush.bf16.msra.mxu2 %v8800_v63 }
 0x521   :  { %v4137_v37 = vadd.f32 %v4136_v18, %v4048_v42  ;;  %v4050_v2 = vpop.f32.mrf.mxu1  ;;  %v4317_v17 = vpop.f32.mrf.mxu0  ;;  %v8928_v42 = vor.u32 %v9517_v35, %v8925_v16 }
 0x522   :  { %v4051_v48 = vadd.f32 %v4050_v2, %v3962_v50 }
 0x523   :  { %v4226_v7 = vadd.f32 %v4225_v3, %v4137_v37  ;;  %4571 = vmatpush.bf16.msra.mxu3 %v8928_v42  ;;  %v13072_v42 = vld [vmem:[#allocation80_spill] sm:$0xff] }
 0x524   :  { %4089 = vmatmul.bf16.gmra.mxu1 %v10428_v53  ;;  %4356 = vmatmul.bf16.gmra.mxu0 %v10430_v14 }
 0x525   :  { %4178 = vmatmul.bf16.gmra.mxu2 %v13070_v19  ;;  %4267 = vmatmul.bf16.gmra.mxu3 %v13071_v45  ;;  %v11282_v4 = vadd.f32 %v4314_v8, %v4226_v7  ;;  %v9453_v45 = vld [vmem:[#allocation8 + $0x524] sm:$0xf]  ;;  %v8669_v19 = vld [vmem:[#allocation8 + $0x530] sm:$0xf0]  ;;  %v3967_v7 = vadd.f32 %v11094_v49, %v11250_v40 }
 0x526   :  { %v8672_v14 = vor.u32 %v9453_v45, %v8669_v19  ;;  %v13073_v19 = vld [vmem:[#allocation81_spill] sm:$0xff] }
 0x528   :  { %v4139_v37 = vpop.f32.mrf.mxu2  ;;  %v4228_v15 = vpop.f32.mrf.mxu3  ;;  %4393 = vmatpush.bf16.msra.mxu1 %v8672_v14  ;;  %v3969_v14 = vadd.f32 %v11103_v26, %v11250_v40 }
 0x529   :  { %v4140_v57 = vadd.f32 %v4139_v37, %v4051_v48  ;;  %v4052_v50 = vpop.f32.mrf.mxu1  ;;  %v4319_v18 = vpop.f32.mrf.mxu0 }
 0x52a   :  { %v4053_v3 = vadd.f32 %v4052_v50, %v3964_v36 }
 0x52b   :  { %v4229_v2 = vadd.f32 %v4228_v15, %v4140_v57 }
 0x52d   :  { %v11286_v8 = vadd.f32 %v4317_v17, %v4229_v2  ;;  %v9312_v2 = vld [vmem:[#allocation8 + $0xb4] sm:$0xf0] }
 0x530   :  { %v4141_v56 = vpop.f32.mrf.mxu2  ;;  %v4230_v47 = vpop.f32.mrf.mxu3 }
 0x531   :  { %v4142_v29 = vadd.f32 %v4141_v56, %v4053_v3  ;;  %v4055_v35 = vpop.f32.mrf.mxu1  ;;  %v4322_v63 = vpop.f32.mrf.mxu0  ;;  %v8099_v3 = vld [vmem:[#allocation8 + $0xa8] sm:$0xf] }
 0x532   :  { %v4056_v48 = vadd.f32 %v4055_v35, %v3967_v7  ;;  %v8100_v7 = vor.u32 %v9312_v2, %v8099_v3  ;;  %v3974_v3 = vadd.f32 %v11115_v21, %v11250_v40  ;;  %v3977_v21 = vadd.f32 %v11118_v58, %v11250_v40 }
 0x533   :  { %v4231_v16 = vadd.f32 %v4230_v47, %v4142_v29 }
 0x534   :  { %4094 = vmatmul.bf16.gmra.mxu1 %v10448_v27  ;;  %4361 = vmatmul.bf16.gmra.mxu0 %v12939_v55 }
 0x535   :  { %4183 = vmatmul.bf16.gmra.mxu2 %v13072_v42  ;;  %4272 = vmatmul.bf16.gmra.mxu3 %v13073_v19  ;;  %v11294_v17 = vadd.f32 %v4319_v18, %v4231_v16  ;;  %v3972_v18 = vadd.f32 %v11106_v5, %v11250_v40 }
 0x536   :  { %4656 = vmatpush.bf16.msra.mxu0 %v8100_v7 }
 0x538   :  { %v4144_v49 = vpop.f32.mrf.mxu2  ;;  %v4233_v45 = vpop.f32.mrf.mxu3 }
 0x539   :  { %v4145_v36 = vadd.f32 %v4144_v49, %v4056_v48  ;;  %v4057_v37 = vpop.f32.mrf.mxu1  ;;  %v4324_v15 = vpop.f32.mrf.mxu0  ;;  %v13075_v49 = vld [vmem:[#allocation85_spill] sm:$0xff] }
 0x53a   :  { %v4058_v57 = vadd.f32 %v4057_v37, %v3969_v14  ;;  %v13074_v14 = vld [vmem:[#allocation84_spill] sm:$0xff] }
 0x53b   :  { %v4234_v50 = vadd.f32 %v4233_v45, %v4145_v36  ;;  %v8781_v45 = vld [vmem:[#allocation8 + $0x610] sm:$0xf0]  ;;  %v9513_v36 = vld [vmem:[#allocation8 + $0x704] sm:$0xf] }
 0x53d   :  { %v11298_v56 = vadd.f32 %v4322_v63, %v4234_v50  ;;  %v9481_v63 = vld [vmem:[#allocation8 + $0x604] sm:$0xf]  ;;  %v8909_v50 = vld [vmem:[#allocation8 + $0x710] sm:$0xf0] }
 0x53e   :  { %v8784_v5 = vor.u32 %v9481_v63, %v8781_v45  ;;  %v9308_v63 = vld [vmem:[#allocation8 + $0x94] sm:$0xf0] }
 0x540   :  { %v4146_v47 = vpop.f32.mrf.mxu2  ;;  %v4235_v29 = vpop.f32.mrf.mxu3  ;;  %4483 = vmatpush.bf16.msra.mxu2 %v8784_v5 }
 0x541   :  { %v4147_v35 = vadd.f32 %v4146_v47, %v4058_v57  ;;  %v4060_v26 = vpop.f32.mrf.mxu1  ;;  %v4327_v16 = vpop.f32.mrf.mxu0  ;;  %v8912_v57 = vor.u32 %v9513_v36, %v8909_v50 }
 0x542   :  { %v4061_v19 = vadd.f32 %v4060_v26, %v3972_v18 }
 0x543   :  { %v4236_v48 = vadd.f32 %v4235_v29, %v4147_v35  ;;  %4572 = vmatpush.bf16.msra.mxu3 %v8912_v57 }
 0x544   :  { %4099 = vmatmul.bf16.gmra.mxu1 %v10468_v9  ;;  %4366 = vmatmul.bf16.gmra.mxu0 %v10470_v6 }
 0x545   :  { %4188 = vmatmul.bf16.gmra.mxu2 %v13074_v14  ;;  %4277 = vmatmul.bf16.gmra.mxu3 %v13075_v49  ;;  %v11306_v37 = vadd.f32 %v4324_v15, %v4236_v48  ;;  %v9449_v49 = vld [vmem:[#allocation8 + $0x504] sm:$0xf]  ;;  %v8653_v14 = vld [vmem:[#allocation8 + $0x510] sm:$0xf0]  ;;  %v8083_v48 = vld [vmem:[#allocation8 + $0x88] sm:$0xf] }
 0x546   :  { %v8656_v6 = vor.u32 %v9449_v49, %v8653_v14  ;;  %v8084_v5 = vor.u32 %v9308_v63, %v8083_v48  ;;  %v13076_v14 = vld [vmem:[#allocation86_spill] sm:$0xff]  ;;  %v13078_v49 = vld [vmem:[#allocation88_spill] sm:$0xff]  ;;  %v3979_v48 = vadd.f32 %v11127_v28, %v11250_v40  ;;  %v3982_v28 = vadd.f32 %v11130_v10, %v11250_v40 }
 0x547   :  { %v8515_v10 = vld [vmem:[#allocation8 + $0x3e8] sm:$0xf] }
 0x548   :  { %v4149_v2 = vpop.f32.mrf.mxu2  ;;  %v4238_v7 = vpop.f32.mrf.mxu3  ;;  %4394 = vmatpush.bf16.msra.mxu1 %v8656_v6  ;;  %4657 = vmatpush.bf16.msra.mxu0 %v8084_v5 }
 0x549   :  { %v4150_v18 = vadd.f32 %v4149_v2, %v4061_v19  ;;  %v4062_v47 = vpop.f32.mrf.mxu1  ;;  %v4329_v29 = vpop.f32.mrf.mxu0 }
 0x54a   :  { %v4063_v35 = vadd.f32 %v4062_v47, %v3974_v3  ;;  %v13079_v47 = vld [vmem:[#allocation89_spill] sm:$0xff] }
 0x54b   :  { %v4239_v26 = vadd.f32 %v4238_v7, %v4150_v18  ;;  %v8067_v7 = vld [vmem:[#allocation8 + $0x68] sm:$0xf]  ;;  %v9304_v18 = vld [vmem:[#allocation8 + $0x74] sm:$0xf0] }
 0x54c   :  { %v8068_v6 = vor.u32 %v9304_v18, %v8067_v7  ;;  %v8035_v18 = vld [vmem:[#allocation8 + $0x28] sm:$0xf] }
 0x54d   :  { %v11310_v15 = vadd.f32 %v4327_v16, %v4239_v26  ;;  %v13077_v16 = vld [vmem:[#allocation87_spill] sm:$0xff]  ;;  %v9300_v26 = vld [vmem:[#allocation8 + $0x54] sm:$0xf0] }
 0x54e   :  { %4658 = vmatpush.bf16.msra.mxu0 %v8068_v6  ;;  %v9292_v6 = vld [vmem:[#allocation8 + $0x14] sm:$0xf0] }
 0x550   :  { %v4151_v45 = vpop.f32.mrf.mxu2  ;;  %v4240_v36 = vpop.f32.mrf.mxu3 }
 0x551   :  { %v4152_v19 = vadd.f32 %v4151_v45, %v4063_v35  ;;  %v4065_v50 = vpop.f32.mrf.mxu1  ;;  %v4332_v2 = vpop.f32.mrf.mxu0  ;;  %v8051_v35 = vld [vmem:[#allocation8 + $0x48] sm:$0xf] }
 0x552   :  { %v4066_v57 = vadd.f32 %v4065_v50, %v3977_v21  ;;  %v8052_v45 = vor.u32 %v9300_v26, %v8051_v35 }
 0x553   :  { %v4241_v3 = vadd.f32 %v4240_v36, %v4152_v19 }
 0x554   :  { %4104 = vmatmul.bf16.gmra.mxu1 %v13076_v14  ;;  %4371 = vmatmul.bf16.gmra.mxu0 %v13077_v16 }
 0x555   :  { %4193 = vmatmul.bf16.gmra.mxu2 %v13078_v49  ;;  %4282 = vmatmul.bf16.gmra.mxu3 %v13079_v47  ;;  %v11318_v58 = vadd.f32 %v4329_v29, %v4241_v3  ;;  %v9296_v49 = vld [vmem:[#allocation8 + $0x34] sm:$0xf0]  ;;  %v8019_v3 = vld [vmem:[#allocation8 + $0x8] sm:$0xf] }
 0x556   :  { %4659 = vmatpush.bf16.msra.mxu0 %v8052_v45  ;;  %v8036_v47 = vor.u32 %v9296_v49, %v8035_v18  ;;  %v8020_v35 = vor.u32 %v9292_v6, %v8019_v3  ;;  %v13080_v45 = vld [vmem:[#allocation90_spill] sm:$0xff]  ;;  %v13081_v49 = vld [vmem:[#allocation91_spill] sm:$0xff]  ;;  %v3984_v3 = vadd.f32 %v11139_v25, %v11250_v40 }
 0x558   :  { %v4154_v63 = vpop.f32.mrf.mxu2  ;;  %v4243_v21 = vpop.f32.mrf.mxu3 }
 0x559   :  { %v4155_v36 = vadd.f32 %v4154_v63, %v4066_v57  ;;  %v4067_v5 = vpop.f32.mrf.mxu1  ;;  %v4334_v19 = vpop.f32.mrf.mxu0 }
 0x55a   :  { %v4068_v50 = vadd.f32 %v4067_v5, %v3979_v48  ;;  %4660 = vmatpush.bf16.msra.mxu0 %v8036_v47  ;;  %v13083_v47 = vld [vmem:[#allocation93_spill] sm:$0xff]  ;;  %v9384_v5 = vld [vmem:[#allocation8 + $0x2f4] sm:$0xf0] }
 0x55b   :  { %v4244_v7 = vadd.f32 %v4243_v21, %v4155_v36  ;;  %v8387_v36 = vld [vmem:[#allocation8 + $0x2e8] sm:$0xf] }
 0x55c   :  { %v8388_v18 = vor.u32 %v9384_v5, %v8387_v36 }
 0x55d   :  { %v11322_v29 = vadd.f32 %v4332_v2, %v4244_v7  ;;  %v13082_v2 = vld [vmem:[#allocation92_spill] sm:$0xff] }
 0x55e   :  { %4661 = vmatpush.bf16.msra.mxu0 %v8020_v35  ;;  %4832 = vmatpush.bf16.msrb.mxu2 %v8388_v18 }
 0x560   :  { %v4156_v16 = vpop.f32.mrf.mxu2  ;;  %v4245_v14 = vpop.f32.mrf.mxu3 }
 0x561   :  { %v4157_v57 = vadd.f32 %v4156_v16, %v4068_v50  ;;  %v4070_v26 = vpop.f32.mrf.mxu1  ;;  %v4337_v63 = vpop.f32.mrf.mxu0  ;;  %v9416_v16 = vld [vmem:[#allocation8 + $0x3f4] sm:$0xf0] }
 0x562   :  { %v4071_v48 = vadd.f32 %v4070_v26, %v3982_v28  ;;  %v8516_v50 = vor.u32 %v9416_v16, %v8515_v10 }
 0x563   :  { %v4246_v21 = vadd.f32 %v4245_v14, %v4157_v57 }
 0x564   :  { %4109 = vmatmul.bf16.gmra.mxu1 %v13080_v45  ;;  %4376 = vmatmul.bf16.gmra.mxu0 %v13081_v49  ;;  %v9352_v49 = vld [vmem:[#allocation8 + $0x1f4] sm:$0xf0] }
 0x565   :  { %4198 = vmatmul.bf16.gmra.mxu2 %v13082_v2  ;;  %4287 = vmatmul.bf16.gmra.mxu3 %v13083_v47  ;;  %v11330_v7 = vadd.f32 %v4334_v19, %v4246_v21  ;;  %v8259_v2 = vld [vmem:[#allocation8 + $0x1e8] sm:$0xf]  ;;  %v3987_v21 = vadd.f32 %v11142_v11, %v11250_v40  ;;  %v3989_v11 = vadd.f32 %v11151_v32, %v11250_v40  ;;  %v13088_v32 = vld [vmem:[#allocation98_spill] sm:$0xff] }
 0x566   :  { %4921 = vmatpush.bf16.msrb.mxu3 %v8516_v50  ;;  %v8260_v45 = vor.u32 %v9352_v49, %v8259_v2  ;;  %v13085_v50 = vld [vmem:[#allocation95_spill] sm:$0xff]  ;;  %v13087_v49 = vld [vmem:[#allocation97_spill] sm:$0xff] }
 0x568   :  { %v4159_v14 = vpop.f32.mrf.mxu2  ;;  %v4248_v6 = vpop.f32.mrf.mxu3  ;;  %4743 = vmatpush.bf16.msrb.mxu1 %v8260_v45 }
 0x569   :  { %v4160_v28 = vadd.f32 %v4159_v14, %v4071_v48  ;;  %v4072_v35 = vpop.f32.mrf.mxu1  ;;  %v4339_v57 = vpop.f32.mrf.mxu0  ;;  %v13084_v14 = vld [vmem:[#allocation94_spill] sm:$0xff] }
 0x56a   :  { %v4073_v26 = vadd.f32 %v4072_v35, %v3984_v3  ;;  %v13086_v3 = vld [vmem:[#allocation96_spill] sm:$0xff] }
 0x56b   :  { %v4249_v47 = vadd.f32 %v4248_v6, %v4160_v28 }
 0x56d   :  { %v11334_v19 = vadd.f32 %v4337_v63, %v4249_v47 }
 0x570   :  { %v4161_v36 = vpop.f32.mrf.mxu2  ;;  %v4250_v25 = vpop.f32.mrf.mxu3 }
 0x571   :  { %v4162_v5 = vadd.f32 %v4161_v36, %v4073_v26  ;;  %v4075_v10 = vpop.f32.mrf.mxu1  ;;  %v4342_v18 = vpop.f32.mrf.mxu0  ;;  %v3992_v36 = vadd.f32 %v11154_v33, %v11250_v40 }
 0x572   :  { %v4076_v48 = vadd.f32 %v4075_v10, %v3987_v21 }
 0x573   :  { %v4251_v16 = vadd.f32 %v4250_v25, %v4162_v5 }
 0x574   :  { %4114 = vmatmul.bf16.gmra.mxu1 %v13084_v14  ;;  %4381 = vmatmul.bf16.gmra.mxu0 %v13085_v50  ;;  %v13089_v50 = vld [vmem:[#allocation20_spill] sm:$0xff] }
 0x575   :  { %4203 = vmatmul.bf16.gmra.mxu2 %v13086_v3  ;;  %4292 = vmatmul.bf16.gmra.mxu3 %v13087_v49  ;;  %v11342_v63 = vadd.f32 %v4339_v57, %v4251_v16 }
 0x578   :  { %v4164_v45 = vpop.f32.mrf.mxu2  ;;  %v4253_v2 = vpop.f32.mrf.mxu3 }
 0x579   :  { %v4165_v47 = vadd.f32 %v4164_v45, %v4076_v48  ;;  %v4077_v6 = vpop.f32.mrf.mxu1  ;;  %v4344_v28 = vpop.f32.mrf.mxu0  ;;  %v13090_v48 = vld [vmem:[#allocation99_spill] sm:$0xff]  ;;  %v9380_v45 = vld [vmem:[#allocation8 + $0x2d4] sm:$0xf0] }
 0x57a   :  { %v4078_v35 = vadd.f32 %v4077_v6, %v3989_v11  ;;  %v13091_v11 = vld [vmem:[#allocation100_spill] sm:$0xff]  ;;  %v9412_v6 = vld [vmem:[#allocation8 + $0x3d4] sm:$0xf0] }
 0x57b   :  { %v4254_v26 = vadd.f32 %v4253_v2, %v4165_v47  ;;  %v8499_v2 = vld [vmem:[#allocation8 + $0x3c8] sm:$0xf] }
 0x57d   :  { %v11346_v21 = vadd.f32 %v4342_v18, %v4254_v26  ;;  %v8371_v18 = vld [vmem:[#allocation8 + $0x2c8] sm:$0xf]  ;;  %v3994_v26 = vadd.f32 %v11163_v60, %v11250_v40 }
 0x57e   :  { %v8372_v33 = vor.u32 %v9380_v45, %v8371_v18 }
 0x580   :  { %v4166_v25 = vpop.f32.mrf.mxu2  ;;  %v4255_v5 = vpop.f32.mrf.mxu3  ;;  %4833 = vmatpush.bf16.msrb.mxu2 %v8372_v33 }
 0x581   :  { %v4167_v10 = vadd.f32 %v4166_v25, %v4078_v35  ;;  %v4080_v57 = vpop.f32.mrf.mxu1  ;;  %v4347_v16 = vpop.f32.mrf.mxu0  ;;  %v8500_v35 = vor.u32 %v9412_v6, %v8499_v2 }
 0x582   :  { %v4081_v49 = vadd.f32 %v4080_v57, %v3992_v36 }
 0x583   :  { %v4256_v3 = vadd.f32 %v4255_v5, %v4167_v10  ;;  %4922 = vmatpush.bf16.msrb.mxu3 %v8500_v35  ;;  %v13093_v35 = vld [vmem:[#allocation24_spill] sm:$0xff] }
 0x584   :  { %4395 = vmatmul.bf16.vlgmr.msra.gmra.mxu1 %v13088_v32  ;;  %4662 = vmatmul.bf16.vlgmr.msra.gmra.mxu0 %v13089_v50  ;;  %v8243_v50 = vld [vmem:[#allocation8 + $0x1c8] sm:$0xf]  ;;  %v9348_v32 = vld [vmem:[#allocation8 + $0x1d4] sm:$0xf0] }
 0x585   :  { %4484 = vmatmul.bf16.vlgmr.msra.gmra.mxu2 %v13090_v48  ;;  %4573 = vmatmul.bf16.vlgmr.msra.gmra.mxu3 %v13091_v11  ;;  %v11354_v47 = vadd.f32 %v4344_v28, %v4256_v3  ;;  %v8244_v14 = vor.u32 %v9348_v32, %v8243_v50  ;;  %v3997_v28 = vadd.f32 %v11166_v51, %v11250_v40  ;;  %v13095_v50 = vld [vmem:[#allocation103_spill] sm:$0xff] }
 0x586   :  { %v3999_v51 = vadd.f32 %v11175_v23, %v11250_v40  ;;  %v13096_v23 = vld [vmem:[#allocation104_spill] sm:$0xff] }
 0x587   :  { %4744 = vmatpush.bf16.msrb.mxu1 %v8244_v14 }
 0x588   :  { %v4169_v36 = vpop.f32.mrf.mxu2  ;;  %v4258_v25 = vpop.f32.mrf.mxu3 }
 0x589   :  { %v4170_v5 = vadd.f32 %v4169_v36, %v4081_v49  ;;  %v4082_v10 = vpop.f32.mrf.mxu1  ;;  %v4349_v57 = vpop.f32.mrf.mxu0  ;;  %v13092_v36 = vld [vmem:[#allocation101_spill] sm:$0xff] }
 0x58a   :  { %v4083_v48 = vadd.f32 %v4082_v10, %v3994_v26  ;;  %v13094_v26 = vld [vmem:[#allocation102_spill] sm:$0xff] }
 0x58b   :  { %v4259_v11 = vadd.f32 %v4258_v25, %v4170_v5 }
 0x58d   :  { %v11358_v3 = vadd.f32 %v4347_v16, %v4259_v11 }
 0x590   :  { %v4171_v18 = vpop.f32.mrf.mxu2  ;;  %v4260_v60 = vpop.f32.mrf.mxu3 }
 0x591   :  { %v4172_v45 = vadd.f32 %v4171_v18, %v4083_v48  ;;  %v4085_v2 = vpop.f32.mrf.mxu1  ;;  %v4352_v33 = vpop.f32.mrf.mxu0  ;;  %v4002_v18 = vadd.f32 %v11178_v20, %v11250_v40 }
 0x592   :  { %v4086_v49 = vadd.f32 %v4085_v2, %v3997_v28 }
 0x593   :  { %v4261_v6 = vadd.f32 %v4260_v60, %v4172_v45 }
 0x594   :  { %4400 = vmatmul.bf16.gmra.mxu1 %v13092_v36  ;;  %4667 = vmatmul.bf16.gmra.mxu0 %v13093_v35  ;;  %v13097_v35 = vld [vmem:[#allocation28_spill] sm:$0xff] }
 0x595   :  { %4489 = vmatmul.bf16.gmra.mxu2 %v13094_v26  ;;  %4578 = vmatmul.bf16.gmra.mxu3 %v13095_v50  ;;  %v11366_v16 = vadd.f32 %v4349_v57, %v4261_v6 }
 0x598   :  { %v4174_v14 = vpop.f32.mrf.mxu2  ;;  %v4263_v32 = vpop.f32.mrf.mxu3 }
 0x599   :  { %v4175_v48 = vadd.f32 %v4174_v14, %v4086_v49  ;;  %v4087_v11 = vpop.f32.mrf.mxu1  ;;  %v4354_v25 = vpop.f32.mrf.mxu0  ;;  %v13098_v49 = vld [vmem:[#allocation105_spill] sm:$0xff]  ;;  %v9376_v14 = vld [vmem:[#allocation8 + $0x2b4] sm:$0xf0] }
 0x59a   :  { %v4088_v5 = vadd.f32 %v4087_v11, %v3999_v51  ;;  %v13099_v51 = vld [vmem:[#allocation106_spill] sm:$0xff] }
 0x59b   :  { %v4264_v10 = vadd.f32 %v4263_v32, %v4175_v48  ;;  %v8483_v32 = vld [vmem:[#allocation8 + $0x3a8] sm:$0xf]  ;;  %v9408_v11 = vld [vmem:[#allocation8 + $0x3b4] sm:$0xf0] }
 0x59d   :  { %v11370_v28 = vadd.f32 %v4352_v33, %v4264_v10  ;;  %v8355_v33 = vld [vmem:[#allocation8 + $0x2a8] sm:$0xf]  ;;  %v4004_v10 = vadd.f32 %v11187_v31, %v11250_v40 }
 0x59e   :  { %v8356_v20 = vor.u32 %v9376_v14, %v8355_v33 }
 0x5a0   :  { %v4176_v60 = vpop.f32.mrf.mxu2  ;;  %v4265_v45 = vpop.f32.mrf.mxu3  ;;  %4834 = vmatpush.bf16.msrb.mxu2 %v8356_v20 }
 0x5a1   :  { %v4177_v2 = vadd.f32 %v4176_v60, %v4088_v5  ;;  %v4090_v57 = vpop.f32.mrf.mxu1  ;;  %v4357_v6 = vpop.f32.mrf.mxu0  ;;  %v8484_v5 = vor.u32 %v9408_v11, %v8483_v32 }
 0x5a2   :  { %v4091_v50 = vadd.f32 %v4090_v57, %v4002_v18 }
 0x5a3   :  { %v4266_v26 = vadd.f32 %v4265_v45, %v4177_v2  ;;  %4923 = vmatpush.bf16.msrb.mxu3 %v8484_v5  ;;  %v13101_v5 = vld [vmem:[#allocation32_spill] sm:$0xff] }
 0x5a4   :  { %4405 = vmatmul.bf16.gmra.mxu1 %v13096_v23  ;;  %4672 = vmatmul.bf16.gmra.mxu0 %v13097_v35  ;;  %v8227_v35 = vld [vmem:[#allocation8 + $0x1a8] sm:$0xf]  ;;  %v9344_v23 = vld [vmem:[#allocation8 + $0x1b4] sm:$0xf0] }
 0x5a5   :  { %4494 = vmatmul.bf16.gmra.mxu2 %v13098_v49  ;;  %4583 = vmatmul.bf16.gmra.mxu3 %v13099_v51  ;;  %v11378_v48 = vadd.f32 %v4354_v25, %v4266_v26  ;;  %v8228_v36 = vor.u32 %v9344_v23, %v8227_v35  ;;  %v4007_v25 = vadd.f32 %v11190_v39, %v11250_v40  ;;  %v13103_v35 = vld [vmem:[#allocation109_spill] sm:$0xff] }
 0x5a6   :  { %v4009_v39 = vadd.f32 %v11199_v54, %v11250_v40  ;;  %v13104_v54 = vld [vmem:[#allocation110_spill] sm:$0xff] }
 0x5a7   :  { %4745 = vmatpush.bf16.msrb.mxu1 %v8228_v36 }
 0x5a8   :  { %v4179_v18 = vpop.f32.mrf.mxu2  ;;  %v4268_v60 = vpop.f32.mrf.mxu3 }
 0x5a9   :  { %v4180_v45 = vadd.f32 %v4179_v18, %v4091_v50  ;;  %v4092_v2 = vpop.f32.mrf.mxu1  ;;  %v4359_v57 = vpop.f32.mrf.mxu0  ;;  %v13100_v18 = vld [vmem:[#allocation107_spill] sm:$0xff] }
 0x5aa   :  { %v4093_v49 = vadd.f32 %v4092_v2, %v4004_v10  ;;  %v13102_v10 = vld [vmem:[#allocation108_spill] sm:$0xff] }
 0x5ab   :  { %v4269_v51 = vadd.f32 %v4268_v60, %v4180_v45 }
 0x5ad   :  { %v11382_v26 = vadd.f32 %v4357_v6, %v4269_v51 }
 0x5b0   :  { %v4181_v33 = vpop.f32.mrf.mxu2  ;;  %v4270_v31 = vpop.f32.mrf.mxu3 }
 0x5b1   :  { %v4182_v14 = vadd.f32 %v4181_v33, %v4093_v49  ;;  %v4095_v32 = vpop.f32.mrf.mxu1  ;;  %v4362_v20 = vpop.f32.mrf.mxu0  ;;  %v4012_v33 = vadd.f32 %v11202_v46, %v11250_v40 }
 0x5b2   :  { %v4096_v50 = vadd.f32 %v4095_v32, %v4007_v25 }
 0x5b3   :  { %v4271_v11 = vadd.f32 %v4270_v31, %v4182_v14 }
 0x5b4   :  { %4410 = vmatmul.bf16.gmra.mxu1 %v13100_v18  ;;  %4677 = vmatmul.bf16.gmra.mxu0 %v13101_v5  ;;  %v13105_v5 = vld [vmem:[#allocation21_spill] sm:$0xff] }
 0x5b5   :  { %4499 = vmatmul.bf16.gmra.mxu2 %v13102_v10  ;;  %4588 = vmatmul.bf16.gmra.mxu3 %v13103_v35  ;;  %v11390_v6 = vadd.f32 %v4359_v57, %v4271_v11 }
 0x5b8   :  { %v4184_v36 = vpop.f32.mrf.mxu2  ;;  %v4273_v23 = vpop.f32.mrf.mxu3 }
 0x5b9   :  { %v4185_v49 = vadd.f32 %v4184_v36, %v4096_v50  ;;  %v4097_v51 = vpop.f32.mrf.mxu1  ;;  %v4364_v60 = vpop.f32.mrf.mxu0  ;;  %v13106_v50 = vld [vmem:[#allocation111_spill] sm:$0xff]  ;;  %v9372_v36 = vld [vmem:[#allocation8 + $0x294] sm:$0xf0] }
 0x5ba   :  { %v4098_v45 = vadd.f32 %v4097_v51, %v4009_v39  ;;  %v13107_v39 = vld [vmem:[#allocation112_spill] sm:$0xff]  ;;  %v9404_v51 = vld [vmem:[#allocation8 + $0x394] sm:$0xf0] }
 0x5bb   :  { %v4274_v2 = vadd.f32 %v4273_v23, %v4185_v49  ;;  %v8467_v23 = vld [vmem:[#allocation8 + $0x388] sm:$0xf] }
 0x5bd   :  { %v11394_v25 = vadd.f32 %v4362_v20, %v4274_v2  ;;  %v8339_v20 = vld [vmem:[#allocation8 + $0x288] sm:$0xf]  ;;  %v4014_v2 = vadd.f32 %v11211_v24, %v11250_v40 }
 0x5be   :  { %v8340_v46 = vor.u32 %v9372_v36, %v8339_v20 }
 0x5c0   :  { %v4186_v31 = vpop.f32.mrf.mxu2  ;;  %v4275_v14 = vpop.f32.mrf.mxu3  ;;  %4835 = vmatpush.bf16.msrb.mxu2 %v8340_v46 }
 0x5c1   :  { %v4187_v32 = vadd.f32 %v4186_v31, %v4098_v45  ;;  %v4100_v57 = vpop.f32.mrf.mxu1  ;;  %v4367_v11 = vpop.f32.mrf.mxu0  ;;  %v8468_v45 = vor.u32 %v9404_v51, %v8467_v23 }
 0x5c2   :  { %v4101_v35 = vadd.f32 %v4100_v57, %v4012_v33 }
 0x5c3   :  { %v4276_v10 = vadd.f32 %v4275_v14, %v4187_v32  ;;  %4924 = vmatpush.bf16.msrb.mxu3 %v8468_v45  ;;  %v13109_v45 = vld [vmem:[#allocation25_spill] sm:$0xff] }
 0x5c4   :  { %4415 = vmatmul.bf16.gmra.mxu1 %v13104_v54  ;;  %4682 = vmatmul.bf16.gmra.mxu0 %v13105_v5  ;;  %v8211_v5 = vld [vmem:[#allocation8 + $0x188] sm:$0xf]  ;;  %v9340_v54 = vld [vmem:[#allocation8 + $0x194] sm:$0xf0] }
 0x5c5   :  { %4504 = vmatmul.bf16.gmra.mxu2 %v13106_v50  ;;  %4593 = vmatmul.bf16.gmra.mxu3 %v13107_v39  ;;  %v11402_v49 = vadd.f32 %v4364_v60, %v4276_v10  ;;  %v8212_v18 = vor.u32 %v9340_v54, %v8211_v5  ;;  %v4017_v60 = vadd.f32 %v11214_v62, %v11250_v40  ;;  %v13111_v5 = vld [vmem:[#allocation115_spill] sm:$0xff] }
 0x5c6   :  { %v4019_v62 = vadd.f32 %v11223_v38, %v11250_v40  ;;  %v13112_v38 = vld [vmem:[#allocation116_spill] sm:$0xff] }
 0x5c7   :  { %4746 = vmatpush.bf16.msrb.mxu1 %v8212_v18 }
 0x5c8   :  { %v4189_v33 = vpop.f32.mrf.mxu2  ;;  %v4278_v31 = vpop.f32.mrf.mxu3 }
 0x5c9   :  { %v4190_v14 = vadd.f32 %v4189_v33, %v4101_v35  ;;  %v4102_v32 = vpop.f32.mrf.mxu1  ;;  %v4369_v57 = vpop.f32.mrf.mxu0  ;;  %v13108_v33 = vld [vmem:[#allocation113_spill] sm:$0xff] }
 0x5ca   :  { %v4103_v50 = vadd.f32 %v4102_v32, %v4014_v2  ;;  %v13110_v2 = vld [vmem:[#allocation114_spill] sm:$0xff] }
 0x5cb   :  { %v4279_v39 = vadd.f32 %v4278_v31, %v4190_v14 }
 0x5cd   :  { %v11406_v10 = vadd.f32 %v4367_v11, %v4279_v39 }
 0x5d0   :  { %v4191_v20 = vpop.f32.mrf.mxu2  ;;  %v4280_v24 = vpop.f32.mrf.mxu3 }
 0x5d1   :  { %v4192_v36 = vadd.f32 %v4191_v20, %v4103_v50  ;;  %v4105_v23 = vpop.f32.mrf.mxu1  ;;  %v4372_v46 = vpop.f32.mrf.mxu0  ;;  %v4022_v20 = vadd.f32 %v11226_v52, %v11250_v40 }
 0x5d2   :  { %v4106_v35 = vadd.f32 %v4105_v23, %v4017_v60 }
 0x5d3   :  { %v4281_v51 = vadd.f32 %v4280_v24, %v4192_v36 }
 0x5d4   :  { %4420 = vmatmul.bf16.gmra.mxu1 %v13108_v33  ;;  %4687 = vmatmul.bf16.gmra.mxu0 %v13109_v45  ;;  %v13113_v45 = vld [vmem:[#allocation29_spill] sm:$0xff] }
 0x5d5   :  { %4509 = vmatmul.bf16.gmra.mxu2 %v13110_v2  ;;  %4598 = vmatmul.bf16.gmra.mxu3 %v13111_v5  ;;  %v11414_v11 = vadd.f32 %v4369_v57, %v4281_v51 }
 0x5d8   :  { %v4194_v18 = vpop.f32.mrf.mxu2  ;;  %v4283_v54 = vpop.f32.mrf.mxu3 }
 0x5d9   :  { %v4195_v50 = vadd.f32 %v4194_v18, %v4106_v35  ;;  %v4107_v39 = vpop.f32.mrf.mxu1  ;;  %v4374_v31 = vpop.f32.mrf.mxu0  ;;  %v13114_v35 = vld [vmem:[#allocation117_spill] sm:$0xff]  ;;  %v9368_v18 = vld [vmem:[#allocation8 + $0x274] sm:$0xf0] }
 0x5da   :  { %v4108_v14 = vadd.f32 %v4107_v39, %v4019_v62  ;;  %v13115_v62 = vld [vmem:[#allocation118_spill] sm:$0xff] }
 0x5db   :  { %v4284_v32 = vadd.f32 %v4283_v54, %v4195_v50  ;;  %v8451_v54 = vld [vmem:[#allocation8 + $0x368] sm:$0xf]  ;;  %v9400_v39 = vld [vmem:[#allocation8 + $0x374] sm:$0xf0] }
 0x5dd   :  { %v11418_v60 = vadd.f32 %v4372_v46, %v4284_v32  ;;  %v8323_v46 = vld [vmem:[#allocation8 + $0x268] sm:$0xf]  ;;  %v4024_v32 = vadd.f32 %v11235_v59, %v11250_v40 }
 0x5de   :  { %v8324_v52 = vor.u32 %v9368_v18, %v8323_v46 }
 0x5e0   :  { %v4196_v24 = vpop.f32.mrf.mxu2  ;;  %v4285_v36 = vpop.f32.mrf.mxu3  ;;  %4836 = vmatpush.bf16.msrb.mxu2 %v8324_v52 }
 0x5e1   :  { %v4197_v23 = vadd.f32 %v4196_v24, %v4108_v14  ;;  %v4110_v57 = vpop.f32.mrf.mxu1  ;;  %v4377_v51 = vpop.f32.mrf.mxu0  ;;  %v8452_v14 = vor.u32 %v9400_v39, %v8451_v54 }
 0x5e2   :  { %v4111_v5 = vadd.f32 %v4110_v57, %v4022_v20 }
 0x5e3   :  { %v4286_v2 = vadd.f32 %v4285_v36, %v4197_v23  ;;  %4925 = vmatpush.bf16.msrb.mxu3 %v8452_v14  ;;  %v13117_v14 = vld [vmem:[#allocation33_spill] sm:$0xff] }
 0x5e4   :  { %4425 = vmatmul.bf16.gmra.mxu1 %v13112_v38  ;;  %4692 = vmatmul.bf16.gmra.mxu0 %v13113_v45  ;;  %v8195_v45 = vld [vmem:[#allocation8 + $0x168] sm:$0xf]  ;;  %v9336_v38 = vld [vmem:[#allocation8 + $0x174] sm:$0xf0] }
 0x5e5   :  { %4514 = vmatmul.bf16.gmra.mxu2 %v13114_v35  ;;  %4603 = vmatmul.bf16.gmra.mxu3 %v13115_v62  ;;  %v11426_v50 = vadd.f32 %v4374_v31, %v4286_v2  ;;  %v8196_v2 = vor.u32 %v9336_v38, %v8195_v45  ;;  %v4027_v31 = vadd.f32 %v11238_v12, %v11250_v40 }
 0x5e6   :  { %v4029_v12 = vadd.f32 %v11247_v30, %v11250_v40 }
 0x5e7   :  { %4747 = vmatpush.bf16.msrb.mxu1 %v8196_v2 }
 0x5e8   :  { %v4199_v20 = vpop.f32.mrf.mxu2  ;;  %v4288_v24 = vpop.f32.mrf.mxu3 }
 0x5e9   :  { %v4200_v36 = vadd.f32 %v4199_v20, %v4111_v5  ;;  %v4112_v23 = vpop.f32.mrf.mxu1  ;;  %v4379_v57 = vpop.f32.mrf.mxu0  ;;  %v13116_v20 = vld [vmem:[#allocation119_spill] sm:$0xff] }
 0x5ea   :  { %v4113_v35 = vadd.f32 %v4112_v23, %v4024_v32  ;;  %v13118_v32 = vld [vmem:[#allocation120_spill] sm:$0xff] }
 0x5eb   :  { %v4289_v62 = vadd.f32 %v4288_v24, %v4200_v36 }
 0x5ed   :  { %v11430_v33 = vadd.f32 %v4377_v51, %v4289_v62  ;;  %v13119_v51 = vld [vmem:[#allocation121_spill] sm:$0xff] }
 0x5f0   :  { %v4201_v46 = vpop.f32.mrf.mxu2  ;;  %v4290_v18 = vpop.f32.mrf.mxu3 }
 0x5f1   :  { %v4202_v59 = vadd.f32 %v4201_v46, %v4113_v35  ;;  %v4115_v54 = vpop.f32.mrf.mxu1  ;;  %v4382_v52 = vpop.f32.mrf.mxu0  ;;  %v9448_v46 = vld [vmem:[#allocation8 + $0x4f4] sm:$0xf0] }
 0x5f2   :  { %v4116_v5 = vadd.f32 %v4115_v54, %v4027_v31  ;;  %v8643_v31 = vld [vmem:[#allocation8 + $0x4e8] sm:$0xf] }
 0x5f3   :  { %v4291_v39 = vadd.f32 %v4290_v18, %v4202_v59  ;;  %v8644_v59 = vor.u32 %v9448_v46, %v8643_v31  ;;  %v9396_v31 = vld [vmem:[#allocation8 + $0x354] sm:$0xf0] }
 0x5f4   :  { %4430 = vmatmul.bf16.gmra.mxu1 %v13116_v20  ;;  %4697 = vmatmul.bf16.gmra.mxu0 %v13117_v14 }
 0x5f5   :  { %4519 = vmatmul.bf16.gmra.mxu2 %v13118_v32  ;;  %4608 = vmatmul.bf16.gmra.mxu3 %v13119_v51  ;;  %v11438_v45 = vadd.f32 %v4379_v57, %v4291_v39 }
 0x5f6   :  { %5010 = vmatpush.bf16.msrb.mxu0 %v8644_v59 }
 0x5f8   :  { %v4204_v38 = vpop.f32.mrf.mxu2  ;;  %v4293_v62 = vpop.f32.mrf.mxu3 }
 0x5f9   :  { %v4205_v35 = vadd.f32 %v4204_v38, %v4116_v5  ;;  %v4117_v24 = vpop.f32.mrf.mxu1  ;;  %v4384_v36 = vpop.f32.mrf.mxu0  ;;  %v13120_v5 = vld [vmem:[#allocation122_spill] sm:$0xff] }
 0x5fa   :  { %v4118_v23 = vadd.f32 %v4117_v24, %v4029_v12  ;;  %v13121_v38 = vld [vmem:[#allocation22_spill] sm:$0xff]  ;;  %v13122_v12 = vld [vmem:[#allocation123_spill] sm:$0xff]  ;;  %v8435_v24 = vld [vmem:[#allocation8 + $0x348] sm:$0xf] }
 0x5fb   :  { %v4294_v2 = vadd.f32 %v4293_v62, %v4205_v35  ;;  %v13123_v62 = vld [vmem:[#allocation124_spill] sm:$0xff]  ;;  %v9364_v35 = vld [vmem:[#allocation8 + $0x254] sm:$0xf0]  ;;  %v8436_v46 = vor.u32 %v9396_v31, %v8435_v24 }
 0x5fc   :  { %v13125_v31 = vld [vmem:[#allocation26_spill] sm:$0xff] }
 0x5fd   :  { %v11442_v18 = vadd.f32 %v4382_v52, %v4294_v2  ;;  %v8307_v52 = vld [vmem:[#allocation8 + $0x248] sm:$0xf]  ;;  %4926 = vmatpush.bf16.msrb.mxu3 %v8436_v46 }
 0x600   :  { %v4206_v54 = vpop.f32.mrf.mxu2  ;;  %v4295_v32 = vpop.f32.mrf.mxu3 }
 0x601   :  { %v4207_v57 = vadd.f32 %v4206_v54, %v4118_v23  ;;  %v4396_v39 = vpop.f32.mrf.mxu1  ;;  %v11444_v51 = vpop.f32.mrf.mxu0  ;;  %v8308_v23 = vor.u32 %v9364_v35, %v8307_v52 }
 0x602   :  { %v4397_v30 = vadd.f32 %v4396_v39, %v11262_v1 }
 0x603   :  { %v4296_v40 = vadd.f32 %v4295_v32, %v4207_v57  ;;  %4837 = vmatpush.bf16.msrb.mxu2 %v8308_v23  ;;  %v13124_v23 = vld [vmem:[#allocation125_spill] sm:$0xff] }
 0x604   :  { %4435 = vmatmul.bf16.gmra.mxu1 %v13120_v5  ;;  %4702 = vmatmul.bf16.gmra.mxu0 %v13121_v38  ;;  %v9332_v38 = vld [vmem:[#allocation8 + $0x154] sm:$0xf0] }
 0x605   :  { %4524 = vmatmul.bf16.gmra.mxu2 %v13122_v12  ;;  %4613 = vmatmul.bf16.gmra.mxu3 %v13123_v62  ;;  %v11451_v2 = vadd.f32 %v4384_v36, %v4296_v40  ;;  %v8179_v62 = vld [vmem:[#allocation8 + $0x148] sm:$0xf] }
 0x606   :  { %v8180_v5 = vor.u32 %v9332_v38, %v8179_v62 }
 0x608   :  { %v4485_v59 = vpop.f32.mrf.mxu2  ;;  %v4574_v54 = vpop.f32.mrf.mxu3  ;;  %4748 = vmatpush.bf16.msrb.mxu1 %v8180_v5 }
 0x609   :  { %v4486_v1 = vadd.f32 %v4485_v59, %v4397_v30  ;;  %v4398_v32 = vpop.f32.mrf.mxu1  ;;  %v11453_v57 = vpop.f32.mrf.mxu0  ;;  %v13126_v59 = vld [vmem:[#allocation126_spill] sm:$0xff] }
 0x60a   :  { %v4399_v39 = vadd.f32 %v4398_v32, %v11270_v43 }
 0x60b   :  { %v4575_v12 = vadd.f32 %v4574_v54, %v4486_v1  ;;  %v13127_v54 = vld [vmem:[#allocation127_spill] sm:$0xff] }
 0x60d   :  { %v6079_v46 = vmax.f32 %v4575_v12, 0.0 }
 0x610   :  { %v4487_v14 = vpop.f32.mrf.mxu2  ;;  %v4576_v36 = vpop.f32.mrf.mxu3 }
 0x611   :  { %v4488_v40 = vadd.f32 %v4487_v14, %v4399_v39  ;;  %v4401_v52 = vpop.f32.mrf.mxu1  ;;  %v11456_v35 = vpop.f32.mrf.mxu0 }
 0x612   :  { %v4402_v24 = vadd.f32 %v4401_v52, %v11274_v34 }
 0x613   :  { %v4577_v30 = vadd.f32 %v4576_v36, %v4488_v40  ;;  %v8627_v36 = vld [vmem:[#allocation8 + $0x4c8] sm:$0xf]  ;;  %v9444_v40 = vld [vmem:[#allocation8 + $0x4d4] sm:$0xf0] }
 0x614   :  { %4440 = vmatmul.bf16.gmra.mxu1 %v13124_v23  ;;  %4707 = vmatmul.bf16.gmra.mxu0 %v13125_v31  ;;  %v8628_v52 = vor.u32 %v9444_v40, %v8627_v36  ;;  %v9360_v36 = vld [vmem:[#allocation8 + $0x234] sm:$0xf0] }
 0x615   :  { %v6083_v43 = vmax.f32 %v4577_v30, 0.0  ;;  %4529 = vmatmul.bf16.gmra.mxu2 %v13126_v59  ;;  %4618 = vmatmul.bf16.gmra.mxu3 %v13127_v54 }
 0x616   :  { %5011 = vmatpush.bf16.msrb.mxu0 %v8628_v52  ;;  %v9392_v52 = vld [vmem:[#allocation8 + $0x334] sm:$0xf0] }
 0x617   :  { %v11463_v38 = vpack.c.bf16 %v6083_v43, %v6079_v46 }
 0x618   :  { %v4490_v5 = vpop.f32.mrf.mxu2  ;;  %v4579_v14 = vpop.f32.mrf.mxu3 }
 0x619   :  { %13128 = vst [vmem:[#allocation72_spill] sm:$0xff] %v11463_v38  ;;  %v4491_v62 = vadd.f32 %v4490_v5, %v4402_v24  ;;  %v4403_v1 = vpop.f32.mrf.mxu1  ;;  %v11465_v32 = vpop.f32.mrf.mxu0  ;;  %v13129_v24 = vld [vmem:[#allocation128_spill] sm:$0xff]  ;;  %v13130_v5 = vld [vmem:[#allocation30_spill] sm:$0xff] }
 0x61a   :  { %v4404_v34 = vadd.f32 %v4403_v1, %v11282_v4  ;;  %v8291_v1 = vld [vmem:[#allocation8 + $0x228] sm:$0xf] }
 0x61b   :  { %v4580_v39 = vadd.f32 %v4579_v14, %v4491_v62  ;;  %v13131_v14 = vld [vmem:[#allocation129_spill] sm:$0xff]  ;;  %v13132_v62 = vld [vmem:[#allocation130_spill] sm:$0xff]  ;;  %v8292_v40 = vor.u32 %v9360_v36, %v8291_v1 }
 0x61d   :  { %v6087_v38 = vmax.f32 %v4580_v39, 0.0  ;;  %4838 = vmatpush.bf16.msrb.mxu2 %v8292_v40 }
 0x620   :  { %v4492_v12 = vpop.f32.mrf.mxu2  ;;  %v4581_v30 = vpop.f32.mrf.mxu3 }
 0x621   :  { %v4493_v59 = vadd.f32 %v4492_v12, %v4404_v34  ;;  %v4406_v31 = vpop.f32.mrf.mxu1  ;;  %v11468_v54 = vpop.f32.mrf.mxu0  ;;  %v8419_v34 = vld [vmem:[#allocation8 + $0x328] sm:$0xf] }
 0x622   :  { %v4407_v46 = vadd.f32 %v4406_v31, %v11286_v8  ;;  %v8420_v12 = vor.u32 %v9392_v52, %v8419_v34  ;;  %v13134_v52 = vld [vmem:[#allocation132_spill] sm:$0xff] }
 0x623   :  { %v4582_v43 = vadd.f32 %v4581_v30, %v4493_v59 }
 0x624   :  { %4445 = vmatmul.bf16.gmra.mxu1 %v13129_v24  ;;  %4712 = vmatmul.bf16.gmra.mxu0 %v13130_v5 }
 0x625   :  { %v6091_v4 = vmax.f32 %v4582_v43, 0.0  ;;  %4534 = vmatmul.bf16.gmra.mxu2 %v13131_v14  ;;  %4623 = vmatmul.bf16.gmra.mxu3 %v13132_v62  ;;  %v8163_v62 = vld [vmem:[#allocation8 + $0x128] sm:$0xf]  ;;  %v9328_v14 = vld [vmem:[#allocation8 + $0x134] sm:$0xf0] }
 0x626   :  { %4927 = vmatpush.bf16.msrb.mxu3 %v8420_v12  ;;  %v8164_v24 = vor.u32 %v9328_v14, %v8163_v62 }
 0x627   :  { %v11475_v23 = vpack.c.bf16 %v6091_v4, %v6087_v38 }
 0x628   :  { %v4495_v8 = vpop.f32.mrf.mxu2  ;;  %v4584_v31 = vpop.f32.mrf.mxu3  ;;  %4749 = vmatpush.bf16.msrb.mxu1 %v8164_v24 }
 0x629   :  { %13133 = vst [vmem:[#allocation80_spill] sm:$0xff] %v11475_v23  ;;  %v4496_v59 = vadd.f32 %v4495_v8, %v4407_v46  ;;  %v4408_v30 = vpop.f32.mrf.mxu1  ;;  %v11477_v5 = vpop.f32.mrf.mxu0  ;;  %v13135_v8 = vld [vmem:[#allocation34_spill] sm:$0xff] }
 0x62a   :  { %v4409_v39 = vadd.f32 %v4408_v30, %v11294_v17 }
 0x62b   :  { %v4585_v43 = vadd.f32 %v4584_v31, %v4496_v59  ;;  %v13136_v31 = vld [vmem:[#allocation134_spill] sm:$0xff]  ;;  %v13137_v59 = vld [vmem:[#allocation135_spill] sm:$0xff] }
 0x62d   :  { %v6095_v12 = vmax.f32 %v4585_v43, 0.0 }
 0x630   :  { %v4497_v1 = vpop.f32.mrf.mxu2  ;;  %v4586_v36 = vpop.f32.mrf.mxu3 }
 0x631   :  { %v4498_v34 = vadd.f32 %v4497_v1, %v4409_v39  ;;  %v4411_v38 = vpop.f32.mrf.mxu1  ;;  %v11480_v4 = vpop.f32.mrf.mxu0 }
 0x632   :  { %v4412_v40 = vadd.f32 %v4411_v38, %v11298_v56  ;;  %v9440_v38 = vld [vmem:[#allocation8 + $0x4b4] sm:$0xf0] }
 0x633   :  { %v4587_v46 = vadd.f32 %v4586_v36, %v4498_v34  ;;  %v8611_v34 = vld [vmem:[#allocation8 + $0x4a8] sm:$0xf] }
 0x634   :  { %4450 = vmatmul.bf16.gmra.mxu1 %v13134_v52  ;;  %4717 = vmatmul.bf16.gmra.mxu0 %v13135_v8  ;;  %v8612_v23 = vor.u32 %v9440_v38, %v8611_v34  ;;  %v9356_v34 = vld [vmem:[#allocation8 + $0x214] sm:$0xf0] }
 0x635   :  { %v6099_v17 = vmax.f32 %v4587_v46, 0.0  ;;  %4539 = vmatmul.bf16.gmra.mxu2 %v13136_v31  ;;  %4628 = vmatmul.bf16.gmra.mxu3 %v13137_v59  ;;  %v9388_v38 = vld [vmem:[#allocation8 + $0x314] sm:$0xf0] }
 0x636   :  { %5012 = vmatpush.bf16.msrb.mxu0 %v8612_v23 }
 0x637   :  { %v11487_v14 = vpack.c.bf16 %v6099_v17, %v6095_v12 }
 0x638   :  { %v4500_v24 = vpop.f32.mrf.mxu2  ;;  %v4589_v62 = vpop.f32.mrf.mxu3 }
 0x639   :  { %13138 = vst [vmem:[#allocation158_spill] sm:$0xff] %v11487_v14  ;;  %v4501_v30 = vadd.f32 %v4500_v24, %v4412_v40  ;;  %v4413_v39 = vpop.f32.mrf.mxu1  ;;  %v11489_v1 = vpop.f32.mrf.mxu0  ;;  %v13139_v40 = vld [vmem:[#allocation137_spill] sm:$0xff]  ;;  %v13140_v24 = vld [vmem:[#allocation23_spill] sm:$0xff] }
 0x63a   :  { %v4414_v56 = vadd.f32 %v4413_v39, %v11306_v37  ;;  %v8275_v39 = vld [vmem:[#allocation8 + $0x208] sm:$0xf] }
 0x63b   :  { %v4590_v36 = vadd.f32 %v4589_v62, %v4501_v30  ;;  %v13141_v62 = vld [vmem:[#allocation138_spill] sm:$0xff]  ;;  %v13142_v30 = vld [vmem:[#allocation139_spill] sm:$0xff]  ;;  %v8276_v23 = vor.u32 %v9356_v34, %v8275_v39  ;;  %v8595_v39 = vld [vmem:[#allocation8 + $0x488] sm:$0xf] }
 0x63c   :  { %v9436_v34 = vld [vmem:[#allocation8 + $0x494] sm:$0xf0] }
 0x63d   :  { %v6103_v14 = vmax.f32 %v4590_v36, 0.0  ;;  %4839 = vmatpush.bf16.msrb.mxu2 %v8276_v23 }
 0x640   :  { %v4502_v43 = vpop.f32.mrf.mxu2  ;;  %v4591_v46 = vpop.f32.mrf.mxu3 }
 0x641   :  { %v4503_v31 = vadd.f32 %v4502_v43, %v4414_v56  ;;  %v4416_v8 = vpop.f32.mrf.mxu1  ;;  %v11492_v59 = vpop.f32.mrf.mxu0  ;;  %v8403_v56 = vld [vmem:[#allocation8 + $0x308] sm:$0xf] }
 0x642   :  { %v4417_v12 = vadd.f32 %v4416_v8, %v11310_v15  ;;  %v8404_v43 = vor.u32 %v9388_v38, %v8403_v56 }
 0x643   :  { %v4592_v17 = vadd.f32 %v4591_v46, %v4503_v31 }
 0x644   :  { %4455 = vmatmul.bf16.gmra.mxu1 %v13139_v40  ;;  %4722 = vmatmul.bf16.gmra.mxu0 %v13140_v24 }
 0x645   :  { %v6107_v37 = vmax.f32 %v4592_v17, 0.0  ;;  %4544 = vmatmul.bf16.gmra.mxu2 %v13141_v62  ;;  %4633 = vmatmul.bf16.gmra.mxu3 %v13142_v30  ;;  %v8147_v30 = vld [vmem:[#allocation8 + $0x108] sm:$0xf]  ;;  %v9324_v62 = vld [vmem:[#allocation8 + $0x114] sm:$0xf0] }
 0x646   :  { %4928 = vmatpush.bf16.msrb.mxu3 %v8404_v43  ;;  %v8148_v40 = vor.u32 %v9324_v62, %v8147_v30 }
 0x647   :  { %v11499_v52 = vpack.c.bf16 %v6107_v37, %v6103_v14  ;;  %v8596_v14 = vor.u32 %v9436_v34, %v8595_v39 }
 0x648   :  { %v4505_v15 = vpop.f32.mrf.mxu2  ;;  %v4594_v8 = vpop.f32.mrf.mxu3  ;;  %4750 = vmatpush.bf16.msrb.mxu1 %v8148_v40  ;;  %v13147_v40 = vld [vmem:[#allocation143_spill] sm:$0xff] }
 0x649   :  { %13143 = vst [vmem:[#allocation159_spill] sm:$0xff] %v11499_v52  ;;  %v4506_v31 = vadd.f32 %v4505_v15, %v4417_v12  ;;  %v4418_v46 = vpop.f32.mrf.mxu1  ;;  %v11501_v24 = vpop.f32.mrf.mxu0  ;;  %5013 = vmatpush.bf16.msrb.mxu0 %v8596_v14  ;;  %v8579_v15 = vld [vmem:[#allocation8 + $0x468] sm:$0xf]  ;;  %v13146_v52 = vld [vmem:[#allocation142_spill] sm:$0xff] }
 0x64a   :  { %v4419_v36 = vadd.f32 %v4418_v46, %v11318_v58  ;;  %v9432_v58 = vld [vmem:[#allocation8 + $0x474] sm:$0xf0] }
 0x64b   :  { %v4595_v17 = vadd.f32 %v4594_v8, %v4506_v31  ;;  %v13144_v8 = vld [vmem:[#allocation140_spill] sm:$0xff]  ;;  %v13145_v31 = vld [vmem:[#allocation27_spill] sm:$0xff]  ;;  %v8580_v62 = vor.u32 %v9432_v58, %v8579_v15  ;;  %v9424_v58 = vld [vmem:[#allocation8 + $0x434] sm:$0xf0] }
 0x64d   :  { %v6111_v30 = vmax.f32 %v4595_v17, 0.0  ;;  %5014 = vmatpush.bf16.msrb.mxu0 %v8580_v62  ;;  %v8531_v62 = vld [vmem:[#allocation8 + $0x408] sm:$0xf] }
 0x650   :  { %v4507_v20 = vpop.f32.mrf.mxu2  ;;  %v4596_v56 = vpop.f32.mrf.mxu3 }
 0x651   :  { %v4508_v37 = vadd.f32 %v4507_v20, %v4419_v36  ;;  %v4421_v38 = vpop.f32.mrf.mxu1  ;;  %v11504_v23 = vpop.f32.mrf.mxu0  ;;  %v8563_v20 = vld [vmem:[#allocation8 + $0x448] sm:$0xf]  ;;  %v9428_v36 = vld [vmem:[#allocation8 + $0x454] sm:$0xf0] }
 0x652   :  { %v4422_v12 = vadd.f32 %v4421_v38, %v11322_v29 }
 0x653   :  { %v4597_v43 = vadd.f32 %v4596_v56, %v4508_v37  ;;  %v8564_v56 = vor.u32 %v9428_v36, %v8563_v20 }
 0x654   :  { %4460 = vmatmul.bf16.gmra.mxu1 %v13144_v8  ;;  %4727 = vmatmul.bf16.gmra.mxu0 %v13145_v31 }
 0x655   :  { %v6115_v46 = vmax.f32 %v4597_v43, 0.0  ;;  %4549 = vmatmul.bf16.gmra.mxu2 %v13146_v52  ;;  %4638 = vmatmul.bf16.gmra.mxu3 %v13147_v40  ;;  %v8547_v43 = vld [vmem:[#allocation8 + $0x428] sm:$0xf]  ;;  %v9420_v40 = vld [vmem:[#allocation8 + $0x414] sm:$0xf0] }
 0x656   :  { %5015 = vmatpush.bf16.msrb.mxu0 %v8564_v56  ;;  %v8548_v52 = vor.u32 %v9424_v58, %v8547_v43  ;;  %v13151_v56 = vld [vmem:[#allocation147_spill] sm:$0xff] }
 0x657   :  { %v11511_v39 = vpack.c.bf16 %v6115_v46, %v6111_v30  ;;  %v8532_v46 = vor.u32 %v9420_v40, %v8531_v62  ;;  %v9512_v40 = vld [vmem:[#allocation8 + $0x6f4] sm:$0xf0] }
 0x658   :  { %v4510_v29 = vpop.f32.mrf.mxu2  ;;  %v4599_v34 = vpop.f32.mrf.mxu3 }
 0x659   :  { %13148 = vst [vmem:[#allocation160_spill] sm:$0xff] %v11511_v39  ;;  %v4511_v14 = vadd.f32 %v4510_v29, %v4422_v12  ;;  %v4423_v37 = vpop.f32.mrf.mxu1  ;;  %v11513_v38 = vpop.f32.mrf.mxu0 }
 0x65a   :  { %v4424_v15 = vadd.f32 %v4423_v37, %v11330_v7  ;;  %5016 = vmatpush.bf16.msrb.mxu0 %v8548_v52  ;;  %v13149_v7 = vld [vmem:[#allocation31_spill] sm:$0xff]  ;;  %v13150_v52 = vld [vmem:[#allocation146_spill] sm:$0xff]  ;;  %v9027_v37 = vld [vmem:[#allocation8 + $0x7e8] sm:$0xf] }
 0x65b   :  { %v4600_v17 = vadd.f32 %v4599_v34, %v4511_v14  ;;  %v8899_v14 = vld [vmem:[#allocation8 + $0x6e8] sm:$0xf] }
 0x65d   :  { %v6119_v29 = vmax.f32 %v4600_v17, 0.0 }
 0x65e   :  { %5017 = vmatpush.bf16.msrb.mxu0 %v8532_v46 }
 0x660   :  { %v4512_v31 = vpop.f32.mrf.mxu2  ;;  %v4601_v30 = vpop.f32.mrf.mxu3 }
 0x661   :  { %v4513_v39 = vadd.f32 %v4512_v31, %v4424_v15  ;;  %v4426_v8 = vpop.f32.mrf.mxu1  ;;  %v11516_v20 = vpop.f32.mrf.mxu0  ;;  %v8900_v31 = vor.u32 %v9512_v40, %v8899_v14  ;;  %v9544_v15 = vld [vmem:[#allocation8 + $0x7f4] sm:$0xf0] }
 0x662   :  { %v4427_v12 = vadd.f32 %v4426_v8, %v11334_v19  ;;  %v9028_v43 = vor.u32 %v9544_v15, %v9027_v37 }
 0x663   :  { %v4602_v36 = vadd.f32 %v4601_v30, %v4513_v39  ;;  %5188 = vmatpush.bf16.msra.mxu2 %v8900_v31 }
 0x664   :  { %4465 = vmatmul.bf16.gmra.mxu1 %v13016_v13  ;;  %4732 = vmatmul.bf16.gmra.mxu0 %v13149_v7 }
 0x665   :  { %v6123_v34 = vmax.f32 %v4602_v36, 0.0  ;;  %4554 = vmatmul.bf16.gmra.mxu2 %v13150_v52  ;;  %4643 = vmatmul.bf16.gmra.mxu3 %v13151_v56  ;;  %v8771_v36 = vld [vmem:[#allocation8 + $0x5e8] sm:$0xf]  ;;  %v9480_v56 = vld [vmem:[#allocation8 + $0x5f4] sm:$0xf0] }
 0x666   :  { %5277 = vmatpush.bf16.msra.mxu3 %v9028_v43  ;;  %v8772_v52 = vor.u32 %v9480_v56, %v8771_v36  ;;  %v13153_v43 = vld [vmem:[#allocation149_spill] sm:$0xff] }
 0x667   :  { %v11523_v58 = vpack.c.bf16 %v6123_v34, %v6119_v29 }
 0x668   :  { %v4515_v19 = vpop.f32.mrf.mxu2  ;;  %v4604_v8 = vpop.f32.mrf.mxu3  ;;  %5099 = vmatpush.bf16.msra.mxu1 %v8772_v52 }
 0x669   :  { %13152 = vst [vmem:[#allocation31_spill] sm:$0xff] %v11523_v58  ;;  %v4516_v39 = vadd.f32 %v4515_v19, %v4427_v12  ;;  %v4428_v62 = vpop.f32.mrf.mxu1  ;;  %v11525_v30 = vpop.f32.mrf.mxu0  ;;  %v13158_v58 = vld [vmem:[#allocation39_spill] sm:$0xff] }
 0x66a   :  { %v4429_v17 = vadd.f32 %v4428_v62, %v11342_v63 }
 0x66b   :  { %v4605_v46 = vadd.f32 %v4604_v8, %v4516_v39 }
 0x66d   :  { %v6127_v15 = vmax.f32 %v4605_v46, 0.0 }
 0x670   :  { %v4517_v14 = vpop.f32.mrf.mxu2  ;;  %v4606_v40 = vpop.f32.mrf.mxu3 }
 0x671   :  { %v4518_v37 = vadd.f32 %v4517_v14, %v4429_v17  ;;  %v4431_v29 = vpop.f32.mrf.mxu1  ;;  %v11528_v34 = vpop.f32.mrf.mxu0 }
 0x672   :  { %v4432_v31 = vadd.f32 %v4431_v29, %v11346_v21 }
 0x673   :  { %v4607_v12 = vadd.f32 %v4606_v40, %v4518_v37 }
 0x674   :  { %4470 = vmatmul.bf16.gmra.mxu1 %v10858_v22  ;;  %4737 = vmatmul.bf16.gmra.mxu0 %v13021_v61 }
 0x675   :  { %v6131_v63 = vmax.f32 %v4607_v12, 0.0  ;;  %4559 = vmatmul.bf16.gmra.mxu2 %v10868_v44  ;;  %4648 = vmatmul.bf16.gmra.mxu3 %v13153_v43  ;;  %v9524_v44 = vld [vmem:[#allocation8 + $0x754] sm:$0xf0] }
 0x677   :  { %v11535_v56 = vpack.c.bf16 %v6131_v63, %v6127_v15  ;;  %v13155_v15 = vld [vmem:[#allocation36_spill] sm:$0xff]  ;;  %v13156_v63 = vld [vmem:[#allocation37_spill] sm:$0xff] }
 0x678   :  { %v4520_v52 = vpop.f32.mrf.mxu2  ;;  %v4609_v19 = vpop.f32.mrf.mxu3 }
 0x679   :  { %13154 = vst [vmem:[#allocation161_spill] sm:$0xff] %v11535_v56  ;;  %v4521_v8 = vadd.f32 %v4520_v52, %v4432_v31  ;;  %v4433_v39 = vpop.f32.mrf.mxu1  ;;  %v11537_v62 = vpop.f32.mrf.mxu0  ;;  %v13157_v56 = vld [vmem:[#allocation38_spill] sm:$0xff] }
 0x67a   :  { %v4434_v21 = vadd.f32 %v4433_v39, %v11354_v47  ;;  %v8883_v47 = vld [vmem:[#allocation8 + $0x6c8] sm:$0xf] }
 0x67b   :  { %v4610_v17 = vadd.f32 %v4609_v19, %v4521_v8  ;;  %v9508_v19 = vld [vmem:[#allocation8 + $0x6d4] sm:$0xf0]  ;;  %v9011_v39 = vld [vmem:[#allocation8 + $0x7c8] sm:$0xf] }
 0x67c   :  { %v8884_v8 = vor.u32 %v9508_v19, %v8883_v47 }
 0x67d   :  { %v6135_v31 = vmax.f32 %v4610_v17, 0.0 }
 0x67e   :  { %5189 = vmatpush.bf16.msra.mxu2 %v8884_v8 }
 0x680   :  { %v4522_v36 = vpop.f32.mrf.mxu2  ;;  %v4611_v14 = vpop.f32.mrf.mxu3 }
 0x681   :  { %v4523_v40 = vadd.f32 %v4522_v36, %v4434_v21  ;;  %v4436_v46 = vpop.f32.mrf.mxu1  ;;  %v11540_v37 = vpop.f32.mrf.mxu0  ;;  %v9540_v21 = vld [vmem:[#allocation8 + $0x7d4] sm:$0xf0] }
 0x682   :  { %v4437_v29 = vadd.f32 %v4436_v46, %v11358_v3  ;;  %v9012_v36 = vor.u32 %v9540_v21, %v9011_v39  ;;  %v13160_v21 = vld [vmem:[#allocation40_spill] sm:$0xff] }
 0x683   :  { %v4612_v12 = vadd.f32 %v4611_v14, %v4523_v40 }
 0x684   :  { %4751 = vmatmul.bf16.vlgmr.msrb.gmra.mxu1 %v13155_v15  ;;  %5018 = vmatmul.bf16.vlgmr.msrb.gmra.mxu0 %v13156_v63 }
 0x685   :  { %v6139_v52 = vmax.f32 %v4612_v12, 0.0  ;;  %4840 = vmatmul.bf16.vlgmr.msrb.gmra.mxu2 %v13157_v56  ;;  %4929 = vmatmul.bf16.vlgmr.msrb.gmra.mxu3 %v13158_v58  ;;  %v8755_v58 = vld [vmem:[#allocation8 + $0x5c8] sm:$0xf]  ;;  %v9476_v56 = vld [vmem:[#allocation8 + $0x5d4] sm:$0xf0] }
 0x686   :  { %5278 = vmatpush.bf16.msra.mxu3 %v9012_v36  ;;  %v8756_v15 = vor.u32 %v9476_v56, %v8755_v58 }
 0x687   :  { %v11547_v43 = vpack.c.bf16 %v6139_v52, %v6135_v31 }
 0x688   :  { %v4525_v3 = vpop.f32.mrf.mxu2  ;;  %v4614_v14 = vpop.f32.mrf.mxu3  ;;  %5100 = vmatpush.bf16.msra.mxu1 %v8756_v15 }
 0x689   :  { %13159 = vst [vmem:[#allocation162_spill] sm:$0xff] %v11547_v43  ;;  %v4526_v40 = vadd.f32 %v4525_v3, %v4437_v29  ;;  %v4438_v46 = vpop.f32.mrf.mxu1  ;;  %v11549_v63 = vpop.f32.mrf.mxu0  ;;  %v13161_v3 = vld [vmem:[#allocation41_spill] sm:$0xff] }
 0x68a   :  { %v4439_v17 = vadd.f32 %v4438_v46, %v11366_v16 }
 0x68b   :  { %v4615_v12 = vadd.f32 %v4614_v14, %v4526_v40  ;;  %v13162_v14 = vld [vmem:[#allocation42_spill] sm:$0xff]  ;;  %v13163_v40 = vld [vmem:[#allocation43_spill] sm:$0xff] }
 0x68d   :  { %v6143_v36 = vmax.f32 %v4615_v12, 0.0 }
 0x690   :  { %v4527_v47 = vpop.f32.mrf.mxu2  ;;  %v4616_v19 = vpop.f32.mrf.mxu3 }
 0x691   :  { %v4528_v39 = vadd.f32 %v4527_v47, %v4439_v17  ;;  %v4441_v31 = vpop.f32.mrf.mxu1  ;;  %v11552_v52 = vpop.f32.mrf.mxu0 }
 0x692   :  { %v4442_v8 = vadd.f32 %v4441_v31, %v11370_v28 }
 0x693   :  { %v4617_v29 = vadd.f32 %v4616_v19, %v4528_v39 }
 0x694   :  { %4756 = vmatmul.bf16.gmra.mxu1 %v13160_v21  ;;  %5023 = vmatmul.bf16.gmra.mxu0 %v13161_v3  ;;  %v13168_v3 = vld [vmem:[#allocation47_spill] sm:$0xff] }
 0x695   :  { %v6147_v16 = vmax.f32 %v4617_v29, 0.0  ;;  %4845 = vmatmul.bf16.gmra.mxu2 %v13162_v14  ;;  %4934 = vmatmul.bf16.gmra.mxu3 %v13163_v40 }
 0x697   :  { %v11559_v58 = vpack.c.bf16 %v6147_v16, %v6143_v36  ;;  %v13165_v36 = vld [vmem:[#allocation44_spill] sm:$0xff]  ;;  %v13166_v16 = vld [vmem:[#allocation45_spill] sm:$0xff] }
 0x698   :  { %v4530_v56 = vpop.f32.mrf.mxu2  ;;  %v4619_v15 = vpop.f32.mrf.mxu3 }
 0x699   :  { %13164 = vst [vmem:[#allocation163_spill] sm:$0xff] %v11559_v58  ;;  %v4531_v46 = vadd.f32 %v4530_v56, %v4442_v8  ;;  %v4443_v17 = vpop.f32.mrf.mxu1  ;;  %v11561_v47 = vpop.f32.mrf.mxu0  ;;  %v13167_v58 = vld [vmem:[#allocation46_spill] sm:$0xff] }
 0x69a   :  { %v4444_v28 = vadd.f32 %v4443_v17, %v11378_v48  ;;  %v8867_v48 = vld [vmem:[#allocation8 + $0x6a8] sm:$0xf] }
 0x69b   :  { %v4620_v19 = vadd.f32 %v4619_v15, %v4531_v46  ;;  %v9504_v15 = vld [vmem:[#allocation8 + $0x6b4] sm:$0xf0]  ;;  %v8995_v17 = vld [vmem:[#allocation8 + $0x7a8] sm:$0xf] }
 0x69c   :  { %v8868_v46 = vor.u32 %v9504_v15, %v8867_v48 }
 0x69d   :  { %v6151_v8 = vmax.f32 %v4620_v19, 0.0 }
 0x69e   :  { %5190 = vmatpush.bf16.msra.mxu2 %v8868_v46 }
 0x6a0   :  { %v4532_v39 = vpop.f32.mrf.mxu2  ;;  %v4621_v31 = vpop.f32.mrf.mxu3 }
 0x6a1   :  { %v4533_v43 = vadd.f32 %v4532_v39, %v4444_v28  ;;  %v4446_v12 = vpop.f32.mrf.mxu1  ;;  %v11564_v29 = vpop.f32.mrf.mxu0  ;;  %v9536_v28 = vld [vmem:[#allocation8 + $0x7b4] sm:$0xf0] }
 0x6a2   :  { %v4447_v14 = vadd.f32 %v4446_v12, %v11382_v26  ;;  %v8996_v39 = vor.u32 %v9536_v28, %v8995_v17  ;;  %v13170_v28 = vld [vmem:[#allocation48_spill] sm:$0xff] }
 0x6a3   :  { %v4622_v40 = vadd.f32 %v4621_v31, %v4533_v43 }
 0x6a4   :  { %4761 = vmatmul.bf16.gmra.mxu1 %v13165_v36  ;;  %5028 = vmatmul.bf16.gmra.mxu0 %v13166_v16 }
 0x6a5   :  { %v6155_v56 = vmax.f32 %v4622_v40, 0.0  ;;  %4850 = vmatmul.bf16.gmra.mxu2 %v13167_v58  ;;  %4939 = vmatmul.bf16.gmra.mxu3 %v13168_v3  ;;  %v8739_v3 = vld [vmem:[#allocation8 + $0x5a8] sm:$0xf]  ;;  %v9472_v58 = vld [vmem:[#allocation8 + $0x5b4] sm:$0xf0] }
 0x6a6   :  { %5279 = vmatpush.bf16.msra.mxu3 %v8996_v39  ;;  %v8740_v36 = vor.u32 %v9472_v58, %v8739_v3 }
 0x6a7   :  { %v11571_v21 = vpack.c.bf16 %v6155_v56, %v6151_v8 }
 0x6a8   :  { %v4535_v26 = vpop.f32.mrf.mxu2  ;;  %v4624_v43 = vpop.f32.mrf.mxu3  ;;  %5101 = vmatpush.bf16.msra.mxu1 %v8740_v36 }
 0x6a9   :  { %13169 = vst [vmem:[#allocation164_spill] sm:$0xff] %v11571_v21  ;;  %v4536_v31 = vadd.f32 %v4535_v26, %v4447_v14  ;;  %v4448_v12 = vpop.f32.mrf.mxu1  ;;  %v11573_v16 = vpop.f32.mrf.mxu0  ;;  %v13171_v26 = vld [vmem:[#allocation49_spill] sm:$0xff] }
 0x6aa   :  { %v4449_v40 = vadd.f32 %v4448_v12, %v11390_v6 }
 0x6ab   :  { %v4625_v19 = vadd.f32 %v4624_v43, %v4536_v31  ;;  %v13172_v43 = vld [vmem:[#allocation50_spill] sm:$0xff]  ;;  %v13173_v31 = vld [vmem:[#allocation51_spill] sm:$0xff] }
 0x6ad   :  { %v6159_v39 = vmax.f32 %v4625_v19, 0.0 }
 0x6b0   :  { %v4537_v48 = vpop.f32.mrf.mxu2  ;;  %v4626_v15 = vpop.f32.mrf.mxu3 }
 0x6b1   :  { %v4538_v17 = vadd.f32 %v4537_v48, %v4449_v40  ;;  %v4451_v8 = vpop.f32.mrf.mxu1  ;;  %v11576_v56 = vpop.f32.mrf.mxu0 }
 0x6b2   :  { %v4452_v46 = vadd.f32 %v4451_v8, %v11394_v25 }
 0x6b3   :  { %v4627_v14 = vadd.f32 %v4626_v15, %v4538_v17 }
 0x6b4   :  { %4766 = vmatmul.bf16.gmra.mxu1 %v13170_v28  ;;  %5033 = vmatmul.bf16.gmra.mxu0 %v13171_v26  ;;  %v13178_v26 = vld [vmem:[#allocation55_spill] sm:$0xff] }
 0x6b5   :  { %v6163_v6 = vmax.f32 %v4627_v14, 0.0  ;;  %4855 = vmatmul.bf16.gmra.mxu2 %v13172_v43  ;;  %4944 = vmatmul.bf16.gmra.mxu3 %v13173_v31 }
 0x6b7   :  { %v11583_v3 = vpack.c.bf16 %v6163_v6, %v6159_v39  ;;  %v13175_v39 = vld [vmem:[#allocation52_spill] sm:$0xff]  ;;  %v13176_v6 = vld [vmem:[#allocation53_spill] sm:$0xff] }
 0x6b8   :  { %v4540_v58 = vpop.f32.mrf.mxu2  ;;  %v4629_v36 = vpop.f32.mrf.mxu3 }
 0x6b9   :  { %13174 = vst [vmem:[#allocation165_spill] sm:$0xff] %v11583_v3  ;;  %v4541_v12 = vadd.f32 %v4540_v58, %v4452_v46  ;;  %v4453_v40 = vpop.f32.mrf.mxu1  ;;  %v11585_v48 = vpop.f32.mrf.mxu0  ;;  %v13177_v3 = vld [vmem:[#allocation54_spill] sm:$0xff] }
 0x6ba   :  { %v4454_v25 = vadd.f32 %v4453_v40, %v11402_v49  ;;  %v8851_v49 = vld [vmem:[#allocation8 + $0x688] sm:$0xf] }
 0x6bb   :  { %v4630_v15 = vadd.f32 %v4629_v36, %v4541_v12  ;;  %v9500_v36 = vld [vmem:[#allocation8 + $0x694] sm:$0xf0]  ;;  %v8979_v40 = vld [vmem:[#allocation8 + $0x788] sm:$0xf] }
 0x6bc   :  { %v8852_v12 = vor.u32 %v9500_v36, %v8851_v49 }
 0x6bd   :  { %v6167_v46 = vmax.f32 %v4630_v15, 0.0 }
 0x6be   :  { %5191 = vmatpush.bf16.msra.mxu2 %v8852_v12 }
 0x6c0   :  { %v4542_v17 = vpop.f32.mrf.mxu2  ;;  %v4631_v8 = vpop.f32.mrf.mxu3 }
 0x6c1   :  { %v4543_v21 = vadd.f32 %v4542_v17, %v4454_v25  ;;  %v4456_v19 = vpop.f32.mrf.mxu1  ;;  %v11588_v14 = vpop.f32.mrf.mxu0  ;;  %v9532_v25 = vld [vmem:[#allocation8 + $0x794] sm:$0xf0] }
 0x6c2   :  { %v4457_v43 = vadd.f32 %v4456_v19, %v11406_v10  ;;  %v8980_v17 = vor.u32 %v9532_v25, %v8979_v40  ;;  %v13180_v25 = vld [vmem:[#allocation56_spill] sm:$0xff] }
 0x6c3   :  { %v4632_v31 = vadd.f32 %v4631_v8, %v4543_v21 }
 0x6c4   :  { %4771 = vmatmul.bf16.gmra.mxu1 %v13175_v39  ;;  %5038 = vmatmul.bf16.gmra.mxu0 %v13176_v6 }
 0x6c5   :  { %v6171_v58 = vmax.f32 %v4632_v31, 0.0  ;;  %4860 = vmatmul.bf16.gmra.mxu2 %v13177_v3  ;;  %4949 = vmatmul.bf16.gmra.mxu3 %v13178_v26  ;;  %v8723_v26 = vld [vmem:[#allocation8 + $0x588] sm:$0xf]  ;;  %v9468_v3 = vld [vmem:[#allocation8 + $0x594] sm:$0xf0] }
 0x6c6   :  { %5280 = vmatpush.bf16.msra.mxu3 %v8980_v17  ;;  %v8724_v39 = vor.u32 %v9468_v3, %v8723_v26 }
 0x6c7   :  { %v11595_v28 = vpack.c.bf16 %v6171_v58, %v6167_v46 }
 0x6c8   :  { %v4545_v10 = vpop.f32.mrf.mxu2  ;;  %v4634_v21 = vpop.f32.mrf.mxu3  ;;  %5102 = vmatpush.bf16.msra.mxu1 %v8724_v39 }
 0x6c9   :  { %13179 = vst [vmem:[#allocation166_spill] sm:$0xff] %v11595_v28  ;;  %v4546_v8 = vadd.f32 %v4545_v10, %v4457_v43  ;;  %v4458_v19 = vpop.f32.mrf.mxu1  ;;  %v11597_v6 = vpop.f32.mrf.mxu0  ;;  %v13181_v10 = vld [vmem:[#allocation57_spill] sm:$0xff] }
 0x6ca   :  { %v4459_v31 = vadd.f32 %v4458_v19, %v11414_v11 }
 0x6cb   :  { %v4635_v15 = vadd.f32 %v4634_v21, %v4546_v8  ;;  %v13182_v21 = vld [vmem:[#allocation58_spill] sm:$0xff]  ;;  %v13183_v8 = vld [vmem:[#allocation59_spill] sm:$0xff] }
 0x6cd   :  { %v6175_v17 = vmax.f32 %v4635_v15, 0.0 }
 0x6d0   :  { %v4547_v49 = vpop.f32.mrf.mxu2  ;;  %v4636_v36 = vpop.f32.mrf.mxu3 }
 0x6d1   :  { %v4548_v40 = vadd.f32 %v4547_v49, %v4459_v31  ;;  %v4461_v46 = vpop.f32.mrf.mxu1  ;;  %v11600_v58 = vpop.f32.mrf.mxu0 }
 0x6d2   :  { %v4462_v12 = vadd.f32 %v4461_v46, %v11418_v60 }
 0x6d3   :  { %v4637_v43 = vadd.f32 %v4636_v36, %v4548_v40 }
 0x6d4   :  { %4776 = vmatmul.bf16.gmra.mxu1 %v13180_v25  ;;  %5043 = vmatmul.bf16.gmra.mxu0 %v13181_v10  ;;  %v13188_v10 = vld [vmem:[#allocation63_spill] sm:$0xff] }
 0x6d5   :  { %v6179_v11 = vmax.f32 %v4637_v43, 0.0  ;;  %4865 = vmatmul.bf16.gmra.mxu2 %v13182_v21  ;;  %4954 = vmatmul.bf16.gmra.mxu3 %v13183_v8 }
 0x6d7   :  { %v11607_v26 = vpack.c.bf16 %v6179_v11, %v6175_v17  ;;  %v13185_v17 = vld [vmem:[#allocation60_spill] sm:$0xff]  ;;  %v13186_v11 = vld [vmem:[#allocation61_spill] sm:$0xff] }
 0x6d8   :  { %v4550_v3 = vpop.f32.mrf.mxu2  ;;  %v4639_v39 = vpop.f32.mrf.mxu3 }
 0x6d9   :  { %13184 = vst [vmem:[#allocation167_spill] sm:$0xff] %v11607_v26  ;;  %v4551_v19 = vadd.f32 %v4550_v3, %v4462_v12  ;;  %v4463_v31 = vpop.f32.mrf.mxu1  ;;  %v11609_v49 = vpop.f32.mrf.mxu0  ;;  %v13187_v26 = vld [vmem:[#allocation62_spill] sm:$0xff] }
 0x6da   :  { %v4464_v60 = vadd.f32 %v4463_v31, %v11426_v50  ;;  %v8835_v50 = vld [vmem:[#allocation8 + $0x668] sm:$0xf] }
 0x6db   :  { %v4640_v36 = vadd.f32 %v4639_v39, %v4551_v19  ;;  %v9496_v39 = vld [vmem:[#allocation8 + $0x674] sm:$0xf0]  ;;  %v8963_v31 = vld [vmem:[#allocation8 + $0x768] sm:$0xf] }
 0x6dc   :  { %v8836_v19 = vor.u32 %v9496_v39, %v8835_v50 }
 0x6dd   :  { %v6183_v12 = vmax.f32 %v4640_v36, 0.0 }
 0x6de   :  { %5192 = vmatpush.bf16.msra.mxu2 %v8836_v19 }
 0x6e0   :  { %v4552_v40 = vpop.f32.mrf.mxu2  ;;  %v4641_v46 = vpop.f32.mrf.mxu3 }
 0x6e1   :  { %v4553_v28 = vadd.f32 %v4552_v40, %v4464_v60  ;;  %v4466_v15 = vpop.f32.mrf.mxu1  ;;  %v11612_v43 = vpop.f32.mrf.mxu0  ;;  %v9528_v60 = vld [vmem:[#allocation8 + $0x774] sm:$0xf0] }
 0x6e2   :  { %v4467_v21 = vadd.f32 %v4466_v15, %v11430_v33  ;;  %v8964_v40 = vor.u32 %v9528_v60, %v8963_v31  ;;  %v13190_v60 = vld [vmem:[#allocation64_spill] sm:$0xff] }
 0x6e3   :  { %v4642_v8 = vadd.f32 %v4641_v46, %v4553_v28 }
 0x6e4   :  { %4781 = vmatmul.bf16.gmra.mxu1 %v13185_v17  ;;  %5048 = vmatmul.bf16.gmra.mxu0 %v13186_v11 }
 0x6e5   :  { %v6187_v3 = vmax.f32 %v4642_v8, 0.0  ;;  %4870 = vmatmul.bf16.gmra.mxu2 %v13187_v26  ;;  %4959 = vmatmul.bf16.gmra.mxu3 %v13188_v10  ;;  %v8707_v10 = vld [vmem:[#allocation8 + $0x568] sm:$0xf]  ;;  %v9464_v26 = vld [vmem:[#allocation8 + $0x574] sm:$0xf0] }
 0x6e6   :  { %5281 = vmatpush.bf16.msra.mxu3 %v8964_v40  ;;  %v8708_v17 = vor.u32 %v9464_v26, %v8707_v10 }
 0x6e7   :  { %v11619_v25 = vpack.c.bf16 %v6187_v3, %v6183_v12 }
 0x6e8   :  { %v4555_v33 = vpop.f32.mrf.mxu2  ;;  %v4644_v28 = vpop.f32.mrf.mxu3  ;;  %5103 = vmatpush.bf16.msra.mxu1 %v8708_v17 }
 0x6e9   :  { %13189 = vst [vmem:[#allocation168_spill] sm:$0xff] %v11619_v25  ;;  %v4556_v46 = vadd.f32 %v4555_v33, %v4467_v21  ;;  %v4468_v15 = vpop.f32.mrf.mxu1  ;;  %v11621_v11 = vpop.f32.mrf.mxu0  ;;  %v13191_v33 = vld [vmem:[#allocation65_spill] sm:$0xff]  ;;  %v9757_v25 = vld [vmem:[#allocation10] sm:$0xf] }
 0x6ea   :  { %v4469_v8 = vadd.f32 %v4468_v15, %v11438_v45 }
 0x6eb   :  { %v4645_v36 = vadd.f32 %v4644_v28, %v4556_v46  ;;  %v13192_v28 = vld [vmem:[#allocation66_spill] sm:$0xff]  ;;  %v13193_v46 = vld [vmem:[#allocation67_spill] sm:$0xff] }
 0x6ed   :  { %v6191_v40 = vmax.f32 %v4645_v36, 0.0  ;;  %v11636_v36 = vperm.slane %v9757_v25, 2  ;;  %v13197_v25 = vld [vmem:[#allocation70_spill] sm:$0xff] }
 0x6f0   :  { %v4557_v50 = vpop.f32.mrf.mxu2  ;;  %v4646_v39 = vpop.f32.mrf.mxu3 }
 0x6f1   :  { %v4558_v31 = vadd.f32 %v4557_v50, %v4469_v8  ;;  %v4471_v12 = vpop.f32.mrf.mxu1  ;;  %v11624_v3 = vpop.f32.mrf.mxu0 }
 0x6f2   :  { %v4472_v19 = vadd.f32 %v4471_v12, %v11442_v18  ;;  %v8133_v12 = vld [vmem:[#allocation8 + $0xf8] sm:$0xf0] }
 0x6f3   :  { %v4647_v21 = vadd.f32 %v4646_v39, %v4558_v31  ;;  %v9318_v31 = vld [vmem:[#allocation8 + $0xec] sm:$0xf] }
 0x6f4   :  { %4786 = vmatmul.bf16.gmra.mxu1 %v13190_v60  ;;  %5053 = vmatmul.bf16.gmra.mxu0 %v13191_v33  ;;  %v13195_v60 = vld [vmem:[#allocation68_spill] sm:$0xff] }
 0x6f5   :  { %v6195_v45 = vmax.f32 %v4647_v21, 0.0  ;;  %4875 = vmatmul.bf16.gmra.mxu2 %v13192_v28  ;;  %4964 = vmatmul.bf16.gmra.mxu3 %v13193_v46  ;;  %v8136_v21 = vor.u32 %v9318_v31, %v8133_v12  ;;  %v8819_v31 = vld [vmem:[#allocation8 + $0x648] sm:$0xf]  ;;  %v9492_v12 = vld [vmem:[#allocation8 + $0x654] sm:$0xf0] }
 0x6f7   :  { %v11631_v10 = vpack.c.bf16 %v6195_v45, %v6191_v40  ;;  %5366 = vmatpush.bf16.msra.mxu0 %v8136_v21  ;;  %v4664_v40 = vadd.f32 %v11444_v51, %v11636_v36  ;;  %v8820_v51 = vor.u32 %v9492_v12, %v8819_v31  ;;  %v8947_v21 = vld [vmem:[#allocation8 + $0x748] sm:$0xf] }
 0x6f8   :  { %v4560_v26 = vpop.f32.mrf.mxu2  ;;  %v4649_v17 = vpop.f32.mrf.mxu3 }
 0x6f9   :  { %13194 = vst [vmem:[#allocation169_spill] sm:$0xff] %v11631_v10  ;;  %v4561_v15 = vadd.f32 %v4560_v26, %v4472_v19  ;;  %v4473_v8 = vpop.f32.mrf.mxu1  ;;  %v11633_v50 = vpop.f32.mrf.mxu0  ;;  %5193 = vmatpush.bf16.msra.mxu2 %v8820_v51 }
 0x6fa   :  { %v4474_v18 = vadd.f32 %v4473_v8, %v11451_v2  ;;  %v13196_v2 = vld [vmem:[#allocation69_spill] sm:$0xff]  ;;  %v13198_v8 = vld [vmem:[#allocation71_spill] sm:$0xff] }
 0x6fb   :  { %v4650_v39 = vadd.f32 %v4649_v17, %v4561_v15 }
 0x6fd   :  { %v6199_v17 = vmax.f32 %v4650_v39, 0.0 }
 0x700   :  { %v4562_v45 = vpop.f32.mrf.mxu2  ;;  %v4651_v10 = vpop.f32.mrf.mxu3 }
 0x701   :  { %v4563_v46 = vadd.f32 %v4562_v45, %v4474_v18  ;;  %v4752_v19 = vpop.f32.mrf.mxu1  ;;  %v5019_v26 = vpop.f32.mrf.mxu0  ;;  %v8948_v18 = vor.u32 %v9524_v44, %v8947_v21  ;;  %v4669_v44 = vadd.f32 %v11456_v35, %v11636_v36  ;;  %v4671_v35 = vadd.f32 %v11465_v32, %v11636_v36 }
 0x702   :  { %v4753_v28 = vadd.f32 %v4752_v19, %v4664_v40 }
 0x703   :  { %v4652_v33 = vadd.f32 %v4651_v10, %v4563_v46  ;;  %v4666_v46 = vadd.f32 %v11453_v57, %v11636_v36  ;;  %5282 = vmatpush.bf16.msra.mxu3 %v8948_v18  ;;  %v13200_v18 = vld [vmem:[#allocation73_spill] sm:$0xff] }
 0x704   :  { %4791 = vmatmul.bf16.gmra.mxu1 %v13195_v60  ;;  %5058 = vmatmul.bf16.gmra.mxu0 %v13196_v2  ;;  %v8691_v2 = vld [vmem:[#allocation8 + $0x548] sm:$0xf]  ;;  %v9460_v60 = vld [vmem:[#allocation8 + $0x554] sm:$0xf0] }
 0x705   :  { %v6203_v15 = vmax.f32 %v4652_v33, 0.0  ;;  %4880 = vmatmul.bf16.gmra.mxu2 %v13197_v25  ;;  %4969 = vmatmul.bf16.gmra.mxu3 %v13198_v8  ;;  %v8692_v31 = vor.u32 %v9460_v60, %v8691_v2  ;;  %v13201_v60 = vld [vmem:[#allocation74_spill] sm:$0xff] }
 0x707   :  { %v11644_v45 = vpack.c.bf16 %v6203_v15, %v6199_v17  ;;  %5104 = vmatpush.bf16.msra.mxu1 %v8692_v31  ;;  %v9314_v31 = vld [vmem:[#allocation8 + $0xcc] sm:$0xf] }
 0x708   :  { %v4841_v10 = vpop.f32.mrf.mxu2  ;;  %v4930_v40 = vpop.f32.mrf.mxu3 }
 0x709   :  { %13199 = vst [vmem:[#allocation170_spill] sm:$0xff] %v11644_v45  ;;  %v4842_v39 = vadd.f32 %v4841_v10, %v4753_v28  ;;  %v4754_v33 = vpop.f32.mrf.mxu1  ;;  %v5021_v19 = vpop.f32.mrf.mxu0 }
 0x70a   :  { %v4755_v25 = vadd.f32 %v4754_v33, %v4666_v46 }
 0x70b   :  { %v4931_v8 = vadd.f32 %v4930_v40, %v4842_v39 }
 0x70d   :  { %v11648_v12 = vadd.f32 %v5019_v26, %v4931_v8 }
 0x710   :  { %v4843_v17 = vpop.f32.mrf.mxu2  ;;  %v4932_v57 = vpop.f32.mrf.mxu3 }
 0x711   :  { %v4844_v15 = vadd.f32 %v4843_v17, %v4755_v25  ;;  %v4757_v21 = vpop.f32.mrf.mxu1  ;;  %v5024_v51 = vpop.f32.mrf.mxu0 }
 0x712   :  { %v4758_v28 = vadd.f32 %v4757_v21, %v4669_v44  ;;  %v8117_v44 = vld [vmem:[#allocation8 + $0xd8] sm:$0xf0] }
 0x713   :  { %v4933_v10 = vadd.f32 %v4932_v57, %v4844_v15  ;;  %v8120_v17 = vor.u32 %v9314_v31, %v8117_v44  ;;  %v9520_v31 = vld [vmem:[#allocation8 + $0x734] sm:$0xf0]  ;;  %v4676_v44 = vadd.f32 %v11477_v5, %v11636_v36 }
 0x714   :  { %4796 = vmatmul.bf16.gmra.mxu1 %v10408_v41  ;;  %5063 = vmatmul.bf16.gmra.mxu0 %v13067_v0 }
 0x715   :  { %4885 = vmatmul.bf16.gmra.mxu2 %v13200_v18  ;;  %4974 = vmatmul.bf16.gmra.mxu3 %v13201_v60  ;;  %v11656_v26 = vadd.f32 %v5021_v19, %v4933_v10  ;;  %v4674_v19 = vadd.f32 %v11468_v54, %v11636_v36 }
 0x716   :  { %5367 = vmatpush.bf16.msra.mxu0 %v8120_v17 }
 0x718   :  { %v4846_v2 = vpop.f32.mrf.mxu2  ;;  %v4935_v8 = vpop.f32.mrf.mxu3 }
 0x719   :  { %v4847_v25 = vadd.f32 %v4846_v2, %v4758_v28  ;;  %v4759_v46 = vpop.f32.mrf.mxu1  ;;  %v5026_v40 = vpop.f32.mrf.mxu0  ;;  %v13203_v2 = vld [vmem:[#allocation77_spill] sm:$0xff] }
 0x71a   :  { %v4760_v39 = vadd.f32 %v4759_v46, %v4671_v35  ;;  %v13202_v35 = vld [vmem:[#allocation76_spill] sm:$0xff] }
 0x71b   :  { %v4936_v33 = vadd.f32 %v4935_v8, %v4847_v25  ;;  %v13204_v8 = vld [vmem:[#allocation78_spill] sm:$0xff]  ;;  %v8931_v46 = vld [vmem:[#allocation8 + $0x728] sm:$0xf] }
 0x71c   :  { %v9488_v25 = vld [vmem:[#allocation8 + $0x634] sm:$0xf0] }
 0x71d   :  { %v11660_v57 = vadd.f32 %v5024_v51, %v4936_v33  ;;  %v8803_v51 = vld [vmem:[#allocation8 + $0x628] sm:$0xf] }
 0x71e   :  { %v8804_v54 = vor.u32 %v9488_v25, %v8803_v51 }
 0x720   :  { %v4848_v15 = vpop.f32.mrf.mxu2  ;;  %v4937_v21 = vpop.f32.mrf.mxu3  ;;  %5194 = vmatpush.bf16.msra.mxu2 %v8804_v54 }
 0x721   :  { %v4849_v10 = vadd.f32 %v4848_v15, %v4760_v39  ;;  %v4762_v32 = vpop.f32.mrf.mxu1  ;;  %v5029_v45 = vpop.f32.mrf.mxu0  ;;  %v8932_v39 = vor.u32 %v9520_v31, %v8931_v46 }
 0x722   :  { %v4763_v60 = vadd.f32 %v4762_v32, %v4674_v19 }
 0x723   :  { %v4938_v28 = vadd.f32 %v4937_v21, %v4849_v10  ;;  %5283 = vmatpush.bf16.msra.mxu3 %v8932_v39 }
 0x724   :  { %4801 = vmatmul.bf16.gmra.mxu1 %v10428_v53  ;;  %5068 = vmatmul.bf16.gmra.mxu0 %v13202_v35  ;;  %v9456_v35 = vld [vmem:[#allocation8 + $0x534] sm:$0xf0] }
 0x725   :  { %4890 = vmatmul.bf16.gmra.mxu2 %v13203_v2  ;;  %4979 = vmatmul.bf16.gmra.mxu3 %v13204_v8  ;;  %v11668_v33 = vadd.f32 %v5026_v40, %v4938_v28  ;;  %v8675_v2 = vld [vmem:[#allocation8 + $0x528] sm:$0xf]  ;;  %v4679_v28 = vadd.f32 %v11480_v4, %v11636_v36 }
 0x726   :  { %v8676_v53 = vor.u32 %v9456_v35, %v8675_v2  ;;  %v13205_v35 = vld [vmem:[#allocation81_spill] sm:$0xff] }
 0x728   :  { %v4851_v17 = vpop.f32.mrf.mxu2  ;;  %v4940_v19 = vpop.f32.mrf.mxu3  ;;  %5105 = vmatpush.bf16.msra.mxu1 %v8676_v53  ;;  %v4681_v53 = vadd.f32 %v11489_v1, %v11636_v36 }
 0x729   :  { %v4852_v15 = vadd.f32 %v4851_v17, %v4763_v60  ;;  %v4764_v21 = vpop.f32.mrf.mxu1  ;;  %v5031_v10 = vpop.f32.mrf.mxu0 }
 0x72a   :  { %v4765_v32 = vadd.f32 %v4764_v21, %v4676_v44  ;;  %v8101_v21 = vld [vmem:[#allocation8 + $0xb8] sm:$0xf0] }
 0x72b   :  { %v4941_v8 = vadd.f32 %v4940_v19, %v4852_v15  ;;  %v9310_v15 = vld [vmem:[#allocation8 + $0xac] sm:$0xf] }
 0x72d   :  { %v11672_v40 = vadd.f32 %v5029_v45, %v4941_v8 }
 0x730   :  { %v4853_v51 = vpop.f32.mrf.mxu2  ;;  %v4942_v5 = vpop.f32.mrf.mxu3 }
 0x731   :  { %v4854_v25 = vadd.f32 %v4853_v51, %v4765_v32  ;;  %v4767_v46 = vpop.f32.mrf.mxu1  ;;  %v5034_v54 = vpop.f32.mrf.mxu0  ;;  %v8104_v32 = vor.u32 %v9310_v15, %v8101_v21  ;;  %v9516_v15 = vld [vmem:[#allocation8 + $0x714] sm:$0xf0]  ;;  %v4686_v21 = vadd.f32 %v11501_v24, %v11636_v36  ;;  %v4689_v24 = vadd.f32 %v11504_v23, %v11636_v36 }
 0x732   :  { %v4768_v60 = vadd.f32 %v4767_v46, %v4679_v28 }
 0x733   :  { %v4943_v31 = vadd.f32 %v4942_v5, %v4854_v25  ;;  %5368 = vmatpush.bf16.msra.mxu0 %v8104_v32 }
 0x734   :  { %4806 = vmatmul.bf16.gmra.mxu1 %v10448_v27  ;;  %5073 = vmatmul.bf16.gmra.mxu0 %v12939_v55 }
 0x735   :  { %4895 = vmatmul.bf16.gmra.mxu2 %v13072_v42  ;;  %4984 = vmatmul.bf16.gmra.mxu3 %v13205_v35  ;;  %v11680_v45 = vadd.f32 %v5031_v10, %v4943_v31  ;;  %v4684_v10 = vadd.f32 %v11492_v59, %v11636_v36 }
 0x738   :  { %v4856_v4 = vpop.f32.mrf.mxu2  ;;  %v4945_v2 = vpop.f32.mrf.mxu3 }
 0x739   :  { %v4857_v8 = vadd.f32 %v4856_v4, %v4768_v60  ;;  %v4769_v39 = vpop.f32.mrf.mxu1  ;;  %v5036_v44 = vpop.f32.mrf.mxu0  ;;  %v13207_v4 = vld [vmem:[#allocation84_spill] sm:$0xff] }
 0x73a   :  { %v4770_v17 = vadd.f32 %v4769_v39, %v4681_v53  ;;  %v13206_v53 = vld [vmem:[#allocation83_spill] sm:$0xff]  ;;  %v8915_v39 = vld [vmem:[#allocation8 + $0x708] sm:$0xf] }
 0x73b   :  { %v4946_v19 = vadd.f32 %v4945_v2, %v4857_v8  ;;  %v13208_v2 = vld [vmem:[#allocation85_spill] sm:$0xff]  ;;  %v9484_v8 = vld [vmem:[#allocation8 + $0x614] sm:$0xf0] }
 0x73d   :  { %v11684_v28 = vadd.f32 %v5034_v54, %v4946_v19  ;;  %v8787_v54 = vld [vmem:[#allocation8 + $0x608] sm:$0xf] }
 0x73e   :  { %v8788_v59 = vor.u32 %v9484_v8, %v8787_v54  ;;  %v8085_v54 = vld [vmem:[#allocation8 + $0x98] sm:$0xf0] }
 0x740   :  { %v4858_v51 = vpop.f32.mrf.mxu2  ;;  %v4947_v5 = vpop.f32.mrf.mxu3  ;;  %5195 = vmatpush.bf16.msra.mxu2 %v8788_v59 }
 0x741   :  { %v4859_v25 = vadd.f32 %v4858_v51, %v4770_v17  ;;  %v4772_v1 = vpop.f32.mrf.mxu1  ;;  %v5039_v46 = vpop.f32.mrf.mxu0  ;;  %v8916_v17 = vor.u32 %v9516_v15, %v8915_v39 }
 0x742   :  { %v4773_v31 = vadd.f32 %v4772_v1, %v4684_v10 }
 0x743   :  { %v4948_v60 = vadd.f32 %v4947_v5, %v4859_v25  ;;  %5284 = vmatpush.bf16.msra.mxu3 %v8916_v17 }
 0x744   :  { %4811 = vmatmul.bf16.gmra.mxu1 %v10468_v9  ;;  %5078 = vmatmul.bf16.gmra.mxu0 %v13206_v53  ;;  %v9452_v53 = vld [vmem:[#allocation8 + $0x514] sm:$0xf0] }
 0x745   :  { %4900 = vmatmul.bf16.gmra.mxu2 %v13207_v4  ;;  %4989 = vmatmul.bf16.gmra.mxu3 %v13208_v2  ;;  %v11692_v19 = vadd.f32 %v5036_v44, %v4948_v60  ;;  %v8659_v4 = vld [vmem:[#allocation8 + $0x508] sm:$0xf]  ;;  %v9306_v60 = vld [vmem:[#allocation8 + $0x8c] sm:$0xf] }
 0x746   :  { %v8660_v9 = vor.u32 %v9452_v53, %v8659_v4  ;;  %v8088_v59 = vor.u32 %v9306_v60, %v8085_v54  ;;  %v13209_v53 = vld [vmem:[#allocation86_spill] sm:$0xff]  ;;  %v13211_v4 = vld [vmem:[#allocation88_spill] sm:$0xff]  ;;  %v4691_v60 = vadd.f32 %v11513_v38, %v11636_v36  ;;  %v4694_v38 = vadd.f32 %v11516_v20, %v11636_v36  ;;  %v9414_v20 = vld [vmem:[#allocation8 + $0x3ec] sm:$0xf] }
 0x748   :  { %v4861_v32 = vpop.f32.mrf.mxu2  ;;  %v4950_v10 = vpop.f32.mrf.mxu3  ;;  %5106 = vmatpush.bf16.msra.mxu1 %v8660_v9  ;;  %5369 = vmatpush.bf16.msra.mxu0 %v8088_v59 }
 0x749   :  { %v4862_v51 = vadd.f32 %v4861_v32, %v4773_v31  ;;  %v4774_v5 = vpop.f32.mrf.mxu1  ;;  %v5041_v25 = vpop.f32.mrf.mxu0 }
 0x74a   :  { %v4775_v1 = vadd.f32 %v4774_v5, %v4686_v21  ;;  %v9298_v5 = vld [vmem:[#allocation8 + $0x4c] sm:$0xf] }
 0x74b   :  { %v4951_v2 = vadd.f32 %v4950_v10, %v4862_v51  ;;  %v9302_v10 = vld [vmem:[#allocation8 + $0x6c] sm:$0xf]  ;;  %v8069_v51 = vld [vmem:[#allocation8 + $0x78] sm:$0xf0] }
 0x74c   :  { %v8072_v9 = vor.u32 %v9302_v10, %v8069_v51  ;;  %v9294_v51 = vld [vmem:[#allocation8 + $0x2c] sm:$0xf] }
 0x74d   :  { %v11696_v44 = vadd.f32 %v5039_v46, %v4951_v2  ;;  %v13210_v46 = vld [vmem:[#allocation87_spill] sm:$0xff]  ;;  %v13212_v2 = vld [vmem:[#allocation89_spill] sm:$0xff] }
 0x74e   :  { %5370 = vmatpush.bf16.msra.mxu0 %v8072_v9  ;;  %v8021_v9 = vld [vmem:[#allocation8 + $0x18] sm:$0xf0] }
 0x750   :  { %v4863_v8 = vpop.f32.mrf.mxu2  ;;  %v4952_v39 = vpop.f32.mrf.mxu3 }
 0x751   :  { %v4864_v31 = vadd.f32 %v4863_v8, %v4775_v1  ;;  %v4777_v15 = vpop.f32.mrf.mxu1  ;;  %v5044_v32 = vpop.f32.mrf.mxu0  ;;  %v8053_v1 = vld [vmem:[#allocation8 + $0x58] sm:$0xf0] }
 0x752   :  { %v4778_v17 = vadd.f32 %v4777_v15, %v4689_v24  ;;  %v8056_v8 = vor.u32 %v9298_v5, %v8053_v1 }
 0x753   :  { %v4953_v21 = vadd.f32 %v4952_v39, %v4864_v31 }
 0x754   :  { %4816 = vmatmul.bf16.gmra.mxu1 %v13209_v53  ;;  %5083 = vmatmul.bf16.gmra.mxu0 %v13210_v46 }
 0x755   :  { %4905 = vmatmul.bf16.gmra.mxu2 %v13211_v4  ;;  %4994 = vmatmul.bf16.gmra.mxu3 %v13212_v2  ;;  %v11704_v23 = vadd.f32 %v5041_v25, %v4953_v21  ;;  %v8037_v4 = vld [vmem:[#allocation8 + $0x38] sm:$0xf0]  ;;  %v9290_v21 = vld [vmem:[#allocation8 + $0xc] sm:$0xf] }
 0x756   :  { %5371 = vmatpush.bf16.msra.mxu0 %v8056_v8  ;;  %v8040_v2 = vor.u32 %v9294_v51, %v8037_v4  ;;  %v8024_v5 = vor.u32 %v9290_v21, %v8021_v9  ;;  %v13213_v8 = vld [vmem:[#allocation90_spill] sm:$0xff]  ;;  %v13214_v4 = vld [vmem:[#allocation91_spill] sm:$0xff]  ;;  %v4696_v21 = vadd.f32 %v11525_v30, %v11636_v36 }
 0x758   :  { %v4866_v54 = vpop.f32.mrf.mxu2  ;;  %v4955_v24 = vpop.f32.mrf.mxu3 }
 0x759   :  { %v4867_v39 = vadd.f32 %v4866_v54, %v4778_v17  ;;  %v4779_v59 = vpop.f32.mrf.mxu1  ;;  %v5046_v31 = vpop.f32.mrf.mxu0 }
 0x75a   :  { %v4780_v15 = vadd.f32 %v4779_v59, %v4691_v60  ;;  %5372 = vmatpush.bf16.msra.mxu0 %v8040_v2  ;;  %v13216_v2 = vld [vmem:[#allocation93_spill] sm:$0xff]  ;;  %v8389_v59 = vld [vmem:[#allocation8 + $0x2f8] sm:$0xf0] }
 0x75b   :  { %v4956_v10 = vadd.f32 %v4955_v24, %v4867_v39  ;;  %v9382_v39 = vld [vmem:[#allocation8 + $0x2ec] sm:$0xf] }
 0x75c   :  { %v8392_v51 = vor.u32 %v9382_v39, %v8389_v59 }
 0x75d   :  { %v11708_v25 = vadd.f32 %v5044_v32, %v4956_v10  ;;  %v13215_v32 = vld [vmem:[#allocation92_spill] sm:$0xff] }
 0x75e   :  { %5373 = vmatpush.bf16.msra.mxu0 %v8024_v5  ;;  %5544 = vmatpush.bf16.msrb.mxu2 %v8392_v51 }
 0x760   :  { %v4868_v46 = vpop.f32.mrf.mxu2  ;;  %v4957_v53 = vpop.f32.mrf.mxu3 }
 0x761   :  { %v4869_v17 = vadd.f32 %v4868_v46, %v4780_v15  ;;  %v4782_v1 = vpop.f32.mrf.mxu1  ;;  %v5049_v54 = vpop.f32.mrf.mxu0  ;;  %v8517_v46 = vld [vmem:[#allocation8 + $0x3f8] sm:$0xf0] }
 0x762   :  { %v4783_v60 = vadd.f32 %v4782_v1, %v4694_v38  ;;  %v8520_v15 = vor.u32 %v9414_v20, %v8517_v46 }
 0x763   :  { %v4958_v24 = vadd.f32 %v4957_v53, %v4869_v17 }
 0x764   :  { %4821 = vmatmul.bf16.gmra.mxu1 %v13213_v8  ;;  %5088 = vmatmul.bf16.gmra.mxu0 %v13214_v4  ;;  %v8261_v4 = vld [vmem:[#allocation8 + $0x1f8] sm:$0xf0] }
 0x765   :  { %4910 = vmatmul.bf16.gmra.mxu2 %v13215_v32  ;;  %4999 = vmatmul.bf16.gmra.mxu3 %v13216_v2  ;;  %v11716_v10 = vadd.f32 %v5046_v31, %v4958_v24  ;;  %v9350_v32 = vld [vmem:[#allocation8 + $0x1ec] sm:$0xf]  ;;  %v4699_v24 = vadd.f32 %v11528_v34, %v11636_v36  ;;  %v4701_v34 = vadd.f32 %v11537_v62, %v11636_v36  ;;  %v13221_v62 = vld [vmem:[#allocation98_spill] sm:$0xff] }
 0x766   :  { %5633 = vmatpush.bf16.msrb.mxu3 %v8520_v15  ;;  %v8264_v8 = vor.u32 %v9350_v32, %v8261_v4  ;;  %v13218_v15 = vld [vmem:[#allocation95_spill] sm:$0xff]  ;;  %v13220_v4 = vld [vmem:[#allocation97_spill] sm:$0xff] }
 0x768   :  { %v4871_v53 = vpop.f32.mrf.mxu2  ;;  %v4960_v9 = vpop.f32.mrf.mxu3  ;;  %5455 = vmatpush.bf16.msrb.mxu1 %v8264_v8 }
 0x769   :  { %v4872_v38 = vadd.f32 %v4871_v53, %v4783_v60  ;;  %v4784_v5 = vpop.f32.mrf.mxu1  ;;  %v5051_v17 = vpop.f32.mrf.mxu0  ;;  %v13217_v53 = vld [vmem:[#allocation94_spill] sm:$0xff] }
 0x76a   :  { %v4785_v1 = vadd.f32 %v4784_v5, %v4696_v21  ;;  %v13219_v21 = vld [vmem:[#allocation96_spill] sm:$0xff] }
 0x76b   :  { %v4961_v2 = vadd.f32 %v4960_v9, %v4872_v38 }
 0x76d   :  { %v11720_v31 = vadd.f32 %v5049_v54, %v4961_v2 }
 0x770   :  { %v4873_v39 = vpop.f32.mrf.mxu2  ;;  %v4962_v30 = vpop.f32.mrf.mxu3 }
 0x771   :  { %v4874_v59 = vadd.f32 %v4873_v39, %v4785_v1  ;;  %v4787_v20 = vpop.f32.mrf.mxu1  ;;  %v5054_v51 = vpop.f32.mrf.mxu0  ;;  %v4704_v39 = vadd.f32 %v11540_v37, %v11636_v36 }
 0x772   :  { %v4788_v60 = vadd.f32 %v4787_v20, %v4699_v24 }
 0x773   :  { %v4963_v46 = vadd.f32 %v4962_v30, %v4874_v59 }
 0x774   :  { %4826 = vmatmul.bf16.gmra.mxu1 %v13217_v53  ;;  %5093 = vmatmul.bf16.gmra.mxu0 %v13218_v15  ;;  %v13222_v15 = vld [vmem:[#allocation20_spill] sm:$0xff] }
 0x775   :  { %4915 = vmatmul.bf16.gmra.mxu2 %v13219_v21  ;;  %5004 = vmatmul.bf16.gmra.mxu3 %v13220_v4  ;;  %v11728_v54 = vadd.f32 %v5051_v17, %v4963_v46 }
 0x778   :  { %v4876_v8 = vpop.f32.mrf.mxu2  ;;  %v4965_v32 = vpop.f32.mrf.mxu3 }
 0x779   :  { %v4877_v2 = vadd.f32 %v4876_v8, %v4788_v60  ;;  %v4789_v9 = vpop.f32.mrf.mxu1  ;;  %v5056_v38 = vpop.f32.mrf.mxu0  ;;  %v13223_v60 = vld [vmem:[#allocation99_spill] sm:$0xff] }
 0x77a   :  { %v4790_v5 = vadd.f32 %v4789_v9, %v4701_v34  ;;  %v13224_v34 = vld [vmem:[#allocation100_spill] sm:$0xff]  ;;  %v8373_v8 = vld [vmem:[#allocation8 + $0x2d8] sm:$0xf0] }
 0x77b   :  { %v4966_v1 = vadd.f32 %v4965_v32, %v4877_v2  ;;  %v9410_v32 = vld [vmem:[#allocation8 + $0x3cc] sm:$0xf]  ;;  %v8501_v9 = vld [vmem:[#allocation8 + $0x3d8] sm:$0xf0] }
 0x77d   :  { %v11732_v24 = vadd.f32 %v5054_v51, %v4966_v1  ;;  %v9378_v51 = vld [vmem:[#allocation8 + $0x2cc] sm:$0xf]  ;;  %v4706_v1 = vadd.f32 %v11549_v63, %v11636_v36 }
 0x77e   :  { %v8376_v37 = vor.u32 %v9378_v51, %v8373_v8 }
 0x780   :  { %v4878_v30 = vpop.f32.mrf.mxu2  ;;  %v4967_v59 = vpop.f32.mrf.mxu3  ;;  %5545 = vmatpush.bf16.msrb.mxu2 %v8376_v37 }
 0x781   :  { %v4879_v20 = vadd.f32 %v4878_v30, %v4790_v5  ;;  %v4792_v17 = vpop.f32.mrf.mxu1  ;;  %v5059_v46 = vpop.f32.mrf.mxu0  ;;  %v8504_v5 = vor.u32 %v9410_v32, %v8501_v9 }
 0x782   :  { %v4793_v4 = vadd.f32 %v4792_v17, %v4704_v39 }
 0x783   :  { %v4968_v21 = vadd.f32 %v4967_v59, %v4879_v20  ;;  %5634 = vmatpush.bf16.msrb.mxu3 %v8504_v5  ;;  %v13226_v5 = vld [vmem:[#allocation24_spill] sm:$0xff] }
 0x784   :  { %5107 = vmatmul.bf16.vlgmr.msra.gmra.mxu1 %v13221_v62  ;;  %5374 = vmatmul.bf16.vlgmr.msra.gmra.mxu0 %v13222_v15  ;;  %v8245_v62 = vld [vmem:[#allocation8 + $0x1d8] sm:$0xf0] }
 0x785   :  { %5196 = vmatmul.bf16.vlgmr.msra.gmra.mxu2 %v13223_v60  ;;  %5285 = vmatmul.bf16.vlgmr.msra.gmra.mxu3 %v13224_v34  ;;  %v11740_v2 = vadd.f32 %v5056_v38, %v4968_v21  ;;  %v9346_v60 = vld [vmem:[#allocation8 + $0x1cc] sm:$0xf]  ;;  %v4709_v38 = vadd.f32 %v11552_v52, %v11636_v36  ;;  %v4711_v52 = vadd.f32 %v11561_v47, %v11636_v36  ;;  %v13229_v47 = vld [vmem:[#allocation104_spill] sm:$0xff] }
 0x786   :  { %v8248_v53 = vor.u32 %v9346_v60, %v8245_v62  ;;  %v13228_v62 = vld [vmem:[#allocation103_spill] sm:$0xff] }
 0x788   :  { %v4881_v39 = vpop.f32.mrf.mxu2  ;;  %v4970_v30 = vpop.f32.mrf.mxu3  ;;  %5456 = vmatpush.bf16.msrb.mxu1 %v8248_v53 }
 0x789   :  { %v4882_v59 = vadd.f32 %v4881_v39, %v4793_v4  ;;  %v4794_v15 = vpop.f32.mrf.mxu1  ;;  %v5061_v20 = vpop.f32.mrf.mxu0  ;;  %v13225_v39 = vld [vmem:[#allocation101_spill] sm:$0xff] }
 0x78a   :  { %v4795_v17 = vadd.f32 %v4794_v15, %v4706_v1  ;;  %v13227_v1 = vld [vmem:[#allocation102_spill] sm:$0xff] }
 0x78b   :  { %v4971_v34 = vadd.f32 %v4970_v30, %v4882_v59 }
 0x78d   :  { %v11744_v21 = vadd.f32 %v5059_v46, %v4971_v34 }
 0x790   :  { %v4883_v51 = vpop.f32.mrf.mxu2  ;;  %v4972_v63 = vpop.f32.mrf.mxu3 }
 0x791   :  { %v4884_v8 = vadd.f32 %v4883_v51, %v4795_v17  ;;  %v4797_v32 = vpop.f32.mrf.mxu1  ;;  %v5064_v37 = vpop.f32.mrf.mxu0  ;;  %v4714_v51 = vadd.f32 %v11564_v29, %v11636_v36 }
 0x792   :  { %v4798_v4 = vadd.f32 %v4797_v32, %v4709_v38 }
 0x793   :  { %v4973_v9 = vadd.f32 %v4972_v63, %v4884_v8 }
 0x794   :  { %5112 = vmatmul.bf16.gmra.mxu1 %v13225_v39  ;;  %5379 = vmatmul.bf16.gmra.mxu0 %v13226_v5 }
 0x795   :  { %5201 = vmatmul.bf16.gmra.mxu2 %v13227_v1  ;;  %5290 = vmatmul.bf16.gmra.mxu3 %v13228_v62  ;;  %v11752_v46 = vadd.f32 %v5061_v20, %v4973_v9  ;;  %v13230_v1 = vld [vmem:[#allocation28_spill] sm:$0xff] }
 0x798   :  { %v4886_v53 = vpop.f32.mrf.mxu2  ;;  %v4975_v60 = vpop.f32.mrf.mxu3 }
 0x799   :  { %v4887_v34 = vadd.f32 %v4886_v53, %v4798_v4  ;;  %v4799_v30 = vpop.f32.mrf.mxu1  ;;  %v5066_v59 = vpop.f32.mrf.mxu0  ;;  %v13231_v4 = vld [vmem:[#allocation105_spill] sm:$0xff]  ;;  %v8357_v53 = vld [vmem:[#allocation8 + $0x2b8] sm:$0xf0] }
 0x79a   :  { %v4800_v15 = vadd.f32 %v4799_v30, %v4711_v52  ;;  %v13232_v52 = vld [vmem:[#allocation106_spill] sm:$0xff]  ;;  %v8485_v30 = vld [vmem:[#allocation8 + $0x3b8] sm:$0xf0] }
 0x79b   :  { %v4976_v17 = vadd.f32 %v4975_v60, %v4887_v34  ;;  %v9406_v60 = vld [vmem:[#allocation8 + $0x3ac] sm:$0xf] }
 0x79d   :  { %v11756_v38 = vadd.f32 %v5064_v37, %v4976_v17  ;;  %v9374_v37 = vld [vmem:[#allocation8 + $0x2ac] sm:$0xf]  ;;  %v4716_v17 = vadd.f32 %v11573_v16, %v11636_v36 }
 0x79e   :  { %v8360_v29 = vor.u32 %v9374_v37, %v8357_v53 }
 0x7a0   :  { %v4888_v63 = vpop.f32.mrf.mxu2  ;;  %v4977_v8 = vpop.f32.mrf.mxu3  ;;  %5546 = vmatpush.bf16.msrb.mxu2 %v8360_v29 }
 0x7a1   :  { %v4889_v32 = vadd.f32 %v4888_v63, %v4800_v15  ;;  %v4802_v20 = vpop.f32.mrf.mxu1  ;;  %v5069_v9 = vpop.f32.mrf.mxu0  ;;  %v8488_v15 = vor.u32 %v9406_v60, %v8485_v30 }
 0x7a2   :  { %v4803_v5 = vadd.f32 %v4802_v20, %v4714_v51 }
 0x7a3   :  { %v4978_v62 = vadd.f32 %v4977_v8, %v4889_v32  ;;  %5635 = vmatpush.bf16.msrb.mxu3 %v8488_v15  ;;  %v13234_v15 = vld [vmem:[#allocation32_spill] sm:$0xff] }
 0x7a4   :  { %5117 = vmatmul.bf16.gmra.mxu1 %v13229_v47  ;;  %5384 = vmatmul.bf16.gmra.mxu0 %v13230_v1  ;;  %v8229_v47 = vld [vmem:[#allocation8 + $0x1b8] sm:$0xf0] }
 0x7a5   :  { %5206 = vmatmul.bf16.gmra.mxu2 %v13231_v4  ;;  %5295 = vmatmul.bf16.gmra.mxu3 %v13232_v52  ;;  %v11764_v34 = vadd.f32 %v5066_v59, %v4978_v62  ;;  %v9342_v4 = vld [vmem:[#allocation8 + $0x1ac] sm:$0xf]  ;;  %v4719_v59 = vadd.f32 %v11576_v56, %v11636_v36  ;;  %v4721_v56 = vadd.f32 %v11585_v48, %v11636_v36  ;;  %v13237_v48 = vld [vmem:[#allocation110_spill] sm:$0xff] }
 0x7a6   :  { %v8232_v39 = vor.u32 %v9342_v4, %v8229_v47  ;;  %v13236_v47 = vld [vmem:[#allocation109_spill] sm:$0xff] }
 0x7a8   :  { %v4891_v51 = vpop.f32.mrf.mxu2  ;;  %v4980_v63 = vpop.f32.mrf.mxu3  ;;  %5457 = vmatpush.bf16.msrb.mxu1 %v8232_v39 }
 0x7a9   :  { %v4892_v8 = vadd.f32 %v4891_v51, %v4803_v5  ;;  %v4804_v1 = vpop.f32.mrf.mxu1  ;;  %v5071_v32 = vpop.f32.mrf.mxu0  ;;  %v13233_v51 = vld [vmem:[#allocation107_spill] sm:$0xff] }
 0x7aa   :  { %v4805_v20 = vadd.f32 %v4804_v1, %v4716_v17  ;;  %v13235_v17 = vld [vmem:[#allocation108_spill] sm:$0xff] }
 0x7ab   :  { %v4981_v52 = vadd.f32 %v4980_v63, %v4892_v8 }
 0x7ad   :  { %v11768_v62 = vadd.f32 %v5069_v9, %v4981_v52 }
 0x7b0   :  { %v4893_v37 = vpop.f32.mrf.mxu2  ;;  %v4982_v16 = vpop.f32.mrf.mxu3 }
 0x7b1   :  { %v4894_v53 = vadd.f32 %v4893_v37, %v4805_v20  ;;  %v4807_v60 = vpop.f32.mrf.mxu1  ;;  %v5074_v29 = vpop.f32.mrf.mxu0  ;;  %v4724_v37 = vadd.f32 %v11588_v14, %v11636_v36 }
 0x7b2   :  { %v4808_v5 = vadd.f32 %v4807_v60, %v4719_v59 }
 0x7b3   :  { %v4983_v30 = vadd.f32 %v4982_v16, %v4894_v53 }
 0x7b4   :  { %5122 = vmatmul.bf16.gmra.mxu1 %v13233_v51  ;;  %5389 = vmatmul.bf16.gmra.mxu0 %v13234_v15 }
 0x7b5   :  { %5211 = vmatmul.bf16.gmra.mxu2 %v13235_v17  ;;  %5300 = vmatmul.bf16.gmra.mxu3 %v13236_v47  ;;  %v11776_v9 = vadd.f32 %v5071_v32, %v4983_v30  ;;  %v13238_v17 = vld [vmem:[#allocation21_spill] sm:$0xff] }
 0x7b8   :  { %v4896_v39 = vpop.f32.mrf.mxu2  ;;  %v4985_v4 = vpop.f32.mrf.mxu3 }
 0x7b9   :  { %v4897_v52 = vadd.f32 %v4896_v39, %v4808_v5  ;;  %v4809_v63 = vpop.f32.mrf.mxu1  ;;  %v5076_v8 = vpop.f32.mrf.mxu0  ;;  %v13239_v5 = vld [vmem:[#allocation111_spill] sm:$0xff] }
 0x7ba   :  { %v4810_v1 = vadd.f32 %v4809_v63, %v4721_v56  ;;  %v13240_v56 = vld [vmem:[#allocation112_spill] sm:$0xff]  ;;  %v8341_v39 = vld [vmem:[#allocation8 + $0x298] sm:$0xf0] }
 0x7bb   :  { %v4986_v20 = vadd.f32 %v4985_v4, %v4897_v52  ;;  %v9402_v4 = vld [vmem:[#allocation8 + $0x38c] sm:$0xf]  ;;  %v8469_v63 = vld [vmem:[#allocation8 + $0x398] sm:$0xf0] }
 0x7bd   :  { %v11780_v59 = vadd.f32 %v5074_v29, %v4986_v20  ;;  %v9370_v29 = vld [vmem:[#allocation8 + $0x28c] sm:$0xf]  ;;  %v4726_v20 = vadd.f32 %v11597_v6, %v11636_v36 }
 0x7be   :  { %v8344_v14 = vor.u32 %v9370_v29, %v8341_v39 }
 0x7c0   :  { %v4898_v16 = vpop.f32.mrf.mxu2  ;;  %v4987_v53 = vpop.f32.mrf.mxu3  ;;  %5547 = vmatpush.bf16.msrb.mxu2 %v8344_v14 }
 0x7c1   :  { %v4899_v60 = vadd.f32 %v4898_v16, %v4810_v1  ;;  %v4812_v32 = vpop.f32.mrf.mxu1  ;;  %v5079_v30 = vpop.f32.mrf.mxu0  ;;  %v8472_v1 = vor.u32 %v9402_v4, %v8469_v63 }
 0x7c2   :  { %v4813_v15 = vadd.f32 %v4812_v32, %v4724_v37 }
 0x7c3   :  { %v4988_v47 = vadd.f32 %v4987_v53, %v4899_v60  ;;  %5636 = vmatpush.bf16.msrb.mxu3 %v8472_v1  ;;  %v13242_v1 = vld [vmem:[#allocation25_spill] sm:$0xff] }
 0x7c4   :  { %5127 = vmatmul.bf16.gmra.mxu1 %v13237_v48  ;;  %5394 = vmatmul.bf16.gmra.mxu0 %v13238_v17  ;;  %v8213_v48 = vld [vmem:[#allocation8 + $0x198] sm:$0xf0] }
 0x7c5   :  { %5216 = vmatmul.bf16.gmra.mxu2 %v13239_v5  ;;  %5305 = vmatmul.bf16.gmra.mxu3 %v13240_v56  ;;  %v11788_v52 = vadd.f32 %v5076_v8, %v4988_v47  ;;  %v9338_v5 = vld [vmem:[#allocation8 + $0x18c] sm:$0xf]  ;;  %v4729_v8 = vadd.f32 %v11600_v58, %v11636_v36  ;;  %v4731_v58 = vadd.f32 %v11609_v49, %v11636_v36  ;;  %v13245_v49 = vld [vmem:[#allocation116_spill] sm:$0xff] }
 0x7c6   :  { %v8216_v51 = vor.u32 %v9338_v5, %v8213_v48  ;;  %v13244_v48 = vld [vmem:[#allocation115_spill] sm:$0xff] }
 0x7c8   :  { %v4901_v37 = vpop.f32.mrf.mxu2  ;;  %v4990_v16 = vpop.f32.mrf.mxu3  ;;  %5458 = vmatpush.bf16.msrb.mxu1 %v8216_v51 }
 0x7c9   :  { %v4902_v53 = vadd.f32 %v4901_v37, %v4813_v15  ;;  %v4814_v17 = vpop.f32.mrf.mxu1  ;;  %v5081_v60 = vpop.f32.mrf.mxu0  ;;  %v13241_v37 = vld [vmem:[#allocation113_spill] sm:$0xff] }
 0x7ca   :  { %v4815_v32 = vadd.f32 %v4814_v17, %v4726_v20  ;;  %v13243_v20 = vld [vmem:[#allocation114_spill] sm:$0xff] }
 0x7cb   :  { %v4991_v56 = vadd.f32 %v4990_v16, %v4902_v53 }
 0x7cd   :  { %v11792_v47 = vadd.f32 %v5079_v30, %v4991_v56 }
 0x7d0   :  { %v4903_v29 = vpop.f32.mrf.mxu2  ;;  %v4992_v6 = vpop.f32.mrf.mxu3 }
 0x7d1   :  { %v4904_v39 = vadd.f32 %v4903_v29, %v4815_v32  ;;  %v4817_v4 = vpop.f32.mrf.mxu1  ;;  %v5084_v14 = vpop.f32.mrf.mxu0  ;;  %v4734_v29 = vadd.f32 %v11612_v43, %v11636_v36 }
 0x7d2   :  { %v4818_v15 = vadd.f32 %v4817_v4, %v4729_v8 }
 0x7d3   :  { %v4993_v63 = vadd.f32 %v4992_v6, %v4904_v39 }
 0x7d4   :  { %5132 = vmatmul.bf16.gmra.mxu1 %v13241_v37  ;;  %5399 = vmatmul.bf16.gmra.mxu0 %v13242_v1 }
 0x7d5   :  { %5221 = vmatmul.bf16.gmra.mxu2 %v13243_v20  ;;  %5310 = vmatmul.bf16.gmra.mxu3 %v13244_v48  ;;  %v11800_v30 = vadd.f32 %v5081_v60, %v4993_v63  ;;  %v13246_v20 = vld [vmem:[#allocation29_spill] sm:$0xff] }
 0x7d8   :  { %v4906_v51 = vpop.f32.mrf.mxu2  ;;  %v4995_v5 = vpop.f32.mrf.mxu3 }
 0x7d9   :  { %v4907_v56 = vadd.f32 %v4906_v51, %v4818_v15  ;;  %v4819_v16 = vpop.f32.mrf.mxu1  ;;  %v5086_v53 = vpop.f32.mrf.mxu0  ;;  %v13247_v15 = vld [vmem:[#allocation117_spill] sm:$0xff]  ;;  %v8325_v51 = vld [vmem:[#allocation8 + $0x278] sm:$0xf0] }
 0x7da   :  { %v4820_v17 = vadd.f32 %v4819_v16, %v4731_v58  ;;  %v13248_v58 = vld [vmem:[#allocation118_spill] sm:$0xff]  ;;  %v8453_v16 = vld [vmem:[#allocation8 + $0x378] sm:$0xf0] }
 0x7db   :  { %v4996_v32 = vadd.f32 %v4995_v5, %v4907_v56  ;;  %v9398_v5 = vld [vmem:[#allocation8 + $0x36c] sm:$0xf] }
 0x7dd   :  { %v11804_v8 = vadd.f32 %v5084_v14, %v4996_v32  ;;  %v9366_v14 = vld [vmem:[#allocation8 + $0x26c] sm:$0xf]  ;;  %v4736_v32 = vadd.f32 %v11621_v11, %v11636_v36 }
 0x7de   :  { %v8328_v43 = vor.u32 %v9366_v14, %v8325_v51 }
 0x7e0   :  { %v4908_v6 = vpop.f32.mrf.mxu2  ;;  %v4997_v39 = vpop.f32.mrf.mxu3  ;;  %5548 = vmatpush.bf16.msrb.mxu2 %v8328_v43 }
 0x7e1   :  { %v4909_v4 = vadd.f32 %v4908_v6, %v4820_v17  ;;  %v4822_v60 = vpop.f32.mrf.mxu1  ;;  %v5089_v63 = vpop.f32.mrf.mxu0  ;;  %v8456_v17 = vor.u32 %v9398_v5, %v8453_v16 }
 0x7e2   :  { %v4823_v1 = vadd.f32 %v4822_v60, %v4734_v29 }
 0x7e3   :  { %v4998_v48 = vadd.f32 %v4997_v39, %v4909_v4  ;;  %5637 = vmatpush.bf16.msrb.mxu3 %v8456_v17  ;;  %v13250_v17 = vld [vmem:[#allocation33_spill] sm:$0xff] }
 0x7e4   :  { %5137 = vmatmul.bf16.gmra.mxu1 %v13245_v49  ;;  %5404 = vmatmul.bf16.gmra.mxu0 %v13246_v20  ;;  %v8197_v49 = vld [vmem:[#allocation8 + $0x178] sm:$0xf0] }
 0x7e5   :  { %5226 = vmatmul.bf16.gmra.mxu2 %v13247_v15  ;;  %5315 = vmatmul.bf16.gmra.mxu3 %v13248_v58  ;;  %v11812_v56 = vadd.f32 %v5086_v53, %v4998_v48  ;;  %v9334_v15 = vld [vmem:[#allocation8 + $0x16c] sm:$0xf]  ;;  %v4739_v53 = vadd.f32 %v11624_v3, %v11636_v36  ;;  %v4741_v3 = vadd.f32 %v11633_v50, %v11636_v36 }
 0x7e6   :  { %v8200_v48 = vor.u32 %v9334_v15, %v8197_v49 }
 0x7e8   :  { %v4911_v29 = vpop.f32.mrf.mxu2  ;;  %v5000_v6 = vpop.f32.mrf.mxu3  ;;  %5459 = vmatpush.bf16.msrb.mxu1 %v8200_v48 }
 0x7e9   :  { %v4912_v39 = vadd.f32 %v4911_v29, %v4823_v1  ;;  %v4824_v20 = vpop.f32.mrf.mxu1  ;;  %v5091_v4 = vpop.f32.mrf.mxu0  ;;  %v13249_v29 = vld [vmem:[#allocation119_spill] sm:$0xff] }
 0x7ea   :  { %v4825_v60 = vadd.f32 %v4824_v20, %v4736_v32  ;;  %v13251_v32 = vld [vmem:[#allocation120_spill] sm:$0xff] }
 0x7eb   :  { %v5001_v58 = vadd.f32 %v5000_v6, %v4912_v39 }
 0x7ed   :  { %v11816_v37 = vadd.f32 %v5089_v63, %v5001_v58  ;;  %v13252_v63 = vld [vmem:[#allocation121_spill] sm:$0xff] }
 0x7f0   :  { %v4913_v14 = vpop.f32.mrf.mxu2  ;;  %v5002_v51 = vpop.f32.mrf.mxu3 }
 0x7f1   :  { %v4914_v11 = vadd.f32 %v4913_v14, %v4825_v60  ;;  %v4827_v5 = vpop.f32.mrf.mxu1  ;;  %v5094_v43 = vpop.f32.mrf.mxu0  ;;  %v8645_v14 = vld [vmem:[#allocation8 + $0x4f8] sm:$0xf0] }
 0x7f2   :  { %v4828_v1 = vadd.f32 %v4827_v5, %v4739_v53  ;;  %v9446_v53 = vld [vmem:[#allocation8 + $0x4ec] sm:$0xf] }
 0x7f3   :  { %v5003_v16 = vadd.f32 %v5002_v51, %v4914_v11  ;;  %v8648_v11 = vor.u32 %v9446_v53, %v8645_v14  ;;  %v8437_v53 = vld [vmem:[#allocation8 + $0x358] sm:$0xf0] }
 0x7f4   :  { %5142 = vmatmul.bf16.gmra.mxu1 %v13249_v29  ;;  %5409 = vmatmul.bf16.gmra.mxu0 %v13250_v17 }
 0x7f5   :  { %5231 = vmatmul.bf16.gmra.mxu2 %v13251_v32  ;;  %5320 = vmatmul.bf16.gmra.mxu3 %v13252_v63  ;;  %v11824_v49 = vadd.f32 %v5091_v4, %v5003_v16 }
 0x7f6   :  { %5722 = vmatpush.bf16.msrb.mxu0 %v8648_v11 }
 0x7f8   :  { %v4916_v15 = vpop.f32.mrf.mxu2  ;;  %v5005_v58 = vpop.f32.mrf.mxu3 }
 0x7f9   :  { %v4917_v6 = vadd.f32 %v4916_v15, %v4828_v1  ;;  %v4829_v39 = vpop.f32.mrf.mxu1  ;;  %v5096_v20 = vpop.f32.mrf.mxu0  ;;  %v13253_v1 = vld [vmem:[#allocation122_spill] sm:$0xff] }
 0x7fa   :  { %v4830_v60 = vadd.f32 %v4829_v39, %v4741_v3  ;;  %v13254_v15 = vld [vmem:[#allocation22_spill] sm:$0xff]  ;;  %v13255_v3 = vld [vmem:[#allocation123_spill] sm:$0xff]  ;;  %v9394_v39 = vld [vmem:[#allocation8 + $0x34c] sm:$0xf] }
 0x7fb   :  { %v5006_v48 = vadd.f32 %v5005_v58, %v4917_v6  ;;  %v13256_v58 = vld [vmem:[#allocation124_spill] sm:$0xff]  ;;  %v8309_v6 = vld [vmem:[#allocation8 + $0x258] sm:$0xf0]  ;;  %v8440_v14 = vor.u32 %v9394_v39, %v8437_v53  ;;  %v13258_v53 = vld [vmem:[#allocation26_spill] sm:$0xff] }
 0x7fd   :  { %v11828_v51 = vadd.f32 %v5094_v43, %v5006_v48  ;;  %v9362_v43 = vld [vmem:[#allocation8 + $0x24c] sm:$0xf]  ;;  %5638 = vmatpush.bf16.msrb.mxu3 %v8440_v14 }
 0x800   :  { %v4918_v5 = vpop.f32.mrf.mxu2  ;;  %v5007_v17 = vpop.f32.mrf.mxu3 }
 0x801   :  { %v4919_v4 = vadd.f32 %v4918_v5, %v4830_v60  ;;  %v5108_v16 = vpop.f32.mrf.mxu1  ;;  %v11830_v63 = vpop.f32.mrf.mxu0  ;;  %v8312_v60 = vor.u32 %v9362_v43, %v8309_v6 }
 0x802   :  { %v5109_v50 = vadd.f32 %v5108_v16, %v11648_v12 }
 0x803   :  { %v5008_v36 = vadd.f32 %v5007_v17, %v4919_v4  ;;  %5549 = vmatpush.bf16.msrb.mxu2 %v8312_v60  ;;  %v13257_v60 = vld [vmem:[#allocation125_spill] sm:$0xff] }
 0x804   :  { %5147 = vmatmul.bf16.gmra.mxu1 %v13253_v1  ;;  %5414 = vmatmul.bf16.gmra.mxu0 %v13254_v15 }
 0x805   :  { %5236 = vmatmul.bf16.gmra.mxu2 %v13255_v3  ;;  %5325 = vmatmul.bf16.gmra.mxu3 %v13256_v58  ;;  %v11837_v48 = vadd.f32 %v5096_v20, %v5008_v36  ;;  %v9330_v58 = vld [vmem:[#allocation8 + $0x14c] sm:$0xf]  ;;  %v8181_v3 = vld [vmem:[#allocation8 + $0x158] sm:$0xf0] }
 0x806   :  { %v8184_v1 = vor.u32 %v9330_v58, %v8181_v3 }
 0x808   :  { %v5197_v11 = vpop.f32.mrf.mxu2  ;;  %v5286_v5 = vpop.f32.mrf.mxu3  ;;  %5460 = vmatpush.bf16.msrb.mxu1 %v8184_v1 }
 0x809   :  { %v5198_v12 = vadd.f32 %v5197_v11, %v5109_v50  ;;  %v5110_v17 = vpop.f32.mrf.mxu1  ;;  %v11839_v4 = vpop.f32.mrf.mxu0  ;;  %v13259_v11 = vld [vmem:[#allocation126_spill] sm:$0xff] }
 0x80a   :  { %v5111_v16 = vadd.f32 %v5110_v17, %v11656_v26 }
 0x80b   :  { %v5287_v15 = vadd.f32 %v5286_v5, %v5198_v12  ;;  %v13260_v5 = vld [vmem:[#allocation127_spill] sm:$0xff] }
 0x80d   :  { %v6080_v14 = vmax.f32 %v5287_v15, 0.0 }
 0x810   :  { %v5199_v32 = vpop.f32.mrf.mxu2  ;;  %v5288_v20 = vpop.f32.mrf.mxu3 }
 0x811   :  { %v5200_v36 = vadd.f32 %v5199_v32, %v5111_v16  ;;  %v5113_v43 = vpop.f32.mrf.mxu1  ;;  %v11842_v6 = vpop.f32.mrf.mxu0 }
 0x812   :  { %v5114_v39 = vadd.f32 %v5113_v43, %v11660_v57 }
 0x813   :  { %v5289_v50 = vadd.f32 %v5288_v20, %v5200_v36  ;;  %v9442_v20 = vld [vmem:[#allocation8 + $0x4cc] sm:$0xf]  ;;  %v8629_v36 = vld [vmem:[#allocation8 + $0x4d8] sm:$0xf0] }
 0x814   :  { %5152 = vmatmul.bf16.gmra.mxu1 %v13257_v60  ;;  %5419 = vmatmul.bf16.gmra.mxu0 %v13258_v53  ;;  %v8632_v43 = vor.u32 %v9442_v20, %v8629_v36  ;;  %v8293_v20 = vld [vmem:[#allocation8 + $0x238] sm:$0xf0] }
 0x815   :  { %v6084_v26 = vmax.f32 %v5289_v50, 0.0  ;;  %5241 = vmatmul.bf16.gmra.mxu2 %v13259_v11  ;;  %5330 = vmatmul.bf16.gmra.mxu3 %v13260_v5 }
 0x816   :  { %5723 = vmatpush.bf16.msrb.mxu0 %v8632_v43  ;;  %v8421_v43 = vld [vmem:[#allocation8 + $0x338] sm:$0xf0] }
 0x817   :  { %v11849_v3 = vpack.c.bf16 %v6084_v26, %v6080_v14 }
 0x818   :  { %v5202_v1 = vpop.f32.mrf.mxu2  ;;  %v5291_v32 = vpop.f32.mrf.mxu3 }
 0x819   :  { %13261 = vst [vmem:[#allocation73_spill] sm:$0xff] %v11849_v3  ;;  %v5203_v58 = vadd.f32 %v5202_v1, %v5114_v39  ;;  %v5115_v12 = vpop.f32.mrf.mxu1  ;;  %v11851_v17 = vpop.f32.mrf.mxu0  ;;  %v13262_v39 = vld [vmem:[#allocation128_spill] sm:$0xff]  ;;  %v13263_v1 = vld [vmem:[#allocation30_spill] sm:$0xff] }
 0x81a   :  { %v5116_v57 = vadd.f32 %v5115_v12, %v11668_v33  ;;  %v9358_v12 = vld [vmem:[#allocation8 + $0x22c] sm:$0xf] }
 0x81b   :  { %v5292_v16 = vadd.f32 %v5291_v32, %v5203_v58  ;;  %v13264_v32 = vld [vmem:[#allocation129_spill] sm:$0xff]  ;;  %v13265_v58 = vld [vmem:[#allocation130_spill] sm:$0xff]  ;;  %v8296_v36 = vor.u32 %v9358_v12, %v8293_v20 }
 0x81d   :  { %v6088_v3 = vmax.f32 %v5292_v16, 0.0  ;;  %5550 = vmatpush.bf16.msrb.mxu2 %v8296_v36 }
 0x820   :  { %v5204_v15 = vpop.f32.mrf.mxu2  ;;  %v5293_v50 = vpop.f32.mrf.mxu3 }
 0x821   :  { %v5205_v53 = vadd.f32 %v5204_v15, %v5116_v57  ;;  %v5118_v11 = vpop.f32.mrf.mxu1  ;;  %v11854_v5 = vpop.f32.mrf.mxu0  ;;  %v9390_v57 = vld [vmem:[#allocation8 + $0x32c] sm:$0xf] }
 0x822   :  { %v5119_v14 = vadd.f32 %v5118_v11, %v11672_v40  ;;  %v8424_v15 = vor.u32 %v9390_v57, %v8421_v43  ;;  %v13267_v43 = vld [vmem:[#allocation132_spill] sm:$0xff] }
 0x823   :  { %v5294_v26 = vadd.f32 %v5293_v50, %v5205_v53 }
 0x824   :  { %5157 = vmatmul.bf16.gmra.mxu1 %v13262_v39  ;;  %5424 = vmatmul.bf16.gmra.mxu0 %v13263_v1 }
 0x825   :  { %v6092_v33 = vmax.f32 %v5294_v26, 0.0  ;;  %5246 = vmatmul.bf16.gmra.mxu2 %v13264_v32  ;;  %5335 = vmatmul.bf16.gmra.mxu3 %v13265_v58  ;;  %v9326_v58 = vld [vmem:[#allocation8 + $0x12c] sm:$0xf]  ;;  %v8165_v32 = vld [vmem:[#allocation8 + $0x138] sm:$0xf0] }
 0x826   :  { %5639 = vmatpush.bf16.msrb.mxu3 %v8424_v15  ;;  %v8168_v39 = vor.u32 %v9326_v58, %v8165_v32 }
 0x827   :  { %v11861_v60 = vpack.c.bf16 %v6092_v33, %v6088_v3 }
 0x828   :  { %v5207_v40 = vpop.f32.mrf.mxu2  ;;  %v5296_v11 = vpop.f32.mrf.mxu3  ;;  %5461 = vmatpush.bf16.msrb.mxu1 %v8168_v39 }
 0x829   :  { %13266 = vst [vmem:[#allocation81_spill] sm:$0xff] %v11861_v60  ;;  %v5208_v50 = vadd.f32 %v5207_v40, %v5119_v14  ;;  %v5120_v53 = vpop.f32.mrf.mxu1  ;;  %v11863_v1 = vpop.f32.mrf.mxu0  ;;  %v13268_v40 = vld [vmem:[#allocation34_spill] sm:$0xff] }
 0x82a   :  { %v5121_v16 = vadd.f32 %v5120_v53, %v11680_v45 }
 0x82b   :  { %v5297_v26 = vadd.f32 %v5296_v11, %v5208_v50  ;;  %v13269_v11 = vld [vmem:[#allocation134_spill] sm:$0xff]  ;;  %v13270_v50 = vld [vmem:[#allocation135_spill] sm:$0xff] }
 0x82d   :  { %v6096_v15 = vmax.f32 %v5297_v26, 0.0 }
 0x830   :  { %v5209_v12 = vpop.f32.mrf.mxu2  ;;  %v5298_v20 = vpop.f32.mrf.mxu3 }
 0x831   :  { %v5210_v57 = vadd.f32 %v5209_v12, %v5121_v16  ;;  %v5123_v3 = vpop.f32.mrf.mxu1  ;;  %v11866_v33 = vpop.f32.mrf.mxu0 }
 0x832   :  { %v5124_v36 = vadd.f32 %v5123_v3, %v11684_v28  ;;  %v8613_v3 = vld [vmem:[#allocation8 + $0x4b8] sm:$0xf0] }
 0x833   :  { %v5299_v14 = vadd.f32 %v5298_v20, %v5210_v57  ;;  %v9438_v57 = vld [vmem:[#allocation8 + $0x4ac] sm:$0xf] }
 0x834   :  { %5162 = vmatmul.bf16.gmra.mxu1 %v13267_v43  ;;  %5429 = vmatmul.bf16.gmra.mxu0 %v13268_v40  ;;  %v8616_v40 = vor.u32 %v9438_v57, %v8613_v3  ;;  %v8277_v57 = vld [vmem:[#allocation8 + $0x218] sm:$0xf0] }
 0x835   :  { %v6100_v45 = vmax.f32 %v5299_v14, 0.0  ;;  %5251 = vmatmul.bf16.gmra.mxu2 %v13269_v11  ;;  %5340 = vmatmul.bf16.gmra.mxu3 %v13270_v50 }
 0x836   :  { %5724 = vmatpush.bf16.msrb.mxu0 %v8616_v40  ;;  %v8405_v40 = vld [vmem:[#allocation8 + $0x318] sm:$0xf0] }
 0x837   :  { %v11873_v32 = vpack.c.bf16 %v6100_v45, %v6096_v15 }
 0x838   :  { %v5212_v39 = vpop.f32.mrf.mxu2  ;;  %v5301_v58 = vpop.f32.mrf.mxu3 }
 0x839   :  { %13271 = vst [vmem:[#allocation20_spill] sm:$0xff] %v11873_v32  ;;  %v5213_v53 = vadd.f32 %v5212_v39, %v5124_v36  ;;  %v5125_v16 = vpop.f32.mrf.mxu1  ;;  %v11875_v12 = vpop.f32.mrf.mxu0  ;;  %v13272_v36 = vld [vmem:[#allocation137_spill] sm:$0xff]  ;;  %v13273_v39 = vld [vmem:[#allocation23_spill] sm:$0xff] }
 0x83a   :  { %v5126_v28 = vadd.f32 %v5125_v16, %v11692_v19  ;;  %v9354_v16 = vld [vmem:[#allocation8 + $0x20c] sm:$0xf] }
 0x83b   :  { %v5302_v20 = vadd.f32 %v5301_v58, %v5213_v53  ;;  %v13274_v58 = vld [vmem:[#allocation138_spill] sm:$0xff]  ;;  %v13275_v53 = vld [vmem:[#allocation139_spill] sm:$0xff]  ;;  %v8280_v3 = vor.u32 %v9354_v16, %v8277_v57  ;;  %v9434_v16 = vld [vmem:[#allocation8 + $0x48c] sm:$0xf] }
 0x83c   :  { %v8597_v57 = vld [vmem:[#allocation8 + $0x498] sm:$0xf0] }
 0x83d   :  { %v6104_v32 = vmax.f32 %v5302_v20, 0.0  ;;  %5551 = vmatpush.bf16.msrb.mxu2 %v8280_v3 }
 0x840   :  { %v5214_v26 = vpop.f32.mrf.mxu2  ;;  %v5303_v14 = vpop.f32.mrf.mxu3 }
 0x841   :  { %v5215_v60 = vadd.f32 %v5214_v26, %v5126_v28  ;;  %v5128_v11 = vpop.f32.mrf.mxu1  ;;  %v11878_v50 = vpop.f32.mrf.mxu0  ;;  %v9386_v28 = vld [vmem:[#allocation8 + $0x30c] sm:$0xf] }
 0x842   :  { %v5129_v15 = vadd.f32 %v5128_v11, %v11696_v44  ;;  %v8408_v26 = vor.u32 %v9386_v28, %v8405_v40 }
 0x843   :  { %v5304_v45 = vadd.f32 %v5303_v14, %v5215_v60 }
 0x844   :  { %5167 = vmatmul.bf16.gmra.mxu1 %v13272_v36  ;;  %5434 = vmatmul.bf16.gmra.mxu0 %v13273_v39 }
 0x845   :  { %v6108_v19 = vmax.f32 %v5304_v45, 0.0  ;;  %5256 = vmatmul.bf16.gmra.mxu2 %v13274_v58  ;;  %5345 = vmatmul.bf16.gmra.mxu3 %v13275_v53  ;;  %v9322_v53 = vld [vmem:[#allocation8 + $0x10c] sm:$0xf]  ;;  %v8149_v58 = vld [vmem:[#allocation8 + $0x118] sm:$0xf0] }
 0x846   :  { %5640 = vmatpush.bf16.msrb.mxu3 %v8408_v26  ;;  %v8152_v36 = vor.u32 %v9322_v53, %v8149_v58 }
 0x847   :  { %v11885_v43 = vpack.c.bf16 %v6108_v19, %v6104_v32  ;;  %v8600_v32 = vor.u32 %v9434_v16, %v8597_v57 }
 0x848   :  { %v5217_v44 = vpop.f32.mrf.mxu2  ;;  %v5306_v60 = vpop.f32.mrf.mxu3  ;;  %5462 = vmatpush.bf16.msrb.mxu1 %v8152_v36  ;;  %v13280_v36 = vld [vmem:[#allocation143_spill] sm:$0xff] }
 0x849   :  { %13276 = vst [vmem:[#allocation24_spill] sm:$0xff] %v11885_v43  ;;  %v5218_v11 = vadd.f32 %v5217_v44, %v5129_v15  ;;  %v5130_v14 = vpop.f32.mrf.mxu1  ;;  %v11887_v39 = vpop.f32.mrf.mxu0  ;;  %5725 = vmatpush.bf16.msrb.mxu0 %v8600_v32  ;;  %v9430_v44 = vld [vmem:[#allocation8 + $0x46c] sm:$0xf]  ;;  %v13279_v43 = vld [vmem:[#allocation142_spill] sm:$0xff] }
 0x84a   :  { %v5131_v20 = vadd.f32 %v5130_v14, %v11704_v23  ;;  %v8581_v23 = vld [vmem:[#allocation8 + $0x478] sm:$0xf0] }
 0x84b   :  { %v5307_v45 = vadd.f32 %v5306_v60, %v5218_v11  ;;  %v13277_v60 = vld [vmem:[#allocation140_spill] sm:$0xff]  ;;  %v13278_v11 = vld [vmem:[#allocation27_spill] sm:$0xff]  ;;  %v8584_v58 = vor.u32 %v9430_v44, %v8581_v23 }
 0x84c   :  { %v8549_v23 = vld [vmem:[#allocation8 + $0x438] sm:$0xf0] }
 0x84d   :  { %v6112_v53 = vmax.f32 %v5307_v45, 0.0  ;;  %5726 = vmatpush.bf16.msrb.mxu0 %v8584_v58  ;;  %v9418_v58 = vld [vmem:[#allocation8 + $0x40c] sm:$0xf] }
 0x850   :  { %v5219_v29 = vpop.f32.mrf.mxu2  ;;  %v5308_v28 = vpop.f32.mrf.mxu3 }
 0x851   :  { %v5220_v19 = vadd.f32 %v5219_v29, %v5131_v20  ;;  %v5133_v40 = vpop.f32.mrf.mxu1  ;;  %v11890_v3 = vpop.f32.mrf.mxu0  ;;  %v9426_v29 = vld [vmem:[#allocation8 + $0x44c] sm:$0xf]  ;;  %v8565_v20 = vld [vmem:[#allocation8 + $0x458] sm:$0xf0] }
 0x852   :  { %v5134_v15 = vadd.f32 %v5133_v40, %v11708_v25 }
 0x853   :  { %v5309_v26 = vadd.f32 %v5308_v28, %v5220_v19  ;;  %v8568_v28 = vor.u32 %v9426_v29, %v8565_v20 }
 0x854   :  { %5172 = vmatmul.bf16.gmra.mxu1 %v13277_v60  ;;  %5439 = vmatmul.bf16.gmra.mxu0 %v13278_v11 }
 0x855   :  { %v6116_v14 = vmax.f32 %v5309_v26, 0.0  ;;  %5261 = vmatmul.bf16.gmra.mxu2 %v13279_v43  ;;  %5350 = vmatmul.bf16.gmra.mxu3 %v13280_v36  ;;  %v9422_v26 = vld [vmem:[#allocation8 + $0x42c] sm:$0xf]  ;;  %v8533_v36 = vld [vmem:[#allocation8 + $0x418] sm:$0xf0] }
 0x856   :  { %5727 = vmatpush.bf16.msrb.mxu0 %v8568_v28  ;;  %v8552_v11 = vor.u32 %v9422_v26, %v8549_v23  ;;  %v13283_v28 = vld [vmem:[#allocation147_spill] sm:$0xff] }
 0x857   :  { %v11897_v16 = vpack.c.bf16 %v6116_v14, %v6112_v53  ;;  %v8536_v14 = vor.u32 %v9418_v58, %v8533_v36  ;;  %v8901_v36 = vld [vmem:[#allocation8 + $0x6f8] sm:$0xf0] }
 0x858   :  { %v5222_v25 = vpop.f32.mrf.mxu2  ;;  %v5311_v57 = vpop.f32.mrf.mxu3 }
 0x859   :  { %13281 = vst [vmem:[#allocation28_spill] sm:$0xff] %v11897_v16  ;;  %v5223_v32 = vadd.f32 %v5222_v25, %v5134_v15  ;;  %v5135_v19 = vpop.f32.mrf.mxu1  ;;  %v11899_v40 = vpop.f32.mrf.mxu0 }
 0x85a   :  { %v5136_v44 = vadd.f32 %v5135_v19, %v11716_v10  ;;  %5728 = vmatpush.bf16.msrb.mxu0 %v8552_v11  ;;  %v9542_v19 = vld [vmem:[#allocation8 + $0x7ec] sm:$0xf] }
 0x85b   :  { %v5312_v45 = vadd.f32 %v5311_v57, %v5223_v32  ;;  %v13282_v57 = vld [vmem:[#allocation146_spill] sm:$0xff]  ;;  %v9510_v32 = vld [vmem:[#allocation8 + $0x6ec] sm:$0xf] }
 0x85d   :  { %v6120_v10 = vmax.f32 %v5312_v45, 0.0 }
 0x85e   :  { %5729 = vmatpush.bf16.msrb.mxu0 %v8536_v14  ;;  %v8773_v14 = vld [vmem:[#allocation8 + $0x5f8] sm:$0xf0] }
 0x860   :  { %v5224_v43 = vpop.f32.mrf.mxu2  ;;  %v5313_v53 = vpop.f32.mrf.mxu3 }
 0x861   :  { %v5225_v16 = vadd.f32 %v5224_v43, %v5136_v44  ;;  %v5138_v60 = vpop.f32.mrf.mxu1  ;;  %v11902_v29 = vpop.f32.mrf.mxu0  ;;  %v8904_v43 = vor.u32 %v9510_v32, %v8901_v36  ;;  %v9029_v44 = vld [vmem:[#allocation8 + $0x7f8] sm:$0xf0] }
 0x862   :  { %v5139_v15 = vadd.f32 %v5138_v60, %v11720_v31  ;;  %v9032_v26 = vor.u32 %v9542_v19, %v9029_v44 }
 0x863   :  { %v5314_v20 = vadd.f32 %v5313_v53, %v5225_v16  ;;  %5900 = vmatpush.bf16.msra.mxu2 %v8904_v43  ;;  %v9478_v53 = vld [vmem:[#allocation8 + $0x5ec] sm:$0xf] }
 0x864   :  { %5177 = vmatmul.bf16.gmra.mxu1 %v13016_v13  ;;  %5444 = vmatmul.bf16.gmra.mxu0 %v13149_v7 }
 0x865   :  { %v6124_v25 = vmax.f32 %v5314_v20, 0.0  ;;  %5266 = vmatmul.bf16.gmra.mxu2 %v13282_v57  ;;  %5355 = vmatmul.bf16.gmra.mxu3 %v13283_v28  ;;  %v8776_v20 = vor.u32 %v9478_v53, %v8773_v14 }
 0x866   :  { %5989 = vmatpush.bf16.msra.mxu3 %v9032_v26  ;;  %v13285_v26 = vld [vmem:[#allocation148_spill] sm:$0xff] }
 0x867   :  { %v11909_v23 = vpack.c.bf16 %v6124_v25, %v6120_v10  ;;  %5811 = vmatpush.bf16.msra.mxu1 %v8776_v20 }
 0x868   :  { %v5227_v31 = vpop.f32.mrf.mxu2  ;;  %v5316_v60 = vpop.f32.mrf.mxu3 }
 0x869   :  { %13284 = vst [vmem:[#allocation32_spill] sm:$0xff] %v11909_v23  ;;  %v5228_v16 = vadd.f32 %v5227_v31, %v5139_v15  ;;  %v5140_v11 = vpop.f32.mrf.mxu1  ;;  %v11911_v7 = vpop.f32.mrf.mxu0  ;;  %v13286_v31 = vld [vmem:[#allocation149_spill] sm:$0xff]  ;;  %v13291_v23 = vld [vmem:[#allocation39_spill] sm:$0xff] }
 0x86a   :  { %v5141_v45 = vadd.f32 %v5140_v11, %v11728_v54 }
 0x86b   :  { %v5317_v58 = vadd.f32 %v5316_v60, %v5228_v16 }
 0x86d   :  { %v6128_v44 = vmax.f32 %v5317_v58, 0.0 }
 0x870   :  { %v5229_v32 = vpop.f32.mrf.mxu2  ;;  %v5318_v36 = vpop.f32.mrf.mxu3 }
 0x871   :  { %v5230_v19 = vadd.f32 %v5229_v32, %v5141_v45  ;;  %v5143_v10 = vpop.f32.mrf.mxu1  ;;  %v11914_v25 = vpop.f32.mrf.mxu0 }
 0x872   :  { %v5144_v43 = vadd.f32 %v5143_v10, %v11732_v24 }
 0x873   :  { %v5319_v15 = vadd.f32 %v5318_v36, %v5230_v19 }
 0x874   :  { %5182 = vmatmul.bf16.gmra.mxu1 %v10858_v22  ;;  %5449 = vmatmul.bf16.gmra.mxu0 %v13021_v61 }
 0x875   :  { %v6132_v54 = vmax.f32 %v5319_v15, 0.0  ;;  %5271 = vmatmul.bf16.gmra.mxu2 %v13285_v26  ;;  %5360 = vmatmul.bf16.gmra.mxu3 %v13286_v31  ;;  %v8949_v26 = vld [vmem:[#allocation8 + $0x758] sm:$0xf0] }
 0x877   :  { %v11921_v60 = vpack.c.bf16 %v6132_v54, %v6128_v44  ;;  %v13288_v44 = vld [vmem:[#allocation36_spill] sm:$0xff]  ;;  %v13289_v54 = vld [vmem:[#allocation37_spill] sm:$0xff] }
 0x878   :  { %v5232_v16 = vpop.f32.mrf.mxu2  ;;  %v5321_v11 = vpop.f32.mrf.mxu3 }
 0x879   :  { %13287 = vst [vmem:[#allocation21_spill] sm:$0xff] %v11921_v60  ;;  %v5233_v45 = vadd.f32 %v5232_v16, %v5144_v43  ;;  %v5145_v53 = vpop.f32.mrf.mxu1  ;;  %v11923_v14 = vpop.f32.mrf.mxu0  ;;  %v13290_v60 = vld [vmem:[#allocation38_spill] sm:$0xff] }
 0x87a   :  { %v5146_v24 = vadd.f32 %v5145_v53, %v11740_v2  ;;  %v9506_v2 = vld [vmem:[#allocation8 + $0x6cc] sm:$0xf] }
 0x87b   :  { %v5322_v20 = vadd.f32 %v5321_v11, %v5233_v45  ;;  %v8885_v11 = vld [vmem:[#allocation8 + $0x6d8] sm:$0xf0]  ;;  %v9538_v53 = vld [vmem:[#allocation8 + $0x7cc] sm:$0xf] }
 0x87c   :  { %v8888_v45 = vor.u32 %v9506_v2, %v8885_v11 }
 0x87d   :  { %v6136_v43 = vmax.f32 %v5322_v20, 0.0 }
 0x87e   :  { %5901 = vmatpush.bf16.msra.mxu2 %v8888_v45 }
 0x880   :  { %v5234_v32 = vpop.f32.mrf.mxu2  ;;  %v5323_v36 = vpop.f32.mrf.mxu3 }
 0x881   :  { %v5235_v61 = vadd.f32 %v5234_v32, %v5146_v24  ;;  %v5148_v58 = vpop.f32.mrf.mxu1  ;;  %v11926_v19 = vpop.f32.mrf.mxu0  ;;  %v9013_v24 = vld [vmem:[#allocation8 + $0x7d8] sm:$0xf0] }
 0x882   :  { %v5149_v10 = vadd.f32 %v5148_v58, %v11744_v21  ;;  %v9016_v32 = vor.u32 %v9538_v53, %v9013_v24  ;;  %v13293_v24 = vld [vmem:[#allocation40_spill] sm:$0xff] }
 0x883   :  { %v5324_v15 = vadd.f32 %v5323_v36, %v5235_v61 }
 0x884   :  { %5463 = vmatmul.bf16.vlgmr.msrb.gmra.mxu1 %v13288_v44  ;;  %5730 = vmatmul.bf16.vlgmr.msrb.gmra.mxu0 %v13289_v54 }
 0x885   :  { %v6140_v16 = vmax.f32 %v5324_v15, 0.0  ;;  %5552 = vmatmul.bf16.vlgmr.msrb.gmra.mxu2 %v13290_v60  ;;  %5641 = vmatmul.bf16.vlgmr.msrb.gmra.mxu3 %v13291_v23  ;;  %v9474_v23 = vld [vmem:[#allocation8 + $0x5cc] sm:$0xf]  ;;  %v8757_v15 = vld [vmem:[#allocation8 + $0x5d8] sm:$0xf0] }
 0x886   :  { %5990 = vmatpush.bf16.msra.mxu3 %v9016_v32  ;;  %v8760_v54 = vor.u32 %v9474_v23, %v8757_v15 }
 0x887   :  { %v11933_v31 = vpack.c.bf16 %v6140_v16, %v6136_v43 }
 0x888   :  { %v5237_v21 = vpop.f32.mrf.mxu2  ;;  %v5326_v36 = vpop.f32.mrf.mxu3  ;;  %5812 = vmatpush.bf16.msra.mxu1 %v8760_v54 }
 0x889   :  { %13292 = vst [vmem:[#allocation25_spill] sm:$0xff] %v11933_v31  ;;  %v5238_v61 = vadd.f32 %v5237_v21, %v5149_v10  ;;  %v5150_v58 = vpop.f32.mrf.mxu1  ;;  %v11935_v44 = vpop.f32.mrf.mxu0  ;;  %v13294_v21 = vld [vmem:[#allocation41_spill] sm:$0xff] }
 0x88a   :  { %v5151_v60 = vadd.f32 %v5150_v58, %v11752_v46 }
 0x88b   :  { %v5327_v20 = vadd.f32 %v5326_v36, %v5238_v61  ;;  %v13295_v36 = vld [vmem:[#allocation42_spill] sm:$0xff]  ;;  %v13296_v61 = vld [vmem:[#allocation43_spill] sm:$0xff] }
 0x88d   :  { %v6144_v32 = vmax.f32 %v5327_v20, 0.0 }
 0x890   :  { %v5239_v2 = vpop.f32.mrf.mxu2  ;;  %v5328_v11 = vpop.f32.mrf.mxu3 }
 0x891   :  { %v5240_v53 = vadd.f32 %v5239_v2, %v5151_v60  ;;  %v5153_v43 = vpop.f32.mrf.mxu1  ;;  %v11938_v16 = vpop.f32.mrf.mxu0 }
 0x892   :  { %v5154_v45 = vadd.f32 %v5153_v43, %v11756_v38 }
 0x893   :  { %v5329_v10 = vadd.f32 %v5328_v11, %v5240_v53 }
 0x894   :  { %5468 = vmatmul.bf16.gmra.mxu1 %v13293_v24  ;;  %5735 = vmatmul.bf16.gmra.mxu0 %v13294_v21 }
 0x895   :  { %v6148_v46 = vmax.f32 %v5329_v10, 0.0  ;;  %5557 = vmatmul.bf16.gmra.mxu2 %v13295_v36  ;;  %5646 = vmatmul.bf16.gmra.mxu3 %v13296_v61 }
 0x897   :  { %v11945_v58 = vpack.c.bf16 %v6148_v46, %v6144_v32  ;;  %v13298_v32 = vld [vmem:[#allocation44_spill] sm:$0xff]  ;;  %v13299_v46 = vld [vmem:[#allocation45_spill] sm:$0xff] }
 0x898   :  { %v5242_v23 = vpop.f32.mrf.mxu2  ;;  %v5331_v60 = vpop.f32.mrf.mxu3 }
 0x899   :  { %13297 = vst [vmem:[#allocation29_spill] sm:$0xff] %v11945_v58  ;;  %v5243_v15 = vadd.f32 %v5242_v23, %v5154_v45  ;;  %v5155_v54 = vpop.f32.mrf.mxu1  ;;  %v11947_v2 = vpop.f32.mrf.mxu0  ;;  %v13300_v23 = vld [vmem:[#allocation46_spill] sm:$0xff]  ;;  %v13301_v58 = vld [vmem:[#allocation47_spill] sm:$0xff] }
 0x89a   :  { %v5156_v38 = vadd.f32 %v5155_v54, %v11764_v34  ;;  %v9502_v34 = vld [vmem:[#allocation8 + $0x6ac] sm:$0xf] }
 0x89b   :  { %v5332_v11 = vadd.f32 %v5331_v60, %v5243_v15  ;;  %v8869_v60 = vld [vmem:[#allocation8 + $0x6b8] sm:$0xf0]  ;;  %v9534_v54 = vld [vmem:[#allocation8 + $0x7ac] sm:$0xf] }
 0x89c   :  { %v8872_v15 = vor.u32 %v9502_v34, %v8869_v60 }
 0x89d   :  { %v6152_v45 = vmax.f32 %v5332_v11, 0.0 }
 0x89e   :  { %5902 = vmatpush.bf16.msra.mxu2 %v8872_v15 }
 0x8a0   :  { %v5244_v53 = vpop.f32.mrf.mxu2  ;;  %v5333_v43 = vpop.f32.mrf.mxu3 }
 0x8a1   :  { %v5245_v24 = vadd.f32 %v5244_v53, %v5156_v38  ;;  %v5158_v20 = vpop.f32.mrf.mxu1  ;;  %v11950_v10 = vpop.f32.mrf.mxu0  ;;  %v8997_v38 = vld [vmem:[#allocation8 + $0x7b8] sm:$0xf0] }
 0x8a2   :  { %v5159_v21 = vadd.f32 %v5158_v20, %v11768_v62  ;;  %v9000_v53 = vor.u32 %v9534_v54, %v8997_v38  ;;  %v13303_v38 = vld [vmem:[#allocation48_spill] sm:$0xff] }
 0x8a3   :  { %v5334_v36 = vadd.f32 %v5333_v43, %v5245_v24 }
 0x8a4   :  { %5473 = vmatmul.bf16.gmra.mxu1 %v13298_v32  ;;  %5740 = vmatmul.bf16.gmra.mxu0 %v13299_v46  ;;  %v8741_v46 = vld [vmem:[#allocation8 + $0x5b8] sm:$0xf0] }
 0x8a5   :  { %v6156_v61 = vmax.f32 %v5334_v36, 0.0  ;;  %5562 = vmatmul.bf16.gmra.mxu2 %v13300_v23  ;;  %5651 = vmatmul.bf16.gmra.mxu3 %v13301_v58  ;;  %v9470_v58 = vld [vmem:[#allocation8 + $0x5ac] sm:$0xf] }
 0x8a6   :  { %5991 = vmatpush.bf16.msra.mxu3 %v9000_v53  ;;  %v8744_v23 = vor.u32 %v9470_v58, %v8741_v46 }
 0x8a7   :  { %v11957_v31 = vpack.c.bf16 %v6156_v61, %v6152_v45 }
 0x8a8   :  { %v5247_v62 = vpop.f32.mrf.mxu2  ;;  %v5336_v43 = vpop.f32.mrf.mxu3  ;;  %5813 = vmatpush.bf16.msra.mxu1 %v8744_v23 }
 0x8a9   :  { %13302 = vst [vmem:[#allocation33_spill] sm:$0xff] %v11957_v31  ;;  %v5248_v24 = vadd.f32 %v5247_v62, %v5159_v21  ;;  %v5160_v20 = vpop.f32.mrf.mxu1  ;;  %v11959_v32 = vpop.f32.mrf.mxu0  ;;  %v13304_v62 = vld [vmem:[#allocation49_spill] sm:$0xff] }
 0x8aa   :  { %v5161_v11 = vadd.f32 %v5160_v20, %v11776_v9 }
 0x8ab   :  { %v5337_v36 = vadd.f32 %v5336_v43, %v5248_v24  ;;  %v13305_v43 = vld [vmem:[#allocation50_spill] sm:$0xff]  ;;  %v13306_v24 = vld [vmem:[#allocation51_spill] sm:$0xff] }
 0x8ad   :  { %v6160_v53 = vmax.f32 %v5337_v36, 0.0 }
 0x8b0   :  { %v5249_v34 = vpop.f32.mrf.mxu2  ;;  %v5338_v60 = vpop.f32.mrf.mxu3 }
 0x8b1   :  { %v5250_v54 = vadd.f32 %v5249_v34, %v5161_v11  ;;  %v5163_v45 = vpop.f32.mrf.mxu1  ;;  %v11962_v61 = vpop.f32.mrf.mxu0 }
 0x8b2   :  { %v5164_v15 = vadd.f32 %v5163_v45, %v11780_v59 }
 0x8b3   :  { %v5339_v21 = vadd.f32 %v5338_v60, %v5250_v54 }
 0x8b4   :  { %5478 = vmatmul.bf16.gmra.mxu1 %v13303_v38  ;;  %5745 = vmatmul.bf16.gmra.mxu0 %v13304_v62 }
 0x8b5   :  { %v6164_v9 = vmax.f32 %v5339_v21, 0.0  ;;  %5567 = vmatmul.bf16.gmra.mxu2 %v13305_v43  ;;  %5656 = vmatmul.bf16.gmra.mxu3 %v13306_v24 }
 0x8b7   :  { %v11969_v20 = vpack.c.bf16 %v6164_v9, %v6160_v53  ;;  %v13308_v53 = vld [vmem:[#allocation52_spill] sm:$0xff]  ;;  %v13309_v9 = vld [vmem:[#allocation53_spill] sm:$0xff] }
 0x8b8   :  { %v5252_v58 = vpop.f32.mrf.mxu2  ;;  %v5341_v11 = vpop.f32.mrf.mxu3 }
 0x8b9   :  { %13307 = vst [vmem:[#allocation22_spill] sm:$0xff] %v11969_v20  ;;  %v5253_v46 = vadd.f32 %v5252_v58, %v5164_v15  ;;  %v5165_v23 = vpop.f32.mrf.mxu1  ;;  %v11971_v34 = vpop.f32.mrf.mxu0  ;;  %v13310_v58 = vld [vmem:[#allocation54_spill] sm:$0xff]  ;;  %v13311_v20 = vld [vmem:[#allocation55_spill] sm:$0xff] }
 0x8ba   :  { %v5166_v59 = vadd.f32 %v5165_v23, %v11788_v52  ;;  %v9498_v52 = vld [vmem:[#allocation8 + $0x68c] sm:$0xf] }
 0x8bb   :  { %v5342_v60 = vadd.f32 %v5341_v11, %v5253_v46  ;;  %v8853_v11 = vld [vmem:[#allocation8 + $0x698] sm:$0xf0]  ;;  %v9530_v23 = vld [vmem:[#allocation8 + $0x78c] sm:$0xf] }
 0x8bc   :  { %v8856_v46 = vor.u32 %v9498_v52, %v8853_v11 }
 0x8bd   :  { %v6168_v15 = vmax.f32 %v5342_v60, 0.0 }
 0x8be   :  { %5903 = vmatpush.bf16.msra.mxu2 %v8856_v46 }
 0x8c0   :  { %v5254_v54 = vpop.f32.mrf.mxu2  ;;  %v5343_v45 = vpop.f32.mrf.mxu3 }
 0x8c1   :  { %v5255_v38 = vadd.f32 %v5254_v54, %v5166_v59  ;;  %v5168_v36 = vpop.f32.mrf.mxu1  ;;  %v11974_v21 = vpop.f32.mrf.mxu0  ;;  %v8981_v59 = vld [vmem:[#allocation8 + $0x798] sm:$0xf0] }
 0x8c2   :  { %v5169_v62 = vadd.f32 %v5168_v36, %v11792_v47  ;;  %v8984_v54 = vor.u32 %v9530_v23, %v8981_v59  ;;  %v13313_v59 = vld [vmem:[#allocation56_spill] sm:$0xff] }
 0x8c3   :  { %v5344_v43 = vadd.f32 %v5343_v45, %v5255_v38 }
 0x8c4   :  { %5483 = vmatmul.bf16.gmra.mxu1 %v13308_v53  ;;  %5750 = vmatmul.bf16.gmra.mxu0 %v13309_v9  ;;  %v8725_v9 = vld [vmem:[#allocation8 + $0x598] sm:$0xf0] }
 0x8c5   :  { %v6172_v24 = vmax.f32 %v5344_v43, 0.0  ;;  %5572 = vmatmul.bf16.gmra.mxu2 %v13310_v58  ;;  %5661 = vmatmul.bf16.gmra.mxu3 %v13311_v20  ;;  %v9466_v20 = vld [vmem:[#allocation8 + $0x58c] sm:$0xf] }
 0x8c6   :  { %5992 = vmatpush.bf16.msra.mxu3 %v8984_v54  ;;  %v8728_v58 = vor.u32 %v9466_v20, %v8725_v9 }
 0x8c7   :  { %v11981_v31 = vpack.c.bf16 %v6172_v24, %v6168_v15 }
 0x8c8   :  { %v5257_v47 = vpop.f32.mrf.mxu2  ;;  %v5346_v45 = vpop.f32.mrf.mxu3  ;;  %5814 = vmatpush.bf16.msra.mxu1 %v8728_v58 }
 0x8c9   :  { %13312 = vst [vmem:[#allocation26_spill] sm:$0xff] %v11981_v31  ;;  %v5258_v38 = vadd.f32 %v5257_v47, %v5169_v62  ;;  %v5170_v36 = vpop.f32.mrf.mxu1  ;;  %v11983_v53 = vpop.f32.mrf.mxu0  ;;  %v13314_v47 = vld [vmem:[#allocation57_spill] sm:$0xff] }
 0x8ca   :  { %v5171_v60 = vadd.f32 %v5170_v36, %v11800_v30 }
 0x8cb   :  { %v5347_v43 = vadd.f32 %v5346_v45, %v5258_v38  ;;  %v13315_v45 = vld [vmem:[#allocation58_spill] sm:$0xff]  ;;  %v13316_v38 = vld [vmem:[#allocation59_spill] sm:$0xff] }
 0x8cd   :  { %v6176_v54 = vmax.f32 %v5347_v43, 0.0 }
 0x8d0   :  { %v5259_v52 = vpop.f32.mrf.mxu2  ;;  %v5348_v11 = vpop.f32.mrf.mxu3 }
 0x8d1   :  { %v5260_v23 = vadd.f32 %v5259_v52, %v5171_v60  ;;  %v5173_v15 = vpop.f32.mrf.mxu1  ;;  %v11986_v24 = vpop.f32.mrf.mxu0 }
 0x8d2   :  { %v5174_v46 = vadd.f32 %v5173_v15, %v11804_v8 }
 0x8d3   :  { %v5349_v62 = vadd.f32 %v5348_v11, %v5260_v23 }
 0x8d4   :  { %5488 = vmatmul.bf16.gmra.mxu1 %v13313_v59  ;;  %5755 = vmatmul.bf16.gmra.mxu0 %v13314_v47 }
 0x8d5   :  { %v6180_v30 = vmax.f32 %v5349_v62, 0.0  ;;  %5577 = vmatmul.bf16.gmra.mxu2 %v13315_v45  ;;  %5666 = vmatmul.bf16.gmra.mxu3 %v13316_v38 }
 0x8d7   :  { %v11993_v36 = vpack.c.bf16 %v6180_v30, %v6176_v54  ;;  %v13318_v54 = vld [vmem:[#allocation60_spill] sm:$0xff]  ;;  %v13319_v30 = vld [vmem:[#allocation61_spill] sm:$0xff] }
 0x8d8   :  { %v5262_v20 = vpop.f32.mrf.mxu2  ;;  %v5351_v60 = vpop.f32.mrf.mxu3 }
 0x8d9   :  { %13317 = vst [vmem:[#allocation30_spill] sm:$0xff] %v11993_v36  ;;  %v5263_v9 = vadd.f32 %v5262_v20, %v5174_v46  ;;  %v5175_v58 = vpop.f32.mrf.mxu1  ;;  %v11995_v52 = vpop.f32.mrf.mxu0  ;;  %v13320_v20 = vld [vmem:[#allocation62_spill] sm:$0xff]  ;;  %v13321_v36 = vld [vmem:[#allocation63_spill] sm:$0xff] }
 0x8da   :  { %v5176_v8 = vadd.f32 %v5175_v58, %v11812_v56  ;;  %v9494_v56 = vld [vmem:[#allocation8 + $0x66c] sm:$0xf] }
 0x8db   :  { %v5352_v11 = vadd.f32 %v5351_v60, %v5263_v9  ;;  %v8837_v60 = vld [vmem:[#allocation8 + $0x678] sm:$0xf0]  ;;  %v9526_v58 = vld [vmem:[#allocation8 + $0x76c] sm:$0xf] }
 0x8dc   :  { %v8840_v9 = vor.u32 %v9494_v56, %v8837_v60 }
 0x8dd   :  { %v6184_v46 = vmax.f32 %v5352_v11, 0.0 }
 0x8de   :  { %5904 = vmatpush.bf16.msra.mxu2 %v8840_v9 }
 0x8e0   :  { %v5264_v23 = vpop.f32.mrf.mxu2  ;;  %v5353_v15 = vpop.f32.mrf.mxu3 }
 0x8e1   :  { %v5265_v59 = vadd.f32 %v5264_v23, %v5176_v8  ;;  %v5178_v43 = vpop.f32.mrf.mxu1  ;;  %v11998_v62 = vpop.f32.mrf.mxu0  ;;  %v8965_v8 = vld [vmem:[#allocation8 + $0x778] sm:$0xf0] }
 0x8e2   :  { %v5179_v47 = vadd.f32 %v5178_v43, %v11816_v37  ;;  %v8968_v23 = vor.u32 %v9526_v58, %v8965_v8  ;;  %v13323_v8 = vld [vmem:[#allocation64_spill] sm:$0xff] }
 0x8e3   :  { %v5354_v45 = vadd.f32 %v5353_v15, %v5265_v59 }
 0x8e4   :  { %5493 = vmatmul.bf16.gmra.mxu1 %v13318_v54  ;;  %5760 = vmatmul.bf16.gmra.mxu0 %v13319_v30  ;;  %v8709_v30 = vld [vmem:[#allocation8 + $0x578] sm:$0xf0] }
 0x8e5   :  { %v6188_v38 = vmax.f32 %v5354_v45, 0.0  ;;  %5582 = vmatmul.bf16.gmra.mxu2 %v13320_v20  ;;  %5671 = vmatmul.bf16.gmra.mxu3 %v13321_v36  ;;  %v9462_v36 = vld [vmem:[#allocation8 + $0x56c] sm:$0xf] }
 0x8e6   :  { %5993 = vmatpush.bf16.msra.mxu3 %v8968_v23  ;;  %v8712_v20 = vor.u32 %v9462_v36, %v8709_v30 }
 0x8e7   :  { %v12005_v31 = vpack.c.bf16 %v6188_v38, %v6184_v46 }
 0x8e8   :  { %v5267_v37 = vpop.f32.mrf.mxu2  ;;  %v5356_v15 = vpop.f32.mrf.mxu3  ;;  %5815 = vmatpush.bf16.msra.mxu1 %v8712_v20 }
 0x8e9   :  { %13322 = vst [vmem:[#allocation34_spill] sm:$0xff] %v12005_v31  ;;  %v5268_v59 = vadd.f32 %v5267_v37, %v5179_v47  ;;  %v5180_v43 = vpop.f32.mrf.mxu1  ;;  %v12007_v54 = vpop.f32.mrf.mxu0  ;;  %v13324_v37 = vld [vmem:[#allocation65_spill] sm:$0xff] }
 0x8ea   :  { %v5181_v11 = vadd.f32 %v5180_v43, %v11824_v49  ;;  %v9522_v31 = vld [vmem:[#allocation8 + $0x74c] sm:$0xf] }
 0x8eb   :  { %v5357_v45 = vadd.f32 %v5356_v15, %v5268_v59  ;;  %v13325_v15 = vld [vmem:[#allocation66_spill] sm:$0xff]  ;;  %v13326_v59 = vld [vmem:[#allocation67_spill] sm:$0xff] }
 0x8ed   :  { %v6192_v23 = vmax.f32 %v5357_v45, 0.0 }
 0x8f0   :  { %v5269_v56 = vpop.f32.mrf.mxu2  ;;  %v5358_v60 = vpop.f32.mrf.mxu3 }
 0x8f1   :  { %v5270_v58 = vadd.f32 %v5269_v56, %v5181_v11  ;;  %v5183_v46 = vpop.f32.mrf.mxu1  ;;  %v12010_v38 = vpop.f32.mrf.mxu0 }
 0x8f2   :  { %v5184_v9 = vadd.f32 %v5183_v46, %v11828_v51  ;;  %v9758_v46 = vld [vmem:[#allocation10] sm:$0xf] }
 0x8f3   :  { %v5359_v47 = vadd.f32 %v5358_v60, %v5270_v58  ;;  %v9552_v58 = vld [vmem:[#allocation11 + $0x38] sm:$0xff] }
 0x8f4   :  { %5498 = vmatmul.bf16.gmra.mxu1 %v13323_v8  ;;  %5765 = vmatmul.bf16.gmra.mxu0 %v13324_v37  ;;  %v12022_v8 = vperm.slane %v9758_v46, 3  ;;  %v8821_v46 = vld [vmem:[#allocation8 + $0x658] sm:$0xf0] }
 0x8f5   :  { %v6196_v49 = vmax.f32 %v5359_v47, 0.0  ;;  %5587 = vmatmul.bf16.gmra.mxu2 %v13325_v15  ;;  %5676 = vmatmul.bf16.gmra.mxu3 %v13326_v59 }
 0x8f6   :  { %6530 = vmatpush.bf16.msra.mxu0 %v9552_v58  ;;  %v5376_v45 = vadd.f32 %v11830_v63, %v12022_v8  ;;  %v9490_v58 = vld [vmem:[#allocation8 + $0x64c] sm:$0xf] }
 0x8f7   :  { %v12017_v43 = vpack.c.bf16 %v6196_v49, %v6192_v23  ;;  %v8824_v63 = vor.u32 %v9490_v58, %v8821_v46 }
 0x8f8   :  { %v5272_v36 = vpop.f32.mrf.mxu2  ;;  %v5361_v11 = vpop.f32.mrf.mxu3 }
 0x8f9   :  { %13327 = vst [vmem:[#allocation23_spill] sm:$0xff] %v12017_v43  ;;  %v5273_v30 = vadd.f32 %v5272_v36, %v5184_v9  ;;  %v5185_v20 = vpop.f32.mrf.mxu1  ;;  %v12019_v56 = vpop.f32.mrf.mxu0  ;;  %v13328_v36 = vld [vmem:[#allocation68_spill] sm:$0xff]  ;;  %v13329_v43 = vld [vmem:[#allocation69_spill] sm:$0xff]  ;;  %5905 = vmatpush.bf16.msra.mxu2 %v8824_v63 }
 0x8fa   :  { %v5186_v51 = vadd.f32 %v5185_v20, %v11837_v48  ;;  %v13331_v20 = vld [vmem:[#allocation71_spill] sm:$0xff] }
 0x8fb   :  { %v5362_v60 = vadd.f32 %v5361_v11, %v5273_v30  ;;  %v13330_v30 = vld [vmem:[#allocation70_spill] sm:$0xff] }
 0x8fd   :  { %v6200_v48 = vmax.f32 %v5362_v60, 0.0 }
 0x900   :  { %v5274_v47 = vpop.f32.mrf.mxu2  ;;  %v5363_v37 = vpop.f32.mrf.mxu3 }
 0x901   :  { %v5275_v23 = vadd.f32 %v5274_v47, %v5186_v51  ;;  %v5464_v49 = vpop.f32.mrf.mxu1  ;;  %v5731_v15 = vpop.f32.mrf.mxu0  ;;  %v8952_v51 = vor.u32 %v9522_v31, %v8949_v26  ;;  %v5381_v26 = vadd.f32 %v11842_v6, %v12022_v8  ;;  %v5383_v6 = vadd.f32 %v11851_v17, %v12022_v8 }
 0x902   :  { %v5465_v9 = vadd.f32 %v5464_v49, %v5376_v45  ;;  %v5378_v45 = vadd.f32 %v11839_v4, %v12022_v8 }
 0x903   :  { %v5364_v59 = vadd.f32 %v5363_v37, %v5275_v23  ;;  %5994 = vmatpush.bf16.msra.mxu3 %v8952_v51  ;;  %v13332_v51 = vld [vmem:[#allocation74_spill] sm:$0xff] }
 0x904   :  { %5503 = vmatmul.bf16.gmra.mxu1 %v13328_v36  ;;  %5770 = vmatmul.bf16.gmra.mxu0 %v13329_v43 }
 0x905   :  { %v6204_v11 = vmax.f32 %v5364_v59, 0.0  ;;  %5592 = vmatmul.bf16.gmra.mxu2 %v13330_v30  ;;  %5681 = vmatmul.bf16.gmra.mxu3 %v13331_v20  ;;  %v9458_v30 = vld [vmem:[#allocation8 + $0x54c] sm:$0xf]  ;;  %v8693_v20 = vld [vmem:[#allocation8 + $0x558] sm:$0xf0] }
 0x906   :  { %v8696_v58 = vor.u32 %v9458_v30, %v8693_v20  ;;  %v9551_v20 = vld [vmem:[#allocation11 + $0x30] sm:$0xff] }
 0x907   :  { %v12030_v47 = vpack.c.bf16 %v6204_v11, %v6200_v48  ;;  %6531 = vmatpush.bf16.msra.mxu0 %v9551_v20 }
 0x908   :  { %v5553_v37 = vpop.f32.mrf.mxu2  ;;  %v5642_v23 = vpop.f32.mrf.mxu3  ;;  %5816 = vmatpush.bf16.msra.mxu1 %v8696_v58 }
 0x909   :  { %v5554_v43 = vadd.f32 %v5553_v37, %v5465_v9  ;;  %v5466_v60 = vpop.f32.mrf.mxu1  ;;  %v5733_v49 = vpop.f32.mrf.mxu0 }
 0x90a   :  { %v5467_v59 = vadd.f32 %v5466_v60, %v5378_v45 }
 0x90b   :  { %v5643_v36 = vadd.f32 %v5642_v23, %v5554_v43 }
 0x90d   :  { %v12034_v46 = vadd.f32 %v5731_v15, %v5643_v36 }
 0x910   :  { %v5555_v31 = vpop.f32.mrf.mxu2  ;;  %v5644_v4 = vpop.f32.mrf.mxu3 }
 0x911   :  { %v5556_v48 = vadd.f32 %v5555_v31, %v5467_v59  ;;  %v5469_v11 = vpop.f32.mrf.mxu1  ;;  %v5736_v63 = vpop.f32.mrf.mxu0 }
 0x912   :  { %v5470_v9 = vadd.f32 %v5469_v11, %v5381_v26  ;;  %v13334_v11 = vld [vmem:[#allocation76_spill] sm:$0xff] }
 0x913   :  { %v5645_v37 = vadd.f32 %v5644_v4, %v5556_v48  ;;  %v13333_v48 = vld [vmem:[#allocation75_spill] sm:$0xff] }
 0x914   :  { %5508 = vmatmul.bf16.gmra.mxu1 %v10408_v41  ;;  %5775 = vmatmul.bf16.gmra.mxu0 %v13067_v0  ;;  %v5386_v0 = vadd.f32 %v11854_v5, %v12022_v8 }
 0x915   :  { %5597 = vmatmul.bf16.gmra.mxu2 %v13200_v18  ;;  %5686 = vmatmul.bf16.gmra.mxu3 %v13332_v51  ;;  %v12042_v15 = vadd.f32 %v5733_v49, %v5645_v37  ;;  %v13336_v37 = vld [vmem:[#allocation78_spill] sm:$0xff]  ;;  %v8805_v51 = vld [vmem:[#allocation8 + $0x638] sm:$0xf0] }
 0x918   :  { %v5558_v45 = vpop.f32.mrf.mxu2  ;;  %v5647_v23 = vpop.f32.mrf.mxu3 }
 0x919   :  { %v5559_v43 = vadd.f32 %v5558_v45, %v5470_v9  ;;  %v5471_v60 = vpop.f32.mrf.mxu1  ;;  %v5738_v59 = vpop.f32.mrf.mxu0  ;;  %v13335_v9 = vld [vmem:[#allocation77_spill] sm:$0xff] }
 0x91a   :  { %v5472_v36 = vadd.f32 %v5471_v60, %v5383_v6  ;;  %v9518_v6 = vld [vmem:[#allocation8 + $0x72c] sm:$0xf]  ;;  %v5388_v60 = vadd.f32 %v11863_v1, %v12022_v8 }
 0x91b   :  { %v5648_v30 = vadd.f32 %v5647_v23, %v5559_v43  ;;  %v8933_v23 = vld [vmem:[#allocation8 + $0x738] sm:$0xf0] }
 0x91c   :  { %v8936_v43 = vor.u32 %v9518_v6, %v8933_v23 }
 0x91d   :  { %v12046_v41 = vadd.f32 %v5736_v63, %v5648_v30  ;;  %v9486_v63 = vld [vmem:[#allocation8 + $0x62c] sm:$0xf] }
 0x91e   :  { %v8808_v5 = vor.u32 %v9486_v63, %v8805_v51  ;;  %5995 = vmatpush.bf16.msra.mxu3 %v8936_v43 }
 0x920   :  { %v5560_v18 = vpop.f32.mrf.mxu2  ;;  %v5649_v49 = vpop.f32.mrf.mxu3  ;;  %5906 = vmatpush.bf16.msra.mxu2 %v8808_v5 }
 0x921   :  { %v5561_v58 = vadd.f32 %v5560_v18, %v5472_v36  ;;  %v5474_v26 = vpop.f32.mrf.mxu1  ;;  %v5741_v31 = vpop.f32.mrf.mxu0 }
 0x922   :  { %v5475_v17 = vadd.f32 %v5474_v26, %v5386_v0  ;;  %v9454_v26 = vld [vmem:[#allocation8 + $0x52c] sm:$0xf] }
 0x923   :  { %v5650_v4 = vadd.f32 %v5649_v49, %v5561_v58 }
 0x924   :  { %5513 = vmatmul.bf16.gmra.mxu1 %v13333_v48  ;;  %5780 = vmatmul.bf16.gmra.mxu0 %v13334_v11  ;;  %v8677_v48 = vld [vmem:[#allocation8 + $0x538] sm:$0xf0] }
 0x925   :  { %5602 = vmatmul.bf16.gmra.mxu2 %v13335_v9  ;;  %5691 = vmatmul.bf16.gmra.mxu3 %v13336_v37  ;;  %v12054_v45 = vadd.f32 %v5738_v59, %v5650_v4  ;;  %v8680_v11 = vor.u32 %v9454_v26, %v8677_v48  ;;  %v5391_v4 = vadd.f32 %v11866_v33, %v12022_v8  ;;  %v13337_v48 = vld [vmem:[#allocation82_spill] sm:$0xff] }
 0x926   :  { %v5393_v33 = vadd.f32 %v11875_v12, %v12022_v8 }
 0x927   :  { %5817 = vmatpush.bf16.msra.mxu1 %v8680_v11  ;;  %v13338_v11 = vld [vmem:[#allocation83_spill] sm:$0xff] }
 0x928   :  { %v5563_v36 = vpop.f32.mrf.mxu2  ;;  %v5652_v30 = vpop.f32.mrf.mxu3 }
 0x929   :  { %v5564_v20 = vadd.f32 %v5563_v36, %v5475_v17  ;;  %v5476_v0 = vpop.f32.mrf.mxu1  ;;  %v5743_v18 = vpop.f32.mrf.mxu0 }
 0x92a   :  { %v5477_v49 = vadd.f32 %v5476_v0, %v5388_v60  ;;  %v9550_v0 = vld [vmem:[#allocation11 + $0x28] sm:$0xff] }
 0x92b   :  { %v5653_v58 = vadd.f32 %v5652_v30, %v5564_v20  ;;  %6532 = vmatpush.bf16.msra.mxu0 %v9550_v0 }
 0x92d   :  { %v12058_v59 = vadd.f32 %v5741_v31, %v5653_v58 }
 0x930   :  { %v5565_v9 = vpop.f32.mrf.mxu2  ;;  %v5654_v1 = vpop.f32.mrf.mxu3 }
 0x931   :  { %v5566_v37 = vadd.f32 %v5565_v9, %v5477_v49  ;;  %v5479_v63 = vpop.f32.mrf.mxu1  ;;  %v5746_v51 = vpop.f32.mrf.mxu0  ;;  %v13340_v9 = vld [vmem:[#allocation85_spill] sm:$0xff] }
 0x932   :  { %v5480_v17 = vadd.f32 %v5479_v63, %v5391_v4  ;;  %v13339_v4 = vld [vmem:[#allocation84_spill] sm:$0xff]  ;;  %v9514_v63 = vld [vmem:[#allocation8 + $0x70c] sm:$0xf] }
 0x933   :  { %v5655_v6 = vadd.f32 %v5654_v1, %v5566_v37  ;;  %v9482_v1 = vld [vmem:[#allocation8 + $0x60c] sm:$0xf]  ;;  %v8789_v37 = vld [vmem:[#allocation8 + $0x618] sm:$0xf0] }
 0x934   :  { %5518 = vmatmul.bf16.gmra.mxu1 %v10448_v27  ;;  %5785 = vmatmul.bf16.gmra.mxu0 %v12939_v55  ;;  %v5396_v55 = vadd.f32 %v11878_v50, %v12022_v8  ;;  %v8792_v50 = vor.u32 %v9482_v1, %v8789_v37  ;;  %v13341_v1 = vld [vmem:[#allocation86_spill] sm:$0xff]  ;;  %v13342_v37 = vld [vmem:[#allocation87_spill] sm:$0xff] }
 0x935   :  { %5607 = vmatmul.bf16.gmra.mxu2 %v13072_v42  ;;  %5696 = vmatmul.bf16.gmra.mxu3 %v13205_v35  ;;  %v12066_v31 = vadd.f32 %v5743_v18, %v5655_v6 }
 0x936   :  { %5907 = vmatpush.bf16.msra.mxu2 %v8792_v50  ;;  %v13344_v50 = vld [vmem:[#allocation89_spill] sm:$0xff] }
 0x938   :  { %v5568_v5 = vpop.f32.mrf.mxu2  ;;  %v5657_v23 = vpop.f32.mrf.mxu3 }
 0x939   :  { %v5569_v43 = vadd.f32 %v5568_v5, %v5480_v17  ;;  %v5481_v60 = vpop.f32.mrf.mxu1  ;;  %v5748_v36 = vpop.f32.mrf.mxu0  ;;  %v8917_v17 = vld [vmem:[#allocation8 + $0x718] sm:$0xf0] }
 0x93a   :  { %v5482_v30 = vadd.f32 %v5481_v60, %v5393_v33  ;;  %v8920_v6 = vor.u32 %v9514_v63, %v8917_v17  ;;  %v5398_v33 = vadd.f32 %v11887_v39, %v12022_v8  ;;  %v9548_v63 = vld [vmem:[#allocation11 + $0x18] sm:$0xff] }
 0x93b   :  { %v5658_v20 = vadd.f32 %v5657_v23, %v5569_v43 }
 0x93c   :  { %5996 = vmatpush.bf16.msra.mxu3 %v8920_v6 }
 0x93d   :  { %v12070_v27 = vadd.f32 %v5746_v51, %v5658_v20 }
 0x940   :  { %v5570_v42 = vpop.f32.mrf.mxu2  ;;  %v5659_v35 = vpop.f32.mrf.mxu3 }
 0x941   :  { %v5571_v18 = vadd.f32 %v5570_v42, %v5482_v30  ;;  %v5484_v49 = vpop.f32.mrf.mxu1  ;;  %v5751_v58 = vpop.f32.mrf.mxu0  ;;  %v8661_v42 = vld [vmem:[#allocation8 + $0x518] sm:$0xf0] }
 0x942   :  { %v5485_v12 = vadd.f32 %v5484_v49, %v5396_v55  ;;  %v9450_v55 = vld [vmem:[#allocation8 + $0x50c] sm:$0xf] }
 0x943   :  { %v5660_v26 = vadd.f32 %v5659_v35, %v5571_v18  ;;  %v8664_v35 = vor.u32 %v9450_v55, %v8661_v42  ;;  %v5401_v18 = vadd.f32 %v11890_v3, %v12022_v8  ;;  %v5403_v3 = vadd.f32 %v11899_v40, %v12022_v8  ;;  %v9546_v55 = vld [vmem:[#allocation11 + $0x8] sm:$0xff] }
 0x944   :  { %5523 = vmatmul.bf16.gmra.mxu1 %v13337_v48  ;;  %5790 = vmatmul.bf16.gmra.mxu0 %v13338_v11 }
 0x945   :  { %5612 = vmatmul.bf16.gmra.mxu2 %v13339_v4  ;;  %5701 = vmatmul.bf16.gmra.mxu3 %v13340_v9  ;;  %v12078_v51 = vadd.f32 %v5748_v36, %v5660_v26  ;;  %v9549_v26 = vld [vmem:[#allocation11 + $0x20] sm:$0xff] }
 0x946   :  { %5818 = vmatpush.bf16.msra.mxu1 %v8664_v35  ;;  %6533 = vmatpush.bf16.msra.mxu0 %v9549_v26 }
 0x948   :  { %v5573_v5 = vpop.f32.mrf.mxu2  ;;  %v5662_v23 = vpop.f32.mrf.mxu3 }
 0x949   :  { %v5574_v43 = vadd.f32 %v5573_v5, %v5485_v12  ;;  %v5486_v60 = vpop.f32.mrf.mxu1  ;;  %v5753_v30 = vpop.f32.mrf.mxu0  ;;  %v9547_v5 = vld [vmem:[#allocation11 + $0x10] sm:$0xff] }
 0x94a   :  { %v5487_v20 = vadd.f32 %v5486_v60, %v5398_v33  ;;  %6534 = vmatpush.bf16.msra.mxu0 %v9548_v63  ;;  %v9576_v63 = vld [vmem:[#allocation11 + $0xf8] sm:$0xff] }
 0x94b   :  { %v5663_v0 = vadd.f32 %v5662_v23, %v5574_v43  ;;  %6797 = vmatpush.bf16.msrb.mxu3 %v9576_v63 }
 0x94d   :  { %v12082_v36 = vadd.f32 %v5751_v58, %v5663_v0  ;;  %v13343_v58 = vld [vmem:[#allocation88_spill] sm:$0xff] }
 0x94e   :  { %6535 = vmatpush.bf16.msra.mxu0 %v9547_v5 }
 0x950   :  { %v5575_v49 = vpop.f32.mrf.mxu2  ;;  %v5664_v39 = vpop.f32.mrf.mxu3 }
 0x951   :  { %v5576_v48 = vadd.f32 %v5575_v49, %v5487_v20  ;;  %v5489_v11 = vpop.f32.mrf.mxu1  ;;  %v5756_v12 = vpop.f32.mrf.mxu0  ;;  %v9545_v49 = vld [vmem:[#allocation11] sm:$0xff] }
 0x952   :  { %v5490_v4 = vadd.f32 %v5489_v11, %v5401_v18  ;;  %6536 = vmatpush.bf16.msra.mxu0 %v9546_v55 }
 0x953   :  { %v5665_v9 = vadd.f32 %v5664_v39, %v5576_v48 }
 0x954   :  { %5528 = vmatmul.bf16.gmra.mxu1 %v13341_v1  ;;  %5795 = vmatmul.bf16.gmra.mxu0 %v13342_v37  ;;  %v13347_v1 = vld [vmem:[#allocation92_spill] sm:$0xff]  ;;  %v9568_v37 = vld [vmem:[#allocation11 + $0xb8] sm:$0xff] }
 0x955   :  { %5617 = vmatmul.bf16.gmra.mxu2 %v13343_v58  ;;  %5706 = vmatmul.bf16.gmra.mxu3 %v13344_v50  ;;  %v12090_v17 = vadd.f32 %v5753_v30, %v5665_v9  ;;  %v5406_v30 = vadd.f32 %v11902_v29, %v12022_v8  ;;  %v13346_v9 = vld [vmem:[#allocation91_spill] sm:$0xff]  ;;  %v5408_v58 = vadd.f32 %v11911_v7, %v12022_v8 }
 0x956   :  { %6537 = vmatpush.bf16.msra.mxu0 %v9545_v49  ;;  %6708 = vmatpush.bf16.msrb.mxu2 %v9568_v37 }
 0x958   :  { %v5578_v6 = vpop.f32.mrf.mxu2  ;;  %v5667_v33 = vpop.f32.mrf.mxu3 }
 0x959   :  { %v5579_v23 = vadd.f32 %v5578_v6, %v5490_v4  ;;  %v5491_v43 = vpop.f32.mrf.mxu1  ;;  %v5758_v60 = vpop.f32.mrf.mxu0  ;;  %v13345_v4 = vld [vmem:[#allocation90_spill] sm:$0xff] }
 0x95a   :  { %v5492_v20 = vadd.f32 %v5491_v43, %v5403_v3 }
 0x95b   :  { %v5668_v0 = vadd.f32 %v5667_v33, %v5579_v23 }
 0x95d   :  { %v12094_v42 = vadd.f32 %v5756_v12, %v5668_v0  ;;  %v13348_v12 = vld [vmem:[#allocation93_spill] sm:$0xff] }
 0x960   :  { %v5580_v35 = vpop.f32.mrf.mxu2  ;;  %v5669_v18 = vpop.f32.mrf.mxu3 }
 0x961   :  { %v5581_v40 = vadd.f32 %v5580_v35, %v5492_v20  ;;  %v5494_v39 = vpop.f32.mrf.mxu1  ;;  %v5761_v26 = vpop.f32.mrf.mxu0  ;;  %v9560_v20 = vld [vmem:[#allocation11 + $0x78] sm:$0xff] }
 0x962   :  { %v5495_v48 = vadd.f32 %v5494_v39, %v5406_v30  ;;  %6619 = vmatpush.bf16.msrb.mxu1 %v9560_v20  ;;  %v13349_v39 = vld [vmem:[#allocation94_spill] sm:$0xff] }
 0x963   :  { %v5670_v11 = vadd.f32 %v5669_v18, %v5581_v40 }
 0x964   :  { %5533 = vmatmul.bf16.gmra.mxu1 %v13345_v4  ;;  %5800 = vmatmul.bf16.gmra.mxu0 %v13346_v9  ;;  %v13352_v4 = vld [vmem:[#allocation97_spill] sm:$0xff] }
 0x965   :  { %5622 = vmatmul.bf16.gmra.mxu2 %v13347_v1  ;;  %5711 = vmatmul.bf16.gmra.mxu3 %v13348_v12  ;;  %v12102_v29 = vadd.f32 %v5758_v60, %v5670_v11  ;;  %v5411_v60 = vadd.f32 %v11914_v25, %v12022_v8  ;;  %v13351_v11 = vld [vmem:[#allocation96_spill] sm:$0xff]  ;;  %v5413_v25 = vadd.f32 %v11923_v14, %v12022_v8  ;;  %v13353_v14 = vld [vmem:[#allocation98_spill] sm:$0xff] }
 0x968   :  { %v5583_v50 = vpop.f32.mrf.mxu2  ;;  %v5672_v3 = vpop.f32.mrf.mxu3 }
 0x969   :  { %v5584_v6 = vadd.f32 %v5583_v50, %v5495_v48  ;;  %v5496_v33 = vpop.f32.mrf.mxu1  ;;  %v5763_v5 = vpop.f32.mrf.mxu0  ;;  %v13350_v48 = vld [vmem:[#allocation95_spill] sm:$0xff] }
 0x96a   :  { %v5497_v23 = vadd.f32 %v5496_v33, %v5408_v58 }
 0x96b   :  { %v5673_v43 = vadd.f32 %v5672_v3, %v5584_v6  ;;  %v5416_v6 = vadd.f32 %v11926_v19, %v12022_v8  ;;  %v5418_v19 = vadd.f32 %v11935_v44, %v12022_v8 }
 0x96d   :  { %v12106_v0 = vadd.f32 %v5761_v26, %v5673_v43 }
 0x970   :  { %v5585_v55 = vpop.f32.mrf.mxu2  ;;  %v5674_v30 = vpop.f32.mrf.mxu3 }
 0x971   :  { %v5586_v35 = vadd.f32 %v5585_v55, %v5497_v23  ;;  %v5499_v18 = vpop.f32.mrf.mxu1  ;;  %v5766_v49 = vpop.f32.mrf.mxu0 }
 0x972   :  { %v5500_v7 = vadd.f32 %v5499_v18, %v5411_v60  ;;  %v13356_v18 = vld [vmem:[#allocation100_spill] sm:$0xff] }
 0x973   :  { %v5675_v40 = vadd.f32 %v5674_v30, %v5586_v35  ;;  %v13354_v30 = vld [vmem:[#allocation79_spill] sm:$0xff] }
 0x974   :  { %5538 = vmatmul.bf16.gmra.mxu1 %v13349_v39  ;;  %5805 = vmatmul.bf16.gmra.mxu0 %v13350_v48  ;;  %v13355_v35 = vld [vmem:[#allocation99_spill] sm:$0xff] }
 0x975   :  { %5627 = vmatmul.bf16.gmra.mxu2 %v13351_v11  ;;  %5716 = vmatmul.bf16.gmra.mxu3 %v13352_v4  ;;  %v12114_v26 = vadd.f32 %v5763_v5, %v5675_v40 }
 0x978   :  { %v5588_v9 = vpop.f32.mrf.mxu2  ;;  %v5677_v1 = vpop.f32.mrf.mxu3 }
 0x979   :  { %v5589_v12 = vadd.f32 %v5588_v9, %v5500_v7  ;;  %v5501_v37 = vpop.f32.mrf.mxu1  ;;  %v5768_v63 = vpop.f32.mrf.mxu0  ;;  %v9575_v7 = vld [vmem:[#allocation11 + $0xf0] sm:$0xff] }
 0x97a   :  { %v5502_v58 = vadd.f32 %v5501_v37, %v5413_v25  ;;  %6798 = vmatpush.bf16.msrb.mxu3 %v9575_v7 }
 0x97b   :  { %v5678_v50 = vadd.f32 %v5677_v1, %v5589_v12  ;;  %v9559_v12 = vld [vmem:[#allocation11 + $0x70] sm:$0xff] }
 0x97c   :  { %6620 = vmatpush.bf16.msrb.mxu1 %v9559_v12 }
 0x97d   :  { %v12118_v3 = vadd.f32 %v5766_v49, %v5678_v50  ;;  %v9567_v49 = vld [vmem:[#allocation11 + $0xb0] sm:$0xff] }
 0x97e   :  { %6709 = vmatpush.bf16.msrb.mxu2 %v9567_v49 }
 0x980   :  { %v5590_v33 = vpop.f32.mrf.mxu2  ;;  %v5679_v23 = vpop.f32.mrf.mxu3 }
 0x981   :  { %v5591_v43 = vadd.f32 %v5590_v33, %v5502_v58  ;;  %v5504_v5 = vpop.f32.mrf.mxu1  ;;  %v5771_v20 = vpop.f32.mrf.mxu0 }
 0x982   :  { %v5505_v60 = vadd.f32 %v5504_v5, %v5416_v6  ;;  %v13357_v5 = vld [vmem:[#allocation101_spill] sm:$0xff] }
 0x983   :  { %v5680_v55 = vadd.f32 %v5679_v23, %v5591_v43 }
 0x984   :  { %5819 = vmatmul.bf16.vlgmr.msra.gmra.mxu1 %v13353_v14  ;;  %6538 = vmatmul.bf16.vlgmr.msra.gmra.mxu0 %v13354_v30  ;;  %v13360_v14 = vld [vmem:[#allocation103_spill] sm:$0xff] }
 0x985   :  { %5908 = vmatmul.bf16.vlgmr.msra.gmra.mxu2 %v13355_v35  ;;  %5997 = vmatmul.bf16.vlgmr.msra.gmra.mxu3 %v13356_v18  ;;  %v12126_v40 = vadd.f32 %v5768_v63, %v5680_v55  ;;  %v5421_v63 = vadd.f32 %v11938_v16, %v12022_v8  ;;  %v13359_v55 = vld [vmem:[#allocation102_spill] sm:$0xff]  ;;  %v5423_v16 = vadd.f32 %v11947_v2, %v12022_v8  ;;  %v13361_v2 = vld [vmem:[#allocation104_spill] sm:$0xff] }
 0x988   :  { %v5593_v39 = vpop.f32.mrf.mxu2  ;;  %v5682_v48 = vpop.f32.mrf.mxu3 }
 0x989   :  { %v5594_v11 = vadd.f32 %v5593_v39, %v5505_v60  ;;  %v5506_v4 = vpop.f32.mrf.mxu1  ;;  %v5773_v25 = vpop.f32.mrf.mxu0  ;;  %v13358_v60 = vld [vmem:[#allocation131_spill] sm:$0xff] }
 0x98a   :  { %v5507_v9 = vadd.f32 %v5506_v4, %v5418_v19 }
 0x98b   :  { %v5683_v1 = vadd.f32 %v5682_v48, %v5594_v11  ;;  %v5426_v11 = vadd.f32 %v11950_v10, %v12022_v8  ;;  %v5428_v10 = vadd.f32 %v11959_v32, %v12022_v8 }
 0x98d   :  { %v12130_v37 = vadd.f32 %v5771_v20, %v5683_v1 }
 0x990   :  { %v5595_v58 = vpop.f32.mrf.mxu2  ;;  %v5684_v50 = vpop.f32.mrf.mxu3 }
 0x991   :  { %v5596_v6 = vadd.f32 %v5595_v58, %v5507_v9  ;;  %v5509_v33 = vpop.f32.mrf.mxu1  ;;  %v5776_v23 = vpop.f32.mrf.mxu0 }
 0x992   :  { %v5510_v44 = vadd.f32 %v5509_v33, %v5421_v63  ;;  %v13364_v33 = vld [vmem:[#allocation106_spill] sm:$0xff] }
 0x993   :  { %v5685_v43 = vadd.f32 %v5684_v50, %v5596_v6  ;;  %v13362_v50 = vld [vmem:[#allocation133_spill] sm:$0xff] }
 0x994   :  { %5824 = vmatmul.bf16.gmra.mxu1 %v13357_v5  ;;  %6543 = vmatmul.bf16.gmra.mxu0 %v13358_v60  ;;  %v13363_v6 = vld [vmem:[#allocation105_spill] sm:$0xff] }
 0x995   :  { %5913 = vmatmul.bf16.gmra.mxu2 %v13359_v55  ;;  %6002 = vmatmul.bf16.gmra.mxu3 %v13360_v14  ;;  %v12138_v20 = vadd.f32 %v5773_v25, %v5685_v43 }
 0x998   :  { %v5598_v30 = vpop.f32.mrf.mxu2  ;;  %v5687_v35 = vpop.f32.mrf.mxu3 }
 0x999   :  { %v5599_v18 = vadd.f32 %v5598_v30, %v5510_v44  ;;  %v5511_v49 = vpop.f32.mrf.mxu1  ;;  %v5778_v7 = vpop.f32.mrf.mxu0  ;;  %v9574_v44 = vld [vmem:[#allocation11 + $0xe8] sm:$0xff] }
 0x99a   :  { %v5512_v19 = vadd.f32 %v5511_v49, %v5423_v16  ;;  %6799 = vmatpush.bf16.msrb.mxu3 %v9574_v44 }
 0x99b   :  { %v5688_v39 = vadd.f32 %v5687_v35, %v5599_v18  ;;  %v9558_v18 = vld [vmem:[#allocation11 + $0x68] sm:$0xff] }
 0x99c   :  { %6621 = vmatpush.bf16.msrb.mxu1 %v9558_v18 }
 0x99d   :  { %v12142_v48 = vadd.f32 %v5776_v23, %v5688_v39  ;;  %v9566_v23 = vld [vmem:[#allocation11 + $0xa8] sm:$0xff] }
 0x99e   :  { %6710 = vmatpush.bf16.msrb.mxu2 %v9566_v23 }
 0x9a0   :  { %v5600_v4 = vpop.f32.mrf.mxu2  ;;  %v5689_v9 = vpop.f32.mrf.mxu3 }
 0x9a1   :  { %v5601_v1 = vadd.f32 %v5600_v4, %v5512_v19  ;;  %v5514_v25 = vpop.f32.mrf.mxu1  ;;  %v5781_v12 = vpop.f32.mrf.mxu0 }
 0x9a2   :  { %v5515_v63 = vadd.f32 %v5514_v25, %v5426_v11  ;;  %v13365_v25 = vld [vmem:[#allocation107_spill] sm:$0xff] }
 0x9a3   :  { %v5690_v58 = vadd.f32 %v5689_v9, %v5601_v1 }
 0x9a4   :  { %5829 = vmatmul.bf16.gmra.mxu1 %v13361_v2  ;;  %6548 = vmatmul.bf16.gmra.mxu0 %v13362_v50  ;;  %v13368_v2 = vld [vmem:[#allocation109_spill] sm:$0xff] }
 0x9a5   :  { %5918 = vmatmul.bf16.gmra.mxu2 %v13363_v6  ;;  %6007 = vmatmul.bf16.gmra.mxu3 %v13364_v33  ;;  %v12150_v43 = vadd.f32 %v5778_v7, %v5690_v58  ;;  %v5431_v7 = vadd.f32 %v11962_v61, %v12022_v8  ;;  %v13367_v58 = vld [vmem:[#allocation108_spill] sm:$0xff]  ;;  %v5433_v61 = vadd.f32 %v11971_v34, %v12022_v8  ;;  %v13369_v34 = vld [vmem:[#allocation110_spill] sm:$0xff] }
 0x9a8   :  { %v5603_v5 = vpop.f32.mrf.mxu2  ;;  %v5692_v60 = vpop.f32.mrf.mxu3 }
 0x9a9   :  { %v5604_v55 = vadd.f32 %v5603_v5, %v5515_v63  ;;  %v5516_v14 = vpop.f32.mrf.mxu1  ;;  %v5783_v16 = vpop.f32.mrf.mxu0  ;;  %v13366_v63 = vld [vmem:[#allocation136_spill] sm:$0xff] }
 0x9aa   :  { %v5517_v30 = vadd.f32 %v5516_v14, %v5428_v10 }
 0x9ab   :  { %v5693_v35 = vadd.f32 %v5692_v60, %v5604_v55  ;;  %v5436_v55 = vadd.f32 %v11974_v21, %v12022_v8  ;;  %v5438_v21 = vadd.f32 %v11983_v53, %v12022_v8 }
 0x9ad   :  { %v12154_v49 = vadd.f32 %v5781_v12, %v5693_v35 }
 0x9b0   :  { %v5605_v19 = vpop.f32.mrf.mxu2  ;;  %v5694_v39 = vpop.f32.mrf.mxu3 }
 0x9b1   :  { %v5606_v11 = vadd.f32 %v5605_v19, %v5517_v30  ;;  %v5519_v4 = vpop.f32.mrf.mxu1  ;;  %v5786_v9 = vpop.f32.mrf.mxu0 }
 0x9b2   :  { %v5520_v32 = vadd.f32 %v5519_v4, %v5431_v7  ;;  %v13372_v4 = vld [vmem:[#allocation112_spill] sm:$0xff] }
 0x9b3   :  { %v5695_v1 = vadd.f32 %v5694_v39, %v5606_v11  ;;  %v13370_v39 = vld [vmem:[#allocation141_spill] sm:$0xff]  ;;  %v13371_v11 = vld [vmem:[#allocation111_spill] sm:$0xff] }
 0x9b4   :  { %5834 = vmatmul.bf16.gmra.mxu1 %v13365_v25  ;;  %6553 = vmatmul.bf16.gmra.mxu0 %v13366_v63 }
 0x9b5   :  { %5923 = vmatmul.bf16.gmra.mxu2 %v13367_v58  ;;  %6012 = vmatmul.bf16.gmra.mxu3 %v13368_v2  ;;  %v12162_v12 = vadd.f32 %v5783_v16, %v5695_v1 }
 0x9b8   :  { %v5608_v50 = vpop.f32.mrf.mxu2  ;;  %v5697_v6 = vpop.f32.mrf.mxu3 }
 0x9b9   :  { %v5609_v33 = vadd.f32 %v5608_v50, %v5520_v32  ;;  %v5521_v23 = vpop.f32.mrf.mxu1  ;;  %v5788_v44 = vpop.f32.mrf.mxu0  ;;  %v9573_v32 = vld [vmem:[#allocation11 + $0xe0] sm:$0xff] }
 0x9ba   :  { %v5522_v10 = vadd.f32 %v5521_v23, %v5433_v61  ;;  %6800 = vmatpush.bf16.msrb.mxu3 %v9573_v32 }
 0x9bb   :  { %v5698_v5 = vadd.f32 %v5697_v6, %v5609_v33  ;;  %v9557_v33 = vld [vmem:[#allocation11 + $0x60] sm:$0xff] }
 0x9bc   :  { %6622 = vmatpush.bf16.msrb.mxu1 %v9557_v33 }
 0x9bd   :  { %v12166_v60 = vadd.f32 %v5786_v9, %v5698_v5  ;;  %v9565_v9 = vld [vmem:[#allocation11 + $0xa0] sm:$0xff] }
 0x9be   :  { %6711 = vmatpush.bf16.msrb.mxu2 %v9565_v9 }
 0x9c0   :  { %v5610_v14 = vpop.f32.mrf.mxu2  ;;  %v5699_v30 = vpop.f32.mrf.mxu3 }
 0x9c1   :  { %v5611_v35 = vadd.f32 %v5610_v14, %v5522_v10  ;;  %v5524_v16 = vpop.f32.mrf.mxu1  ;;  %v5791_v18 = vpop.f32.mrf.mxu0 }
 0x9c2   :  { %v5525_v7 = vadd.f32 %v5524_v16, %v5436_v55  ;;  %v13373_v16 = vld [vmem:[#allocation113_spill] sm:$0xff] }
 0x9c3   :  { %v5700_v19 = vadd.f32 %v5699_v30, %v5611_v35 }
 0x9c4   :  { %5839 = vmatmul.bf16.gmra.mxu1 %v13369_v34  ;;  %6558 = vmatmul.bf16.gmra.mxu0 %v13370_v39  ;;  %v13376_v34 = vld [vmem:[#allocation115_spill] sm:$0xff] }
 0x9c5   :  { %5928 = vmatmul.bf16.gmra.mxu2 %v13371_v11  ;;  %6017 = vmatmul.bf16.gmra.mxu3 %v13372_v4  ;;  %v12174_v1 = vadd.f32 %v5788_v44, %v5700_v19  ;;  %v5441_v44 = vadd.f32 %v11986_v24, %v12022_v8  ;;  %v13375_v19 = vld [vmem:[#allocation114_spill] sm:$0xff]  ;;  %v5443_v24 = vadd.f32 %v11995_v52, %v12022_v8  ;;  %v13378_v52 = vld [vmem:[#allocation145_spill] sm:$0xff] }
 0x9c8   :  { %v5613_v25 = vpop.f32.mrf.mxu2  ;;  %v5702_v63 = vpop.f32.mrf.mxu3 }
 0x9c9   :  { %v5614_v58 = vadd.f32 %v5613_v25, %v5525_v7  ;;  %v5526_v2 = vpop.f32.mrf.mxu1  ;;  %v5793_v61 = vpop.f32.mrf.mxu0  ;;  %v13374_v7 = vld [vmem:[#allocation144_spill] sm:$0xff] }
 0x9ca   :  { %v5527_v50 = vadd.f32 %v5526_v2, %v5438_v21 }
 0x9cb   :  { %v5703_v6 = vadd.f32 %v5702_v63, %v5614_v58  ;;  %v5446_v58 = vadd.f32 %v11998_v62, %v12022_v8  ;;  %v5448_v62 = vadd.f32 %v12007_v54, %v12022_v8 }
 0x9cd   :  { %v12178_v23 = vadd.f32 %v5791_v18, %v5703_v6 }
 0x9d0   :  { %v5615_v10 = vpop.f32.mrf.mxu2  ;;  %v5704_v5 = vpop.f32.mrf.mxu3 }
 0x9d1   :  { %v5616_v55 = vadd.f32 %v5615_v10, %v5527_v50  ;;  %v5529_v14 = vpop.f32.mrf.mxu1  ;;  %v5796_v30 = vpop.f32.mrf.mxu0  ;;  %v13377_v10 = vld [vmem:[#allocation116_spill] sm:$0xff] }
 0x9d2   :  { %v5530_v53 = vadd.f32 %v5529_v14, %v5441_v44  ;;  %v13380_v14 = vld [vmem:[#allocation118_spill] sm:$0xff] }
 0x9d3   :  { %v5705_v35 = vadd.f32 %v5704_v5, %v5616_v55  ;;  %v13379_v55 = vld [vmem:[#allocation117_spill] sm:$0xff] }
 0x9d4   :  { %5844 = vmatmul.bf16.gmra.mxu1 %v13373_v16  ;;  %6563 = vmatmul.bf16.gmra.mxu0 %v13374_v7 }
 0x9d5   :  { %5933 = vmatmul.bf16.gmra.mxu2 %v13375_v19  ;;  %6022 = vmatmul.bf16.gmra.mxu3 %v13376_v34  ;;  %v12186_v18 = vadd.f32 %v5793_v61, %v5705_v35 }
 0x9d8   :  { %v5618_v39 = vpop.f32.mrf.mxu2  ;;  %v5707_v11 = vpop.f32.mrf.mxu3 }
 0x9d9   :  { %v5619_v4 = vadd.f32 %v5618_v39, %v5530_v53  ;;  %v5531_v9 = vpop.f32.mrf.mxu1  ;;  %v5798_v25 = vpop.f32.mrf.mxu0  ;;  %v9572_v53 = vld [vmem:[#allocation11 + $0xd8] sm:$0xff] }
 0x9da   :  { %v5532_v32 = vadd.f32 %v5531_v9, %v5443_v24  ;;  %6801 = vmatpush.bf16.msrb.mxu3 %v9572_v53 }
 0x9db   :  { %v5708_v21 = vadd.f32 %v5707_v11, %v5619_v4  ;;  %v9556_v11 = vld [vmem:[#allocation11 + $0x58] sm:$0xff] }
 0x9dc   :  { %6623 = vmatpush.bf16.msrb.mxu1 %v9556_v11 }
 0x9dd   :  { %v12190_v63 = vadd.f32 %v5796_v30, %v5708_v21  ;;  %v9564_v30 = vld [vmem:[#allocation11 + $0x98] sm:$0xff] }
 0x9de   :  { %6712 = vmatpush.bf16.msrb.mxu2 %v9564_v30 }
 0x9e0   :  { %v5620_v2 = vpop.f32.mrf.mxu2  ;;  %v5709_v50 = vpop.f32.mrf.mxu3 }
 0x9e1   :  { %v5621_v6 = vadd.f32 %v5620_v2, %v5532_v32  ;;  %v5534_v61 = vpop.f32.mrf.mxu1  ;;  %v5801_v5 = vpop.f32.mrf.mxu0  ;;  %v5451_v32 = vadd.f32 %v12010_v38, %v12022_v8 }
 0x9e2   :  { %v5535_v33 = vadd.f32 %v5534_v61, %v5446_v58  ;;  %v13382_v61 = vld [vmem:[#allocation35_spill] sm:$0xff] }
 0x9e3   :  { %v5710_v44 = vadd.f32 %v5709_v50, %v5621_v6  ;;  %v13381_v6 = vld [vmem:[#allocation119_spill] sm:$0xff] }
 0x9e4   :  { %5849 = vmatmul.bf16.gmra.mxu1 %v13377_v10  ;;  %6568 = vmatmul.bf16.gmra.mxu0 %v13378_v52  ;;  %v5453_v52 = vadd.f32 %v12019_v56, %v12022_v8  ;;  %v13385_v56 = vld [vmem:[#allocation122_spill] sm:$0xff] }
 0x9e5   :  { %5938 = vmatmul.bf16.gmra.mxu2 %v13379_v55  ;;  %6027 = vmatmul.bf16.gmra.mxu3 %v13380_v14  ;;  %v12198_v35 = vadd.f32 %v5798_v25, %v5710_v44  ;;  %v13384_v44 = vld [vmem:[#allocation121_spill] sm:$0xff]  ;;  %v13386_v8 = vld [vmem:[#allocation150_spill] sm:$0xff] }
 0x9e8   :  { %v5623_v16 = vpop.f32.mrf.mxu2  ;;  %v5712_v7 = vpop.f32.mrf.mxu3 }
 0x9e9   :  { %v5624_v19 = vadd.f32 %v5623_v16, %v5535_v33  ;;  %v5536_v34 = vpop.f32.mrf.mxu1  ;;  %v5803_v9 = vpop.f32.mrf.mxu0  ;;  %v13383_v33 = vld [vmem:[#allocation120_spill] sm:$0xff]  ;;  %v9584_v16 = vld [vmem:[#allocation13 + $0x38] sm:$0xff] }
 0x9ea   :  { %v5537_v24 = vadd.f32 %v5536_v34, %v5448_v62  ;;  %7002 = vmatpush.bf16.msrb.mxu0 %v9584_v16  ;;  %v13390_v16 = vld [vmem:[#allocation151_spill] sm:$0xff] }
 0x9eb   :  { %v5713_v39 = vadd.f32 %v5712_v7, %v5624_v19 }
 0x9ed   :  { %v12202_v4 = vadd.f32 %v5801_v5, %v5713_v39 }
 0x9f0   :  { %v5625_v21 = vpop.f32.mrf.mxu2  ;;  %v5714_v25 = vpop.f32.mrf.mxu3 }
 0x9f1   :  { %v5626_v58 = vadd.f32 %v5625_v21, %v5537_v24  ;;  %v5539_v2 = vpop.f32.mrf.mxu1  ;;  %v5806_v30 = vpop.f32.mrf.mxu0  ;;  %v13387_v21 = vld [vmem:[#allocation123_spill] sm:$0xff] }
 0x9f2   :  { %v5540_v50 = vadd.f32 %v5539_v2, %v5451_v32  ;;  %v9571_v2 = vld [vmem:[#allocation11 + $0xd0] sm:$0xff] }
 0x9f3   :  { %v5715_v54 = vadd.f32 %v5714_v25, %v5626_v58  ;;  %v13388_v25 = vld [vmem:[#allocation124_spill] sm:$0xff]  ;;  %v9563_v58 = vld [vmem:[#allocation11 + $0x90] sm:$0xff]  ;;  %6802 = vmatpush.bf16.msrb.mxu3 %v9571_v2 }
 0x9f4   :  { %5854 = vmatmul.bf16.gmra.mxu1 %v13381_v6  ;;  %6573 = vmatmul.bf16.gmra.mxu0 %v13382_v61 }
 0x9f5   :  { %5943 = vmatmul.bf16.gmra.mxu2 %v13383_v33  ;;  %6032 = vmatmul.bf16.gmra.mxu3 %v13384_v44  ;;  %v12210_v10 = vadd.f32 %v5803_v9, %v5715_v54 }
 0x9f6   :  { %6713 = vmatpush.bf16.msrb.mxu2 %v9563_v58 }
 0x9f8   :  { %v5628_v38 = vpop.f32.mrf.mxu2  ;;  %v5717_v5 = vpop.f32.mrf.mxu3 }
 0x9f9   :  { %v5629_v55 = vadd.f32 %v5628_v38, %v5540_v50  ;;  %v5541_v14 = vpop.f32.mrf.mxu1  ;;  %v5808_v32 = vpop.f32.mrf.mxu0 }
 0x9fa   :  { %v5542_v53 = vadd.f32 %v5541_v14, %v5453_v52  ;;  %v9555_v52 = vld [vmem:[#allocation11 + $0x50] sm:$0xff] }
 0x9fb   :  { %v5718_v62 = vadd.f32 %v5717_v5, %v5629_v55  ;;  %6624 = vmatpush.bf16.msrb.mxu1 %v9555_v52 }
 0x9fd   :  { %v12214_v7 = vadd.f32 %v5806_v30, %v5718_v62  ;;  %v13389_v62 = vld [vmem:[#allocation125_spill] sm:$0xff] }
 0xa00   :  { %v5630_v19 = vpop.f32.mrf.mxu2  ;;  %v5719_v34 = vpop.f32.mrf.mxu3 }
 0xa01   :  { %v5631_v24 = vadd.f32 %v5630_v19, %v5542_v53  ;;  %v5820_v39 = vpop.f32.mrf.mxu1 }
 0xa02   :  { %v5821_v11 = vadd.f32 %v5820_v39, %v12034_v46  ;;  %v13392_v39 = vld [vmem:[#allocation127_spill] sm:$0xff] }
 0xa03   :  { %v5720_v9 = vadd.f32 %v5719_v34, %v5631_v24  ;;  %v13391_v24 = vld [vmem:[#allocation126_spill] sm:$0xff] }
 0xa04   :  { %5859 = vmatmul.bf16.gmra.mxu1 %v13385_v56  ;;  %6578 = vmatmul.bf16.gmra.mxu0 %v13386_v8 }
 0xa05   :  { %5948 = vmatmul.bf16.gmra.mxu2 %v13387_v21  ;;  %6037 = vmatmul.bf16.gmra.mxu3 %v13388_v25  ;;  %v12221_v50 = vadd.f32 %v5808_v32, %v5720_v9  ;;  %v9583_v21 = vld [vmem:[#allocation13 + $0x30] sm:$0xff] }
 0xa06   :  { %7003 = vmatpush.bf16.msrb.mxu0 %v9583_v21  ;;  %v13398_v21 = vld [vmem:[#allocation153_spill] sm:$0xff] }
 0xa08   :  { %v5909_v54 = vpop.f32.mrf.mxu2  ;;  %v5998_v6 = vpop.f32.mrf.mxu3 }
 0xa09   :  { %v5910_v61 = vadd.f32 %v5909_v54, %v5821_v11  ;;  %v5822_v46 = vpop.f32.mrf.mxu1 }
 0xa0a   :  { %v5823_v33 = vadd.f32 %v5822_v46, %v12042_v15  ;;  %v13393_v46 = vld [vmem:[#allocation128_spill] sm:$0xff] }
 0xa0b   :  { %v5999_v44 = vadd.f32 %v5998_v6, %v5910_v61 }
 0xa0d   :  { %v6081_v19 = vmax.f32 %v5999_v44, 0.0 }
 0xa10   :  { %v5911_v38 = vpop.f32.mrf.mxu2  ;;  %v6000_v5 = vpop.f32.mrf.mxu3 }
 0xa11   :  { %v5912_v55 = vadd.f32 %v5911_v38, %v5823_v33  ;;  %v5825_v14 = vpop.f32.mrf.mxu1  ;;  %v13394_v33 = vld [vmem:[#allocation152_spill] sm:$0xff]  ;;  %v13395_v38 = vld [vmem:[#allocation129_spill] sm:$0xff] }
 0xa12   :  { %v5826_v30 = vadd.f32 %v5825_v14, %v12046_v41 }
 0xa13   :  { %v6001_v53 = vadd.f32 %v6000_v5, %v5912_v55  ;;  %v13396_v5 = vld [vmem:[#allocation130_spill] sm:$0xff]  ;;  %v9570_v55 = vld [vmem:[#allocation11 + $0xc8] sm:$0xff] }
 0xa14   :  { %5864 = vmatmul.bf16.gmra.mxu1 %v13389_v62  ;;  %6583 = vmatmul.bf16.gmra.mxu0 %v13390_v16 }
 0xa15   :  { %v6085_v34 = vmax.f32 %v6001_v53, 0.0  ;;  %5953 = vmatmul.bf16.gmra.mxu2 %v13391_v24  ;;  %6042 = vmatmul.bf16.gmra.mxu3 %v13392_v39  ;;  %v9554_v24 = vld [vmem:[#allocation11 + $0x48] sm:$0xff] }
 0xa16   :  { %6803 = vmatpush.bf16.msrb.mxu3 %v9570_v55  ;;  %6625 = vmatpush.bf16.msrb.mxu1 %v9554_v24 }
 0xa17   :  { %v12229_v15 = vpack.c.bf16 %v6085_v34, %v6081_v19  ;;  %v12240_v34 = vpop.f32.mrf.mxu0 }
 0xa18   :  { %v5914_v11 = vpop.f32.mrf.mxu2  ;;  %v6003_v9 = vpop.f32.mrf.mxu3 }
 0xa19   :  { %v5915_v32 = vadd.f32 %v5914_v11, %v5826_v30  ;;  %v5827_v56 = vpop.f32.mrf.mxu1 }
 0xa1a   :  { %v5828_v8 = vadd.f32 %v5827_v56, %v12054_v45  ;;  %v9562_v45 = vld [vmem:[#allocation11 + $0x88] sm:$0xff] }
 0xa1b   :  { %v6004_v41 = vadd.f32 %v6003_v9, %v5915_v32  ;;  %6714 = vmatpush.bf16.msrb.mxu2 %v9562_v45 }
 0xa1d   :  { %v6089_v44 = vmax.f32 %v6004_v41, 0.0  ;;  %v13397_v41 = vld [vmem:[#allocation132_spill] sm:$0xff] }
 0xa20   :  { %v5916_v25 = vpop.f32.mrf.mxu2  ;;  %v6005_v58 = vpop.f32.mrf.mxu3 }
 0xa21   :  { %v5917_v2 = vadd.f32 %v5916_v25, %v5828_v8  ;;  %v5830_v54 = vpop.f32.mrf.mxu1 }
 0xa22   :  { %v5831_v6 = vadd.f32 %v5830_v54, %v12058_v59  ;;  %v12247_v54 = vpop.f32.mrf.mxu0 }
 0xa23   :  { %v6006_v61 = vadd.f32 %v6005_v58, %v5917_v2  ;;  %v13399_v2 = vld [vmem:[#allocation134_spill] sm:$0xff] }
 0xa24   :  { %5869 = vmatmul.bf16.gmra.mxu1 %v13393_v46  ;;  %6588 = vmatmul.bf16.gmra.mxu0 %v13394_v33 }
 0xa25   :  { %v6093_v52 = vmax.f32 %v6006_v61, 0.0  ;;  %5958 = vmatmul.bf16.gmra.mxu2 %v13395_v38  ;;  %6047 = vmatmul.bf16.gmra.mxu3 %v13396_v5  ;;  %v9582_v38 = vld [vmem:[#allocation13 + $0x28] sm:$0xff] }
 0xa26   :  { %7004 = vmatpush.bf16.msrb.mxu0 %v9582_v38  ;;  %v13405_v38 = vld [vmem:[#allocation140_spill] sm:$0xff] }
 0xa27   :  { %v12237_v14 = vpack.c.bf16 %v6093_v52, %v6089_v44 }
 0xa28   :  { %v5919_v30 = vpop.f32.mrf.mxu2  ;;  %v6008_v53 = vpop.f32.mrf.mxu3 }
 0xa29   :  { %v5920_v59 = vadd.f32 %v5919_v30, %v5831_v6  ;;  %v5832_v62 = vpop.f32.mrf.mxu1 }
 0xa2a   :  { %v5833_v16 = vadd.f32 %v5832_v62, %v12066_v31  ;;  %v13400_v31 = vld [vmem:[#allocation135_spill] sm:$0xff]  ;;  %v12252_v55 = vpop.f32.mrf.mxu0 }
 0xa2b   :  { %v6009_v19 = vadd.f32 %v6008_v53, %v5920_v59 }
 0xa2d   :  { %v6097_v25 = vmax.f32 %v6009_v19, 0.0  ;;  %v13402_v19 = vld [vmem:[#allocation154_spill] sm:$0xff] }
 0xa30   :  { %v5921_v39 = vpop.f32.mrf.mxu2  ;;  %v6010_v11 = vpop.f32.mrf.mxu3 }
 0xa31   :  { %v5922_v9 = vadd.f32 %v5921_v39, %v5833_v16  ;;  %v5835_v32 = vpop.f32.mrf.mxu1  ;;  %v13401_v16 = vld [vmem:[#allocation137_spill] sm:$0xff] }
 0xa32   :  { %v5836_v56 = vadd.f32 %v5835_v32, %v12070_v27  ;;  %v9569_v32 = vld [vmem:[#allocation11 + $0xc0] sm:$0xff] }
 0xa33   :  { %v6011_v8 = vadd.f32 %v6010_v11, %v5922_v9  ;;  %v13403_v11 = vld [vmem:[#allocation138_spill] sm:$0xff]  ;;  %v9561_v9 = vld [vmem:[#allocation11 + $0x80] sm:$0xff]  ;;  %6804 = vmatpush.bf16.msrb.mxu3 %v9569_v32 }
 0xa34   :  { %5874 = vmatmul.bf16.gmra.mxu1 %v13397_v41  ;;  %6593 = vmatmul.bf16.gmra.mxu0 %v13398_v21 }
 0xa35   :  { %v6101_v58 = vmax.f32 %v6011_v8, 0.0  ;;  %5963 = vmatmul.bf16.gmra.mxu2 %v13399_v2  ;;  %6052 = vmatmul.bf16.gmra.mxu3 %v13400_v31  ;;  %v9553_v31 = vld [vmem:[#allocation11 + $0x40] sm:$0xff] }
 0xa36   :  { %6715 = vmatpush.bf16.msrb.mxu2 %v9561_v9  ;;  %6626 = vmatpush.bf16.msrb.mxu1 %v9553_v31 }
 0xa37   :  { %v12249_v6 = vpack.c.bf16 %v6101_v58, %v6097_v25  ;;  %v12262_v58 = vpop.f32.mrf.mxu0 }
 0xa38   :  { %v5924_v61 = vpop.f32.mrf.mxu2  ;;  %v6013_v46 = vpop.f32.mrf.mxu3 }
 0xa39   :  { %v5925_v33 = vadd.f32 %v5924_v61, %v5836_v56  ;;  %v5837_v44 = vpop.f32.mrf.mxu1 }
 0xa3a   :  { %v5838_v27 = vadd.f32 %v5837_v44, %v12078_v51  ;;  %v13404_v51 = vld [vmem:[#allocation139_spill] sm:$0xff] }
 0xa3b   :  { %v6014_v52 = vadd.f32 %v6013_v46, %v5925_v33 }
 0xa3d   :  { %v6105_v24 = vmax.f32 %v6014_v52, 0.0 }
 0xa40   :  { %v5926_v5 = vpop.f32.mrf.mxu2  ;;  %v6015_v45 = vpop.f32.mrf.mxu3 }
 0xa41   :  { %v5927_v30 = vadd.f32 %v5926_v5, %v5838_v27  ;;  %v5840_v53 = vpop.f32.mrf.mxu1  ;;  %v13406_v5 = vld [vmem:[#allocation155_spill] sm:$0xff] }
 0xa42   :  { %v5841_v59 = vadd.f32 %v5840_v53, %v12082_v36  ;;  %v13407_v53 = vld [vmem:[#allocation142_spill] sm:$0xff] }
 0xa43   :  { %v6016_v62 = vadd.f32 %v6015_v45, %v5927_v30  ;;  %v12267_v45 = vpop.f32.mrf.mxu0 }
 0xa44   :  { %5879 = vmatmul.bf16.gmra.mxu1 %v13401_v16  ;;  %6598 = vmatmul.bf16.gmra.mxu0 %v13402_v19 }
 0xa45   :  { %v6109_v39 = vmax.f32 %v6016_v62, 0.0  ;;  %5968 = vmatmul.bf16.gmra.mxu2 %v13403_v11  ;;  %6057 = vmatmul.bf16.gmra.mxu3 %v13404_v51  ;;  %v9581_v51 = vld [vmem:[#allocation13 + $0x20] sm:$0xff] }
 0xa46   :  { %7005 = vmatpush.bf16.msrb.mxu0 %v9581_v51 }
 0xa47   :  { %v12259_v56 = vpack.c.bf16 %v6109_v39, %v6105_v24 }
 0xa48   :  { %v5929_v8 = vpop.f32.mrf.mxu2  ;;  %v6018_v41 = vpop.f32.mrf.mxu3 }
 0xa49   :  { %v5930_v36 = vadd.f32 %v5929_v8, %v5841_v59  ;;  %v5842_v21 = vpop.f32.mrf.mxu1  ;;  %v13408_v59 = vld [vmem:[#allocation143_spill] sm:$0xff] }
 0xa4a   :  { %v5843_v25 = vadd.f32 %v5842_v21, %v12090_v17 }
 0xa4b   :  { %v6019_v2 = vadd.f32 %v6018_v41, %v5930_v36  ;;  %v12274_v9 = vpop.f32.mrf.mxu0 }
 0xa4d   :  { %v6113_v30 = vmax.f32 %v6019_v2, 0.0  ;;  %v13409_v2 = vld [vmem:[#allocation156_spill] sm:$0xff] }
 0xa50   :  { %v5931_v61 = vpop.f32.mrf.mxu2  ;;  %v6020_v46 = vpop.f32.mrf.mxu3 }
 0xa51   :  { %v5932_v33 = vadd.f32 %v5931_v61, %v5843_v25  ;;  %v5845_v44 = vpop.f32.mrf.mxu1 }
 0xa52   :  { %v5846_v27 = vadd.f32 %v5845_v44, %v12094_v42 }
 0xa53   :  { %v6021_v52 = vadd.f32 %v6020_v46, %v5932_v33 }
 0xa54   :  { %5884 = vmatmul.bf16.gmra.mxu1 %v13405_v38  ;;  %6603 = vmatmul.bf16.gmra.mxu0 %v13406_v5 }
 0xa55   :  { %v6117_v17 = vmax.f32 %v6021_v52, 0.0  ;;  %5973 = vmatmul.bf16.gmra.mxu2 %v13407_v53  ;;  %6062 = vmatmul.bf16.gmra.mxu3 %v13408_v59  ;;  %v12283_v52 = vpop.f32.mrf.mxu0 }
 0xa57   :  { %v12271_v62 = vpack.c.bf16 %v6117_v17, %v6113_v30 }
 0xa58   :  { %v5934_v16 = vpop.f32.mrf.mxu2  ;;  %v6023_v19 = vpop.f32.mrf.mxu3 }
 0xa59   :  { %v5935_v24 = vadd.f32 %v5934_v16, %v5846_v27  ;;  %v5847_v39 = vpop.f32.mrf.mxu1 }
 0xa5a   :  { %v5848_v42 = vadd.f32 %v5847_v39, %v12102_v29  ;;  %v13412_v39 = vld [vmem:[#allocation149_spill] sm:$0xff] }
 0xa5b   :  { %v6024_v11 = vadd.f32 %v6023_v19, %v5935_v24  ;;  %v13411_v24 = vld [vmem:[#allocation148_spill] sm:$0xff] }
 0xa5d   :  { %v6121_v31 = vmax.f32 %v6024_v11, 0.0  ;;  %v12287_v59 = vpop.f32.mrf.mxu0 }
 0xa60   :  { %v5936_v32 = vpop.f32.mrf.mxu2  ;;  %v6025_v8 = vpop.f32.mrf.mxu3 }
 0xa61   :  { %v5937_v41 = vadd.f32 %v5936_v32, %v5848_v42  ;;  %v5850_v36 = vpop.f32.mrf.mxu1 }
 0xa62   :  { %v5851_v21 = vadd.f32 %v5850_v36, %v12106_v0 }
 0xa63   :  { %v6026_v25 = vadd.f32 %v6025_v8, %v5937_v41  ;;  %v9580_v41 = vld [vmem:[#allocation13 + $0x18] sm:$0xff] }
 0xa64   :  { %5889 = vmatmul.bf16.gmra.mxu1 %v13016_v13  ;;  %6608 = vmatmul.bf16.gmra.mxu0 %v13409_v2 }
 0xa65   :  { %v6125_v61 = vmax.f32 %v6026_v25, 0.0  ;;  %5978 = vmatmul.bf16.gmra.mxu2 %v13282_v57  ;;  %6067 = vmatmul.bf16.gmra.mxu3 %v13283_v28  ;;  %v13410_v28 = vld [vmem:[#allocation157_spill] sm:$0xff] }
 0xa66   :  { %7006 = vmatpush.bf16.msrb.mxu0 %v9580_v41  ;;  %v9579_v41 = vld [vmem:[#allocation13 + $0x10] sm:$0xff] }
 0xa67   :  { %v12281_v29 = vpack.c.bf16 %v6125_v61, %v6121_v31  ;;  %v13413_v61 = vld [vmem:[#allocation72_spill] sm:$0xff] }
 0xa68   :  { %v5939_v46 = vpop.f32.mrf.mxu2  ;;  %v6028_v33 = vpop.f32.mrf.mxu3 }
 0xa69   :  { %v5940_v44 = vadd.f32 %v5939_v46, %v5851_v21  ;;  %v5852_v27 = vpop.f32.mrf.mxu1 }
 0xa6a   :  { %v5853_v0 = vadd.f32 %v5852_v27, %v12114_v26  ;;  %7007 = vmatpush.bf16.msrb.mxu0 %v9579_v41 }
 0xa6b   :  { %v6029_v38 = vadd.f32 %v6028_v33, %v5940_v44  ;;  %v13414_v44 = vld [vmem:[#allocation73_spill] sm:$0xff] }
 0xa6d   :  { %v6129_v16 = vmax.f32 %v6029_v38, 0.0 }
 0xa70   :  { %v5941_v13 = vpop.f32.mrf.mxu2  ;;  %v6030_v5 = vpop.f32.mrf.mxu3 }
 0xa71   :  { %v5942_v30 = vadd.f32 %v5941_v13, %v5853_v0  ;;  %v5855_v17 = vpop.f32.mrf.mxu1 }
 0xa72   :  { %v5856_v53 = vadd.f32 %v5855_v17, %v12118_v3 }
 0xa73   :  { %v6031_v57 = vadd.f32 %v6030_v5, %v5942_v30 }
 0xa74   :  { %5894 = vmatmul.bf16.gmra.mxu1 %v10858_v22  ;;  %6613 = vmatmul.bf16.gmra.mxu0 %v13410_v28 }
 0xa75   :  { %v6133_v19 = vmax.f32 %v6031_v57, 0.0  ;;  %5983 = vmatmul.bf16.gmra.mxu2 %v13411_v24  ;;  %6072 = vmatmul.bf16.gmra.mxu3 %v13412_v39  ;;  %v13416_v39 = vld [vmem:[#allocation81_spill] sm:$0xff] }
 0xa77   :  { %v12293_v26 = vpack.c.bf16 %v6133_v19, %v6129_v16  ;;  %v13415_v19 = vld [vmem:[#allocation80_spill] sm:$0xff] }
 0xa78   :  { %v5944_v42 = vpop.f32.mrf.mxu2  ;;  %v6033_v11 = vpop.f32.mrf.mxu3 }
 0xa79   :  { %v5945_v51 = vadd.f32 %v5944_v42, %v5856_v53  ;;  %v5857_v32 = vpop.f32.mrf.mxu1 }
 0xa7a   :  { %v5858_v3 = vadd.f32 %v5857_v32, %v12126_v40 }
 0xa7b   :  { %v6034_v8 = vadd.f32 %v6033_v11, %v5945_v51 }
 0xa7d   :  { %v6137_v46 = vmax.f32 %v6034_v8, 0.0 }
 0xa80   :  { %v5946_v22 = vpop.f32.mrf.mxu2  ;;  %v6035_v36 = vpop.f32.mrf.mxu3 }
 0xa81   :  { %v5947_v21 = vadd.f32 %v5946_v22, %v5858_v3  ;;  %v5860_v25 = vpop.f32.mrf.mxu1 }
 0xa82   :  { %v5861_v2 = vadd.f32 %v5860_v25, %v12130_v37 }
 0xa83   :  { %v6036_v31 = vadd.f32 %v6035_v36, %v5947_v21 }
 0xa84   :  { %6627 = vmatmul.bf16.vlgmr.msrb.gmra.mxu1 %v13413_v61 }
 0xa85   :  { %v6141_v33 = vmax.f32 %v6036_v31, 0.0  ;;  %6716 = vmatmul.bf16.vlgmr.msrb.gmra.mxu2 %v13414_v44  ;;  %6805 = vmatmul.bf16.vlgmr.msrb.gmra.mxu3 %v12229_v15  ;;  %v13417_v31 = vld [vmem:[#allocation158_spill] sm:$0xff] }
 0xa87   :  { %v12300_v27 = vpack.c.bf16 %v6141_v33, %v6137_v46  ;;  %v13418_v46 = vld [vmem:[#allocation20_spill] sm:$0xff]  ;;  %v12314_v33 = vpop.f32.mrf.mxu0 }
 0xa88   :  { %v5949_v40 = vpop.f32.mrf.mxu2  ;;  %v6038_v0 = vpop.f32.mrf.mxu3 }
 0xa89   :  { %v5950_v38 = vadd.f32 %v5949_v40, %v5861_v2  ;;  %v5862_v13 = vpop.f32.mrf.mxu1 }
 0xa8a   :  { %v5863_v5 = vadd.f32 %v5862_v13, %v12138_v20 }
 0xa8b   :  { %v6039_v30 = vadd.f32 %v6038_v0, %v5950_v38 }
 0xa8d   :  { %v6145_v24 = vmax.f32 %v6039_v30, 0.0 }
 0xa90   :  { %v5951_v17 = vpop.f32.mrf.mxu2  ;;  %v6040_v37 = vpop.f32.mrf.mxu3 }
 0xa91   :  { %v5952_v53 = vadd.f32 %v5951_v17, %v5863_v5  ;;  %v5865_v57 = vpop.f32.mrf.mxu1  ;;  %v12319_v17 = vpop.f32.mrf.mxu0 }
 0xa92   :  { %v5866_v28 = vadd.f32 %v5865_v57, %v12142_v48 }
 0xa93   :  { %v6041_v16 = vadd.f32 %v6040_v37, %v5952_v53 }
 0xa94   :  { %6632 = vmatmul.bf16.gmra.mxu1 %v13415_v19 }
 0xa95   :  { %v6149_v15 = vmax.f32 %v6041_v16, 0.0  ;;  %6721 = vmatmul.bf16.gmra.mxu2 %v13416_v39  ;;  %6810 = vmatmul.bf16.gmra.mxu3 %v12237_v14 }
 0xa97   :  { %v12307_v42 = vpack.c.bf16 %v6149_v15, %v6145_v24  ;;  %v13420_v24 = vld [vmem:[#allocation24_spill] sm:$0xff] }
 0xa98   :  { %v5954_v11 = vpop.f32.mrf.mxu2  ;;  %v6043_v20 = vpop.f32.mrf.mxu3 }
 0xa99   :  { %v5955_v51 = vadd.f32 %v5954_v11, %v5866_v28  ;;  %v5867_v32 = vpop.f32.mrf.mxu1  ;;  %v13419_v28 = vld [vmem:[#allocation159_spill] sm:$0xff] }
 0xa9a   :  { %v5868_v3 = vadd.f32 %v5867_v32, %v12150_v43  ;;  %v12328_v32 = vpop.f32.mrf.mxu0 }
 0xa9b   :  { %v6044_v8 = vadd.f32 %v6043_v20, %v5955_v51 }
 0xa9d   :  { %v6153_v14 = vmax.f32 %v6044_v8, 0.0 }
 0xaa0   :  { %v5956_v48 = vpop.f32.mrf.mxu2  ;;  %v6045_v22 = vpop.f32.mrf.mxu3 }
 0xaa1   :  { %v5957_v36 = vadd.f32 %v5956_v48, %v5868_v3  ;;  %v5870_v21 = vpop.f32.mrf.mxu1  ;;  %v9578_v3 = vld [vmem:[#allocation13 + $0x8] sm:$0xff] }
 0xaa2   :  { %v5871_v25 = vadd.f32 %v5870_v21, %v12154_v49  ;;  %7008 = vmatpush.bf16.msrb.mxu0 %v9578_v3  ;;  %v13421_v21 = vld [vmem:[#allocation160_spill] sm:$0xff] }
 0xaa3   :  { %v6046_v2 = vadd.f32 %v6045_v22, %v5957_v36 }
 0xaa4   :  { %6637 = vmatmul.bf16.gmra.mxu1 %v13417_v31 }
 0xaa5   :  { %v6157_v61 = vmax.f32 %v6046_v2, 0.0  ;;  %6726 = vmatmul.bf16.gmra.mxu2 %v13418_v46  ;;  %6815 = vmatmul.bf16.gmra.mxu3 %v12249_v6 }
 0xaa7   :  { %v12316_v43 = vpack.c.bf16 %v6157_v61, %v6153_v14  ;;  %v13422_v14 = vld [vmem:[#allocation28_spill] sm:$0xff] }
 0xaa8   :  { %v5959_v44 = vpop.f32.mrf.mxu2  ;;  %v6048_v40 = vpop.f32.mrf.mxu3 }
 0xaa9   :  { %v5960_v0 = vadd.f32 %v5959_v44, %v5871_v25  ;;  %v5872_v38 = vpop.f32.mrf.mxu1  ;;  %v12332_v25 = vpop.f32.mrf.mxu0 }
 0xaaa   :  { %v5873_v13 = vadd.f32 %v5872_v38, %v12162_v12 }
 0xaab   :  { %v6049_v49 = vadd.f32 %v6048_v40, %v5960_v0 }
 0xaad   :  { %v6161_v16 = vmax.f32 %v6049_v49, 0.0 }
 0xab0   :  { %v5961_v5 = vpop.f32.mrf.mxu2  ;;  %v6050_v30 = vpop.f32.mrf.mxu3 }
 0xab1   :  { %v5962_v37 = vadd.f32 %v5961_v5, %v5873_v13  ;;  %v5875_v53 = vpop.f32.mrf.mxu1  ;;  %v12339_v38 = vpop.f32.mrf.mxu0 }
 0xab2   :  { %v5876_v57 = vadd.f32 %v5875_v53, %v12166_v60 }
 0xab3   :  { %v6051_v6 = vadd.f32 %v6050_v30, %v5962_v37 }
 0xab4   :  { %6642 = vmatmul.bf16.gmra.mxu1 %v13419_v28  ;;  %v13424_v28 = vld [vmem:[#allocation32_spill] sm:$0xff] }
 0xab5   :  { %v6165_v19 = vmax.f32 %v6051_v6, 0.0  ;;  %6731 = vmatmul.bf16.gmra.mxu2 %v13420_v24  ;;  %6820 = vmatmul.bf16.gmra.mxu3 %v12259_v56 }
 0xab7   :  { %v12325_v15 = vpack.c.bf16 %v6165_v19, %v6161_v16 }
 0xab8   :  { %v5964_v12 = vpop.f32.mrf.mxu2  ;;  %v6053_v39 = vpop.f32.mrf.mxu3 }
 0xab9   :  { %v5965_v11 = vadd.f32 %v5964_v12, %v5876_v57  ;;  %v5877_v20 = vpop.f32.mrf.mxu1  ;;  %v13423_v57 = vld [vmem:[#allocation31_spill] sm:$0xff]  ;;  %v12347_v24 = vpop.f32.mrf.mxu0 }
 0xaba   :  { %v5878_v51 = vadd.f32 %v5877_v20, %v12174_v1  ;;  %v9577_v20 = vld [vmem:[#allocation13] sm:$0xff] }
 0xabb   :  { %v6054_v60 = vadd.f32 %v6053_v39, %v5965_v11  ;;  %7009 = vmatpush.bf16.msrb.mxu0 %v9577_v20 }
 0xabd   :  { %v6169_v2 = vmax.f32 %v6054_v60, 0.0 }
 0xac0   :  { %v5966_v8 = vpop.f32.mrf.mxu2  ;;  %v6055_v41 = vpop.f32.mrf.mxu3 }
 0xac1   :  { %v5967_v48 = vadd.f32 %v5966_v8, %v5878_v51  ;;  %v5880_v22 = vpop.f32.mrf.mxu1 }
 0xac2   :  { %v5881_v36 = vadd.f32 %v5880_v22, %v12178_v23  ;;  %v13425_v22 = vld [vmem:[#allocation161_spill] sm:$0xff] }
 0xac3   :  { %v6056_v56 = vadd.f32 %v6055_v41, %v5967_v48 }
 0xac4   :  { %6647 = vmatmul.bf16.gmra.mxu1 %v13421_v21  ;;  %v13426_v21 = vld [vmem:[#allocation21_spill] sm:$0xff] }
 0xac5   :  { %v6173_v31 = vmax.f32 %v6056_v56, 0.0  ;;  %6736 = vmatmul.bf16.gmra.mxu2 %v13422_v14  ;;  %6825 = vmatmul.bf16.gmra.mxu3 %v12271_v62 }
 0xac7   :  { %v12336_v1 = vpack.c.bf16 %v6173_v31, %v6169_v2 }
 0xac8   :  { %v5969_v61 = vpop.f32.mrf.mxu2  ;;  %v6058_v46 = vpop.f32.mrf.mxu3 }
 0xac9   :  { %v5970_v44 = vadd.f32 %v5969_v61, %v5881_v36  ;;  %v5882_v40 = vpop.f32.mrf.mxu1 }
 0xaca   :  { %v5883_v0 = vadd.f32 %v5882_v40, %v12186_v18 }
 0xacb   :  { %v6059_v23 = vadd.f32 %v6058_v46, %v5970_v44 }
 0xacd   :  { %v6177_v62 = vmax.f32 %v6059_v23, 0.0 }
 0xad0   :  { %v5971_v13 = vpop.f32.mrf.mxu2  ;;  %v6060_v49 = vpop.f32.mrf.mxu3 }
 0xad1   :  { %v5972_v5 = vadd.f32 %v5971_v13, %v5883_v0  ;;  %v5885_v30 = vpop.f32.mrf.mxu1 }
 0xad2   :  { %v5886_v37 = vadd.f32 %v5885_v30, %v12190_v63  ;;  %v13427_v30 = vld [vmem:[#allocation162_spill] sm:$0xff] }
 0xad3   :  { %v6061_v53 = vadd.f32 %v6060_v49, %v5972_v5 }
 0xad4   :  { %6652 = vmatmul.bf16.gmra.mxu1 %v13423_v57 }
 0xad5   :  { %v6181_v6 = vmax.f32 %v6061_v53, 0.0  ;;  %6741 = vmatmul.bf16.gmra.mxu2 %v13424_v28  ;;  %6830 = vmatmul.bf16.gmra.mxu3 %v12281_v29  ;;  %v12351_v29 = vpop.f32.mrf.mxu0  ;;  %v13428_v53 = vld [vmem:[#allocation25_spill] sm:$0xff] }
 0xad7   :  { %v12345_v16 = vpack.c.bf16 %v6181_v6, %v6177_v62 }
 0xad8   :  { %v5974_v18 = vpop.f32.mrf.mxu2  ;;  %v6063_v19 = vpop.f32.mrf.mxu3 }
 0xad9   :  { %v5975_v12 = vadd.f32 %v5974_v18, %v5886_v37  ;;  %v5887_v39 = vpop.f32.mrf.mxu1 }
 0xada   :  { %v5888_v11 = vadd.f32 %v5887_v39, %v12198_v35 }
 0xadb   :  { %v6064_v63 = vadd.f32 %v6063_v19, %v5975_v12 }
 0xadd   :  { %v6185_v36 = vmax.f32 %v6064_v63, 0.0  ;;  %v12359_v44 = vpop.f32.mrf.mxu0 }
 0xae0   :  { %v5976_v51 = vpop.f32.mrf.mxu2  ;;  %v6065_v60 = vpop.f32.mrf.mxu3 }
 0xae1   :  { %v5977_v3 = vadd.f32 %v5976_v51, %v5888_v11  ;;  %v5890_v8 = vpop.f32.mrf.mxu1 }
 0xae2   :  { %v5891_v41 = vadd.f32 %v5890_v8, %v12202_v4 }
 0xae3   :  { %v6066_v48 = vadd.f32 %v6065_v60, %v5977_v3  ;;  %v13429_v60 = vld [vmem:[#allocation163_spill] sm:$0xff] }
 0xae4   :  { %6657 = vmatmul.bf16.gmra.mxu1 %v13425_v22 }
 0xae5   :  { %v6189_v56 = vmax.f32 %v6066_v48, 0.0  ;;  %6746 = vmatmul.bf16.gmra.mxu2 %v13426_v21  ;;  %6835 = vmatmul.bf16.gmra.mxu3 %v12293_v26  ;;  %v12365_v57 = vpop.f32.mrf.mxu0 }
 0xae7   :  { %v12356_v35 = vpack.c.bf16 %v6189_v56, %v6185_v36 }
 0xae8   :  { %v5979_v2 = vpop.f32.mrf.mxu2  ;;  %v6068_v31 = vpop.f32.mrf.mxu3 }
 0xae9   :  { %v5980_v14 = vadd.f32 %v5979_v2, %v5891_v41  ;;  %v5892_v61 = vpop.f32.mrf.mxu1  ;;  %v13430_v41 = vld [vmem:[#allocation29_spill] sm:$0xff] }
 0xaea   :  { %v5893_v46 = vadd.f32 %v5892_v61, %v12210_v10 }
 0xaeb   :  { %v6069_v4 = vadd.f32 %v6068_v31, %v5980_v14 }
 0xaed   :  { %v6193_v26 = vmax.f32 %v6069_v4, 0.0  ;;  %v12370_v11 = vpop.f32.mrf.mxu0 }
 0xaf0   :  { %v5981_v40 = vpop.f32.mrf.mxu2  ;;  %v6070_v0 = vpop.f32.mrf.mxu3 }
 0xaf1   :  { %v5982_v23 = vadd.f32 %v5981_v40, %v5893_v46  ;;  %v5895_v13 = vpop.f32.mrf.mxu1 }
 0xaf2   :  { %v5896_v49 = vadd.f32 %v5895_v13, %v12214_v7  ;;  %v13431_v13 = vld [vmem:[#allocation164_spill] sm:$0xff] }
 0xaf3   :  { %v6071_v5 = vadd.f32 %v6070_v0, %v5982_v23 }
 0xaf4   :  { %6662 = vmatmul.bf16.gmra.mxu1 %v13427_v30  ;;  %v13432_v30 = vld [vmem:[#allocation33_spill] sm:$0xff] }
 0xaf5   :  { %v6197_v37 = vmax.f32 %v6071_v5, 0.0  ;;  %6751 = vmatmul.bf16.gmra.mxu2 %v13428_v53  ;;  %6840 = vmatmul.bf16.gmra.mxu3 %v12300_v27  ;;  %v12376_v27 = vld [vmem:[%s12613_s6] ss:$0 sm:$0xff]  ;;  %v12384_v21 = vpop.f32.mrf.mxu0 }
 0xaf6   :  { %v6540_v36 = vadd.f32 %v12376_v27, %v12240_v34  ;;  %v6542_v31 = vadd.f32 %v12376_v27, %v12247_v54  ;;  %v6545_v53 = vadd.f32 %v12376_v27, %v12252_v55 }
 0xaf7   :  { %v12367_v10 = vpack.c.bf16 %v6197_v37, %v6193_v26 }
 0xaf8   :  { %v5984_v62 = vpop.f32.mrf.mxu2  ;;  %v6073_v6 = vpop.f32.mrf.mxu3 }
 0xaf9   :  { %v5985_v28 = vadd.f32 %v5984_v62, %v5896_v49  ;;  %v5897_v18 = vpop.f32.mrf.mxu1 }
 0xafa   :  { %v5898_v19 = vadd.f32 %v5897_v18, %v12221_v50 }
 0xafb   :  { %v6074_v7 = vadd.f32 %v6073_v6, %v5985_v28  ;;  %v6547_v28 = vadd.f32 %v12376_v27, %v12262_v58 }
 0xafd   :  { %v6201_v3 = vmax.f32 %v6074_v7, 0.0  ;;  %v12389_v49 = vpop.f32.mrf.mxu0 }
 0xb00   :  { %v5986_v12 = vpop.f32.mrf.mxu2  ;;  %v6075_v39 = vpop.f32.mrf.mxu3 }
 0xb01   :  { %v5987_v63 = vadd.f32 %v5986_v12, %v5898_v19  ;;  %v6628_v20 = vpop.f32.mrf.mxu1 }
 0xb02   :  { %v6629_v2 = vadd.f32 %v6628_v20, %v6540_v36 }
 0xb03   :  { %v6076_v51 = vadd.f32 %v6075_v39, %v5987_v63 }
 0xb04   :  { %6667 = vmatmul.bf16.gmra.mxu1 %v13429_v60  ;;  %v13433_v60 = vld [vmem:[#allocation165_spill] sm:$0xff] }
 0xb05   :  { %v6205_v8 = vmax.f32 %v6076_v51, 0.0  ;;  %6756 = vmatmul.bf16.gmra.mxu2 %v13430_v41  ;;  %6845 = vmatmul.bf16.gmra.mxu3 %v12307_v42  ;;  %v12397_v19 = vpop.f32.mrf.mxu0 }
 0xb07   :  { %v12380_v50 = vpack.c.bf16 %v6205_v8, %v6201_v3  ;;  %v13434_v8 = vld [vmem:[#allocation22_spill] sm:$0xff] }
 0xb08   :  { %v6717_v48 = vpop.f32.mrf.mxu2  ;;  %v6806_v22 = vpop.f32.mrf.mxu3 }
 0xb09   :  { %v6630_v56 = vpop.f32.mrf.mxu1  ;;  %v6718_v14 = vadd.f32 %v6717_v48, %v6629_v2 }
 0xb0a   :  { %v6631_v61 = vadd.f32 %v6630_v56, %v6542_v31  ;;  %v6552_v31 = vadd.f32 %v12376_v27, %v12274_v9 }
 0xb0b   :  { %v6807_v40 = vadd.f32 %v6806_v22, %v6718_v14  ;;  %v6550_v22 = vadd.f32 %v12376_v27, %v12267_v45 }
 0xb0d   :  { %v6886_v34 = vmax.f32 %v6807_v40, 0.0  ;;  %v12404_v36 = vpop.f32.mrf.mxu0 }
 0xb10   :  { %v6719_v46 = vpop.f32.mrf.mxu2  ;;  %v6808_v4 = vpop.f32.mrf.mxu3 }
 0xb11   :  { %v6720_v42 = vadd.f32 %v6719_v46, %v6631_v61  ;;  %v6633_v0 = vpop.f32.mrf.mxu1 }
 0xb12   :  { %v6634_v6 = vadd.f32 %v6633_v0, %v6545_v53 }
 0xb13   :  { %v6809_v23 = vadd.f32 %v6808_v4, %v6720_v42 }
 0xb14   :  { %6672 = vmatmul.bf16.gmra.mxu1 %v13431_v13  ;;  %v13435_v13 = vld [vmem:[#allocation166_spill] sm:$0xff] }
 0xb15   :  { %v6887_v5 = vmax.f32 %v6809_v23, 0.0  ;;  %6761 = vmatmul.bf16.gmra.mxu2 %v13432_v30  ;;  %6850 = vmatmul.bf16.gmra.mxu3 %v12316_v43  ;;  %v12408_v0 = vpop.f32.mrf.mxu0 }
 0xb17   :  { %v6918_v26 = vpack.c.bf16 %v6887_v5, %v6886_v34  ;;  %v13436_v5 = vld [vmem:[#allocation26_spill] sm:$0xff] }
 0xb18   :  { %v6722_v54 = vpop.f32.mrf.mxu2  ;;  %v6811_v37 = vpop.f32.mrf.mxu3 }
 0xb19   :  { %7010 = vmatmul.bf16.vlgmr.msrb.gmra.mxu0 %v6918_v26  ;;  %v6635_v62 = vpop.f32.mrf.mxu1  ;;  %v6723_v18 = vadd.f32 %v6722_v54, %v6634_v6  ;;  %v6555_v54 = vadd.f32 %v12376_v27, %v12283_v52 }
 0xb1a   :  { %v6636_v7 = vadd.f32 %v6635_v62, %v6547_v28  ;;  %v6557_v62 = vadd.f32 %v12376_v27, %v12287_v59 }
 0xb1b   :  { %v6812_v63 = vadd.f32 %v6811_v37, %v6723_v18 }
 0xb1d   :  { %v6888_v3 = vmax.f32 %v6812_v63, 0.0  ;;  %v12417_v6 = vpop.f32.mrf.mxu0 }
 0xb20   :  { %v6724_v12 = vpop.f32.mrf.mxu2  ;;  %v6813_v39 = vpop.f32.mrf.mxu3 }
 0xb21   :  { %v6725_v43 = vadd.f32 %v6724_v12, %v6636_v7  ;;  %v6638_v20 = vpop.f32.mrf.mxu1 }
 0xb22   :  { %v6639_v2 = vadd.f32 %v6638_v20, %v6550_v22  ;;  %v13437_v20 = vld [vmem:[#allocation167_spill] sm:$0xff]  ;;  %v6562_v22 = vadd.f32 %v12376_v27, %v12319_v17 }
 0xb23   :  { %v6814_v51 = vadd.f32 %v6813_v39, %v6725_v43 }
 0xb24   :  { %6677 = vmatmul.bf16.gmra.mxu1 %v13433_v60  ;;  %v13438_v60 = vld [vmem:[#allocation30_spill] sm:$0xff] }
 0xb25   :  { %v6889_v55 = vmax.f32 %v6814_v51, 0.0  ;;  %6766 = vmatmul.bf16.gmra.mxu2 %v13434_v8  ;;  %6855 = vmatmul.bf16.gmra.mxu3 %v12325_v15 }
 0xb27   :  { %v6919_v41 = vpack.c.bf16 %v6889_v55, %v6888_v3  ;;  %v12422_v3 = vpop.f32.mrf.mxu0 }
 0xb28   :  { %v6727_v58 = vpop.f32.mrf.mxu2  ;;  %v6816_v48 = vpop.f32.mrf.mxu3 }
 0xb29   :  { %7015 = vmatmul.bf16.gmra.mxu0 %v6919_v41  ;;  %v6640_v56 = vpop.f32.mrf.mxu1  ;;  %v6728_v14 = vadd.f32 %v6727_v58, %v6639_v2  ;;  %v6560_v41 = vadd.f32 %v12376_v27, %v12314_v33 }
 0xb2a   :  { %v6641_v61 = vadd.f32 %v6640_v56, %v6552_v31 }
 0xb2b   :  { %v6817_v40 = vadd.f32 %v6816_v48, %v6728_v14 }
 0xb2d   :  { %v6890_v45 = vmax.f32 %v6817_v40, 0.0 }
 0xb30   :  { %v6729_v46 = vpop.f32.mrf.mxu2  ;;  %v6818_v4 = vpop.f32.mrf.mxu3 }
 0xb31   :  { %v6730_v15 = vadd.f32 %v6729_v46, %v6641_v61  ;;  %v6643_v42 = vpop.f32.mrf.mxu1  ;;  %v12428_v61 = vpop.f32.mrf.mxu0 }
 0xb32   :  { %v6644_v53 = vadd.f32 %v6643_v42, %v6555_v54 }
 0xb33   :  { %v6819_v23 = vadd.f32 %v6818_v4, %v6730_v15  ;;  %v13439_v15 = vld [vmem:[#allocation168_spill] sm:$0xff] }
 0xb34   :  { %6682 = vmatmul.bf16.gmra.mxu1 %v13435_v13 }
 0xb35   :  { %v6891_v34 = vmax.f32 %v6819_v23, 0.0  ;;  %6771 = vmatmul.bf16.gmra.mxu2 %v13436_v5  ;;  %6860 = vmatmul.bf16.gmra.mxu3 %v12336_v1  ;;  %v13440_v23 = vld [vmem:[#allocation34_spill] sm:$0xff] }
 0xb37   :  { %v6920_v30 = vpack.c.bf16 %v6891_v34, %v6890_v45  ;;  %v6565_v34 = vadd.f32 %v12376_v27, %v12328_v32 }
 0xb38   :  { %v6732_v9 = vpop.f32.mrf.mxu2  ;;  %v6821_v26 = vpop.f32.mrf.mxu3 }
 0xb39   :  { %7020 = vmatmul.bf16.gmra.mxu0 %v6920_v30  ;;  %v6645_v37 = vpop.f32.mrf.mxu1  ;;  %v6733_v28 = vadd.f32 %v6732_v9, %v6644_v53  ;;  %v12435_v30 = vpop.f32.mrf.mxu0 }
 0xb3a   :  { %v6646_v18 = vadd.f32 %v6645_v37, %v6557_v62 }
 0xb3b   :  { %v6822_v39 = vadd.f32 %v6821_v26, %v6733_v28  ;;  %v6567_v26 = vadd.f32 %v12376_v27, %v12332_v25 }
 0xb3d   :  { %v6892_v51 = vmax.f32 %v6822_v39, 0.0 }
 0xb40   :  { %v6734_v7 = vpop.f32.mrf.mxu2  ;;  %v6823_v12 = vpop.f32.mrf.mxu3 }
 0xb41   :  { %v6735_v1 = vadd.f32 %v6734_v7, %v6646_v18  ;;  %v6648_v63 = vpop.f32.mrf.mxu1  ;;  %v12440_v39 = vpop.f32.mrf.mxu0 }
 0xb42   :  { %v6649_v48 = vadd.f32 %v6648_v63, %v6560_v41  ;;  %v13442_v63 = vld [vmem:[#allocation23_spill] sm:$0xff] }
 0xb43   :  { %v6824_v43 = vadd.f32 %v6823_v12, %v6735_v1  ;;  %v13441_v12 = vld [vmem:[#allocation169_spill] sm:$0xff] }
 0xb44   :  { %6687 = vmatmul.bf16.gmra.mxu1 %v13437_v20 }
 0xb45   :  { %v6893_v52 = vmax.f32 %v6824_v43, 0.0  ;;  %6776 = vmatmul.bf16.gmra.mxu2 %v13438_v60  ;;  %6865 = vmatmul.bf16.gmra.mxu3 %v12345_v16 }
 0xb47   :  { %v6921_v59 = vpack.c.bf16 %v6893_v52, %v6892_v51  ;;  %v6570_v51 = vadd.f32 %v12376_v27, %v12339_v38 }
 0xb48   :  { %v6737_v55 = vpop.f32.mrf.mxu2  ;;  %v6826_v8 = vpop.f32.mrf.mxu3 }
 0xb49   :  { %7025 = vmatmul.bf16.gmra.mxu0 %v6921_v59  ;;  %v6650_v58 = vpop.f32.mrf.mxu1  ;;  %v6738_v56 = vadd.f32 %v6737_v55, %v6649_v48  ;;  %v6572_v59 = vadd.f32 %v12376_v27, %v12347_v24 }
 0xb4a   :  { %v6651_v2 = vadd.f32 %v6650_v58, %v6562_v22 }
 0xb4b   :  { %v6827_v16 = vadd.f32 %v6826_v8, %v6738_v56  ;;  %v12448_v8 = vpop.f32.mrf.mxu0 }
 0xb4d   :  { %v6894_v42 = vmax.f32 %v6827_v16, 0.0 }
 0xb50   :  { %v6739_v31 = vpop.f32.mrf.mxu2  ;;  %v6828_v14 = vpop.f32.mrf.mxu3 }
 0xb51   :  { %v6740_v46 = vadd.f32 %v6739_v31, %v6651_v2  ;;  %v6653_v4 = vpop.f32.mrf.mxu1  ;;  %v13443_v31 = vld [vmem:[#allocation170_spill] sm:$0xff] }
 0xb52   :  { %v6654_v9 = vadd.f32 %v6653_v4, %v6565_v34  ;;  %v6575_v4 = vadd.f32 %v12376_v27, %v12351_v29 }
 0xb53   :  { %v6829_v40 = vadd.f32 %v6828_v14, %v6740_v46 }
 0xb54   :  { %6692 = vmatmul.bf16.gmra.mxu1 %v13439_v15  ;;  %v12455_v15 = vpop.f32.mrf.mxu0 }
 0xb55   :  { %v6895_v33 = vmax.f32 %v6829_v40, 0.0  ;;  %6781 = vmatmul.bf16.gmra.mxu2 %v13440_v23  ;;  %6870 = vmatmul.bf16.gmra.mxu3 %v12356_v35 }
 0xb57   :  { %v6922_v13 = vpack.c.bf16 %v6895_v33, %v6894_v42  ;;  %v6577_v33 = vadd.f32 %v12376_v27, %v12359_v44 }
 0xb58   :  { %v6742_v17 = vpop.f32.mrf.mxu2  ;;  %v6831_v45 = vpop.f32.mrf.mxu3 }
 0xb59   :  { %7030 = vmatmul.bf16.gmra.mxu0 %v6922_v13  ;;  %v6655_v5 = vpop.f32.mrf.mxu1  ;;  %v6743_v54 = vadd.f32 %v6742_v17, %v6654_v9 }
 0xb5a   :  { %v6656_v37 = vadd.f32 %v6655_v5, %v6567_v26 }
 0xb5b   :  { %v6832_v28 = vadd.f32 %v6831_v45, %v6743_v54 }
 0xb5c   :  { %v12459_v9 = vpop.f32.mrf.mxu0 }
 0xb5d   :  { %v6896_v32 = vmax.f32 %v6832_v28, 0.0 }
 0xb60   :  { %v6744_v53 = vpop.f32.mrf.mxu2  ;;  %v6833_v62 = vpop.f32.mrf.mxu3 }
 0xb61   :  { %v6745_v35 = vadd.f32 %v6744_v53, %v6656_v37  ;;  %v6658_v18 = vpop.f32.mrf.mxu1 }
 0xb62   :  { %v6659_v60 = vadd.f32 %v6658_v18, %v6570_v51 }
 0xb63   :  { %v6834_v7 = vadd.f32 %v6833_v62, %v6745_v35  ;;  %v6580_v62 = vadd.f32 %v12376_v27, %v12365_v57  ;;  %v6582_v35 = vadd.f32 %v12376_v27, %v12370_v11  ;;  %v12470_v57 = vld [vmem:[%s12615_s8] ss:$0 sm:$0xff] }
 0xb64   :  { %6697 = vmatmul.bf16.gmra.mxu1 %v13441_v12 }
 0xb65   :  { %v6897_v1 = vmax.f32 %v6834_v7, 0.0  ;;  %6786 = vmatmul.bf16.gmra.mxu2 %v13442_v63  ;;  %6875 = vmatmul.bf16.gmra.mxu3 %v12367_v10  ;;  %v12465_v7 = vpop.f32.mrf.mxu0 }
 0xb67   :  { %v6923_v43 = vpack.c.bf16 %v6897_v1, %v6896_v32 }
 0xb68   :  { %v6747_v25 = vpop.f32.mrf.mxu2  ;;  %v6836_v20 = vpop.f32.mrf.mxu3 }
 0xb69   :  { %7035 = vmatmul.bf16.gmra.mxu0 %v6923_v43  ;;  %v6660_v52 = vpop.f32.mrf.mxu1  ;;  %v6748_v55 = vadd.f32 %v6747_v25, %v6659_v60 }
 0xb6a   :  { %v6661_v41 = vadd.f32 %v6660_v52, %v6572_v59 }
 0xb6b   :  { %v6837_v22 = vadd.f32 %v6836_v20, %v6748_v55 }
 0xb6d   :  { %v6898_v14 = vmax.f32 %v6837_v22, 0.0 }
 0xb70   :  { %v6749_v58 = vpop.f32.mrf.mxu2  ;;  %v6838_v48 = vpop.f32.mrf.mxu3 }
 0xb71   :  { %v6750_v10 = vadd.f32 %v6749_v58, %v6661_v41  ;;  %v6663_v56 = vpop.f32.mrf.mxu1  ;;  %v6585_v58 = vadd.f32 %v12376_v27, %v12384_v21 }
 0xb72   :  { %v6664_v42 = vadd.f32 %v6663_v56, %v6575_v4  ;;  %v6587_v56 = vadd.f32 %v12376_v27, %v12389_v49 }
 0xb73   :  { %v6839_v2 = vadd.f32 %v6838_v48, %v6750_v10 }
 0xb74   :  { %6702 = vmatmul.bf16.gmra.mxu1 %v13443_v31 }
 0xb75   :  { %v6899_v38 = vmax.f32 %v6839_v2, 0.0  ;;  %6791 = vmatmul.bf16.gmra.mxu2 %v12030_v47  ;;  %6880 = vmatmul.bf16.gmra.mxu3 %v12380_v50 }
 0xb77   :  { %v6924_v16 = vpack.c.bf16 %v6899_v38, %v6898_v14 }
 0xb78   :  { %v6752_v24 = vpop.f32.mrf.mxu2  ;;  %v6841_v46 = vpop.f32.mrf.mxu3 }
 0xb79   :  { %7040 = vmatmul.bf16.gmra.mxu0 %v6924_v16  ;;  %v6665_v40 = vpop.f32.mrf.mxu1  ;;  %v6753_v23 = vadd.f32 %v6752_v24, %v6664_v42 }
 0xb7a   :  { %v6666_v13 = vadd.f32 %v6665_v40, %v6577_v33 }
 0xb7b   :  { %v6842_v45 = vadd.f32 %v6841_v46, %v6753_v23 }
 0xb7d   :  { %v6900_v26 = vmax.f32 %v6842_v45, 0.0 }
 0xb80   :  { %v6754_v17 = vpop.f32.mrf.mxu2  ;;  %v6843_v47 = vpop.f32.mrf.mxu3 }
 0xb81   :  { %v6755_v50 = vadd.f32 %v6754_v17, %v6666_v13  ;;  %v6668_v34 = vpop.f32.mrf.mxu1 }
 0xb82   :  { %v6669_v28 = vadd.f32 %v6668_v34, %v6580_v62 }
 0xb83   :  { %v6844_v5 = vadd.f32 %v6843_v47, %v6755_v50 }
 0xb85   :  { %v6901_v29 = vmax.f32 %v6844_v5, 0.0 }
 0xb87   :  { %v6925_v54 = vpack.c.bf16 %v6901_v29, %v6900_v26 }
 0xb88   :  { %v6757_v37 = vpop.f32.mrf.mxu2  ;;  %v6846_v53 = vpop.f32.mrf.mxu3 }
 0xb89   :  { %7045 = vmatmul.bf16.gmra.mxu0 %v6925_v54  ;;  %v6670_v44 = vpop.f32.mrf.mxu1  ;;  %v6758_v18 = vadd.f32 %v6757_v37, %v6669_v28  ;;  %v6590_v37 = vadd.f32 %v12376_v27, %v12397_v19  ;;  %v6592_v28 = vadd.f32 %v12376_v27, %v12404_v36 }
 0xb8a   :  { %v6671_v12 = vadd.f32 %v6670_v44, %v6582_v35 }
 0xb8b   :  { %v6847_v63 = vadd.f32 %v6846_v53, %v6758_v18 }
 0xb8d   :  { %v6902_v51 = vmax.f32 %v6847_v63, 0.0 }
 0xb90   :  { %v6759_v32 = vpop.f32.mrf.mxu2  ;;  %v6848_v1 = vpop.f32.mrf.mxu3 }
 0xb91   :  { %v6760_v43 = vadd.f32 %v6759_v32, %v6671_v12  ;;  %v6673_v25 = vpop.f32.mrf.mxu1 }
 0xb92   :  { %v6674_v10 = vadd.f32 %v6673_v25, %v6585_v58 }
 0xb93   :  { %v6849_v20 = vadd.f32 %v6848_v1, %v6760_v43 }
 0xb95   :  { %v6903_v52 = vmax.f32 %v6849_v20, 0.0 }
 0xb96   :  { %v7011_v60 = vpop.f32.mrf.mxu0 }
 0xb97   :  { %v6926_v59 = vpack.c.bf16 %v6903_v52, %v6902_v51  ;;  %v7012_v11 = vadd.f32 %v12470_v57, %v7011_v60 }
 0xb98   :  { %v6762_v55 = vpop.f32.mrf.mxu2  ;;  %v6851_v41 = vpop.f32.mrf.mxu3 }
 0xb99   :  { %v9193_v48 = vmul.f32 -1.442695, %v7012_v11  ;;  %7050 = vmatmul.bf16.gmra.mxu0 %v6926_v59  ;;  %v6675_v22 = vpop.f32.mrf.mxu1  ;;  %v6763_v2 = vadd.f32 %v6762_v55, %v6674_v10 }
 0xb9a   :  { %v6676_v14 = vadd.f32 %v6675_v22, %v6587_v56 }
 0xb9b   :  { %9627 = vpow2.f32 %v9193_v48  ;;  %v6852_v4 = vadd.f32 %v6851_v41, %v6763_v2 }
 0xb9d   :  { %v6904_v13 = vmax.f32 %v6852_v4, 0.0 }
 0xb9e   :  { %v7013_v31 = vpop.f32.mrf.mxu0 }
 0xb9f   :  { %v7014_v38 = vadd.f32 %v12470_v57, %v7013_v31 }
 0xba0   :  { %v6764_v16 = vpop.f32.mrf.mxu2  ;;  %v6853_v24 = vpop.f32.mrf.mxu3 }
 0xba1   :  { %v9628_v46 = vpop.eup %9627  ;;  %v9194_v40 = vmul.f32 -1.442695, %v7014_v38  ;;  %v6765_v42 = vadd.f32 %v6764_v16, %v6676_v14  ;;  %v6678_v21 = vpop.f32.mrf.mxu1 }
 0xba2   :  { %v7187_v33 = vadd.f32 1.0, %v9628_v46  ;;  %v6679_v44 = vadd.f32 %v6678_v21, %v6590_v37 }
 0xba3   :  { %9629 = vpow2.f32 %v9194_v40  ;;  %v6854_v23 = vadd.f32 %v6853_v24, %v6765_v42 }
 0xba4   :  { %9631 = vrcp.f32 %v7187_v33  ;;  %v7228_v18 = vand.u32 2147483647, %v7187_v33  ;;  %v7230_v12 = vand.u32 2147483648, %v7187_v33  ;;  %vm7224_vm1 = vweird.f32 %v7187_v33 }
 0xba5   :  { %v6905_v17 = vmax.f32 %v6854_v23, 0.0 }
 0xba6   :  { %v7016_v47 = vpop.f32.mrf.mxu0  ;;  %v7231_v36 = vor.u32 1.1754944e-38, %v7230_v12  ;;  %vm7229_vm3 = vcmp.eq.f32.partialorder %v7228_v18, 8.507059e+37 }
 0xba7   :  { %v6927_v49 = vpack.c.bf16 %v6905_v17, %v6904_v13  ;;  %v7017_v45 = vadd.f32 %v12470_v57, %v7016_v47 }
 0xba8   :  { %v6767_v50 = vpop.f32.mrf.mxu2  ;;  %v6856_v34 = vpop.f32.mrf.mxu3 }
 0xba9   :  { %v9630_v5 = vpop.eup %9629  ;;  %v9195_v26 = vmul.f32 -1.442695, %v7017_v45  ;;  %7055 = vmatmul.bf16.gmra.mxu0 %v6927_v49  ;;  %v6680_v29 = vpop.f32.mrf.mxu1  ;;  %v6768_v32 = vadd.f32 %v6767_v50, %v6679_v44  ;;  %v6595_v49 = vadd.f32 %v12376_v27, %v12408_v0 }
 0xbaa   :  { %v9632_v54 = vpop.eup %9631  ;;  %v7188_v53 = vadd.f32 1.0, %v9630_v5  ;;  %v6681_v43 = vadd.f32 %v6680_v29, %v6592_v28 }
 0xbab   :  { %v7220_v62 = vmul.f32 %v9632_v54, %v7187_v33  ;;  %9633 = vpow2.f32 %v9195_v26  ;;  %vm7225_vm0 = vweird.f32 %v9632_v54  ;;  %v6857_v58 = vadd.f32 %v6856_v34, %v6768_v32 }
 0xbac   :  { %9635 = vrcp.f32 %v7188_v53  ;;  %vm7226_vm2 = vmor %vm7224_vm1, %vm7225_vm0  ;;  %v7243_v31 = vand.u32 2147483647, %v7188_v53  ;;  %v7245_v14 = vand.u32 2147483648, %v7188_v53  ;;  %vm7239_vm5 = vweird.f32 %v7188_v53 }
 0xbad   :  { %v7221_v35 = vsub.f32 1.0, %v7220_v62  ;;  %v6906_v38 = vmax.f32 %v6857_v58, 0.0 }
 0xbae   :  { %v7018_v1 = vpop.f32.mrf.mxu0  ;;  %v7246_v45 = vor.u32 1.1754944e-38, %v7245_v14  ;;  %vm7244_vm7 = vcmp.eq.f32.partialorder %v7243_v31, 8.507059e+37 }
 0xbaf   :  { %v7222_v63 = vmul.f32 %v9632_v54, %v7221_v35  ;;  %v7019_v25 = vadd.f32 %v12470_v57, %v7018_v1 }
 0xbb0   :  { %v6769_v20 = vpop.f32.mrf.mxu2  ;;  %v6858_v19 = vpop.f32.mrf.mxu3 }
 0xbb1   :  { %v9634_v51 = vpop.eup %9633  ;;  %v7223_v52 = vadd.f32 %v9632_v54, %v7222_v63  ;;  %v9196_v60 = vmul.f32 -1.442695, %v7019_v25  ;;  %v6770_v59 = vadd.f32 %v6769_v20, %v6681_v43  ;;  %v6683_v11 = vpop.f32.mrf.mxu1 }
 0xbb2   :  { %v9636_v55 = vpop.eup %9635  ;;  %v12484_v41 = vadd.f32 1.0, %v9634_v51  ;;  %v6684_v29 = vadd.f32 %v6683_v11, %v6595_v49  ;;  %v6602_v49 = vadd.f32 %v12376_v27, %v12428_v61 }
 0xbb3   :  { %v7227_v48 = vsel %vm7226_vm2, %v9632_v54, %v7223_v52  ;;  %v7235_v22 = vmul.f32 %v9636_v55, %v7188_v53  ;;  %9637 = vpow2.f32 %v9196_v60  ;;  %v6859_v2 = vadd.f32 %v6858_v19, %v6770_v59 }
 0xbb4   :  { %v7232_v10 = vsel %vm7229_vm3, %v7231_v36, %v7227_v48  ;;  %9639 = vrcp.f32 %v12484_v41  ;;  %vm7240_vm4 = vweird.f32 %v9636_v55  ;;  %v6597_v54 = vadd.f32 %v12376_v27, %v12417_v6 }
 0xbb5   :  { %7699 = vst [vmem:[#allocation14] sm:$0xff] %v7232_v10  ;;  %v7236_v56 = vsub.f32 1.0, %v7235_v22  ;;  %v6907_v46 = vmax.f32 %v6859_v2, 0.0  ;;  %vm7241_vm6 = vmor %vm7239_vm5, %vm7240_vm4  ;;  %v7258_v0 = vand.u32 2147483647, %v12484_v41  ;;  %v7260_v53 = vand.u32 2147483648, %v12484_v41 }
 0xbb6   :  { %v7021_v16 = vpop.f32.mrf.mxu0  ;;  %vm7254_vm9 = vweird.f32 %v12484_v41 }
 0xbb7   :  { %v7237_v24 = vmul.f32 %v9636_v55, %v7236_v56  ;;  %v7022_v4 = vadd.f32 %v12470_v57, %v7021_v16  ;;  %v6928_v23 = vpack.c.bf16 %v6907_v46, %v6906_v38  ;;  %v7261_v19 = vor.u32 1.1754944e-38, %v7260_v53 }
 0xbb8   :  { %v6772_v40 = vpop.f32.mrf.mxu2  ;;  %v6861_v42 = vpop.f32.mrf.mxu3  ;;  %vm7259_vm11 = vcmp.eq.f32.partialorder %v7258_v0, 8.507059e+37 }
 0xbb9   :  { %v9638_v21 = vpop.eup %9637  ;;  %v7238_v33 = vadd.f32 %v9636_v55, %v7237_v24  ;;  %v9197_v13 = vmul.f32 -1.442695, %v7022_v4  ;;  %v6685_v17 = vpop.f32.mrf.mxu1  ;;  %7060 = vmatmul.bf16.gmra.mxu0 %v6928_v23  ;;  %v6773_v62 = vadd.f32 %v6772_v40, %v6684_v29 }
 0xbba   :  { %v9640_v47 = vpop.eup %9639  ;;  %v12490_v50 = vadd.f32 1.0, %v9638_v21  ;;  %v6686_v35 = vadd.f32 %v6685_v17, %v6597_v54 }
 0xbbb   :  { %v7242_v34 = vsel %vm7241_vm6, %v9636_v55, %v7238_v33  ;;  %v7250_v5 = vmul.f32 %v9640_v47, %v12484_v41  ;;  %9641 = vpow2.f32 %v9197_v13  ;;  %vm7255_vm8 = vweird.f32 %v9640_v47 }
 0xbbc   :  { %v7247_v26 = vsel %vm7244_vm7, %v7246_v45, %v7242_v34  ;;  %9643 = vrcp.f32 %v12490_v50  ;;  %vm7256_vm10 = vmor %vm7254_vm9, %vm7255_vm8  ;;  %v6862_v52 = vadd.f32 %v6861_v42, %v6773_v62  ;;  %v7273_v41 = vand.u32 2147483647, %v12490_v50 }
 0xbbd   :  { %7700 = vst [vmem:[#allocation14 + $0x8] sm:$0xff] %v7247_v26  ;;  %v7251_v37 = vsub.f32 1.0, %v7250_v5  ;;  %v7275_v58 = vand.u32 2147483648, %v12490_v50  ;;  %vm7269_vm13 = vweird.f32 %v12490_v50  ;;  %v6600_v42 = vadd.f32 %v12376_v27, %v12422_v3 }
 0xbbe   :  { %v7023_v44 = vpop.f32.mrf.mxu0  ;;  %v6908_v48 = vmax.f32 %v6862_v52, 0.0  ;;  %vm7274_vm15 = vcmp.eq.f32.partialorder %v7273_v41, 8.507059e+37 }
 0xbbf   :  { %v7252_v28 = vmul.f32 %v9640_v47, %v7251_v37  ;;  %v7024_v18 = vadd.f32 %v12470_v57, %v7023_v44  ;;  %v7276_v21 = vor.u32 1.1754944e-38, %v7275_v58 }
 0xbc0   :  { %v6774_v12 = vpop.f32.mrf.mxu2  ;;  %v6863_v32 = vpop.f32.mrf.mxu3 }
 0xbc1   :  { %v9642_v1 = vpop.eup %9641  ;;  %v7253_v63 = vadd.f32 %v9640_v47, %v7252_v28  ;;  %v9198_v6 = vmul.f32 -1.442695, %v7024_v18  ;;  %v6775_v43 = vadd.f32 %v6774_v12, %v6686_v35  ;;  %v6688_v25 = vpop.f32.mrf.mxu1 }
 0xbc2   :  { %v9644_v20 = vpop.eup %9643  ;;  %v12500_v51 = vadd.f32 1.0, %v9642_v1 }
 0xbc3   :  { %v7257_v60 = vsel %vm7256_vm10, %v9640_v47, %v7253_v63  ;;  %v7265_v59 = vmul.f32 %v9644_v20, %v12490_v50  ;;  %9645 = vpow2.f32 %v9198_v6  ;;  %v6864_v36 = vadd.f32 %v6863_v32, %v6775_v43 }
 0xbc4   :  { %v7262_v11 = vsel %vm7259_vm11, %v7261_v19, %v7257_v60  ;;  %9647 = vrcp.f32 %v12500_v51  ;;  %vm7270_vm12 = vweird.f32 %v9644_v20  ;;  %v6689_v47 = vadd.f32 %v6688_v25, %v6600_v42 }
 0xbc5   :  { %7701 = vst [vmem:[#allocation14 + $0x10] sm:$0xff] %v7262_v11  ;;  %v7266_v55 = vsub.f32 1.0, %v7265_v59  ;;  %v6909_v56 = vmax.f32 %v6864_v36, 0.0  ;;  %vm7271_vm14 = vmor %vm7269_vm13, %vm7270_vm12  ;;  %v7288_v3 = vand.u32 2147483647, %v12500_v51  ;;  %v7290_v50 = vand.u32 2147483648, %v12500_v51 }
 0xbc6   :  { %v7026_v22 = vpop.f32.mrf.mxu0  ;;  %vm7284_vm1 = vweird.f32 %v12500_v51 }
 0xbc7   :  { %v7267_v10 = vmul.f32 %v9644_v20, %v7266_v55  ;;  %v7027_v2 = vadd.f32 %v12470_v57, %v7026_v22  ;;  %v6929_v24 = vpack.c.bf16 %v6909_v56, %v6908_v48  ;;  %v7291_v18 = vor.u32 1.1754944e-38, %v7290_v50 }
 0xbc8   :  { %v6777_v31 = vpop.f32.mrf.mxu2  ;;  %v6866_v14 = vpop.f32.mrf.mxu3  ;;  %vm7289_vm3 = vcmp.eq.f32.partialorder %v7288_v3, 8.507059e+37 }
 0xbc9   :  { %v9646_v38 = vpop.eup %9645  ;;  %v7268_v16 = vadd.f32 %v9644_v20, %v7267_v10  ;;  %v9199_v46 = vmul.f32 -1.442695, %v7027_v2  ;;  %v6690_v4 = vpop.f32.mrf.mxu1  ;;  %7065 = vmatmul.bf16.gmra.mxu0 %v6929_v24  ;;  %v6778_v34 = vadd.f32 %v6777_v31, %v6689_v47  ;;  %v6605_v2 = vadd.f32 %v12376_v27, %v12435_v30 }
 0xbca   :  { %v9648_v40 = vpop.eup %9647  ;;  %v12510_v33 = vadd.f32 1.0, %v9646_v38  ;;  %v6691_v29 = vadd.f32 %v6690_v4, %v6602_v49  ;;  %v6607_v4 = vadd.f32 %v12376_v27, %v12440_v39 }
 0xbcb   :  { %v7272_v23 = vsel %vm7271_vm14, %v9644_v20, %v7268_v16  ;;  %v7280_v13 = vmul.f32 %v9648_v40, %v12500_v51  ;;  %9649 = vpow2.f32 %v9199_v46  ;;  %vm7285_vm0 = vweird.f32 %v9648_v40 }
 0xbcc   :  { %v7277_v17 = vsel %vm7274_vm15, %v7276_v21, %v7272_v23  ;;  %9651 = vrcp.f32 %v12510_v33  ;;  %vm7286_vm2 = vmor %vm7284_vm1, %vm7285_vm0  ;;  %v6867_v32 = vadd.f32 %v6866_v14, %v6778_v34  ;;  %v7303_v20 = vand.u32 2147483647, %v12510_v33 }
 0xbcd   :  { %7702 = vst [vmem:[#allocation14 + $0x18] sm:$0xff] %v7277_v17  ;;  %v7281_v45 = vsub.f32 1.0, %v7280_v13  ;;  %v7305_v19 = vand.u32 2147483648, %v12510_v33  ;;  %vm7299_vm5 = vweird.f32 %v12510_v33 }
 0xbce   :  { %v7028_v5 = vpop.f32.mrf.mxu0  ;;  %v6910_v51 = vmax.f32 %v6867_v32, 0.0  ;;  %vm7304_vm7 = vcmp.eq.f32.partialorder %v7303_v20, 8.507059e+37 }
 0xbcf   :  { %v7282_v26 = vmul.f32 %v9648_v40, %v7281_v45  ;;  %v7029_v54 = vadd.f32 %v12470_v57, %v7028_v5  ;;  %v7306_v31 = vor.u32 1.1754944e-38, %v7305_v19 }
 0xbd0   :  { %v6779_v37 = vpop.f32.mrf.mxu2  ;;  %v6868_v0 = vpop.f32.mrf.mxu3 }
 0xbd1   :  { %v9650_v53 = vpop.eup %9649  ;;  %v7283_v62 = vadd.f32 %v9648_v40, %v7282_v26  ;;  %v9200_v61 = vmul.f32 -1.442695, %v7029_v54  ;;  %v6780_v44 = vadd.f32 %v6779_v37, %v6691_v29  ;;  %v6693_v28 = vpop.f32.mrf.mxu1 }
 0xbd2   :  { %v9652_v35 = vpop.eup %9651  ;;  %v12520_v12 = vadd.f32 1.0, %v9650_v53  ;;  %v6694_v46 = vadd.f32 %v6693_v28, %v6605_v2 }
 0xbd3   :  { %v7287_v1 = vsel %vm7286_vm2, %v9648_v40, %v7283_v62  ;;  %v7295_v63 = vmul.f32 %v9652_v35, %v12510_v33  ;;  %9653 = vpow2.f32 %v9200_v61  ;;  %v6869_v25 = vadd.f32 %v6868_v0, %v6780_v44 }
 0xbd4   :  { %v7292_v6 = vsel %vm7289_vm3, %v7291_v18, %v7287_v1  ;;  %9655 = vrcp.f32 %v12520_v12  ;;  %vm7300_vm4 = vweird.f32 %v9652_v35  ;;  %v7318_v30 = vand.u32 2147483647, %v12520_v12 }
 0xbd5   :  { %7703 = vst [vmem:[#allocation14 + $0x20] sm:$0xff] %v7292_v6  ;;  %v7296_v43 = vsub.f32 1.0, %v7295_v63  ;;  %v6911_v59 = vmax.f32 %v6869_v25, 0.0  ;;  %vm7301_vm6 = vmor %vm7299_vm5, %vm7300_vm4  ;;  %v7320_v42 = vand.u32 2147483648, %v12520_v12  ;;  %vm7314_vm9 = vweird.f32 %v12520_v12 }
 0xbd6   :  { %v7031_v52 = vpop.f32.mrf.mxu0  ;;  %vm7319_vm11 = vcmp.eq.f32.partialorder %v7318_v30, 8.507059e+37 }
 0xbd7   :  { %v7297_v60 = vmul.f32 %v9652_v35, %v7296_v43  ;;  %v7032_v11 = vadd.f32 %v12470_v57, %v7031_v52  ;;  %v6930_v48 = vpack.c.bf16 %v6911_v59, %v6910_v51  ;;  %v7321_v26 = vor.u32 1.1754944e-38, %v7320_v42 }
 0xbd8   :  { %v6782_v55 = vpop.f32.mrf.mxu2  ;;  %v6871_v36 = vpop.f32.mrf.mxu3 }
 0xbd9   :  { %v9654_v41 = vpop.eup %9653  ;;  %v7298_v58 = vadd.f32 %v9652_v35, %v7297_v60  ;;  %v9201_v22 = vmul.f32 -1.442695, %v7032_v11  ;;  %v6695_v10 = vpop.f32.mrf.mxu1  ;;  %7070 = vmatmul.bf16.gmra.mxu0 %v6930_v48  ;;  %v6783_v21 = vadd.f32 %v6782_v55, %v6694_v46  ;;  %v6610_v60 = vadd.f32 %v12376_v27, %v12448_v8 }
 0xbda   :  { %v9656_v56 = vpop.eup %9655  ;;  %v12530_v14 = vadd.f32 1.0, %v9654_v41  ;;  %v6696_v13 = vadd.f32 %v6695_v10, %v6607_v4  ;;  %v6612_v48 = vadd.f32 %v12376_v27, %v12455_v15 }
 0xbdb   :  { %v7302_v38 = vsel %vm7301_vm6, %v9652_v35, %v7298_v58  ;;  %v7310_v16 = vmul.f32 %v9656_v56, %v12520_v12  ;;  %9657 = vpow2.f32 %v9201_v22  ;;  %vm7315_vm8 = vweird.f32 %v9656_v56 }
 0xbdc   :  { %v7307_v24 = vsel %vm7304_vm7, %v7306_v31, %v7302_v38  ;;  %9659 = vrcp.f32 %v12530_v14  ;;  %vm7316_vm10 = vmor %vm7314_vm9, %vm7315_vm8  ;;  %v6872_v54 = vadd.f32 %v6871_v36, %v6783_v21  ;;  %v7333_v44 = vand.u32 2147483647, %v12530_v14 }
 0xbdd   :  { %7704 = vst [vmem:[#allocation14 + $0x28] sm:$0xff] %v7307_v24  ;;  %v7311_v40 = vsub.f32 1.0, %v7310_v16  ;;  %v7335_v28 = vand.u32 2147483648, %v12530_v14  ;;  %vm7329_vm13 = vweird.f32 %v12530_v14 }
 0xbde   :  { %v7033_v33 = vpop.f32.mrf.mxu0  ;;  %v6912_v35 = vmax.f32 %v6872_v54, 0.0  ;;  %vm7334_vm15 = vcmp.eq.f32.partialorder %v7333_v44, 8.507059e+37 }
 0xbdf   :  { %v7312_v23 = vmul.f32 %v9656_v56, %v7311_v40  ;;  %v7034_v17 = vadd.f32 %v12470_v57, %v7033_v33  ;;  %v7336_v59 = vor.u32 1.1754944e-38, %v7335_v28 }
 0xbe0   :  { %v6784_v47 = vpop.f32.mrf.mxu2  ;;  %v6873_v49 = vpop.f32.mrf.mxu3 }
 0xbe1   :  { %v9658_v45 = vpop.eup %9657  ;;  %v7313_v3 = vadd.f32 %v9656_v56, %v7312_v23  ;;  %v9202_v39 = vmul.f32 -1.442695, %v7034_v17  ;;  %v6785_v50 = vadd.f32 %v6784_v47, %v6696_v13  ;;  %v6698_v34 = vpop.f32.mrf.mxu1 }
 0xbe2   :  { %v9660_v5 = vpop.eup %9659  ;;  %v12540_v29 = vadd.f32 1.0, %v9658_v45  ;;  %v6699_v58 = vadd.f32 %v6698_v34, %v6610_v60 }
 0xbe3   :  { %v7317_v37 = vsel %vm7316_vm10, %v9656_v56, %v7313_v3  ;;  %v7325_v0 = vmul.f32 %v9660_v5, %v12530_v14  ;;  %9661 = vpow2.f32 %v9202_v39  ;;  %v6874_v61 = vadd.f32 %v6873_v49, %v6785_v50 }
 0xbe4   :  { %v7322_v53 = vsel %vm7319_vm11, %v7321_v26, %v7317_v37  ;;  %9663 = vrcp.f32 %v12540_v29  ;;  %vm7330_vm12 = vweird.f32 %v9660_v5  ;;  %v7348_v8 = vand.u32 2147483647, %v12540_v29 }
 0xbe5   :  { %7705 = vst [vmem:[#allocation14 + $0x30] sm:$0xff] %v7322_v53  ;;  %v7326_v62 = vsub.f32 1.0, %v7325_v0  ;;  %v6913_v32 = vmax.f32 %v6874_v61, 0.0  ;;  %vm7331_vm14 = vmor %vm7329_vm13, %vm7330_vm12  ;;  %v7350_v10 = vand.u32 2147483648, %v12540_v29  ;;  %vm7344_vm1 = vweird.f32 %v12540_v29  ;;  %v9759_v61 = vld [vmem:[%s12613_s6] ss:$0 sm:$0xff] }
 0xbe6   :  { %v7036_v18 = vpop.f32.mrf.mxu0  ;;  %vm7349_vm3 = vcmp.eq.f32.partialorder %v7348_v8, 8.507059e+37  ;;  %v6615_v44 = vadd.f32 %v9759_v61, %v12459_v9 }
 0xbe7   :  { %v7327_v12 = vmul.f32 %v9660_v5, %v7326_v62  ;;  %v7037_v1 = vadd.f32 %v12470_v57, %v7036_v18  ;;  %v6931_v20 = vpack.c.bf16 %v6913_v32, %v6912_v35  ;;  %v7351_v30 = vor.u32 1.1754944e-38, %v7350_v10 }
 0xbe8   :  { %v6787_v63 = vpop.f32.mrf.mxu2  ;;  %v6876_v6 = vpop.f32.mrf.mxu3 }
 0xbe9   :  { %v9662_v43 = vpop.eup %9661  ;;  %v7328_v25 = vadd.f32 %v9660_v5, %v7327_v12  ;;  %v9203_v19 = vmul.f32 -1.442695, %v7037_v1  ;;  %v6700_v51 = vpop.f32.mrf.mxu1  ;;  %7075 = vmatmul.bf16.gmra.mxu0 %v6931_v20  ;;  %v6788_v56 = vadd.f32 %v6787_v63, %v6699_v58 }
 0xbea   :  { %v9664_v52 = vpop.eup %9663  ;;  %v12550_v11 = vadd.f32 1.0, %v9662_v43  ;;  %v6701_v14 = vadd.f32 %v6700_v51, %v6612_v48  ;;  %v6617_v43 = vadd.f32 %v9759_v61, %v12465_v7 }
 0xbeb   :  { %v7332_v55 = vsel %vm7331_vm14, %v9660_v5, %v7328_v25  ;;  %v7340_v36 = vmul.f32 %v9664_v52, %v12540_v29  ;;  %9665 = vpow2.f32 %v9203_v19  ;;  %vm7345_vm0 = vweird.f32 %v9664_v52 }
 0xbec   :  { %v7337_v41 = vsel %vm7334_vm15, %v7336_v59, %v7332_v55  ;;  %9667 = vrcp.f32 %v12550_v11  ;;  %vm7346_vm2 = vmor %vm7344_vm1, %vm7345_vm0  ;;  %v6877_v21 = vadd.f32 %v6876_v6, %v6788_v56  ;;  %v7363_v45 = vand.u32 2147483647, %v12550_v11 }
 0xbed   :  { %7706 = vst [vmem:[#allocation14 + $0x38] sm:$0xff] %v7337_v41  ;;  %v7341_v22 = vsub.f32 1.0, %v7340_v36  ;;  %v7365_v3 = vand.u32 2147483648, %v12550_v11  ;;  %vm7359_vm5 = vweird.f32 %v12550_v11 }
 0xbee   :  { %v7038_v2 = vpop.f32.mrf.mxu0  ;;  %v6914_v39 = vmax.f32 %v6877_v21, 0.0  ;;  %vm7364_vm7 = vcmp.eq.f32.partialorder %v7363_v45, 8.507059e+37 }
 0xbef   :  { %v7342_v31 = vmul.f32 %v9664_v52, %v7341_v22  ;;  %v7039_v38 = vadd.f32 %v12470_v57, %v7038_v2  ;;  %v7366_v28 = vor.u32 1.1754944e-38, %v7365_v3 }
 0xbf0   :  { %v6789_v16 = vpop.f32.mrf.mxu2  ;;  %v6878_v24 = vpop.f32.mrf.mxu3 }
 0xbf1   :  { %v9666_v46 = vpop.eup %9665  ;;  %v7343_v4 = vadd.f32 %v9664_v52, %v7342_v31  ;;  %v9204_v27 = vmul.f32 -1.442695, %v7039_v38  ;;  %v6790_v15 = vadd.f32 %v6789_v16, %v6701_v14  ;;  %v6703_v33 = vpop.f32.mrf.mxu1 }
 0xbf2   :  { %v9668_v40 = vpop.eup %9667  ;;  %v12560_v42 = vadd.f32 1.0, %v9666_v46  ;;  %v6704_v63 = vadd.f32 %v6703_v33, %v6615_v44 }
 0xbf3   :  { %v7347_v23 = vsel %vm7346_vm2, %v9664_v52, %v7343_v4  ;;  %v7355_v13 = vmul.f32 %v9668_v40, %v12550_v11  ;;  %9669 = vpow2.f32 %v9204_v27  ;;  %v6879_v49 = vadd.f32 %v6878_v24, %v6790_v15 }
 0xbf4   :  { %v7352_v17 = vsel %vm7349_vm3, %v7351_v30, %v7347_v23  ;;  %9671 = vrcp.f32 %v12560_v42  ;;  %vm7360_vm4 = vweird.f32 %v9668_v40  ;;  %v7378_v9 = vand.u32 2147483647, %v12560_v42 }
 0xbf5   :  { %7707 = vst [vmem:[#allocation14 + $0x40] sm:$0xff] %v7352_v17  ;;  %v7356_v47 = vsub.f32 1.0, %v7355_v13  ;;  %v6915_v5 = vmax.f32 %v6879_v49, 0.0  ;;  %vm7361_vm6 = vmor %vm7359_vm5, %vm7360_vm4  ;;  %v7380_v20 = vand.u32 2147483648, %v12560_v42  ;;  %vm7374_vm9 = vweird.f32 %v12560_v42 }
 0xbf6   :  { %v7041_v50 = vpop.f32.mrf.mxu0  ;;  %vm7379_vm11 = vcmp.eq.f32.partialorder %v7378_v9, 8.507059e+37 }
 0xbf7   :  { %v7357_v34 = vmul.f32 %v9668_v40, %v7356_v47  ;;  %v7042_v26 = vadd.f32 %v12470_v57, %v7041_v50  ;;  %v6932_v0 = vpack.c.bf16 %v6915_v5, %v6914_v39  ;;  %v7381_v48 = vor.u32 1.1754944e-38, %v7380_v20 }
 0xbf8   :  { %v6792_v29 = vpop.f32.mrf.mxu2  ;;  %v6881_v18 = vpop.f32.mrf.mxu3 }
 0xbf9   :  { %v9670_v54 = vpop.eup %9669  ;;  %v7358_v37 = vadd.f32 %v9668_v40, %v7357_v34  ;;  %v9205_v53 = vmul.f32 -1.442695, %v7042_v26  ;;  %7080 = vmatmul.bf16.gmra.mxu0 %v6932_v0  ;;  %v6705_v6 = vpop.f32.mrf.mxu1  ;;  %v6793_v19 = vadd.f32 %v6792_v29, %v6704_v63 }
 0xbfa   :  { %v9672_v62 = vpop.eup %9671  ;;  %v7198_v35 = vadd.f32 1.0, %v9670_v54  ;;  %v6706_v60 = vadd.f32 %v6705_v6, %v6617_v43 }
 0xbfb   :  { %v7362_v12 = vsel %vm7361_vm6, %v9668_v40, %v7358_v37  ;;  %v7370_v32 = vmul.f32 %v9672_v62, %v12560_v42  ;;  %9673 = vpow2.f32 %v9205_v53  ;;  %vm7375_vm8 = vweird.f32 %v9672_v62 }
 0xbfc   :  { %v7367_v1 = vsel %vm7364_vm7, %v7366_v28, %v7362_v12  ;;  %9675 = vrcp.f32 %v7198_v35  ;;  %vm7376_vm10 = vmor %vm7374_vm9, %vm7375_vm8  ;;  %v6882_v8 = vadd.f32 %v6881_v18, %v6793_v19  ;;  %v7393_v16 = vand.u32 2147483647, %v7198_v35 }
 0xbfd   :  { %7708 = vst [vmem:[#allocation14 + $0x48] sm:$0xff] %v7367_v1  ;;  %v7371_v25 = vsub.f32 1.0, %v7370_v32  ;;  %v7395_v24 = vand.u32 2147483648, %v7198_v35  ;;  %vm7389_vm13 = vweird.f32 %v7198_v35 }
 0xbfe   :  { %v7043_v51 = vpop.f32.mrf.mxu0  ;;  %v6916_v46 = vmax.f32 %v6882_v8, 0.0  ;;  %vm7394_vm15 = vcmp.eq.f32.partialorder %v7393_v16, 8.507059e+37 }
 0xbff   :  { %v7372_v52 = vmul.f32 %v9672_v62, %v7371_v25  ;;  %v7044_v59 = vadd.f32 %v12470_v57, %v7043_v51  ;;  %v7396_v13 = vor.u32 1.1754944e-38, %v7395_v24 }
 0xc00   :  { %v6794_v11 = vpop.f32.mrf.mxu2  ;;  %v6883_v31 = vpop.f32.mrf.mxu3 }
 0xc01   :  { %v9674_v55 = vpop.eup %9673  ;;  %v7373_v36 = vadd.f32 %v9672_v62, %v7372_v52  ;;  %v9206_v41 = vmul.f32 -1.442695, %v7044_v59  ;;  %v6795_v7 = vadd.f32 %v6794_v11, %v6706_v60 }
 0xc02   :  { %v9676_v58 = vpop.eup %9675  ;;  %v7199_v22 = vadd.f32 1.0, %v9674_v55 }
 0xc03   :  { %v7377_v10 = vsel %vm7376_vm10, %v9672_v62, %v7373_v36  ;;  %v7385_v56 = vmul.f32 %v9676_v58, %v7198_v35  ;;  %9677 = vpow2.f32 %v9206_v41  ;;  %v6884_v38 = vadd.f32 %v6883_v31, %v6795_v7 }
 0xc04   :  { %v7382_v2 = vsel %vm7379_vm11, %v7381_v48, %v7377_v10  ;;  %9679 = vrcp.f32 %v7199_v22  ;;  %vm7390_vm12 = vweird.f32 %v9676_v58  ;;  %v7410_v39 = vand.u32 2147483648, %v7199_v22 }
 0xc05   :  { %7709 = vst [vmem:[#allocation14 + $0x50] sm:$0xff] %v7382_v2  ;;  %v7386_v14 = vsub.f32 1.0, %v7385_v56  ;;  %v6917_v15 = vmax.f32 %v6884_v38, 0.0  ;;  %vm7391_vm14 = vmor %vm7389_vm13, %vm7390_vm12  ;;  %v7408_v5 = vand.u32 2147483647, %v7199_v22  ;;  %vm7404_vm1 = vweird.f32 %v7199_v22 }
 0xc06   :  { %v7046_v4 = vpop.f32.mrf.mxu0  ;;  %v7411_v53 = vor.u32 1.1754944e-38, %v7410_v39 }
 0xc07   :  { %v7387_v27 = vmul.f32 %v9676_v58, %v7386_v14  ;;  %v7047_v40 = vadd.f32 %v12470_v57, %v7046_v4  ;;  %v6933_v21 = vpack.c.bf16 %v6917_v15, %v6916_v46  ;;  %vm7409_vm3 = vcmp.eq.f32.partialorder %v7408_v5, 8.507059e+37 }
 0xc09   :  { %v9678_v30 = vpop.eup %9677  ;;  %v7388_v42 = vadd.f32 %v9676_v58, %v7387_v27  ;;  %v9207_v33 = vmul.f32 -1.442695, %v7047_v40  ;;  %7085 = vmatmul.bf16.gmra.mxu0 %v6933_v21 }
 0xc0a   :  { %v9680_v23 = vpop.eup %9679  ;;  %v7200_v17 = vadd.f32 1.0, %v9678_v30 }
 0xc0b   :  { %v7392_v47 = vsel %vm7391_vm14, %v9676_v58, %v7388_v42  ;;  %v7400_v49 = vmul.f32 %v9680_v23, %v7199_v22  ;;  %9681 = vpow2.f32 %v9207_v33  ;;  %vm7405_vm0 = vweird.f32 %v9680_v23 }
 0xc0c   :  { %v7397_v45 = vsel %vm7394_vm15, %v7396_v13, %v7392_v47  ;;  %9683 = vrcp.f32 %v7200_v17  ;;  %vm7406_vm2 = vmor %vm7404_vm1, %vm7405_vm0  ;;  %v7425_v18 = vand.u32 2147483648, %v7200_v17  ;;  %v7423_v1 = vand.u32 2147483647, %v7200_v17 }
 0xc0d   :  { %7710 = vst [vmem:[#allocation14 + $0x58] sm:$0xff] %v7397_v45  ;;  %v7401_v3 = vsub.f32 1.0, %v7400_v49  ;;  %vm7419_vm5 = vweird.f32 %v7200_v17 }
 0xc0e   :  { %v7048_v50 = vpop.f32.mrf.mxu0  ;;  %v7426_v20 = vor.u32 1.1754944e-38, %v7425_v18  ;;  %vm7424_vm7 = vcmp.eq.f32.partialorder %v7423_v1, 8.507059e+37 }
 0xc0f   :  { %v7402_v34 = vmul.f32 %v9680_v23, %v7401_v3  ;;  %v7049_v26 = vadd.f32 %v12470_v57, %v7048_v50 }
 0xc11   :  { %v9682_v29 = vpop.eup %9681  ;;  %v7403_v54 = vadd.f32 %v9680_v23, %v7402_v34  ;;  %v9208_v37 = vmul.f32 -1.442695, %v7049_v26 }
 0xc12   :  { %v9684_v0 = vpop.eup %9683  ;;  %v7201_v62 = vadd.f32 1.0, %v9682_v29 }
 0xc13   :  { %v7407_v61 = vsel %vm7406_vm2, %v9680_v23, %v7403_v54  ;;  %v7415_v44 = vmul.f32 %v9684_v0, %v7200_v17  ;;  %9685 = vpow2.f32 %v9208_v37  ;;  %vm7420_vm4 = vweird.f32 %v9684_v0 }
 0xc14   :  { %v7412_v28 = vsel %vm7409_vm3, %v7411_v53, %v7407_v61  ;;  %9687 = vrcp.f32 %v7201_v62  ;;  %vm7421_vm6 = vmor %vm7419_vm5, %vm7420_vm4  ;;  %v7440_v11 = vand.u32 2147483648, %v7201_v62  ;;  %v7438_v41 = vand.u32 2147483647, %v7201_v62 }
 0xc15   :  { %7711 = vst [vmem:[#allocation14 + $0x60] sm:$0xff] %v7412_v28  ;;  %v7416_v35 = vsub.f32 1.0, %v7415_v44  ;;  %vm7434_vm9 = vweird.f32 %v7201_v62 }
 0xc16   :  { %v7051_v12 = vpop.f32.mrf.mxu0  ;;  %v7441_v10 = vor.u32 1.1754944e-38, %v7440_v11  ;;  %vm7439_vm11 = vcmp.eq.f32.partialorder %v7438_v41, 8.507059e+37 }
 0xc17   :  { %v7417_v32 = vmul.f32 %v9684_v0, %v7416_v35  ;;  %v7052_v63 = vadd.f32 %v12470_v57, %v7051_v12 }
 0xc19   :  { %v9686_v6 = vpop.eup %9685  ;;  %v7418_v43 = vadd.f32 %v9684_v0, %v7417_v32  ;;  %v9209_v25 = vmul.f32 -1.442695, %v7052_v63  ;;  %v12587_v32 = vld [vmem:[%s12615_s8] ss:$0 sm:$0xff]  ;;  %s9978_s8 = smov [#allocation14]  }
 0xc1a   :  { %v9688_v9 = vpop.eup %9687  ;;  %v7202_v19 = vadd.f32 1.0, %v9686_v6  ;;  %s7735_s29 = sshll.u32 %s9978_s8, 4  ;;  %s7736_s29 = int_to_ptr.vmem [resolvable:$true] %s7735_s29 }
 0xc1b   :  { %v7422_v51 = vsel %vm7421_vm6, %v9684_v0, %v7418_v43  ;;  %v7430_v52 = vmul.f32 %v9688_v9, %v7201_v62  ;;  %9689 = vpow2.f32 %v9209_v25  ;;  %vm7435_vm8 = vweird.f32 %v9688_v9 }
 0xc1c   :  { %v7427_v60 = vsel %vm7424_vm7, %v7426_v20, %v7422_v51  ;;  %9691 = vrcp.f32 %v7202_v19  ;;  %vm7436_vm10 = vmor %vm7434_vm9, %vm7435_vm8  ;;  %v7455_v16 = vand.u32 2147483648, %v7202_v19  ;;  %v7453_v4 = vand.u32 2147483647, %v7202_v19 }
 0xc1d   :  { %7712 = vst [vmem:[#allocation14 + $0x68] sm:$0xff] %v7427_v60  ;;  %v7431_v59 = vsub.f32 1.0, %v7430_v52  ;;  %vm7449_vm13 = vweird.f32 %v7202_v19 }
 0xc1e   :  { %v7053_v55 = vpop.f32.mrf.mxu0  ;;  %v7456_v21 = vor.u32 1.1754944e-38, %v7455_v16  ;;  %vm7454_vm15 = vcmp.eq.f32.partialorder %v7453_v4, 8.507059e+37 }
 0xc1f   :  { %v7432_v36 = vmul.f32 %v9688_v9, %v7431_v59  ;;  %v7054_v7 = vadd.f32 %v12470_v57, %v7053_v55 }
 0xc21   :  { %v9690_v58 = vpop.eup %9689  ;;  %v7433_v48 = vadd.f32 %v9688_v9, %v7432_v36  ;;  %v9210_v22 = vmul.f32 -1.442695, %v7054_v7 }
 0xc22   :  { %v9692_v8 = vpop.eup %9691  ;;  %v7203_v56 = vadd.f32 1.0, %v9690_v58 }
 0xc23   :  { %v7437_v2 = vsel %vm7436_vm10, %v9688_v9, %v7433_v48  ;;  %v7445_v31 = vmul.f32 %v9692_v8, %v7202_v19  ;;  %9693 = vpow2.f32 %v9210_v22  ;;  %vm7450_vm12 = vweird.f32 %v9692_v8 }
 0xc24   :  { %v7442_v14 = vsel %vm7439_vm11, %v7441_v10, %v7437_v2  ;;  %9695 = vrcp.f32 %v7203_v56  ;;  %vm7451_vm14 = vmor %vm7449_vm13, %vm7450_vm12  ;;  %v7470_v49 = vand.u32 2147483648, %v7203_v56  ;;  %v7468_v39 = vand.u32 2147483647, %v7203_v56 }
 0xc25   :  { %7713 = vst [vmem:[#allocation14 + $0x70] sm:$0xff] %v7442_v14  ;;  %v7446_v38 = vsub.f32 1.0, %v7445_v31  ;;  %vm7464_vm1 = vweird.f32 %v7203_v56 }
 0xc26   :  { %v7056_v24 = vpop.f32.mrf.mxu0  ;;  %v7471_v54 = vor.u32 1.1754944e-38, %v7470_v49  ;;  %vm7469_vm3 = vcmp.eq.f32.partialorder %v7468_v39, 8.507059e+37 }
 0xc27   :  { %v7447_v46 = vmul.f32 %v9692_v8, %v7446_v38  ;;  %v7057_v27 = vadd.f32 %v12470_v57, %v7056_v24 }
 0xc29   :  { %v9694_v15 = vpop.eup %9693  ;;  %v7448_v40 = vadd.f32 %v9692_v8, %v7447_v46  ;;  %v9211_v30 = vmul.f32 -1.442695, %v7057_v27 }
 0xc2a   :  { %v9696_v42 = vpop.eup %9695  ;;  %v7204_v33 = vadd.f32 1.0, %v9694_v15 }
 0xc2b   :  { %v7452_v23 = vsel %vm7451_vm14, %v9692_v8, %v7448_v40  ;;  %v7460_v13 = vmul.f32 %v9696_v42, %v7203_v56  ;;  %9697 = vpow2.f32 %v9211_v30  ;;  %vm7465_vm0 = vweird.f32 %v9696_v42 }
 0xc2c   :  { %v7457_v17 = vsel %vm7454_vm15, %v7456_v21, %v7452_v23  ;;  %9699 = vrcp.f32 %v7204_v33  ;;  %vm7466_vm2 = vmor %vm7464_vm1, %vm7465_vm0  ;;  %v7485_v44 = vand.u32 2147483648, %v7204_v33  ;;  %vm7479_vm5 = vweird.f32 %v7204_v33 }
 0xc2d   :  { %7714 = vst [vmem:[#allocation14 + $0x78] sm:$0xff] %v7457_v17  ;;  %v7461_v47 = vsub.f32 1.0, %v7460_v13 }
 0xc2e   :  { %v7058_v45 = vpop.f32.mrf.mxu0  ;;  %v7486_v6 = vor.u32 1.1754944e-38, %v7485_v44 }
 0xc2f   :  { %v7462_v3 = vmul.f32 %v9696_v42, %v7461_v47  ;;  %v7059_v50 = vadd.f32 %v12470_v57, %v7058_v45  ;;  %v7483_v57 = vand.u32 2147483647, %v7204_v33 }
 0xc31   :  { %v9698_v34 = vpop.eup %9697  ;;  %v7463_v5 = vadd.f32 %v9696_v42, %v7462_v3  ;;  %v9212_v26 = vmul.f32 -1.442695, %v7059_v50  ;;  %vm7484_vm7 = vcmp.eq.f32.partialorder %v7483_v57, 8.507059e+37 }
 0xc32   :  { %v9700_v29 = vpop.eup %9699  ;;  %v7205_v37 = vadd.f32 1.0, %v9698_v34 }
 0xc33   :  { %v7467_v0 = vsel %vm7466_vm2, %v9696_v42, %v7463_v5  ;;  %v7475_v53 = vmul.f32 %v9700_v29, %v7204_v33  ;;  %9701 = vpow2.f32 %v9212_v26  ;;  %vm7480_vm4 = vweird.f32 %v9700_v29 }
 0xc34   :  { %v7472_v62 = vsel %vm7469_vm3, %v7471_v54, %v7467_v0  ;;  %9703 = vrcp.f32 %v7205_v37  ;;  %vm7481_vm6 = vmor %vm7479_vm5, %vm7480_vm4  ;;  %v7500_v52 = vand.u32 2147483648, %v7205_v37  ;;  %v7498_v59 = vand.u32 2147483647, %v7205_v37 }
 0xc35   :  { %7715 = vst [vmem:[#allocation14 + $0x80] sm:$0xff] %v7472_v62  ;;  %v7476_v61 = vsub.f32 1.0, %v7475_v53  ;;  %vm7494_vm9 = vweird.f32 %v7205_v37 }
 0xc36   :  { %v7061_v35 = vpop.f32.mrf.mxu0  ;;  %v7501_v7 = vor.u32 1.1754944e-38, %v7500_v52  ;;  %vm7499_vm11 = vcmp.eq.f32.partialorder %v7498_v59, 8.507059e+37 }
 0xc37   :  { %v7477_v28 = vmul.f32 %v9700_v29, %v7476_v61  ;;  %v7062_v1 = vadd.f32 %v12587_v32, %v7061_v35 }
 0xc39   :  { %v9702_v18 = vpop.eup %9701  ;;  %v7478_v12 = vadd.f32 %v9700_v29, %v7477_v28  ;;  %v9213_v20 = vmul.f32 -1.442695, %v7062_v1 }
 0xc3a   :  { %v9704_v63 = vpop.eup %9703  ;;  %v7206_v43 = vadd.f32 1.0, %v9702_v18 }
 0xc3b   :  { %v7482_v25 = vsel %vm7481_vm6, %v9700_v29, %v7478_v12  ;;  %v7490_v9 = vmul.f32 %v9704_v63, %v7205_v37  ;;  %vm7495_vm8 = vweird.f32 %v9704_v63 }
 0xc3c   :  { %v7487_v19 = vsel %vm7484_vm7, %v7486_v6, %v7482_v25  ;;  %9705 = vrcp.f32 %v7206_v43  ;;  %vm7496_vm10 = vmor %vm7494_vm9, %vm7495_vm8  ;;  %v7515_v31 = vand.u32 2147483648, %v7206_v43  ;;  %v7513_v38 = vand.u32 2147483647, %v7206_v43 }
 0xc3d   :  { %7716 = vst [vmem:[#allocation14 + $0x88] sm:$0xff] %v7487_v19  ;;  %v7491_v51 = vsub.f32 1.0, %v7490_v9  ;;  %9707 = vpow2.f32 %v9213_v20  ;;  %vm7509_vm13 = vweird.f32 %v7206_v43 }
 0xc3e   :  { %v7063_v11 = vpop.f32.mrf.mxu0  ;;  %v7516_v4 = vor.u32 1.1754944e-38, %v7515_v31  ;;  %vm7514_vm15 = vcmp.eq.f32.partialorder %v7513_v38, 8.507059e+37 }
 0xc3f   :  { %v7492_v60 = vmul.f32 %v9704_v63, %v7491_v51  ;;  %v7064_v36 = vadd.f32 %v12587_v32, %v7063_v11 }
 0xc41   :  { %v7493_v55 = vadd.f32 %v9704_v63, %v7492_v60  ;;  %v9214_v8 = vmul.f32 -1.442695, %v7064_v36 }
 0xc42   :  { %v9706_v41 = vpop.eup %9705 }
 0xc43   :  { %v9708_v58 = vpop.eup %9707  ;;  %v7497_v48 = vsel %vm7496_vm10, %v9704_v63, %v7493_v55  ;;  %v7505_v22 = vmul.f32 %v9706_v41, %v7206_v43  ;;  %9709 = vpow2.f32 %v9214_v8  ;;  %vm7510_vm12 = vweird.f32 %v9706_v41 }
 0xc44   :  { %v7502_v10 = vsel %vm7499_vm11, %v7501_v7, %v7497_v48  ;;  %v7207_v56 = vadd.f32 1.0, %v9708_v58  ;;  %vm7511_vm14 = vmor %vm7509_vm13, %vm7510_vm12 }
 0xc45   :  { %7717 = vst [vmem:[#allocation14 + $0x90] sm:$0xff] %v7502_v10  ;;  %v7506_v2 = vsub.f32 1.0, %v7505_v22 }
 0xc46   :  { %9711 = vrcp.f32 %v7207_v56  ;;  %v7066_v16 = vpop.f32.mrf.mxu0  ;;  %v7530_v13 = vand.u32 2147483648, %v7207_v56  ;;  %v7528_v49 = vand.u32 2147483647, %v7207_v56  ;;  %vm7524_vm1 = vweird.f32 %v7207_v56 }
 0xc47   :  { %v7507_v14 = vmul.f32 %v9706_v41, %v7506_v2  ;;  %v7067_v46 = vadd.f32 %v12587_v32, %v7066_v16 }
 0xc48   :  { %v7531_v5 = vor.u32 1.1754944e-38, %v7530_v13  ;;  %vm7529_vm3 = vcmp.eq.f32.partialorder %v7528_v49, 8.507059e+37 }
 0xc49   :  { %v7508_v24 = vadd.f32 %v9706_v41, %v7507_v14  ;;  %v9710_v27 = vpop.eup %9709  ;;  %v9215_v40 = vmul.f32 -1.442695, %v7067_v46 }
 0xc4a   :  { %v7208_v21 = vadd.f32 1.0, %v9710_v27 }
 0xc4b   :  { %v7512_v15 = vsel %vm7511_vm14, %v9706_v41, %v7508_v24  ;;  %9713 = vpow2.f32 %v9215_v40 }
 0xc4c   :  { %v9712_v30 = vpop.eup %9711  ;;  %v7517_v42 = vsel %vm7514_vm15, %v7516_v4, %v7512_v15  ;;  %9715 = vrcp.f32 %v7208_v21  ;;  %v7545_v53 = vand.u32 2147483648, %v7208_v21  ;;  %v7543_v44 = vand.u32 2147483647, %v7208_v21 }
 0xc4d   :  { %7718 = vst [vmem:[#allocation14 + $0x98] sm:$0xff] %v7517_v42  ;;  %v7520_v33 = vmul.f32 %v9712_v30, %v7207_v56  ;;  %vm7525_vm0 = vweird.f32 %v9712_v30  ;;  %vm7539_vm5 = vweird.f32 %v7208_v21 }
 0xc4e   :  { %v7068_v17 = vpop.f32.mrf.mxu0  ;;  %vm7526_vm2 = vmor %vm7524_vm1, %vm7525_vm0  ;;  %v7546_v1 = vor.u32 1.1754944e-38, %v7545_v53  ;;  %vm7544_vm7 = vcmp.eq.f32.partialorder %v7543_v44, 8.507059e+37 }
 0xc4f   :  { %v7521_v23 = vsub.f32 1.0, %v7520_v33  ;;  %v7069_v45 = vadd.f32 %v12587_v32, %v7068_v17 }
 0xc51   :  { %v7522_v47 = vmul.f32 %v9712_v30, %v7521_v23  ;;  %v9714_v3 = vpop.eup %9713  ;;  %v9216_v50 = vmul.f32 -1.442695, %v7069_v45 }
 0xc52   :  { %v9716_v34 = vpop.eup %9715  ;;  %v7209_v26 = vadd.f32 1.0, %v9714_v3 }
 0xc53   :  { %v7523_v39 = vadd.f32 %v9712_v30, %v7522_v47  ;;  %v7535_v54 = vmul.f32 %v9716_v34, %v7208_v21  ;;  %9717 = vpow2.f32 %v9216_v50  ;;  %vm7540_vm4 = vweird.f32 %v9716_v34 }
 0xc54   :  { %9719 = vrcp.f32 %v7209_v26  ;;  %vm7541_vm6 = vmor %vm7539_vm5, %vm7540_vm4  ;;  %v7560_v20 = vand.u32 2147483648, %v7209_v26  ;;  %v7558_v52 = vand.u32 2147483647, %v7209_v26  ;;  %vm7554_vm9 = vweird.f32 %v7209_v26 }
 0xc55   :  { %v7527_v29 = vsel %vm7526_vm2, %v9712_v30, %v7523_v39  ;;  %v7536_v0 = vsub.f32 1.0, %v7535_v54 }
 0xc56   :  { %v7532_v37 = vsel %vm7529_vm3, %v7531_v5, %v7527_v29  ;;  %v7071_v62 = vpop.f32.mrf.mxu0  ;;  %v7561_v41 = vor.u32 1.1754944e-38, %v7560_v20  ;;  %vm7559_vm11 = vcmp.eq.f32.partialorder %v7558_v52, 8.507059e+37 }
 0xc57   :  { %7719 = vst [vmem:[#allocation14 + $0xa0] sm:$0xff] %v7532_v37  ;;  %v7537_v61 = vmul.f32 %v9716_v34, %v7536_v0  ;;  %v7072_v28 = vadd.f32 %v12587_v32, %v7071_v62 }
 0xc59   :  { %v9718_v57 = vpop.eup %9717  ;;  %v7538_v35 = vadd.f32 %v9716_v34, %v7537_v61  ;;  %v9217_v18 = vmul.f32 -1.442695, %v7072_v28 }
 0xc5a   :  { %v9720_v12 = vpop.eup %9719  ;;  %v7210_v63 = vadd.f32 1.0, %v9718_v57 }
 0xc5b   :  { %v7542_v6 = vsel %vm7541_vm6, %v9716_v34, %v7538_v35  ;;  %v7550_v43 = vmul.f32 %v9720_v12, %v7209_v26  ;;  %9721 = vpow2.f32 %v9217_v18  ;;  %vm7555_vm8 = vweird.f32 %v9720_v12 }
 0xc5c   :  { %v7547_v25 = vsel %vm7544_vm7, %v7546_v1, %v7542_v6  ;;  %9723 = vrcp.f32 %v7210_v63  ;;  %vm7556_vm10 = vmor %vm7554_vm9, %vm7555_vm8  ;;  %v7575_v10 = vand.u32 2147483648, %v7210_v63  ;;  %v7573_v31 = vand.u32 2147483647, %v7210_v63 }
 0xc5d   :  { %7720 = vst [vmem:[#allocation14 + $0xa8] sm:$0xff] %v7547_v25  ;;  %v7551_v9 = vsub.f32 1.0, %v7550_v43  ;;  %vm7569_vm13 = vweird.f32 %v7210_v63 }
 0xc5e   :  { %v7073_v19 = vpop.f32.mrf.mxu0  ;;  %v7576_v4 = vor.u32 1.1754944e-38, %v7575_v10  ;;  %vm7574_vm15 = vcmp.eq.f32.partialorder %v7573_v31, 8.507059e+37 }
 0xc5f   :  { %v7552_v51 = vmul.f32 %v9720_v12, %v7551_v9  ;;  %v7074_v60 = vadd.f32 %v12587_v32, %v7073_v19 }
 0xc61   :  { %v9722_v59 = vpop.eup %9721  ;;  %v7553_v11 = vadd.f32 %v9720_v12, %v7552_v51  ;;  %v9218_v55 = vmul.f32 -1.442695, %v7074_v60 }
 0xc62   :  { %v9724_v36 = vpop.eup %9723  ;;  %v7211_v7 = vadd.f32 1.0, %v9722_v59 }
 0xc63   :  { %v7557_v58 = vsel %vm7556_vm10, %v9720_v12, %v7553_v11  ;;  %v7565_v48 = vmul.f32 %v9724_v36, %v7210_v63  ;;  %9725 = vpow2.f32 %v9218_v55  ;;  %vm7570_vm12 = vweird.f32 %v9724_v36 }
 0xc64   :  { %v7562_v22 = vsel %vm7559_vm11, %v7561_v41, %v7557_v58  ;;  %9727 = vrcp.f32 %v7211_v7  ;;  %vm7571_vm14 = vmor %vm7569_vm13, %vm7570_vm12  ;;  %v7590_v21 = vand.u32 2147483648, %v7211_v7  ;;  %v7588_v13 = vand.u32 2147483647, %v7211_v7 }
 0xc65   :  { %7721 = vst [vmem:[#allocation14 + $0xb0] sm:$0xff] %v7562_v22  ;;  %v7566_v8 = vsub.f32 1.0, %v7565_v48  ;;  %vm7584_vm1 = vweird.f32 %v7211_v7 }
 0xc66   :  { %v7076_v56 = vpop.f32.mrf.mxu0  ;;  %v7591_v39 = vor.u32 1.1754944e-38, %v7590_v21  ;;  %vm7589_vm3 = vcmp.eq.f32.partialorder %v7588_v13, 8.507059e+37 }
 0xc67   :  { %v7567_v2 = vmul.f32 %v9724_v36, %v7566_v8  ;;  %v7077_v14 = vadd.f32 %v12587_v32, %v7076_v56 }
 0xc69   :  { %v9726_v38 = vpop.eup %9725  ;;  %v7568_v16 = vadd.f32 %v9724_v36, %v7567_v2  ;;  %v9219_v24 = vmul.f32 -1.442695, %v7077_v14 }
 0xc6a   :  { %v9728_v46 = vpop.eup %9727  ;;  %v7212_v27 = vadd.f32 1.0, %v9726_v38 }
 0xc6b   :  { %v7572_v15 = vsel %vm7571_vm14, %v9724_v36, %v7568_v16  ;;  %v7580_v40 = vmul.f32 %v9728_v46, %v7211_v7  ;;  %9729 = vpow2.f32 %v9219_v24  ;;  %vm7585_vm0 = vweird.f32 %v9728_v46 }
 0xc6c   :  { %v7577_v30 = vsel %vm7574_vm15, %v7576_v4, %v7572_v15  ;;  %9731 = vrcp.f32 %v7212_v27  ;;  %vm7586_vm2 = vmor %vm7584_vm1, %vm7585_vm0  ;;  %v7605_v54 = vand.u32 2147483648, %v7212_v27  ;;  %v7603_v53 = vand.u32 2147483647, %v7212_v27 }
 0xc6d   :  { %7722 = vst [vmem:[#allocation14 + $0xb8] sm:$0xff] %v7577_v30  ;;  %v7581_v42 = vsub.f32 1.0, %v7580_v40  ;;  %vm7599_vm5 = vweird.f32 %v7212_v27 }
 0xc6e   :  { %v7078_v33 = vpop.f32.mrf.mxu0  ;;  %v7606_v35 = vor.u32 1.1754944e-38, %v7605_v54  ;;  %vm7604_vm7 = vcmp.eq.f32.partialorder %v7603_v53, 8.507059e+37 }
 0xc6f   :  { %v7582_v23 = vmul.f32 %v9728_v46, %v7581_v42  ;;  %v7079_v17 = vadd.f32 %v12587_v32, %v7078_v33 }
 0xc71   :  { %v9730_v47 = vpop.eup %9729  ;;  %v7583_v49 = vadd.f32 %v9728_v46, %v7582_v23  ;;  %v9220_v45 = vmul.f32 -1.442695, %v7079_v17 }
 0xc72   :  { %v9732_v3 = vpop.eup %9731  ;;  %v7213_v50 = vadd.f32 1.0, %v9730_v47 }
 0xc73   :  { %v7587_v34 = vsel %vm7586_vm2, %v9728_v46, %v7583_v49  ;;  %v7595_v5 = vmul.f32 %v9732_v3, %v7212_v27  ;;  %9733 = vpow2.f32 %v9220_v45  ;;  %vm7600_vm4 = vweird.f32 %v9732_v3 }
 0xc74   :  { %v7592_v26 = vsel %vm7589_vm3, %v7591_v39, %v7587_v34  ;;  %9735 = vrcp.f32 %v7213_v50  ;;  %vm7601_vm6 = vmor %vm7599_vm5, %vm7600_vm4  ;;  %v7620_v43 = vand.u32 2147483648, %v7213_v50  ;;  %v7618_v20 = vand.u32 2147483647, %v7213_v50 }
 0xc75   :  { %7723 = vst [vmem:[#allocation14 + $0xc0] sm:$0xff] %v7592_v26  ;;  %v7596_v29 = vsub.f32 1.0, %v7595_v5  ;;  %vm7614_vm9 = vweird.f32 %v7213_v50 }
 0xc76   :  { %v7081_v37 = vpop.f32.mrf.mxu0  ;;  %v7621_v11 = vor.u32 1.1754944e-38, %v7620_v43  ;;  %vm7619_vm11 = vcmp.eq.f32.partialorder %v7618_v20, 8.507059e+37 }
 0xc77   :  { %v7597_v0 = vmul.f32 %v9732_v3, %v7596_v29  ;;  %v7082_v62 = vadd.f32 %v12587_v32, %v7081_v37 }
 0xc79   :  { %v9734_v61 = vpop.eup %9733  ;;  %v7598_v44 = vadd.f32 %v9732_v3, %v7597_v0  ;;  %v9221_v28 = vmul.f32 -1.442695, %v7082_v62 }
 0xc7a   :  { %v9736_v57 = vpop.eup %9735  ;;  %v7214_v18 = vadd.f32 1.0, %v9734_v61 }
 0xc7b   :  { %v7602_v12 = vsel %vm7601_vm6, %v9732_v3, %v7598_v44  ;;  %v7610_v1 = vmul.f32 %v9736_v57, %v7213_v50  ;;  %9737 = vpow2.f32 %v9221_v28  ;;  %vm7615_vm8 = vweird.f32 %v9736_v57 }
 0xc7c   :  { %v7607_v63 = vsel %vm7604_vm7, %v7606_v35, %v7602_v12  ;;  %9739 = vrcp.f32 %v7214_v18  ;;  %vm7616_vm10 = vmor %vm7614_vm9, %vm7615_vm8  ;;  %v7635_v48 = vand.u32 2147483648, %v7214_v18  ;;  %v7633_v10 = vand.u32 2147483647, %v7214_v18 }
 0xc7d   :  { %7724 = vst [vmem:[#allocation14 + $0xc8] sm:$0xff] %v7607_v63  ;;  %v7611_v6 = vsub.f32 1.0, %v7610_v1  ;;  %vm7629_vm13 = vweird.f32 %v7214_v18 }
 0xc7e   :  { %v7083_v25 = vpop.f32.mrf.mxu0  ;;  %v7636_v16 = vor.u32 1.1754944e-38, %v7635_v48  ;;  %vm7634_vm15 = vcmp.eq.f32.partialorder %v7633_v10, 8.507059e+37 }
 0xc7f   :  { %v7612_v9 = vmul.f32 %v9736_v57, %v7611_v6  ;;  %v7084_v19 = vadd.f32 %v12587_v32, %v7083_v25 }
 0xc81   :  { %v9738_v51 = vpop.eup %9737  ;;  %v7613_v52 = vadd.f32 %v9736_v57, %v7612_v9  ;;  %v9222_v60 = vmul.f32 -1.442695, %v7084_v19 }
 0xc82   :  { %v9740_v59 = vpop.eup %9739  ;;  %v7215_v55 = vadd.f32 1.0, %v9738_v51 }
 0xc83   :  { %v7617_v36 = vsel %vm7616_vm10, %v9736_v57, %v7613_v52  ;;  %v7625_v41 = vmul.f32 %v9740_v59, %v7214_v18  ;;  %9741 = vpow2.f32 %v9222_v60  ;;  %vm7630_vm12 = vweird.f32 %v9740_v59 }
 0xc84   :  { %v7622_v7 = vsel %vm7619_vm11, %v7621_v11, %v7617_v36  ;;  %9743 = vrcp.f32 %v7215_v55  ;;  %vm7631_vm14 = vmor %vm7629_vm13, %vm7630_vm12  ;;  %v7650_v40 = vand.u32 2147483648, %v7215_v55  ;;  %v7648_v21 = vand.u32 2147483647, %v7215_v55 }
 0xc85   :  { %7725 = vst [vmem:[#allocation14 + $0xd0] sm:$0xff] %v7622_v7  ;;  %v7626_v58 = vsub.f32 1.0, %v7625_v41  ;;  %vm7644_vm1 = vweird.f32 %v7215_v55 }
 0xc86   :  { %v7086_v22 = vpop.f32.mrf.mxu0  ;;  %v7651_v49 = vor.u32 1.1754944e-38, %v7650_v40  ;;  %vm7649_vm3 = vcmp.eq.f32.partialorder %v7648_v21, 8.507059e+37 }
 0xc87   :  { %v7627_v8 = vmul.f32 %v9740_v59, %v7626_v58  ;;  %v7087_v56 = vadd.f32 %v12587_v32, %v7086_v22 }
 0xc89   :  { %v9742_v2 = vpop.eup %9741  ;;  %v7628_v31 = vadd.f32 %v9740_v59, %v7627_v8  ;;  %v9223_v14 = vmul.f32 -1.442695, %v7087_v56 }
 0xc8a   :  { %v9744_v38 = vpop.eup %9743  ;;  %v7216_v24 = vadd.f32 1.0, %v9742_v2 }
 0xc8b   :  { %v7632_v46 = vsel %vm7631_vm14, %v9740_v59, %v7628_v31  ;;  %v7640_v4 = vmul.f32 %v9744_v38, %v7215_v55  ;;  %9745 = vpow2.f32 %v9223_v14  ;;  %vm7645_vm0 = vweird.f32 %v9744_v38 }
 0xc8c   :  { %v7637_v27 = vsel %vm7634_vm15, %v7636_v16, %v7632_v46  ;;  %9747 = vrcp.f32 %v7216_v24  ;;  %vm7646_vm2 = vmor %vm7644_vm1, %vm7645_vm0  ;;  %v7665_v5 = vand.u32 2147483648, %v7216_v24  ;;  %vm7659_vm5 = vweird.f32 %v7216_v24 }
 0xc8d   :  { %7726 = vst [vmem:[#allocation14 + $0xd8] sm:$0xff] %v7637_v27  ;;  %v7641_v15 = vsub.f32 1.0, %v7640_v4 }
 0xc8e   :  { %v7088_v30 = vpop.f32.mrf.mxu0  ;;  %v7666_v0 = vor.u32 1.1754944e-38, %v7665_v5 }
 0xc8f   :  { %v7642_v42 = vmul.f32 %v9744_v38, %v7641_v15  ;;  %v7089_v33 = vadd.f32 %v12587_v32, %v7088_v30  ;;  %v7663_v32 = vand.u32 2147483647, %v7216_v24 }
 0xc91   :  { %v9746_v23 = vpop.eup %9745  ;;  %v7643_v13 = vadd.f32 %v9744_v38, %v7642_v42  ;;  %v9224_v17 = vmul.f32 -1.442695, %v7089_v33  ;;  %vm7664_vm7 = vcmp.eq.f32.partialorder %v7663_v32, 8.507059e+37 }
 0xc92   :  { %v9748_v47 = vpop.eup %9747  ;;  %v7217_v45 = vadd.f32 1.0, %v9746_v23 }
 0xc93   :  { %v7647_v3 = vsel %vm7646_vm2, %v9744_v38, %v7643_v13  ;;  %v7655_v39 = vmul.f32 %v9748_v47, %v7216_v24  ;;  %9749 = vpow2.f32 %v9224_v17  ;;  %vm7660_vm4 = vweird.f32 %v9748_v47 }
 0xc94   :  { %v7652_v50 = vsel %vm7649_vm3, %v7651_v49, %v7647_v3  ;;  %9751 = vrcp.f32 %v7217_v45  ;;  %vm7661_vm6 = vmor %vm7659_vm5, %vm7660_vm4  ;;  %v7680_v57 = vand.u32 2147483648, %v7217_v45  ;;  %v7678_v18 = vand.u32 2147483647, %v7217_v45 }
 0xc95   :  { %7727 = vst [vmem:[#allocation14 + $0xe0] sm:$0xff] %v7652_v50  ;;  %v7656_v34 = vsub.f32 1.0, %v7655_v39  ;;  %vm7674_vm9 = vweird.f32 %v7217_v45 }
 0xc96   :  { %v7681_v63 = vor.u32 1.1754944e-38, %v7680_v57  ;;  %vm7679_vm11 = vcmp.eq.f32.partialorder %v7678_v18, 8.507059e+37 }
 0xc97   :  { %v7657_v26 = vmul.f32 %v9748_v47, %v7656_v34 }
 0xc99   :  { %v9750_v29 = vpop.eup %9749  ;;  %v7658_v54 = vadd.f32 %v9748_v47, %v7657_v26 }
 0xc9a   :  { %v9752_v37 = vpop.eup %9751  ;;  %v7218_v53 = vadd.f32 1.0, %v9750_v29 }
 0xc9b   :  { %v7662_v62 = vsel %vm7661_vm6, %v9748_v47, %v7658_v54  ;;  %v7670_v61 = vmul.f32 %v9752_v37, %v7217_v45  ;;  %vm7675_vm8 = vweird.f32 %v9752_v37 }
 0xc9c   :  { %v7667_v44 = vsel %vm7664_vm7, %v7666_v0, %v7662_v62  ;;  %9753 = vrcp.f32 %v7218_v53  ;;  %vm7676_vm10 = vmor %vm7674_vm9, %vm7675_vm8  ;;  %v7695_v20 = vand.u32 2147483648, %v7218_v53  ;;  %v7693_v51 = vand.u32 2147483647, %v7218_v53 }
 0xc9d   :  { %7728 = vst [vmem:[#allocation14 + $0xe8] sm:$0xff] %v7667_v44  ;;  %v7671_v28 = vsub.f32 1.0, %v7670_v61  ;;  %vm7689_vm13 = vweird.f32 %v7218_v53 }
 0xc9e   :  { %v7696_v60 = vor.u32 1.1754944e-38, %v7695_v20  ;;  %vm7694_vm15 = vcmp.eq.f32.partialorder %v7693_v51, 8.507059e+37 }
 0xc9f   :  { %v7672_v35 = vmul.f32 %v9752_v37, %v7671_v28 }
 0xca1   :  { %v7673_v12 = vadd.f32 %v9752_v37, %v7672_v35 }
 0xca2   :  { %v9754_v1 = vpop.eup %9753 }
 0xca3   :  { %v7677_v6 = vsel %vm7676_vm10, %v9752_v37, %v7673_v12  ;;  %v7685_v43 = vmul.f32 %v9754_v1, %v7218_v53  ;;  %vm7690_vm12 = vweird.f32 %v9754_v1 }
 0xca4   :  { %v7682_v25 = vsel %vm7679_vm11, %v7681_v63, %v7677_v6  ;;  %vm7691_vm14 = vmor %vm7689_vm13, %vm7690_vm12 }
 0xca5   :  { %7729 = vst [vmem:[#allocation14 + $0xf0] sm:$0xff] %v7682_v25  ;;  %v7686_v9 = vsub.f32 1.0, %v7685_v43 }
 0xca7   :  { %v7687_v19 = vmul.f32 %v9754_v1, %v7686_v9 }
 0xca9   :  { %v7688_v52 = vadd.f32 %v9754_v1, %v7687_v19 }
 0xcab   :  { %v7692_v59 = vsel %vm7691_vm14, %v9754_v1, %v7688_v52 }
 0xcac   :  { %v7697_v11 = vsel %vm7694_vm15, %v7696_v60, %v7692_v59 }
 0xcad   :  { %7730 = vst [vmem:[#allocation14 + $0xf8] sm:$0xff] %v7697_v11 }
 0xcae   :  { %7743 = dma.vmem_to_hbm [thread:$0]  %s7736_s29, 4096, %s7738_s11, [#allocation4], %s9973_s12, %s9973_s12, %s9974_s5  }
 0xcaf   :  { %9961 = dma.done.wait [#allocation4], 4096  }
 0xcb0   :  { %9962 = vsyncadd [#allocation4], 4294963200 }
 0xcb1   :  { %7748 = vsyncpa [#allocation3], 1 }
 0xcb2   :  { %7749 = vsyncpa [#allocation6], 1 }
 0xcb3   :  { %7750 = vsyncpa [#allocation9], 1 }
 0xcb4   :  { %7751 = vsyncpa [#allocation12], 1 }
 0xcb5   :  { %7752 = vsyncpa [#allocation4], 1 }

</bundles_post_ra>
